<compile_context>
chip_gen: v5e
topology: v5e:2x2
jax: 0.10.0
libtpu: 0.0.40
codegen_flags: <defaults>
</compile_context>

<pallas_src>
import functools

import jax
import jax.numpy as jnp
from jax.experimental import pallas as pl
from jax.experimental.pallas import tpu as pltpu


# ----------------------------------------------------------------------------
# Pallas kernel: transposed conv-as-matmul  out^T = W @ A^T + b, ReLU
#   a_ref: (K, M)   w_ref: (OC, K)   b_ref: (OC, 1)   o_ref: (OC, M)
# Everything fits VMEM for these layer sizes, so a single grid step suffices
# and the result is written straight into the output block (no scratch).
# ----------------------------------------------------------------------------
def _conv_t_kernel(a_ref, w_ref, b_ref, o_ref):
    y = jnp.dot(w_ref[...], a_ref[...], preferred_element_type=jnp.float32)
    y = y + b_ref[...]
    o_ref[...] = jnp.maximum(y, 0.0).astype(o_ref.dtype)


def conv_t_pallas(a_t, w2d, b_col):
    """relu(W @ A^T + b) with lane-dense output.

    a_t: (K, M) f32, w2d: (OC, K) f32, b_col: (OC, 1) f32 -> (OC, M) f32.
    """
    K, M = a_t.shape
    OC, K2 = w2d.shape
    assert K == K2
    return pl.pallas_call(
        _conv_t_kernel,
        out_shape=jax.ShapeDtypeStruct((OC, M), jnp.float32),
        grid_spec=pltpu.PrefetchScalarGridSpec(
            num_scalar_prefetch=0,
            grid=(1,),
            in_specs=[
                pl.BlockSpec((K, M), lambda i: (0, 0)),
                pl.BlockSpec((OC, K), lambda i: (0, 0)),
                pl.BlockSpec((OC, 1), lambda i: (0, 0)),
            ],
            out_specs=pl.BlockSpec((OC, M), lambda i: (0, 0)),
        ),
        compiler_params=pltpu.CompilerParams(
            dimension_semantics=("arbitrary",)
        ),
    )(a_t, w2d, b_col)


# ----------------------------------------------------------------------------
# Pallas kernel: fused fc head
#   h = relu(x @ W1 + b1)  accumulated over K tiles in a VMEM scratch,
#   out = h @ W2 + b2      computed in the last-step epilogue.
# W1 is streamed as bf16 (f32 accumulation); x tile is cast to bf16 in-kernel.
# ----------------------------------------------------------------------------
def _fc_head_kernel(x_ref, w1_ref, b1_ref, w2_ref, b2_ref, o_ref, h_ref):
    k = pl.program_id(0)

    @pl.when(k == 0)
    def _():
        h_ref[...] = jnp.zeros_like(h_ref)

    h_ref[...] += jnp.dot(
        x_ref[...].astype(w1_ref.dtype),
        w1_ref[...],
        preferred_element_type=jnp.float32,
    )

    @pl.when(k == pl.num_programs(0) - 1)
    def _():
        h = jnp.maximum(h_ref[...] + b1_ref[...], 0.0)
        o_ref[...] = (
            jnp.dot(h, w2_ref[...], preferred_element_type=jnp.float32)
            + b2_ref[...]
        ).astype(o_ref.dtype)


def fc_head_pallas(x, w1, b1, w2, b2, *, tk):
    """Computes fc2(relu(fc1(x))) in one pallas_call.

    x: (M, K) f32; w1: (K, H) bf16; b1: (1, H) f32; w2: (H, N) f32; b2: (1, N).
    """
    M, K = x.shape
    K2, H = w1.shape
    assert K == K2 and K % tk == 0
    H2, N = w2.shape
    assert H == H2

    return pl.pallas_call(
        _fc_head_kernel,
        out_shape=jax.ShapeDtypeStruct((M, N), jnp.float32),
        grid_spec=pltpu.PrefetchScalarGridSpec(
            num_scalar_prefetch=0,
            grid=(K // tk,),
            in_specs=[
                pl.BlockSpec((M, tk), lambda k: (0, k)),
                pl.BlockSpec((tk, H), lambda k: (k, 0)),
                pl.BlockSpec((1, H), lambda k: (0, 0)),
                pl.BlockSpec((H, N), lambda k: (0, 0)),
                pl.BlockSpec((1, N), lambda k: (0, 0)),
            ],
            out_specs=pl.BlockSpec((M, N), lambda k: (0, 0)),
            scratch_shapes=[pltpu.VMEM((M, H), jnp.float32)],
        ),
        compiler_params=pltpu.CompilerParams(
            dimension_semantics=("arbitrary",)
        ),
    )(x, w1, b1, w2, b2)


# ----------------------------------------------------------------------------
# Plain-JAX glue: transposed im2col on (C, B, H, W) activations.
#   Returns A^T of shape (C*KH*KW, B*OH*OW), K ordered (c, kh, kw) to match the
#   flattened torch (OC, C, KH, KW) weight, M ordered (b, oh, ow).
# TODO(synk): in-kernel patch extraction would need strided lane reads, which
#             does not lower cleanly; patch extraction stays as XLA slices.
# ----------------------------------------------------------------------------
def im2col_t(x, kh, kw, stride, pad):
    if pad:
        x = jnp.pad(x, ((0, 0), (0, 0), (pad, pad), (pad, pad)))
    C, B, H, W = x.shape
    oh = (H - kh) // stride + 1
    ow = (W - kw) // stride + 1
    cols = []
    for i in range(kh):
        for j in range(kw):
            patch = x[:, :, i : i + stride * oh : stride, j : j + stride * ow : stride]
            cols.append(patch)  # (C, B, oh, ow)
    cols = jnp.stack(cols, axis=0).reshape(kh, kw, C, B, oh, ow)
    cols = cols.transpose(2, 0, 1, 3, 4, 5)  # (C, kh, kw, B, oh, ow)
    return cols.reshape(C * kh * kw, B * oh * ow), oh, ow


# ----------------------------------------------------------------------------
# Parameter init: torch-style uniform init, then pre-packed once into the
# kernel-friendly layouts (no transposes inside the jitted forward).
# ----------------------------------------------------------------------------
def init_params(key):
    keys = jax.random.split(key, 10)

    def u(k, shape, fan_in):
        bound = 1.0 / jnp.sqrt(fan_in)
        return jax.random.uniform(k, shape, jnp.float32, -bound, bound)

    conv1_w = u(keys[0], (32, 1, 8, 8), 1 * 8 * 8)
    conv1_b = u(keys[1], (32,), 1 * 8 * 8)
    conv2_w = u(keys[2], (64, 32, 4, 4), 32 * 4 * 4)
    conv2_b = u(keys[3], (64,), 32 * 4 * 4)
    conv3_w = u(keys[4], (128, 64, 3, 3), 64 * 3 * 3)
    conv3_b = u(keys[5], (128,), 64 * 3 * 3)
    fc1_w = u(keys[6], (512, 128 * 19 * 8), 128 * 19 * 8)  # torch (out, in)
    fc1_b = u(keys[7], (512,), 128 * 19 * 8)
    fc2_w = u(keys[8], (6, 512), 512)
    fc2_b = u(keys[9], (6,), 512)

    return {
        # conv weights flattened to (OC, C*KH*KW); biases as (OC, 1) columns.
        "conv1_w": conv1_w.reshape(32, 1 * 8 * 8),
        "conv1_b": conv1_b.reshape(32, 1),
        "conv2_w": conv2_w.reshape(64, 32 * 4 * 4),
        "conv2_b": conv2_b.reshape(64, 1),
        "conv3_w": conv3_w.reshape(128, 64 * 3 * 3),
        "conv3_b": conv3_b.reshape(128, 1),
        # fc1 weight pre-transposed to (K, N) and stored bf16 (streamed bf16,
        # accumulated f32 in-kernel).
        "fc1_w": fc1_w.T.astype(jnp.bfloat16),
        "fc1_b": fc1_b.reshape(1, 512),
        "fc2_w": fc2_w.T,                 # (512, 6)
        "fc2_b": fc2_b.reshape(1, 6),
    }


# ----------------------------------------------------------------------------
# DeepQNetwork forward
# ----------------------------------------------------------------------------
def deep_q_network_forward(params, observation):
    # observation.view(-1, 1, 185, 95)
    x = observation.reshape(-1, 1, 185, 95).astype(jnp.float32)
    B = x.shape[0]
    # Activations kept in (C, B, H, W) layout for the transposed conv pipeline.
    # C == 1 here, so this transpose is a free relabeling.
    x = x.transpose(1, 0, 2, 3)

    # conv1: Conv2d(1, 32, 8, stride=4, padding=1) + ReLU -> (32, B, 45, 23)
    a, oh, ow = im2col_t(x, 8, 8, 4, 1)
    y = conv_t_pallas(a, params["conv1_w"], params["conv1_b"])
    x = y.reshape(32, B, oh, ow)

    # conv2: Conv2d(32, 64, 4, stride=2) + ReLU -> (64, B, 21, 10)
    a, oh, ow = im2col_t(x, 4, 4, 2, 0)
    y = conv_t_pallas(a, params["conv2_w"], params["conv2_b"])
    x = y.reshape(64, B, oh, ow)

    # conv3: Conv2d(64, 128, 3) + ReLU -> (128, B, 19, 8)
    a, oh, ow = im2col_t(x, 3, 3, 1, 0)
    y = conv_t_pallas(a, params["conv3_w"], params["conv3_b"])

    # view(-1, 128*19*8): per-batch NCHW flatten (C-major, H, W) == PyTorch.
    x = y.reshape(128, B, 19, 8).transpose(1, 0, 2, 3).reshape(B, 128 * 19 * 8)

    # Fused fc1(ReLU) + fc2 head; K = 19456 tiled by 2432 -> grid of 8.
    return fc_head_pallas(
        x, params["fc1_w"], params["fc1_b"],
        params["fc2_w"], params["fc2_b"], tk=2432,
    )


if __name__ == "__main__":
    key = jax.random.PRNGKey(0)
    pkey, xkey = jax.random.split(key)
    params = init_params(pkey)

    # The module's forward hard-codes 185x95 single-channel frames; batch=2.
    obs = jax.random.uniform(xkey, (2, 1, 185, 95), jnp.float32)

    actions = jax.jit(deep_q_network_forward)(params, obs)
    actions = jax.block_until_ready(actions)
    assert actions.shape == (2, 6), actions.shape
    assert actions.dtype == jnp.float32
    print("KERNEL_OK")
</pallas_src>

<mosaic_0001>
module attributes {stable_mosaic.version = 11 : i64} {
  func.func @_conv_t_kernel(%arg0: i32, %arg1: memref<64x2070xf32, #tpu.memory_space<vmem>>, %arg2: memref<32x64xf32, #tpu.memory_space<vmem>>, %arg3: memref<32x1xf32, #tpu.memory_space<vmem>>, %arg4: memref<32x2070xf32, #tpu.memory_space<vmem>>) attributes {dimension_semantics = [#tpu.dimension_semantics<arbitrary>], iteration_bounds = array<i64: 1>, scalar_prefetch = 0 : i64, scratch_operands = 0 : i64, tpu.core_type = #tpu.core_type<tc>, window_params = [{pipeline_mode = #tpu.pipeline_mode<synchronous>, transform_indices = @transform_0, window_bounds = array<i64: 64, 2070>}, {pipeline_mode = #tpu.pipeline_mode<synchronous>, transform_indices = @transform_1, window_bounds = array<i64: 32, 64>}, {pipeline_mode = #tpu.pipeline_mode<synchronous>, transform_indices = @transform_2, window_bounds = array<i64: 32, 1>}, {pipeline_mode = #tpu.pipeline_mode<synchronous>, transform_indices = @transform_3, window_bounds = array<i64: 32, 2070>}]} {
    %c0 = arith.constant 0 : index
    %c0_0 = arith.constant 0 : index
    %0 = vector.load %arg2[%c0, %c0_0] : memref<32x64xf32, #tpu.memory_space<vmem>>, vector<32x64xf32>
    %c0_1 = arith.constant 0 : index
    %c0_2 = arith.constant 0 : index
    %1 = vector.load %arg1[%c0_1, %c0_2] : memref<64x2070xf32, #tpu.memory_space<vmem>>, vector<64x2070xf32>
    %cst = arith.constant dense<0.000000e+00> : vector<32x2070xf32>
    %2 = tpu.matmul %0, %1, %cst {dimension_numbers = #tpu.dot_dimension_numbers<[1], [0], [0], [1], [0, 0, 1, 1], [], []>} : vector<32x64xf32>, vector<64x2070xf32>, vector<32x2070xf32> -> vector<32x2070xf32>
    %c0_3 = arith.constant 0 : index
    %c0_4 = arith.constant 0 : index
    %3 = vector.load %arg3[%c0_3, %c0_4] : memref<32x1xf32, #tpu.memory_space<vmem>>, vector<32x1xf32>
    %4 = vector.broadcast %3 : vector<32x1xf32> to vector<32x2070xf32>
    %5 = arith.addf %2, %4 : vector<32x2070xf32>
    %cst_5 = arith.constant 0.000000e+00 : f32
    %6 = vector.broadcast %cst_5 : f32 to vector<32x2070xf32>
    %7 = arith.maximumf %5, %6 : vector<32x2070xf32>
    %c0_6 = arith.constant 0 : index
    %c0_7 = arith.constant 0 : index
    %8 = vector.load %arg4[%c0_6, %c0_7] : memref<32x2070xf32, #tpu.memory_space<vmem>>, vector<32x2070xf32>
    tpu.vector_store %arg4[%c0_6, %c0_7], %7 {strides = array<i32>} : memref<32x2070xf32, #tpu.memory_space<vmem>>, vector<32x2070xf32>,
    return
  }
  func.func @transform_0(%arg0: i32) -> (i32, i32) {
    %c0_i32 = arith.constant 0 : i32
    %c0_i32_0 = arith.constant 0 : i32
    %c0_i32_1 = arith.constant 0 : i32
    return %c0_i32, %c0_i32_0 : i32, i32
  }
  func.func @transform_1(%arg0: i32) -> (i32, i32) {
    %c0_i32 = arith.constant 0 : i32
    %c0_i32_0 = arith.constant 0 : i32
    %c0_i32_1 = arith.constant 0 : i32
    return %c0_i32, %c0_i32_0 : i32, i32
  }
  func.func @transform_2(%arg0: i32) -> (i32, i32) {
    %c0_i32 = arith.constant 0 : i32
    %c0_i32_0 = arith.constant 0 : i32
    %c0_i32_1 = arith.constant 0 : i32
    return %c0_i32, %c0_i32_0 : i32, i32
  }
  func.func @transform_3(%arg0: i32) -> (i32, i32) {
    %c0_i32 = arith.constant 0 : i32
    %c0_i32_0 = arith.constant 0 : i32
    %c0_i32_1 = arith.constant 0 : i32
    return %c0_i32, %c0_i32_0 : i32, i32
  }
}

module attributes {stable_mosaic.version = 11 : i64} {
  func.func @_conv_t_kernel(%arg0: i32, %arg1: memref<512x420xf32, #tpu.memory_space<vmem>>, %arg2: memref<64x512xf32, #tpu.memory_space<vmem>>, %arg3: memref<64x1xf32, #tpu.memory_space<vmem>>, %arg4: memref<64x420xf32, #tpu.memory_space<vmem>>) attributes {dimension_semantics = [#tpu.dimension_semantics<arbitrary>], iteration_bounds = array<i64: 1>, scalar_prefetch = 0 : i64, scratch_operands = 0 : i64, tpu.core_type = #tpu.core_type<tc>, window_params = [{pipeline_mode = #tpu.pipeline_mode<synchronous>, transform_indices = @transform_0, window_bounds = array<i64: 512, 420>}, {pipeline_mode = #tpu.pipeline_mode<synchronous>, transform_indices = @transform_1, window_bounds = array<i64: 64, 512>}, {pipeline_mode = #tpu.pipeline_mode<synchronous>, transform_indices = @transform_2, window_bounds = array<i64: 64, 1>}, {pipeline_mode = #tpu.pipeline_mode<synchronous>, transform_indices = @transform_3, window_bounds = array<i64: 64, 420>}]} {
    %c0 = arith.constant 0 : index
    %c0_0 = arith.constant 0 : index
    %0 = vector.load %arg2[%c0, %c0_0] : memref<64x512xf32, #tpu.memory_space<vmem>>, vector<64x512xf32>
    %c0_1 = arith.constant 0 : index
    %c0_2 = arith.constant 0 : index
    %1 = vector.load %arg1[%c0_1, %c0_2] : memref<512x420xf32, #tpu.memory_space<vmem>>, vector<512x420xf32>
    %cst = arith.constant dense<0.000000e+00> : vector<64x420xf32>
    %2 = tpu.matmul %0, %1, %cst {dimension_numbers = #tpu.dot_dimension_numbers<[1], [0], [0], [1], [0, 0, 1, 1], [], []>} : vector<64x512xf32>, vector<512x420xf32>, vector<64x420xf32> -> vector<64x420xf32>
    %c0_3 = arith.constant 0 : index
    %c0_4 = arith.constant 0 : index
    %3 = vector.load %arg3[%c0_3, %c0_4] : memref<64x1xf32, #tpu.memory_space<vmem>>, vector<64x1xf32>
    %4 = vector.broadcast %3 : vector<64x1xf32> to vector<64x420xf32>
    %5 = arith.addf %2, %4 : vector<64x420xf32>
    %cst_5 = arith.constant 0.000000e+00 : f32
    %6 = vector.broadcast %cst_5 : f32 to vector<64x420xf32>
    %7 = arith.maximumf %5, %6 : vector<64x420xf32>
    %c0_6 = arith.constant 0 : index
    %c0_7 = arith.constant 0 : index
    %8 = vector.load %arg4[%c0_6, %c0_7] : memref<64x420xf32, #tpu.memory_space<vmem>>, vector<64x420xf32>
    tpu.vector_store %arg4[%c0_6, %c0_7], %7 {strides = array<i32>} : memref<64x420xf32, #tpu.memory_space<vmem>>, vector<64x420xf32>,
    return
  }
  func.func @transform_0(%arg0: i32) -> (i32, i32) {
    %c0_i32 = arith.constant 0 : i32
    %c0_i32_0 = arith.constant 0 : i32
    %c0_i32_1 = arith.constant 0 : i32
    return %c0_i32, %c0_i32_0 : i32, i32
  }
  func.func @transform_1(%arg0: i32) -> (i32, i32) {
    %c0_i32 = arith.constant 0 : i32
    %c0_i32_0 = arith.constant 0 : i32
    %c0_i32_1 = arith.constant 0 : i32
    return %c0_i32, %c0_i32_0 : i32, i32
  }
  func.func @transform_2(%arg0: i32) -> (i32, i32) {
    %c0_i32 = arith.constant 0 : i32
    %c0_i32_0 = arith.constant 0 : i32
    %c0_i32_1 = arith.constant 0 : i32
    return %c0_i32, %c0_i32_0 : i32, i32
  }
  func.func @transform_3(%arg0: i32) -> (i32, i32) {
    %c0_i32 = arith.constant 0 : i32
    %c0_i32_0 = arith.constant 0 : i32
    %c0_i32_1 = arith.constant 0 : i32
    return %c0_i32, %c0_i32_0 : i32, i32
  }
}

module attributes {stable_mosaic.version = 11 : i64} {
  func.func @_conv_t_kernel(%arg0: i32, %arg1: memref<576x304xf32, #tpu.memory_space<vmem>>, %arg2: memref<128x576xf32, #tpu.memory_space<vmem>>, %arg3: memref<128x1xf32, #tpu.memory_space<vmem>>, %arg4: memref<128x304xf32, #tpu.memory_space<vmem>>) attributes {dimension_semantics = [#tpu.dimension_semantics<arbitrary>], iteration_bounds = array<i64: 1>, scalar_prefetch = 0 : i64, scratch_operands = 0 : i64, tpu.core_type = #tpu.core_type<tc>, window_params = [{pipeline_mode = #tpu.pipeline_mode<synchronous>, transform_indices = @transform_0, window_bounds = array<i64: 576, 304>}, {pipeline_mode = #tpu.pipeline_mode<synchronous>, transform_indices = @transform_1, window_bounds = array<i64: 128, 576>}, {pipeline_mode = #tpu.pipeline_mode<synchronous>, transform_indices = @transform_2, window_bounds = array<i64: 128, 1>}, {pipeline_mode = #tpu.pipeline_mode<synchronous>, transform_indices = @transform_3, window_bounds = array<i64: 128, 304>}]} {
    %c0 = arith.constant 0 : index
    %c0_0 = arith.constant 0 : index
    %0 = vector.load %arg2[%c0, %c0_0] : memref<128x576xf32, #tpu.memory_space<vmem>>, vector<128x576xf32>
    %c0_1 = arith.constant 0 : index
    %c0_2 = arith.constant 0 : index
    %1 = vector.load %arg1[%c0_1, %c0_2] : memref<576x304xf32, #tpu.memory_space<vmem>>, vector<576x304xf32>
    %cst = arith.constant dense<0.000000e+00> : vector<128x304xf32>
    %2 = tpu.matmul %0, %1, %cst {dimension_numbers = #tpu.dot_dimension_numbers<[1], [0], [0], [1], [0, 0, 1, 1], [], []>} : vector<128x576xf32>, vector<576x304xf32>, vector<128x304xf32> -> vector<128x304xf32>
    %c0_3 = arith.constant 0 : index
    %c0_4 = arith.constant 0 : index
    %3 = vector.load %arg3[%c0_3, %c0_4] : memref<128x1xf32, #tpu.memory_space<vmem>>, vector<128x1xf32>
    %4 = vector.broadcast %3 : vector<128x1xf32> to vector<128x304xf32>
    %5 = arith.addf %2, %4 : vector<128x304xf32>
    %cst_5 = arith.constant 0.000000e+00 : f32
    %6 = vector.broadcast %cst_5 : f32 to vector<128x304xf32>
    %7 = arith.maximumf %5, %6 : vector<128x304xf32>
    %c0_6 = arith.constant 0 : index
    %c0_7 = arith.constant 0 : index
    %8 = vector.load %arg4[%c0_6, %c0_7] : memref<128x304xf32, #tpu.memory_space<vmem>>, vector<128x304xf32>
    tpu.vector_store %arg4[%c0_6, %c0_7], %7 {strides = array<i32>} : memref<128x304xf32, #tpu.memory_space<vmem>>, vector<128x304xf32>,
    return
  }
  func.func @transform_0(%arg0: i32) -> (i32, i32) {
    %c0_i32 = arith.constant 0 : i32
    %c0_i32_0 = arith.constant 0 : i32
    %c0_i32_1 = arith.constant 0 : i32
    return %c0_i32, %c0_i32_0 : i32, i32
  }
  func.func @transform_1(%arg0: i32) -> (i32, i32) {
    %c0_i32 = arith.constant 0 : i32
    %c0_i32_0 = arith.constant 0 : i32
    %c0_i32_1 = arith.constant 0 : i32
    return %c0_i32, %c0_i32_0 : i32, i32
  }
  func.func @transform_2(%arg0: i32) -> (i32, i32) {
    %c0_i32 = arith.constant 0 : i32
    %c0_i32_0 = arith.constant 0 : i32
    %c0_i32_1 = arith.constant 0 : i32
    return %c0_i32, %c0_i32_0 : i32, i32
  }
  func.func @transform_3(%arg0: i32) -> (i32, i32) {
    %c0_i32 = arith.constant 0 : i32
    %c0_i32_0 = arith.constant 0 : i32
    %c0_i32_1 = arith.constant 0 : i32
    return %c0_i32, %c0_i32_0 : i32, i32
  }
}

module attributes {stable_mosaic.version = 11 : i64} {
  func.func @_fc_head_kernel(%arg0: i32, %arg1: memref<2x2432xf32, #tpu.memory_space<vmem>>, %arg2: memref<2432x512xbf16, #tpu.memory_space<vmem>>, %arg3: memref<1x512xf32, #tpu.memory_space<vmem>>, %arg4: memref<512x6xf32, #tpu.memory_space<vmem>>, %arg5: memref<1x6xf32, #tpu.memory_space<vmem>>, %arg6: memref<2x6xf32, #tpu.memory_space<vmem>>, %arg7: memref<2x512xf32, #tpu.memory_space<vmem>>) attributes {dimension_semantics = [#tpu.dimension_semantics<arbitrary>], iteration_bounds = array<i64: 8>, scalar_prefetch = 0 : i64, scratch_operands = 1 : i64, tpu.core_type = #tpu.core_type<tc>, window_params = [{transform_indices = @transform_0, window_bounds = array<i64: 2, 2432>}, {transform_indices = @transform_1, window_bounds = array<i64: 2432, 512>}, {pipeline_mode = #tpu.pipeline_mode<synchronous>, transform_indices = @transform_2, window_bounds = array<i64: 1, 512>}, {pipeline_mode = #tpu.pipeline_mode<synchronous>, transform_indices = @transform_3, window_bounds = array<i64: 512, 6>}, {pipeline_mode = #tpu.pipeline_mode<synchronous>, transform_indices = @transform_4, window_bounds = array<i64: 1, 6>}, {pipeline_mode = #tpu.pipeline_mode<synchronous>, transform_indices = @transform_5, window_bounds = array<i64: 2, 6>}]} {
    %c0_i32 = arith.constant 0 : i32
    %0 = arith.cmpi eq, %arg0, %c0_i32 : i32
    %1 = arith.extui %0 : i1 to i32
    %c0_i32_0 = arith.constant 0 : i32
    %2 = arith.cmpi ne, %1, %c0_i32_0 : i32
    scf.if %2 {
      %cst_9 = arith.constant 0.000000e+00 : f32
      %13 = vector.broadcast %cst_9 : f32 to vector<2x512xf32>
      %c0_10 = arith.constant 0 : index
      %c0_11 = arith.constant 0 : index
      %14 = vector.load %arg7[%c0_10, %c0_11] : memref<2x512xf32, #tpu.memory_space<vmem>>, vector<2x512xf32>
      tpu.vector_store %arg7[%c0_10, %c0_11], %13 {strides = array<i32>} : memref<2x512xf32, #tpu.memory_space<vmem>>, vector<2x512xf32>,
    } else {
    }
    %c0 = arith.constant 0 : index
    %c0_1 = arith.constant 0 : index
    %3 = vector.load %arg7[%c0, %c0_1] : memref<2x512xf32, #tpu.memory_space<vmem>>, vector<2x512xf32>
    %c0_2 = arith.constant 0 : index
    %c0_3 = arith.constant 0 : index
    %4 = vector.load %arg1[%c0_2, %c0_3] : memref<2x2432xf32, #tpu.memory_space<vmem>>, vector<2x2432xf32>
    %5 = arith.truncf %4 : vector<2x2432xf32> to vector<2x2432xbf16>
    %c0_4 = arith.constant 0 : index
    %c0_5 = arith.constant 0 : index
    %6 = vector.load %arg2[%c0_4, %c0_5] : memref<2432x512xbf16, #tpu.memory_space<vmem>>, vector<2432x512xbf16>
    %cst = arith.constant dense<0.000000e+00> : vector<2x512xf32>
    %7 = tpu.matmul %5, %6, %cst {dimension_numbers = #tpu.dot_dimension_numbers<[1], [0], [0], [1], [0, 0, 1, 1], [], []>} : vector<2x2432xbf16>, vector<2432x512xbf16>, vector<2x512xf32> -> vector<2x512xf32>
    %8 = arith.addf %3, %7 : vector<2x512xf32>
    %c0_6 = arith.constant 0 : index
    %c0_7 = arith.constant 0 : index
    %9 = vector.load %arg7[%c0_6, %c0_7] : memref<2x512xf32, #tpu.memory_space<vmem>>, vector<2x512xf32>
    tpu.vector_store %arg7[%c0_6, %c0_7], %8 {strides = array<i32>} : memref<2x512xf32, #tpu.memory_space<vmem>>, vector<2x512xf32>,
    %c7_i32 = arith.constant 7 : i32
    %10 = arith.cmpi eq, %arg0, %c7_i32 : i32
    %11 = arith.extui %10 : i1 to i32
    %c0_i32_8 = arith.constant 0 : i32
    %12 = arith.cmpi ne, %11, %c0_i32_8 : i32
    scf.if %12 {
      %c0_9 = arith.constant 0 : index
      %c0_10 = arith.constant 0 : index
      %13 = vector.load %arg7[%c0_9, %c0_10] : memref<2x512xf32, #tpu.memory_space<vmem>>, vector<2x512xf32>
      %c0_11 = arith.constant 0 : index
      %c0_12 = arith.constant 0 : index
      %14 = vector.load %arg3[%c0_11, %c0_12] : memref<1x512xf32, #tpu.memory_space<vmem>>, vector<1x512xf32>
      %15 = vector.broadcast %14 : vector<1x512xf32> to vector<2x512xf32>
      %16 = arith.addf %13, %15 : vector<2x512xf32>
      %cst_13 = arith.constant 0.000000e+00 : f32
      %17 = vector.broadcast %cst_13 : f32 to vector<2x512xf32>
      %18 = arith.maximumf %16, %17 : vector<2x512xf32>
      %c0_14 = arith.constant 0 : index
      %c0_15 = arith.constant 0 : index
      %19 = vector.load %arg4[%c0_14, %c0_15] : memref<512x6xf32, #tpu.memory_space<vmem>>, vector<512x6xf32>
      %cst_16 = arith.constant dense<0.000000e+00> : vector<2x6xf32>
      %20 = tpu.matmul %18, %19, %cst_16 {dimension_numbers = #tpu.dot_dimension_numbers<[1], [0], [0], [1], [0, 0, 1, 1], [], []>} : vector<2x512xf32>, vector<512x6xf32>, vector<2x6xf32> -> vector<2x6xf32>
      %c0_17 = arith.constant 0 : index
      %c0_18 = arith.constant 0 : index
      %21 = vector.load %arg5[%c0_17, %c0_18] : memref<1x6xf32, #tpu.memory_space<vmem>>, vector<1x6xf32>
      %22 = vector.broadcast %21 : vector<1x6xf32> to vector<2x6xf32>
      %23 = arith.addf %20, %22 : vector<2x6xf32>
      %c0_19 = arith.constant 0 : index
      %c0_20 = arith.constant 0 : index
      %24 = vector.load %arg6[%c0_19, %c0_20] : memref<2x6xf32, #tpu.memory_space<vmem>>, vector<2x6xf32>
      tpu.vector_store %arg6[%c0_19, %c0_20], %23 {strides = array<i32>} : memref<2x6xf32, #tpu.memory_space<vmem>>, vector<2x6xf32>,
    } else {
    }
    return
  }
  func.func @transform_0(%arg0: i32) -> (i32, i32) {
    %c0_i32 = arith.constant 0 : i32
    %c0_i32_0 = arith.constant 0 : i32
    return %c0_i32, %arg0 : i32, i32
  }
  func.func @transform_1(%arg0: i32) -> (i32, i32) {
    %c0_i32 = arith.constant 0 : i32
    %c0_i32_0 = arith.constant 0 : i32
    return %arg0, %c0_i32 : i32, i32
  }
  func.func @transform_2(%arg0: i32) -> (i32, i32) {
    %c0_i32 = arith.constant 0 : i32
    %c0_i32_0 = arith.constant 0 : i32
    %c0_i32_1 = arith.constant 0 : i32
    return %c0_i32, %c0_i32_0 : i32, i32
  }
  func.func @transform_3(%arg0: i32) -> (i32, i32) {
    %c0_i32 = arith.constant 0 : i32
    %c0_i32_0 = arith.constant 0 : i32
    %c0_i32_1 = arith.constant 0 : i32
    return %c0_i32, %c0_i32_0 : i32, i32
  }
  func.func @transform_4(%arg0: i32) -> (i32, i32) {
    %c0_i32 = arith.constant 0 : i32
    %c0_i32_0 = arith.constant 0 : i32
    %c0_i32_1 = arith.constant 0 : i32
    return %c0_i32, %c0_i32_0 : i32, i32
  }
  func.func @transform_5(%arg0: i32) -> (i32, i32) {
    %c0_i32 = arith.constant 0 : i32
    %c0_i32_0 = arith.constant 0 : i32
    %c0_i32_1 = arith.constant 0 : i32
    return %c0_i32, %c0_i32_0 : i32, i32
  }
}

</mosaic_0001>

<bundles_post_ra>
// kernel: deep_q_network_forward.4
= control target key start
LH: loop header
LB: loop body
LE: loop exit
PB: predicated region body
PF: predicated region fallthrough
CT: control target
= control target key end

     0   :  { %v912_v3 = vmov 0   ;;  %vm178_vm0 = vcmask 523264   ;;  %vm768_vm1 = vcmask 179200   ;;  %s1793_s0 = inlined_call_operand.vmem [shape: f32[64,2070], index: 0, kind: input, shape index: {}]   ;;  %s1794_s1 = inlined_call_operand.vmem [shape: f32[32,64], index: 1, kind: input, shape index: {}]   ;;  %s1795_s2 = inlined_call_operand.vmem [shape: f32[32,1], index: 2, kind: input, shape index: {}]   ;;  %s1796_s3 = inlined_call_operand.vmem [shape: f32[32,2070], index: 3, kind: output, shape index: {}]  }
   0x1   :  { %v137_v0 = vld [vmem:[%s1793_s0 + $0x3b8] sm:$0xff]  ;;  %v139_v1 = vld [vmem:[%s1793_s0 + $0x3c8] sm:$0xff]  ;;  %v120_v2 = vld [vmem:[%s1793_s0 + $0x330] sm:$0xff]  ;;  %911 = vset.pattern.permute.xlu1 %v912_v3  ;;  %910 = vset.pattern.permute.xlu0 %v912_v3 }
   0x2   :  { %199 = vmatpush.msra.mxu0 %v137_v0  ;;  %893 = vmatpush.msra.mxu1 %v137_v0  ;;  %v122_v4 = vld [vmem:[%s1793_s0 + $0x340] sm:$0xff]  ;;  %v140_v5 = vld [vmem:[%s1793_s0 + $0x3d0] sm:$0xff]  ;;  %v103_v6 = vld [vmem:[%s1793_s0 + $0x2a8] sm:$0xff] }
   0x3   :  { %257 = vmatpush.msra.mxu2 %v139_v1  ;;  %286 = vmatpush.msra.mxu3 %v140_v5  ;;  %v123_v7 = vld [vmem:[%s1793_s0 + $0x348] sm:$0xff]  ;;  %v105_v8 = vld [vmem:[%s1793_s0 + $0x2b8] sm:$0xff]  ;;  %v106_v9 = vld [vmem:[%s1793_s0 + $0x2c0] sm:$0xff] }
   0x4   :  { %200 = vmatpush.msra.mxu0 %v120_v2  ;;  %894 = vmatpush.msra.mxu1 %v120_v2  ;;  %v86_v10 = vld [vmem:[%s1793_s0 + $0x220] sm:$0xff]  ;;  %v88_v11 = vld [vmem:[%s1793_s0 + $0x230] sm:$0xff]  ;;  %v89_v12 = vld [vmem:[%s1793_s0 + $0x238] sm:$0xff] }
   0x5   :  { %258 = vmatpush.msra.mxu2 %v122_v4  ;;  %287 = vmatpush.msra.mxu3 %v123_v7  ;;  %v69_v13 = vld [vmem:[%s1793_s0 + $0x198] sm:$0xff]  ;;  %v71_v14 = vld [vmem:[%s1793_s0 + $0x1a8] sm:$0xff]  ;;  %v72_v15 = vld [vmem:[%s1793_s0 + $0x1b0] sm:$0xff] }
   0x6   :  { %201 = vmatpush.msra.mxu0 %v103_v6  ;;  %895 = vmatpush.msra.mxu1 %v103_v6  ;;  %v52_v16 = vld [vmem:[%s1793_s0 + $0x110] sm:$0xff]  ;;  %v54_v17 = vld [vmem:[%s1793_s0 + $0x120] sm:$0xff]  ;;  %v55_v18 = vld [vmem:[%s1793_s0 + $0x128] sm:$0xff] }
   0x7   :  { %259 = vmatpush.msra.mxu2 %v105_v8  ;;  %288 = vmatpush.msra.mxu3 %v106_v9  ;;  %v35_v19 = vld [vmem:[%s1793_s0 + $0x88] sm:$0xff]  ;;  %v37_v20 = vld [vmem:[%s1793_s0 + $0x98] sm:$0xff]  ;;  %v38_v21 = vld [vmem:[%s1793_s0 + $0xa0] sm:$0xff] }
   0x8   :  { %202 = vmatpush.msra.mxu0 %v86_v10  ;;  %896 = vmatpush.msra.mxu1 %v86_v10  ;;  %v18_v22 = vld [vmem:[%s1793_s0] sm:$0xff]  ;;  %v20_v23 = vld [vmem:[%s1793_s0 + $0x10] sm:$0xff]  ;;  %v21_v27 = vld [vmem:[%s1793_s0 + $0x18] sm:$0xff] }
   0x9   :  { %260 = vmatpush.msra.mxu2 %v88_v11  ;;  %289 = vmatpush.msra.mxu3 %v89_v12  ;;  %v1005_v24 = vld [vmem:[%s1794_s1] sm:$0xff]  ;;  %v1010_v25 = vld [vmem:[%s1794_s1 + $0x10] sm:$0xff]  ;;  %v141_v28 = vld [vmem:[%s1793_s0 + $0x3d8] sm:$0xff] }
   0xa   :  { %203 = vmatpush.msra.mxu0 %v69_v13  ;;  %897 = vmatpush.msra.mxu1 %v69_v13  ;;  %v138_v26 = vld [vmem:[%s1793_s0 + $0x3c0] sm:$0xff]  ;;  %v121_v29 = vld [vmem:[%s1793_s0 + $0x338] sm:$0xff]  ;;  %v143_v30 = vld [vmem:[%s1793_s0 + $0x3e8] sm:$0xff] }
   0xb   :  { %261 = vmatpush.msra.mxu2 %v71_v14  ;;  %290 = vmatpush.msra.mxu3 %v72_v15  ;;  %v124_v31 = vld [vmem:[%s1793_s0 + $0x350] sm:$0xff]  ;;  %v126_v34 = vld [vmem:[%s1793_s0 + $0x360] sm:$0xff]  ;;  %v107_v35 = vld [vmem:[%s1793_s0 + $0x2c8] sm:$0xff] }
   0xc   :  { %204 = vmatpush.msra.mxu0 %v52_v16  ;;  %898 = vmatpush.msra.mxu1 %v52_v16  ;;  %v144_v32 = vld [vmem:[%s1793_s0 + $0x3f0] sm:$0xff]  ;;  %v87_v37 = vld [vmem:[%s1793_s0 + $0x228] sm:$0xff]  ;;  %v90_v39 = vld [vmem:[%s1793_s0 + $0x240] sm:$0xff] }
   0xd   :  { %262 = vmatpush.msra.mxu2 %v54_v17  ;;  %291 = vmatpush.msra.mxu3 %v55_v18  ;;  %v104_v33 = vld [vmem:[%s1793_s0 + $0x2b0] sm:$0xff]  ;;  %v1059_v38 = vld [vmem:[%s1794_s1 + $0x8] sm:$0xff]  ;;  %v1067_v40 = vld [vmem:[%s1794_s1 + $0x18] sm:$0xff] }
   0xe   :  { %205 = vmatpush.msra.mxu0 %v35_v19  ;;  %899 = vmatpush.msra.mxu1 %v35_v19  ;;  %v156_v36 = vld [vmem:[%s1795_s2 + $0x10] sm:$0xff]  ;;  %v70_v41 = vld [vmem:[%s1793_s0 + $0x1a0] sm:$0xff]  ;;  %v73_v42 = vld [vmem:[%s1793_s0 + $0x1b8] sm:$0xff] }
   0xf   :  { %263 = vmatpush.msra.mxu2 %v37_v20  ;;  %292 = vmatpush.msra.mxu3 %v38_v21  ;;  %v53_v43 = vld [vmem:[%s1793_s0 + $0x118] sm:$0xff]  ;;  %v56_v45 = vld [vmem:[%s1793_s0 + $0x130] sm:$0xff]  ;;  %v127_v46 = vld [vmem:[%s1793_s0 + $0x368] sm:$0xff] }
  0x10   :  { %206 = vmatpush.msra.mxu0 %v18_v22  ;;  %900 = vmatpush.msra.mxu1 %v18_v22  ;;  %v109_v44 = vld [vmem:[%s1793_s0 + $0x2d8] sm:$0xff]  ;;  %v36_v47 = vld [vmem:[%s1793_s0 + $0x90] sm:$0xff]  ;;  %v39_v49 = vld [vmem:[%s1793_s0 + $0xa8] sm:$0xff] }
  0x11   :  { %264 = vmatpush.msra.mxu2 %v20_v23  ;;  %825 = vmatmul.msk.f32.vlgmr.msra.gmra.mxu0 %vm178_vm0, %v1005_v24  ;;  %v92_v48 = vld [vmem:[%s1793_s0 + $0x250] sm:$0xff]  ;;  %v110_v50 = vld [vmem:[%s1793_s0 + $0x2e0] sm:$0xff]  ;;  %v19_v51 = vld [vmem:[%s1793_s0 + $0x8] sm:$0xff] }
  0x12   :  { %827 = vmatmul.msk.f32.vlgmr.msra.gmra.mxu1 %vm178_vm0, %v1010_v25  ;;  %833 = vmatmul.msk.f32.vlgmr.msra.gmra.mxu2 %vm178_vm0, %v1005_v24  ;;  %v75_v52 = vld [vmem:[%s1793_s0 + $0x1c8] sm:$0xff]  ;;  %v22_v53 = vld [vmem:[%s1793_s0 + $0x20] sm:$0xff]  ;;  %v157_v55 = vld [vmem:[%s1795_s2 + $0x18] sm:$0xff] }
  0x13   :  { %228 = vmatpush.msrb.mxu1 %v138_v26  ;;  %293 = vmatpush.msra.mxu3 %v21_v27  ;;  %v142_v54 = vld [vmem:[%s1793_s0 + $0x3e0] sm:$0xff]  ;;  %v125_v57 = vld [vmem:[%s1793_s0 + $0x358] sm:$0xff]  ;;  %v108_v61 = vld [vmem:[%s1793_s0 + $0x2d0] sm:$0xff] }
  0x14   :  { %315 = vmatpush.msrb.mxu0 %v141_v28  ;;  %837 = vmatmul.msk.f32.vlgmr.msra.gmra.mxu3 %vm178_vm0, %v1005_v24  ;;  %v154_v56 = vld [vmem:[%s1795_s2] sm:$0xff]  ;;  %v93_v59 = vld [vmem:[%s1793_s0 + $0x258] sm:$0xff]  ;;  %v76_v63 = vld [vmem:[%s1793_s0 + $0x1d0] sm:$0xff] }
  0x15   :  { %229 = vmatpush.msrb.mxu1 %v121_v29  ;;  %373 = vmatpush.msrb.mxu2 %v143_v30  ;;  %v58_v58 = vld [vmem:[%s1793_s0 + $0x140] sm:$0xff]  ;;  %v145_v60 = vld [vmem:[%s1793_s0 + $0x3f8] sm:$0xff]  ;;  %v128_v0 = vld [vmem:[%s1793_s0 + $0x370] sm:$0xff] }
  0x16   :  { %316 = vmatpush.msrb.mxu0 %v124_v31  ;;  %402 = vmatpush.msrb.mxu3 %v144_v32  ;;  %v41_v62 = vld [vmem:[%s1793_s0 + $0xb8] sm:$0xff]  ;;  %v24_v1 = vld [vmem:[%s1793_s0 + $0x30] sm:$0xff]  ;;  %v91_v2 = vld [vmem:[%s1793_s0 + $0x248] sm:$0xff] }
  0x17   :  { %230 = vmatpush.msrb.mxu1 %v104_v33  ;;  %374 = vmatpush.msrb.mxu2 %v126_v34  ;;  %v155_v3 = vld [vmem:[%s1795_s2 + $0x8] sm:$0xff]  ;;  %v74_v5 = vld [vmem:[%s1793_s0 + $0x1c0] sm:$0xff]  ;;  %v57_v9 = vld [vmem:[%s1793_s0 + $0x138] sm:$0xff] }
  0x18   :  { %317 = vmatpush.msrb.mxu0 %v107_v35  ;;  %170 = vperm.xlu1 %911, %v156_v36   ;;  %v59_v4 = vld [vmem:[%s1793_s0 + $0x148] sm:$0xff]  ;;  %v42_v7 = vld [vmem:[%s1793_s0 + $0xc0] sm:$0xff]  ;;  %v25_v11 = vld [vmem:[%s1793_s0 + $0x38] sm:$0xff] }
  0x19   :  { %231 = vmatpush.msrb.mxu1 %v87_v37  ;;  %826 = vmatmul.msk.f32.gmra.mxu0 %vm178_vm0, %v1059_v38  ;;  %v111_v6 = vld [vmem:[%s1793_s0 + $0x2e8] sm:$0xff]  ;;  %v94_v10 = vld [vmem:[%s1793_s0 + $0x260] sm:$0xff]  ;;  %v77_v13 = vld [vmem:[%s1793_s0 + $0x1d8] sm:$0xff] }
  0x1a   :  { %318 = vmatpush.msrb.mxu0 %v90_v39  ;;  %828 = vmatmul.msk.f32.gmra.mxu1 %vm178_vm0, %v1067_v40  ;;  %v147_v8 = vld [vmem:[%s1793_s0 + $0x408] sm:$0xff]  ;;  %v130_v12 = vld [vmem:[%s1793_s0 + $0x380] sm:$0xff]  ;;  %v40_v14 = vld [vmem:[%s1793_s0 + $0xb0] sm:$0xff] }
  0x1b   :  { %232 = vmatpush.msrb.mxu1 %v70_v41  ;;  %834 = vmatmul.msk.f32.gmra.mxu2 %vm178_vm0, %v1059_v38  ;;  %v113_v15 = vld [vmem:[%s1793_s0 + $0x2f8] sm:$0xff]  ;;  %v148_v16 = vld [vmem:[%s1793_s0 + $0x410] sm:$0xff]  ;;  %v23_v18 = vld [vmem:[%s1793_s0 + $0x28] sm:$0xff] }
  0x1c   :  { %319 = vmatpush.msrb.mxu0 %v73_v42  ;;  %838 = vmatmul.msk.f32.gmra.mxu3 %vm178_vm0, %v1059_v38  ;;  %v60_v17 = vld [vmem:[%s1793_s0 + $0x150] sm:$0xff]  ;;  %v131_v20 = vld [vmem:[%s1793_s0 + $0x388] sm:$0xff]  ;;  %v146_v22 = vld [vmem:[%s1793_s0 + $0x400] sm:$0xff] }
  0x1d   :  { %233 = vmatpush.msrb.mxu1 %v53_v43  ;;  %375 = vmatpush.msrb.mxu2 %v109_v44  ;;  %v96_v19 = vld [vmem:[%s1793_s0 + $0x270] sm:$0xff]  ;;  %v43_v21 = vld [vmem:[%s1793_s0 + $0xc8] sm:$0xff]  ;;  %v114_v26 = vld [vmem:[%s1793_s0 + $0x300] sm:$0xff] }
  0x1e   :  { %320 = vmatpush.msrb.mxu0 %v56_v45  ;;  %403 = vmatpush.msrb.mxu3 %v127_v46  ;;  %v79_v23 = vld [vmem:[%s1793_s0 + $0x1e8] sm:$0xff]  ;;  %v26_v27 = vld [vmem:[%s1793_s0 + $0x40] sm:$0xff]  ;;  %v129_v28 = vld [vmem:[%s1793_s0 + $0x378] sm:$0xff] }
  0x1f   :  { %234 = vmatpush.msrb.mxu1 %v36_v47  ;;  %376 = vmatpush.msrb.mxu2 %v92_v48  ;;  %v62_v29 = vld [vmem:[%s1793_s0 + $0x160] sm:$0xff]  ;;  %v97_v30 = vld [vmem:[%s1793_s0 + $0x278] sm:$0xff]  ;;  %v112_v31 = vld [vmem:[%s1793_s0 + $0x2f0] sm:$0xff] }
  0x20   :  { %321 = vmatpush.msrb.mxu0 %v39_v49  ;;  %404 = vmatpush.msrb.mxu3 %v110_v50  ;;  %v149_v32 = vld [vmem:[%s1793_s0 + $0x418] sm:$0xff]  ;;  %v80_v34 = vld [vmem:[%s1793_s0 + $0x1f0] sm:$0xff]  ;;  %v95_v35 = vld [vmem:[%s1793_s0 + $0x268] sm:$0xff] }
  0x21   :  { %235 = vmatpush.msrb.mxu1 %v19_v51  ;;  %377 = vmatpush.msrb.mxu2 %v75_v52  ;;  %v45_v33 = vld [vmem:[%s1793_s0 + $0xd8] sm:$0xff]  ;;  %v132_v36 = vld [vmem:[%s1793_s0 + $0x390] sm:$0xff]  ;;  %v63_v37 = vld [vmem:[%s1793_s0 + $0x168] sm:$0xff] }
  0x22   :  { %322 = vmatpush.msrb.mxu0 %v22_v53  ;;  %829 = vmatmul.msk.f32.vlgmr.msrb.gmra.mxu1 %vm178_vm0, %v1005_v24  ;;  %v28_v39 = vld [vmem:[%s1793_s0 + $0x50] sm:$0xff]  ;;  %v115_v41 = vld [vmem:[%s1793_s0 + $0x308] sm:$0xff]  ;;  %v78_v42 = vld [vmem:[%s1793_s0 + $0x1e0] sm:$0xff] }
  0x23   :  { %835 = vmatmul.msk.f32.gmra.mxu2 %vm178_vm0, %v1010_v25  ;;  %841 = vmatmul.msk.f32.vlgmr.msrb.gmra.mxu0 %vm178_vm0, %v1005_v24  ;;  %v46_v43 = vld [vmem:[%s1793_s0 + $0xe0] sm:$0xff]  ;;  %v151_v44 = vld [vmem:[%s1793_s0 + $0x428] sm:$0xff]  ;;  %v61_v45 = vld [vmem:[%s1793_s0 + $0x158] sm:$0xff] }
  0x24   :  { %344 = vmatpush.msra.mxu1 %v142_v54  ;;  %839 = vmatmul.msk.f32.gmra.mxu3 %vm178_vm0, %v1010_v25  ;;  %v98_v46 = vld [vmem:[%s1793_s0 + $0x280] sm:$0xff]  ;;  %v29_v47 = vld [vmem:[%s1793_s0 + $0x58] sm:$0xff]  ;;  %v44_v49 = vld [vmem:[%s1793_s0 + $0xd0] sm:$0xff] }
  0x25   :  { %175 = vperm.xlu1 %911, %v157_v55   ;;  %160 = vperm.xlu0 %910, %v154_v56   ;;  %v134_v48 = vld [vmem:[%s1793_s0 + $0x3a0] sm:$0xff]  ;;  %v81_v50 = vld [vmem:[%s1793_s0 + $0x1f8] sm:$0xff]  ;;  %v152_v52 = vld [vmem:[%s1793_s0 + $0x430] sm:$0xff] }
  0x26   :  { %345 = vmatpush.msra.mxu1 %v125_v57  ;;  %378 = vmatpush.msrb.mxu2 %v58_v58  ;;  %v117_v51 = vld [vmem:[%s1793_s0 + $0x318] sm:$0xff]  ;;  %v64_v53 = vld [vmem:[%s1793_s0 + $0x170] sm:$0xff]  ;;  %v27_v54 = vld [vmem:[%s1793_s0 + $0x48] sm:$0xff] }
  0x27   :  { %405 = vmatpush.msrb.mxu3 %v93_v59  ;;  %431 = vmatpush.msra.mxu0 %v145_v60  ;;  %v47_v55 = vld [vmem:[%s1793_s0 + $0xe8] sm:$0xff]  ;;  %v100_v56 = vld [vmem:[%s1793_s0 + $0x290] sm:$0xff]  ;;  %v150_v58 = vld [vmem:[%s1793_s0 + $0x420] sm:$0xff] }
  0x28   :  { %346 = vmatpush.msra.mxu1 %v108_v61  ;;  %379 = vmatpush.msrb.mxu2 %v41_v62  ;;  %v135_v57 = vld [vmem:[%s1793_s0 + $0x3a8] sm:$0xff]  ;;  %v30_v59 = vld [vmem:[%s1793_s0 + $0x60] sm:$0xff]  ;;  %v133_v62 = vld [vmem:[%s1793_s0 + $0x398] sm:$0xff] }
  0x29   :  { %406 = vmatpush.msrb.mxu3 %v76_v63  ;;  %432 = vmatpush.msra.mxu0 %v128_v0  ;;  %v83_v60 = vld [vmem:[%s1793_s0 + $0x208] sm:$0xff]  ;;  %v118_v61 = vld [vmem:[%s1793_s0 + $0x320] sm:$0xff]  ;;  %v153_v0 = vld [vmem:[%s1793_s0 + $0x438] sm:$0xff] }
  0x2a   :  { %830 = vmatmul.msk.f32.gmra.mxu1 %vm178_vm0, %v1059_v38  ;;  %380 = vmatpush.msrb.mxu2 %v24_v1  ;;  %v66_v63 = vld [vmem:[%s1793_s0 + $0x180] sm:$0xff]  ;;  %v101_v1 = vld [vmem:[%s1793_s0 + $0x298] sm:$0xff] }
  0x2b   :  { %836 = vmatmul.msk.f32.gmra.mxu2 %vm178_vm0, %v1067_v40  ;;  %842 = vmatmul.msk.f32.gmra.mxu0 %vm178_vm0, %v1059_v38 }
  0x2c   :  { %840 = vmatmul.msk.f32.gmra.mxu3 %vm178_vm0, %v1067_v40  ;;  %347 = vmatpush.msra.mxu1 %v91_v2  ;;  %v116_v2 = vld [vmem:[%s1793_s0 + $0x310] sm:$0xff] }
  0x2d   :  { %165 = vperm.xlu0 %910, %v155_v3   ;;  %407 = vmatpush.msrb.mxu3 %v59_v4  ;;  %v49_v3 = vld [vmem:[%s1793_s0 + $0xf8] sm:$0xff]  ;;  %v84_v4 = vld [vmem:[%s1793_s0 + $0x210] sm:$0xff] }
  0x2e   :  { %348 = vmatpush.msra.mxu1 %v74_v5  ;;  %433 = vmatpush.msra.mxu0 %v111_v6  ;;  %v99_v5 = vld [vmem:[%s1793_s0 + $0x288] sm:$0xff]  ;;  %v136_v6 = vld [vmem:[%s1793_s0 + $0x3b0] sm:$0xff] }
  0x2f   :  { %408 = vmatpush.msrb.mxu3 %v42_v7  ;;  %489 = vmatpush.msra.mxu2 %v147_v8  ;;  %v67_v7 = vld [vmem:[%s1793_s0 + $0x188] sm:$0xff]  ;;  %v32_v8 = vld [vmem:[%s1793_s0 + $0x70] sm:$0xff] }
  0x30   :  { %349 = vmatpush.msra.mxu1 %v57_v9  ;;  %434 = vmatpush.msra.mxu0 %v94_v10  ;;  %v82_v9 = vld [vmem:[%s1793_s0 + $0x200] sm:$0xff]  ;;  %v119_v10 = vld [vmem:[%s1793_s0 + $0x328] sm:$0xff] }
  0x31   :  { %409 = vmatpush.msrb.mxu3 %v25_v11  ;;  %490 = vmatpush.msra.mxu2 %v130_v12  ;;  %v50_v11 = vld [vmem:[%s1793_s0 + $0x100] sm:$0xff] }
  0x32   :  { %831 = vmatmul.msk.f32.gmra.mxu1 %vm178_vm0, %v1010_v25  ;;  %435 = vmatpush.msra.mxu0 %v77_v13  ;;  %v102_v12 = vld [vmem:[%s1793_s0 + $0x2a0] sm:$0xff]  ;;  %v65_v13 = vld [vmem:[%s1793_s0 + $0x178] sm:$0xff] }
  0x33   :  { %843 = vmatmul.msk.f32.gmra.mxu0 %vm178_vm0, %v1010_v25  ;;  %849 = vmatmul.msk.f32.vlgmr.msrb.gmra.mxu2 %vm178_vm0, %v1005_v24 }
  0x34   :  { %853 = vmatmul.msk.f32.vlgmr.msrb.gmra.mxu3 %vm178_vm0, %v1005_v24  ;;  %350 = vmatpush.msra.mxu1 %v40_v14  ;;  %v33_v14 = vld [vmem:[%s1793_s0 + $0x78] sm:$0xff] }
  0x35   :  { %491 = vmatpush.msra.mxu2 %v113_v15  ;;  %518 = vmatpush.msra.mxu3 %v148_v16  ;;  %v48_v15 = vld [vmem:[%s1793_s0 + $0xf0] sm:$0xff]  ;;  %v85_v16 = vld [vmem:[%s1793_s0 + $0x218] sm:$0xff] }
  0x36   :  { %436 = vmatpush.msra.mxu0 %v60_v17  ;;  %351 = vmatpush.msra.mxu1 %v23_v18  ;;  %v68_v17 = vld [vmem:[%s1793_s0 + $0x190] sm:$0xff]  ;;  %v31_v18 = vld [vmem:[%s1793_s0 + $0x68] sm:$0xff] }
  0x37   :  { %492 = vmatpush.msra.mxu2 %v96_v19  ;;  %519 = vmatpush.msra.mxu3 %v131_v20  ;;  %v51_v19 = vld [vmem:[%s1793_s0 + $0x108] sm:$0xff]  ;;  %v34_v20 = vld [vmem:[%s1793_s0 + $0x80] sm:$0xff] }
  0x38   :  { %437 = vmatpush.msra.mxu0 %v43_v21  ;;  %460 = vmatpush.msrb.mxu1 %v146_v22 }
  0x39   :  { %493 = vmatpush.msra.mxu2 %v79_v23  ;;  %520 = vmatpush.msra.mxu3 %v114_v26 }
  0x3a   :  { %832 = vmatmul.msk.f32.gmra.mxu1 %vm178_vm0, %v1067_v40  ;;  %438 = vmatpush.msra.mxu0 %v26_v27 }
  0x3b   :  { %844 = vmatmul.msk.f32.gmra.mxu0 %vm178_vm0, %v1067_v40  ;;  %850 = vmatmul.msk.f32.gmra.mxu2 %vm178_vm0, %v1059_v38 }
  0x3c   :  { %854 = vmatmul.msk.f32.gmra.mxu3 %vm178_vm0, %v1059_v38  ;;  %461 = vmatpush.msrb.mxu1 %v129_v28 }
  0x3d   :  { %494 = vmatpush.msra.mxu2 %v62_v29  ;;  %521 = vmatpush.msra.mxu3 %v97_v30 }
  0x3e   :  { %462 = vmatpush.msrb.mxu1 %v112_v31  ;;  %547 = vmatpush.msrb.mxu0 %v149_v32 }
  0x3f   :  { %495 = vmatpush.msra.mxu2 %v45_v33  ;;  %522 = vmatpush.msra.mxu3 %v80_v34 }
  0x40   :  { %463 = vmatpush.msrb.mxu1 %v95_v35  ;;  %548 = vmatpush.msrb.mxu0 %v132_v36 }
  0x41   :  { %523 = vmatpush.msra.mxu3 %v63_v37  ;;  %496 = vmatpush.msra.mxu2 %v28_v39 }
  0x42   :  { %845 = vmatmul.msk.f32.vlgmr.msra.gmra.mxu1 %vm178_vm0, %v1005_v24  ;;  %549 = vmatpush.msrb.mxu0 %v115_v41 }
  0x43   :  { %851 = vmatmul.msk.f32.gmra.mxu2 %vm178_vm0, %v1010_v25  ;;  %857 = vmatmul.msk.f32.vlgmr.msra.gmra.mxu0 %vm178_vm0, %v1005_v24 }
  0x44   :  { %855 = vmatmul.msk.f32.gmra.mxu3 %vm178_vm0, %v1010_v25  ;;  %464 = vmatpush.msrb.mxu1 %v78_v42 }
  0x45   :  { %524 = vmatpush.msra.mxu3 %v46_v43  ;;  %605 = vmatpush.msrb.mxu2 %v151_v44 }
  0x46   :  { %465 = vmatpush.msrb.mxu1 %v61_v45  ;;  %550 = vmatpush.msrb.mxu0 %v98_v46 }
  0x47   :  { %525 = vmatpush.msra.mxu3 %v29_v47  ;;  %606 = vmatpush.msrb.mxu2 %v134_v48 }
  0x48   :  { %466 = vmatpush.msrb.mxu1 %v44_v49  ;;  %551 = vmatpush.msrb.mxu0 %v81_v50 }
  0x49   :  { %607 = vmatpush.msrb.mxu2 %v117_v51  ;;  %634 = vmatpush.msrb.mxu3 %v152_v52 }
  0x4a   :  { %846 = vmatmul.msk.f32.gmra.mxu1 %vm178_vm0, %v1059_v38  ;;  %552 = vmatpush.msrb.mxu0 %v64_v53 }
  0x4b   :  { %852 = vmatmul.msk.f32.gmra.mxu2 %vm178_vm0, %v1067_v40  ;;  %858 = vmatmul.msk.f32.gmra.mxu0 %vm178_vm0, %v1059_v38 }
  0x4c   :  { %856 = vmatmul.msk.f32.gmra.mxu3 %vm178_vm0, %v1067_v40  ;;  %467 = vmatpush.msrb.mxu1 %v27_v54 }
  0x4d   :  { %553 = vmatpush.msrb.mxu0 %v47_v55  ;;  %608 = vmatpush.msrb.mxu2 %v100_v56 }
  0x4e   :  { %635 = vmatpush.msrb.mxu3 %v135_v57  ;;  %576 = vmatpush.msra.mxu1 %v150_v58 }
  0x4f   :  { %554 = vmatpush.msrb.mxu0 %v30_v59  ;;  %609 = vmatpush.msrb.mxu2 %v83_v60 }
  0x50   :  { %636 = vmatpush.msrb.mxu3 %v118_v61  ;;  %577 = vmatpush.msra.mxu1 %v133_v62 }
  0x51   :  { %610 = vmatpush.msrb.mxu2 %v66_v63  ;;  %663 = vmatpush.msra.mxu0 %v153_v0 }
  0x52   :  { %847 = vmatmul.msk.f32.gmra.mxu1 %vm178_vm0, %v1010_v25  ;;  %637 = vmatpush.msrb.mxu3 %v101_v1 }
  0x53   :  { %859 = vmatmul.msk.f32.gmra.mxu0 %vm178_vm0, %v1010_v25  ;;  %865 = vmatmul.msk.f32.vlgmr.msra.gmra.mxu2 %vm178_vm0, %v1005_v24 }
  0x54   :  { %869 = vmatmul.msk.f32.vlgmr.msra.gmra.mxu3 %vm178_vm0, %v1005_v24  ;;  %578 = vmatpush.msra.mxu1 %v116_v2 }
  0x55   :  { %611 = vmatpush.msrb.mxu2 %v49_v3  ;;  %638 = vmatpush.msrb.mxu3 %v84_v4 }
  0x56   :  { %579 = vmatpush.msra.mxu1 %v99_v5  ;;  %664 = vmatpush.msra.mxu0 %v136_v6 }
  0x57   :  { %639 = vmatpush.msrb.mxu3 %v67_v7  ;;  %612 = vmatpush.msrb.mxu2 %v32_v8 }
  0x58   :  { %580 = vmatpush.msra.mxu1 %v82_v9  ;;  %665 = vmatpush.msra.mxu0 %v119_v10 }
  0x59   :  { %640 = vmatpush.msrb.mxu3 %v50_v11  ;;  %901 = vmatpush.msra.mxu2 %v153_v0 }
  0x5a   :  { %848 = vmatmul.msk.f32.gmra.mxu1 %vm178_vm0, %v1067_v40  ;;  %666 = vmatpush.msra.mxu0 %v102_v12 }
  0x5b   :  { %860 = vmatmul.msk.f32.gmra.mxu0 %vm178_vm0, %v1067_v40  ;;  %866 = vmatmul.msk.f32.gmra.mxu2 %vm178_vm0, %v1059_v38 }
  0x5c   :  { %870 = vmatmul.msk.f32.gmra.mxu3 %vm178_vm0, %v1059_v38  ;;  %581 = vmatpush.msra.mxu1 %v65_v13 }
  0x5d   :  { %641 = vmatpush.msrb.mxu3 %v33_v14  ;;  %902 = vmatpush.msra.mxu2 %v136_v6 }
  0x5e   :  { %582 = vmatpush.msra.mxu1 %v48_v15  ;;  %667 = vmatpush.msra.mxu0 %v85_v16 }
  0x5f   :  { %903 = vmatpush.msra.mxu2 %v119_v10 }
  0x60   :  { %668 = vmatpush.msra.mxu0 %v68_v17  ;;  %583 = vmatpush.msra.mxu1 %v31_v18 }
  0x61   :  { %904 = vmatpush.msra.mxu2 %v102_v12 }
  0x62   :  { %861 = vmatmul.msk.f32.vlgmr.msrb.gmra.mxu1 %vm178_vm0, %v1005_v24  ;;  %669 = vmatpush.msra.mxu0 %v51_v19 }
  0x63   :  { %867 = vmatmul.msk.f32.gmra.mxu2 %vm178_vm0, %v1010_v25  ;;  %873 = vmatmul.msk.f32.vlgmr.msrb.gmra.mxu0 %vm178_vm0, %v1005_v24 }
  0x64   :  { %871 = vmatmul.msk.f32.gmra.mxu3 %vm178_vm0, %v1010_v25  ;;  %670 = vmatpush.msra.mxu0 %v34_v20 }
  0x65   :  { %905 = vmatpush.msra.mxu2 %v85_v16 }
  0x67   :  { %906 = vmatpush.msra.mxu2 %v68_v17 }
  0x69   :  { %907 = vmatpush.msra.mxu2 %v51_v19 }
  0x6a   :  { %862 = vmatmul.msk.f32.gmra.mxu1 %vm178_vm0, %v1059_v38 }
  0x6b   :  { %868 = vmatmul.msk.f32.gmra.mxu2 %vm178_vm0, %v1067_v40  ;;  %874 = vmatmul.msk.f32.gmra.mxu0 %vm178_vm0, %v1059_v38 }
  0x6c   :  { %872 = vmatmul.msk.f32.gmra.mxu3 %vm178_vm0, %v1067_v40  ;;  %908 = vmatpush.msra.mxu2 %v34_v20 }
  0x72   :  { %863 = vmatmul.msk.f32.gmra.mxu1 %vm178_vm0, %v1010_v25 }
  0x73   :  { %875 = vmatmul.msk.f32.gmra.mxu0 %vm178_vm0, %v1010_v25  ;;  %881 = vmatmul.msk.f32.vlgmr.msrb.gmra.mxu2 %vm178_vm0, %v1005_v24 }
  0x74   :  { %885 = vmatmul.msk.f32.vlgmr.msrb.gmra.mxu3 %vm178_vm0, %v1005_v24 }
  0x7a   :  { %864 = vmatmul.msk.f32.gmra.mxu1 %vm178_vm0, %v1067_v40 }
  0x7b   :  { %876 = vmatmul.msk.f32.gmra.mxu0 %vm178_vm0, %v1067_v40  ;;  %882 = vmatmul.msk.f32.gmra.mxu2 %vm178_vm0, %v1059_v38 }
  0x7c   :  { %886 = vmatmul.msk.f32.gmra.mxu3 %vm178_vm0, %v1059_v38 }
  0x82   :  { %877 = vmatmul.msk.f32.vlgmr.msra.gmra.mxu1 %vm178_vm0, %v1005_v24 }
  0x83   :  { %883 = vmatmul.msk.f32.gmra.mxu2 %vm178_vm0, %v1010_v25  ;;  %889 = vmatmul.msk.f32.vlgmr.msra.gmra.mxu0 %vm178_vm0, %v1005_v24 }
  0x84   :  { %887 = vmatmul.msk.f32.gmra.mxu3 %vm178_vm0, %v1010_v25 }
  0x8a   :  { %878 = vmatmul.msk.f32.gmra.mxu1 %vm178_vm0, %v1059_v38  ;;  %v1501_v21 = vpop.permute.xlu1 %170 }
  0x8b   :  { %884 = vmatmul.msk.f32.gmra.mxu2 %vm178_vm0, %v1067_v40  ;;  %890 = vmatmul.msk.f32.gmra.mxu0 %vm178_vm0, %v1059_v38 }
  0x8c   :  { %888 = vmatmul.msk.f32.gmra.mxu3 %vm178_vm0, %v1067_v40 }
  0x8e   :  { %v208_v22 = vpop.f32.mrf.mxu0 }
  0x8f   :  { %v214_v23 = vpop.f32.mrf.mxu1 }
  0x90   :  { %v215_v24 = vadd.f32 %v214_v23, %v1501_v21 }
  0x92   :  { %v718_v26 = vmax.f32 %v215_v24, 0.0  ;;  %879 = vmatmul.msk.f32.gmra.mxu1 %vm178_vm0, %v1010_v25 }
  0x93   :  { %891 = vmatmul.msk.f32.gmra.mxu0 %vm178_vm0, %v1010_v25  ;;  %892 = vmatmul.msk.f32.vlgmr.msra.gmra.mxu2 %vm178_vm0, %v1067_v40 }
  0x94   :  { %787 = vst [vmem:[%s1796_s3 + $0x110] sm:$0xff] %v718_v26 }
  0x95   :  { %v266_v38 = vpop.f32.mrf.mxu2 }
  0x96   :  { %v211_v27 = vpop.f32.mrf.mxu0 }
  0x97   :  { %v1513_v28 = vpop.permute.xlu1 %175  ;;  %v1515_v29 = vpop.permute.xlu0 %160 }
  0x98   :  { %v209_v30 = vadd.f32 %v208_v22, %v1515_v29  ;;  %v267_v31 = vadd.f32 %v266_v38, %v1515_v29  ;;  %v217_v32 = vpop.f32.mrf.mxu1  ;;  %v295_v33 = vpop.f32.mrf.mxu3 }
  0x99   :  { %v218_v25 = vadd.f32 %v217_v32, %v1513_v28  ;;  %v296_v34 = vadd.f32 %v295_v33, %v1515_v29 }
  0x9a   :  { %v684_v35 = vmax.f32 %v209_v30, 0.0  ;;  %v686_v36 = vmax.f32 %v267_v31, 0.0  ;;  %880 = vmatmul.msk.f32.gmra.mxu1 %vm178_vm0, %v1067_v40 }
  0x9b   :  { %v735_v37 = vmax.f32 %v218_v25, 0.0  ;;  %v687_v39 = vmax.f32 %v296_v34, 0.0 }
  0x9c   :  { %752 = vst [vmem:[%s1796_s3] sm:$0xff] %v684_v35 }
  0x9d   :  { %754 = vst [vmem:[%s1796_s3 + $0x10] sm:$0xff] %v686_v36 }
  0x9e   :  { %804 = vst [vmem:[%s1796_s3 + $0x198] sm:$0xff] %v735_v37  ;;  %v269_v41 = vpop.f32.mrf.mxu2 }
  0x9f   :  { %755 = vst [vmem:[%s1796_s3 + $0x18] sm:$0xff] %v687_v39  ;;  %v1535_v40 = vpop.permute.xlu0 %165 }
  0xa0   :  { %v212_v42 = vadd.f32 %v211_v27, %v1535_v40  ;;  %v270_v43 = vadd.f32 %v269_v41, %v1535_v40  ;;  %v237_v44 = vpop.f32.mrf.mxu1  ;;  %v298_v45 = vpop.f32.mrf.mxu3 }
  0xa1   :  { %v238_v46 = vadd.f32 %v237_v44, %v1515_v29  ;;  %v299_v47 = vadd.f32 %v298_v45, %v1535_v40  ;;  %v324_v48 = vpop.f32.mrf.mxu0 }
  0xa2   :  { %v701_v49 = vmax.f32 %v212_v42, 0.0  ;;  %v703_v50 = vmax.f32 %v270_v43, 0.0  ;;  %v325_v51 = vadd.f32 %v324_v48, %v1515_v29 }
  0xa3   :  { %v685_v52 = vmax.f32 %v238_v46, 0.0  ;;  %v704_v53 = vmax.f32 %v299_v47, 0.0 }
  0xa4   :  { %770 = vst [vmem:[%s1796_s3 + $0x88] sm:$0xff] %v701_v49  ;;  %v688_v54 = vmax.f32 %v325_v51, 0.0 }
  0xa5   :  { %772 = vst [vmem:[%s1796_s3 + $0x98] sm:$0xff] %v703_v50 }
  0xa6   :  { %753 = vst [vmem:[%s1796_s3 + $0x8] sm:$0xff] %v685_v52  ;;  %v272_v55 = vpop.f32.mrf.mxu2 }
  0xa7   :  { %773 = vst [vmem:[%s1796_s3 + $0xa0] sm:$0xff] %v704_v53  ;;  %v273_v56 = vadd.f32 %v272_v55, %v1501_v21 }
  0xa8   :  { %756 = vst [vmem:[%s1796_s3 + $0x20] sm:$0xff] %v688_v54  ;;  %v240_v57 = vpop.f32.mrf.mxu1  ;;  %v301_v58 = vpop.f32.mrf.mxu3 }
  0xa9   :  { %v720_v59 = vmax.f32 %v273_v56, 0.0  ;;  %v241_v60 = vadd.f32 %v240_v57, %v1535_v40  ;;  %v302_v61 = vadd.f32 %v301_v58, %v1501_v21  ;;  %v327_v62 = vpop.f32.mrf.mxu0 }
  0xaa   :  { %v328_v63 = vadd.f32 %v327_v62, %v1535_v40 }
  0xab   :  { %789 = vst [vmem:[%s1796_s3 + $0x120] sm:$0xff] %v720_v59  ;;  %v702_v0 = vmax.f32 %v241_v60, 0.0  ;;  %v721_v1 = vmax.f32 %v302_v61, 0.0 }
  0xac   :  { %v705_v2 = vmax.f32 %v328_v63, 0.0 }
  0xad   :  { %771 = vst [vmem:[%s1796_s3 + $0x90] sm:$0xff] %v702_v0 }
  0xae   :  { %790 = vst [vmem:[%s1796_s3 + $0x128] sm:$0xff] %v721_v1  ;;  %v275_v3 = vpop.f32.mrf.mxu2 }
  0xaf   :  { %774 = vst [vmem:[%s1796_s3 + $0xa8] sm:$0xff] %v705_v2  ;;  %v276_v4 = vadd.f32 %v275_v3, %v1513_v28 }
  0xb0   :  { %v243_v5 = vpop.f32.mrf.mxu1  ;;  %v304_v6 = vpop.f32.mrf.mxu3 }
  0xb1   :  { %v737_v7 = vmax.f32 %v276_v4, 0.0  ;;  %v244_v8 = vadd.f32 %v243_v5, %v1501_v21  ;;  %v305_v9 = vadd.f32 %v304_v6, %v1513_v28  ;;  %v330_v10 = vpop.f32.mrf.mxu0 }
  0xb2   :  { %v331_v11 = vadd.f32 %v330_v10, %v1501_v21 }
  0xb3   :  { %806 = vst [vmem:[%s1796_s3 + $0x1a8] sm:$0xff] %v737_v7  ;;  %v719_v12 = vmax.f32 %v244_v8, 0.0  ;;  %v738_v13 = vmax.f32 %v305_v9, 0.0 }
  0xb4   :  { %v722_v14 = vmax.f32 %v331_v11, 0.0 }
  0xb5   :  { %788 = vst [vmem:[%s1796_s3 + $0x118] sm:$0xff] %v719_v12 }
  0xb6   :  { %807 = vst [vmem:[%s1796_s3 + $0x1b0] sm:$0xff] %v738_v13  ;;  %v382_v15 = vpop.f32.mrf.mxu2 }
  0xb7   :  { %791 = vst [vmem:[%s1796_s3 + $0x130] sm:$0xff] %v722_v14  ;;  %v383_v16 = vadd.f32 %v382_v15, %v1515_v29 }
  0xb8   :  { %v246_v17 = vpop.f32.mrf.mxu1  ;;  %v411_v18 = vpop.f32.mrf.mxu3 }
  0xb9   :  { %v690_v19 = vmax.f32 %v383_v16, 0.0  ;;  %v247_v20 = vadd.f32 %v246_v17, %v1513_v28  ;;  %v333_v22 = vpop.f32.mrf.mxu0  ;;  %v412_v23 = vadd.f32 %v411_v18, %v1515_v29 }
  0xba   :  { %v334_v24 = vadd.f32 %v333_v22, %v1513_v28 }
  0xbb   :  { %758 = vst [vmem:[%s1796_s3 + $0x30] sm:$0xff] %v690_v19  ;;  %v736_v26 = vmax.f32 %v247_v20, 0.0  ;;  %v691_v38 = vmax.f32 %v412_v23, 0.0 }
  0xbc   :  { %v739_v27 = vmax.f32 %v334_v24, 0.0 }
  0xbd   :  { %805 = vst [vmem:[%s1796_s3 + $0x1a0] sm:$0xff] %v736_v26 }
  0xbe   :  { %808 = vst [vmem:[%s1796_s3 + $0x1b8] sm:$0xff] %v739_v27  ;;  %v385_v30 = vpop.f32.mrf.mxu2 }
  0xbf   :  { %759 = vst [vmem:[%s1796_s3 + $0x38] sm:$0xff] %v691_v38  ;;  %v386_v31 = vadd.f32 %v385_v30, %v1535_v40 }
  0xc0   :  { %v353_v32 = vpop.f32.mrf.mxu1  ;;  %v414_v33 = vpop.f32.mrf.mxu3 }
  0xc1   :  { %v707_v25 = vmax.f32 %v386_v31, 0.0  ;;  %v354_v34 = vadd.f32 %v353_v32, %v1515_v29  ;;  %v415_v35 = vadd.f32 %v414_v33, %v1535_v40  ;;  %v440_v36 = vpop.f32.mrf.mxu0 }
  0xc2   :  { %v441_v37 = vadd.f32 %v440_v36, %v1515_v29 }
  0xc3   :  { %776 = vst [vmem:[%s1796_s3 + $0xb8] sm:$0xff] %v707_v25  ;;  %v689_v39 = vmax.f32 %v354_v34, 0.0  ;;  %v708_v41 = vmax.f32 %v415_v35, 0.0 }
  0xc4   :  { %v692_v42 = vmax.f32 %v441_v37, 0.0 }
  0xc5   :  { %757 = vst [vmem:[%s1796_s3 + $0x28] sm:$0xff] %v689_v39 }
  0xc6   :  { %777 = vst [vmem:[%s1796_s3 + $0xc0] sm:$0xff] %v708_v41  ;;  %v388_v43 = vpop.f32.mrf.mxu2 }
  0xc7   :  { %760 = vst [vmem:[%s1796_s3 + $0x40] sm:$0xff] %v692_v42  ;;  %v389_v44 = vadd.f32 %v388_v43, %v1501_v21 }
  0xc8   :  { %v356_v45 = vpop.f32.mrf.mxu1  ;;  %v417_v46 = vpop.f32.mrf.mxu3 }
  0xc9   :  { %v724_v47 = vmax.f32 %v389_v44, 0.0  ;;  %v357_v48 = vadd.f32 %v356_v45, %v1535_v40  ;;  %v418_v49 = vadd.f32 %v417_v46, %v1501_v21  ;;  %v443_v50 = vpop.f32.mrf.mxu0 }
  0xca   :  { %v444_v51 = vadd.f32 %v443_v50, %v1535_v40 }
  0xcb   :  { %793 = vst [vmem:[%s1796_s3 + $0x140] sm:$0xff] %v724_v47  ;;  %v706_v52 = vmax.f32 %v357_v48, 0.0  ;;  %v725_v53 = vmax.f32 %v418_v49, 0.0 }
  0xcc   :  { %v709_v54 = vmax.f32 %v444_v51, 0.0 }
  0xcd   :  { %775 = vst [vmem:[%s1796_s3 + $0xb0] sm:$0xff] %v706_v52 }
  0xce   :  { %794 = vst [vmem:[%s1796_s3 + $0x148] sm:$0xff] %v725_v53  ;;  %v391_v55 = vpop.f32.mrf.mxu2 }
  0xcf   :  { %778 = vst [vmem:[%s1796_s3 + $0xc8] sm:$0xff] %v709_v54  ;;  %v392_v56 = vadd.f32 %v391_v55, %v1513_v28 }
  0xd0   :  { %v359_v57 = vpop.f32.mrf.mxu1  ;;  %v420_v58 = vpop.f32.mrf.mxu3 }
  0xd1   :  { %v741_v59 = vmax.f32 %v392_v56, 0.0  ;;  %v360_v60 = vadd.f32 %v359_v57, %v1501_v21  ;;  %v421_v61 = vadd.f32 %v420_v58, %v1513_v28  ;;  %v446_v62 = vpop.f32.mrf.mxu0 }
  0xd2   :  { %v447_v63 = vadd.f32 %v446_v62, %v1501_v21 }
  0xd3   :  { %810 = vst [vmem:[%s1796_s3 + $0x1c8] sm:$0xff] %v741_v59  ;;  %v723_v0 = vmax.f32 %v360_v60, 0.0  ;;  %v742_v1 = vmax.f32 %v421_v61, 0.0 }
  0xd4   :  { %v726_v2 = vmax.f32 %v447_v63, 0.0 }
  0xd5   :  { %792 = vst [vmem:[%s1796_s3 + $0x138] sm:$0xff] %v723_v0 }
  0xd6   :  { %811 = vst [vmem:[%s1796_s3 + $0x1d0] sm:$0xff] %v742_v1  ;;  %v498_v3 = vpop.f32.mrf.mxu2 }
  0xd7   :  { %795 = vst [vmem:[%s1796_s3 + $0x150] sm:$0xff] %v726_v2  ;;  %v499_v4 = vadd.f32 %v498_v3, %v1515_v29 }
  0xd8   :  { %v362_v5 = vpop.f32.mrf.mxu1  ;;  %v527_v6 = vpop.f32.mrf.mxu3 }
  0xd9   :  { %v694_v7 = vmax.f32 %v499_v4, 0.0  ;;  %v363_v8 = vadd.f32 %v362_v5, %v1513_v28  ;;  %v449_v9 = vpop.f32.mrf.mxu0  ;;  %v528_v10 = vadd.f32 %v527_v6, %v1515_v29 }
  0xda   :  { %v450_v11 = vadd.f32 %v449_v9, %v1513_v28 }
  0xdb   :  { %762 = vst [vmem:[%s1796_s3 + $0x50] sm:$0xff] %v694_v7  ;;  %v740_v12 = vmax.f32 %v363_v8, 0.0  ;;  %v695_v13 = vmax.f32 %v528_v10, 0.0 }
  0xdc   :  { %v743_v14 = vmax.f32 %v450_v11, 0.0 }
  0xdd   :  { %809 = vst [vmem:[%s1796_s3 + $0x1c0] sm:$0xff] %v740_v12 }
  0xde   :  { %812 = vst [vmem:[%s1796_s3 + $0x1d8] sm:$0xff] %v743_v14  ;;  %v501_v15 = vpop.f32.mrf.mxu2 }
  0xdf   :  { %763 = vst [vmem:[%s1796_s3 + $0x58] sm:$0xff] %v695_v13  ;;  %v502_v16 = vadd.f32 %v501_v15, %v1535_v40 }
  0xe0   :  { %v469_v17 = vpop.f32.mrf.mxu1  ;;  %v530_v18 = vpop.f32.mrf.mxu3 }
  0xe1   :  { %v711_v19 = vmax.f32 %v502_v16, 0.0  ;;  %v470_v20 = vadd.f32 %v469_v17, %v1515_v29  ;;  %v531_v22 = vadd.f32 %v530_v18, %v1535_v40  ;;  %v556_v23 = vpop.f32.mrf.mxu0 }
  0xe2   :  { %v557_v24 = vadd.f32 %v556_v23, %v1515_v29 }
  0xe3   :  { %780 = vst [vmem:[%s1796_s3 + $0xd8] sm:$0xff] %v711_v19  ;;  %v693_v26 = vmax.f32 %v470_v20, 0.0  ;;  %v712_v38 = vmax.f32 %v531_v22, 0.0 }
  0xe4   :  { %v696_v27 = vmax.f32 %v557_v24, 0.0 }
  0xe5   :  { %761 = vst [vmem:[%s1796_s3 + $0x48] sm:$0xff] %v693_v26 }
  0xe6   :  { %781 = vst [vmem:[%s1796_s3 + $0xe0] sm:$0xff] %v712_v38  ;;  %v504_v30 = vpop.f32.mrf.mxu2 }
  0xe7   :  { %764 = vst [vmem:[%s1796_s3 + $0x60] sm:$0xff] %v696_v27  ;;  %v505_v31 = vadd.f32 %v504_v30, %v1501_v21 }
  0xe8   :  { %v472_v32 = vpop.f32.mrf.mxu1  ;;  %v533_v33 = vpop.f32.mrf.mxu3 }
  0xe9   :  { %v728_v25 = vmax.f32 %v505_v31, 0.0  ;;  %v473_v34 = vadd.f32 %v472_v32, %v1535_v40  ;;  %v534_v35 = vadd.f32 %v533_v33, %v1501_v21  ;;  %v559_v36 = vpop.f32.mrf.mxu0 }
  0xea   :  { %v560_v37 = vadd.f32 %v559_v36, %v1535_v40 }
  0xeb   :  { %797 = vst [vmem:[%s1796_s3 + $0x160] sm:$0xff] %v728_v25  ;;  %v710_v39 = vmax.f32 %v473_v34, 0.0  ;;  %v729_v41 = vmax.f32 %v534_v35, 0.0 }
  0xec   :  { %v713_v42 = vmax.f32 %v560_v37, 0.0 }
  0xed   :  { %779 = vst [vmem:[%s1796_s3 + $0xd0] sm:$0xff] %v710_v39 }
  0xee   :  { %798 = vst [vmem:[%s1796_s3 + $0x168] sm:$0xff] %v729_v41  ;;  %v507_v43 = vpop.f32.mrf.mxu2 }
  0xef   :  { %782 = vst [vmem:[%s1796_s3 + $0xe8] sm:$0xff] %v713_v42  ;;  %v508_v44 = vadd.f32 %v507_v43, %v1513_v28 }
  0xf0   :  { %v475_v45 = vpop.f32.mrf.mxu1  ;;  %v536_v46 = vpop.f32.mrf.mxu3 }
  0xf1   :  { %v745_v47 = vmax.f32 %v508_v44, 0.0  ;;  %v476_v48 = vadd.f32 %v475_v45, %v1501_v21  ;;  %v537_v49 = vadd.f32 %v536_v46, %v1513_v28  ;;  %v562_v50 = vpop.f32.mrf.mxu0 }
  0xf2   :  { %v563_v51 = vadd.f32 %v562_v50, %v1501_v21 }
  0xf3   :  { %814 = vst [vmem:[%s1796_s3 + $0x1e8] sm:$0xff] %v745_v47  ;;  %v727_v52 = vmax.f32 %v476_v48, 0.0  ;;  %v746_v53 = vmax.f32 %v537_v49, 0.0 }
  0xf4   :  { %v730_v54 = vmax.f32 %v563_v51, 0.0 }
  0xf5   :  { %796 = vst [vmem:[%s1796_s3 + $0x158] sm:$0xff] %v727_v52 }
  0xf6   :  { %815 = vst [vmem:[%s1796_s3 + $0x1f0] sm:$0xff] %v746_v53  ;;  %v614_v55 = vpop.f32.mrf.mxu2 }
  0xf7   :  { %799 = vst [vmem:[%s1796_s3 + $0x170] sm:$0xff] %v730_v54  ;;  %v615_v56 = vadd.f32 %v614_v55, %v1515_v29 }
  0xf8   :  { %v478_v57 = vpop.f32.mrf.mxu1  ;;  %v643_v58 = vpop.f32.mrf.mxu3 }
  0xf9   :  { %v698_v59 = vmax.f32 %v615_v56, 0.0  ;;  %v479_v60 = vadd.f32 %v478_v57, %v1513_v28  ;;  %v565_v61 = vpop.f32.mrf.mxu0  ;;  %v644_v62 = vadd.f32 %v643_v58, %v1515_v29 }
  0xfa   :  { %v566_v63 = vadd.f32 %v565_v61, %v1513_v28 }
  0xfb   :  { %766 = vst [vmem:[%s1796_s3 + $0x70] sm:$0xff] %v698_v59  ;;  %v744_v0 = vmax.f32 %v479_v60, 0.0  ;;  %v699_v1 = vmax.f32 %v644_v62, 0.0 }
  0xfc   :  { %v747_v2 = vmax.f32 %v566_v63, 0.0 }
  0xfd   :  { %813 = vst [vmem:[%s1796_s3 + $0x1e0] sm:$0xff] %v744_v0 }
  0xfe   :  { %816 = vst [vmem:[%s1796_s3 + $0x1f8] sm:$0xff] %v747_v2  ;;  %v617_v3 = vpop.f32.mrf.mxu2 }
  0xff   :  { %767 = vst [vmem:[%s1796_s3 + $0x78] sm:$0xff] %v699_v1  ;;  %v618_v4 = vadd.f32 %v617_v3, %v1535_v40 }
 0x100   :  { %v585_v5 = vpop.f32.mrf.mxu1  ;;  %v646_v6 = vpop.f32.mrf.mxu3 }
 0x101   :  { %v715_v7 = vmax.f32 %v618_v4, 0.0  ;;  %v586_v8 = vadd.f32 %v585_v5, %v1515_v29  ;;  %v647_v9 = vadd.f32 %v646_v6, %v1535_v40  ;;  %v672_v10 = vpop.f32.mrf.mxu0 }
 0x102   :  { %v673_v11 = vadd.f32 %v672_v10, %v1515_v29 }
 0x103   :  { %784 = vst [vmem:[%s1796_s3 + $0xf8] sm:$0xff] %v715_v7  ;;  %v697_v12 = vmax.f32 %v586_v8, 0.0  ;;  %v716_v13 = vmax.f32 %v647_v9, 0.0 }
 0x104   :  { %v700_v14 = vmax.f32 %v673_v11, 0.0 }
 0x105   :  { %765 = vst [vmem:[%s1796_s3 + $0x68] sm:$0xff] %v697_v12 }
 0x106   :  { %785 = vst [vmem:[%s1796_s3 + $0x100] sm:$0xff] %v716_v13  ;;  %v620_v15 = vpop.f32.mrf.mxu2 }
 0x107   :  { %769 = vst.msk [vmem:[%s1796_s3 + $0x80] sm:$0xff] %vm768_vm1, %v700_v14  ;;  %v621_v29 = vadd.f32 %v620_v15, %v1501_v21 }
 0x108   :  { %v588_v16 = vpop.f32.mrf.mxu1  ;;  %v649_v17 = vpop.f32.mrf.mxu3 }
 0x109   :  { %v732_v18 = vmax.f32 %v621_v29, 0.0  ;;  %v589_v19 = vadd.f32 %v588_v16, %v1535_v40  ;;  %v650_v20 = vadd.f32 %v649_v17, %v1501_v21  ;;  %v675_v22 = vpop.f32.mrf.mxu0 }
 0x10a   :  { %v676_v23 = vadd.f32 %v675_v22, %v1535_v40 }
 0x10b   :  { %801 = vst [vmem:[%s1796_s3 + $0x180] sm:$0xff] %v732_v18  ;;  %v714_v24 = vmax.f32 %v589_v19, 0.0  ;;  %v733_v26 = vmax.f32 %v650_v20, 0.0 }
 0x10c   :  { %v717_v38 = vmax.f32 %v676_v23, 0.0 }
 0x10d   :  { %783 = vst [vmem:[%s1796_s3 + $0xf0] sm:$0xff] %v714_v24 }
 0x10e   :  { %802 = vst [vmem:[%s1796_s3 + $0x188] sm:$0xff] %v733_v26  ;;  %v623_v27 = vpop.f32.mrf.mxu2 }
 0x10f   :  { %786 = vst.msk [vmem:[%s1796_s3 + $0x108] sm:$0xff] %vm768_vm1, %v717_v38  ;;  %v624_v40 = vadd.f32 %v623_v27, %v1513_v28 }
 0x110   :  { %v591_v30 = vpop.f32.mrf.mxu1  ;;  %v652_v31 = vpop.f32.mrf.mxu3 }
 0x111   :  { %v749_v32 = vmax.f32 %v624_v40, 0.0  ;;  %v592_v33 = vadd.f32 %v591_v30, %v1501_v21  ;;  %v653_v25 = vadd.f32 %v652_v31, %v1513_v28  ;;  %v678_v34 = vpop.f32.mrf.mxu0 }
 0x112   :  { %v679_v35 = vadd.f32 %v678_v34, %v1501_v21 }
 0x113   :  { %818 = vst [vmem:[%s1796_s3 + $0x208] sm:$0xff] %v749_v32  ;;  %v731_v36 = vmax.f32 %v592_v33, 0.0  ;;  %v750_v37 = vmax.f32 %v653_v25, 0.0 }
 0x114   :  { %v734_v39 = vmax.f32 %v679_v35, 0.0 }
 0x115   :  { %800 = vst [vmem:[%s1796_s3 + $0x178] sm:$0xff] %v731_v36 }
 0x116   :  { %819 = vst [vmem:[%s1796_s3 + $0x210] sm:$0xff] %v750_v37  ;;  %v681_v41 = vpop.f32.mrf.mxu2 }
 0x117   :  { %803 = vst.msk [vmem:[%s1796_s3 + $0x190] sm:$0xff] %vm768_vm1, %v734_v39  ;;  %v682_v21 = vadd.f32 %v681_v41, %v1513_v28 }
 0x118   :  { %v594_v42 = vpop.f32.mrf.mxu1 }
 0x119   :  { %v751_v43 = vmax.f32 %v682_v21, 0.0  ;;  %v595_v44 = vadd.f32 %v594_v42, %v1513_v28 }
 0x11b   :  { %820 = vst.msk [vmem:[%s1796_s3 + $0x218] sm:$0xff] %vm768_vm1, %v751_v43  ;;  %v748_v45 = vmax.f32 %v595_v44, 0.0 }
 0x11d   :  { %817 = vst [vmem:[%s1796_s3 + $0x200] sm:$0xff] %v748_v45 }

// kernel: deep_q_network_forward.5
= control target key start
LH: loop header
LB: loop body
LE: loop exit
PB: predicated region body
PF: predicated region fallthrough
CT: control target
= control target key end

     0   :  { %vm1041_vm0 = vcmask 293888   ;;  %s2419_s0 = inlined_call_operand.vmem [shape: f32[512,420], index: 0, kind: input, shape index: {}]   ;;  %s2420_s1 = inlined_call_operand.vmem [shape: f32[64,512], index: 1, kind: input, shape index: {}]   ;;  %s2421_s2 = inlined_call_operand.vmem [shape: f32[64,1], index: 2, kind: input, shape index: {}]   ;;  %s2422_s3 = inlined_call_operand.vmem [shape: f32[64,420], index: 3, kind: output, shape index: {}]  }
   0x1   :  { %v106_v0 = vld [vmem:[%s2419_s0 + $0x1e0] sm:$0xff]  ;;  %v1322_v63 = vld [vmem:[%s2420_s1 + $0x10] sm:$0xff] }
   0x2   :  { %v234_v1 = vld [vmem:[%s2419_s0 + $0x5e0] sm:$0xff]  ;;  %350 = vmatpush.msra.mxu0 %v106_v0  ;;  %v235_v0 = vld [vmem:[%s2419_s0 + $0x5e8] sm:$0xff] }
   0x3   :  { %v102_v2 = vld [vmem:[%s2419_s0 + $0x1c0] sm:$0xff]  ;;  %432 = vmatpush.msra.mxu2 %v234_v1 }
   0x4   :  { %v170_v3 = vld [vmem:[%s2419_s0 + $0x3e0] sm:$0xff]  ;;  %351 = vmatpush.msra.mxu0 %v102_v2 }
   0x5   :  { %v230_v4 = vld [vmem:[%s2419_s0 + $0x5c0] sm:$0xff]  ;;  %391 = vmatpush.msra.mxu1 %v170_v3  ;;  %v1336_v3 = vld [vmem:[%s2420_s1 + $0x8] sm:$0xff] }
   0x6   :  { %v298_v5 = vld [vmem:[%s2419_s0 + $0x7e0] sm:$0xff]  ;;  %433 = vmatpush.msra.mxu2 %v230_v4  ;;  %v1343_v4 = vld [vmem:[%s2420_s1 + $0x18] sm:$0xff] }
   0x7   :  { %473 = vmatpush.msra.mxu3 %v298_v5  ;;  %v98_v6 = vld [vmem:[%s2419_s0 + $0x1a0] sm:$0xff]  ;;  %v107_v5 = vld [vmem:[%s2419_s0 + $0x1e8] sm:$0xff] }
   0x8   :  { %v166_v7 = vld [vmem:[%s2419_s0 + $0x3c0] sm:$0xff]  ;;  %352 = vmatpush.msra.mxu0 %v98_v6  ;;  %v299_v6 = vld [vmem:[%s2419_s0 + $0x7e8] sm:$0xff] }
   0x9   :  { %v226_v8 = vld [vmem:[%s2419_s0 + $0x5a0] sm:$0xff]  ;;  %392 = vmatpush.msra.mxu1 %v166_v7  ;;  %v171_v7 = vld [vmem:[%s2419_s0 + $0x3e8] sm:$0xff] }
   0xa   :  { %v294_v9 = vld [vmem:[%s2419_s0 + $0x7c0] sm:$0xff]  ;;  %434 = vmatpush.msra.mxu2 %v226_v8  ;;  %v231_v8 = vld [vmem:[%s2419_s0 + $0x5c8] sm:$0xff] }
   0xb   :  { %v162_v10 = vld [vmem:[%s2419_s0 + $0x3a0] sm:$0xff]  ;;  %474 = vmatpush.msra.mxu3 %v294_v9  ;;  %v103_v9 = vld [vmem:[%s2419_s0 + $0x1c8] sm:$0xff] }
   0xc   :  { %v94_v11 = vld [vmem:[%s2419_s0 + $0x180] sm:$0xff]  ;;  %393 = vmatpush.msra.mxu1 %v162_v10  ;;  %v295_v10 = vld [vmem:[%s2419_s0 + $0x7c8] sm:$0xff] }
   0xd   :  { %v222_v12 = vld [vmem:[%s2419_s0 + $0x580] sm:$0xff]  ;;  %353 = vmatpush.msra.mxu0 %v94_v11  ;;  %v167_v11 = vld [vmem:[%s2419_s0 + $0x3c8] sm:$0xff] }
   0xe   :  { %v290_v13 = vld [vmem:[%s2419_s0 + $0x7a0] sm:$0xff]  ;;  %435 = vmatpush.msra.mxu2 %v222_v12  ;;  %v227_v12 = vld [vmem:[%s2419_s0 + $0x5a8] sm:$0xff] }
   0xf   :  { %v158_v14 = vld [vmem:[%s2419_s0 + $0x380] sm:$0xff]  ;;  %475 = vmatpush.msra.mxu3 %v290_v13  ;;  %v99_v13 = vld [vmem:[%s2419_s0 + $0x1a8] sm:$0xff] }
  0x10   :  { %v286_v15 = vld [vmem:[%s2419_s0 + $0x780] sm:$0xff]  ;;  %394 = vmatpush.msra.mxu1 %v158_v14 }
  0x11   :  { %v90_v16 = vld [vmem:[%s2419_s0 + $0x160] sm:$0xff]  ;;  %476 = vmatpush.msra.mxu3 %v286_v15  ;;  %v1382_v15 = vld [vmem:[%s2420_s1 + $0x30] sm:$0xff] }
  0x12   :  { %v218_v17 = vld [vmem:[%s2419_s0 + $0x560] sm:$0xff]  ;;  %354 = vmatpush.msra.mxu0 %v90_v16  ;;  %v291_v16 = vld [vmem:[%s2419_s0 + $0x7a8] sm:$0xff] }
  0x13   :  { %v154_v18 = vld [vmem:[%s2419_s0 + $0x360] sm:$0xff]  ;;  %436 = vmatpush.msra.mxu2 %v218_v17  ;;  %v1390_v17 = vld [vmem:[%s2420_s1 + $0x28] sm:$0xff] }
  0x14   :  { %v282_v19 = vld [vmem:[%s2419_s0 + $0x760] sm:$0xff]  ;;  %395 = vmatpush.msra.mxu1 %v154_v18  ;;  %v223_v18 = vld [vmem:[%s2419_s0 + $0x588] sm:$0xff] }
  0x15   :  { %v86_v20 = vld [vmem:[%s2419_s0 + $0x140] sm:$0xff]  ;;  %477 = vmatpush.msra.mxu3 %v282_v19  ;;  %v1400_v19 = vld [vmem:[%s2420_s1 + $0x38] sm:$0xff] }
  0x16   :  { %v214_v21 = vld [vmem:[%s2419_s0 + $0x540] sm:$0xff]  ;;  %355 = vmatpush.msra.mxu0 %v86_v20  ;;  %v163_v20 = vld [vmem:[%s2419_s0 + $0x3a8] sm:$0xff] }
  0x17   :  { %v150_v22 = vld [vmem:[%s2419_s0 + $0x340] sm:$0xff]  ;;  %437 = vmatpush.msra.mxu2 %v214_v21  ;;  %v1107_v21 = vmov 0  }
  0x18   :  { %v278_v23 = vld [vmem:[%s2419_s0 + $0x740] sm:$0xff]  ;;  %396 = vmatpush.msra.mxu1 %v150_v22  ;;  %1076 = vset.pattern.permute.xlu0 %v1107_v21 }
  0x19   :  { %v82_v24 = vld [vmem:[%s2419_s0 + $0x120] sm:$0xff]  ;;  %478 = vmatpush.msra.mxu3 %v278_v23  ;;  %v95_v23 = vld [vmem:[%s2419_s0 + $0x188] sm:$0xff]  ;;  %1077 = vset.pattern.permute.xlu1 %v1107_v21 }
  0x1a   :  { %v210_v25 = vld [vmem:[%s2419_s0 + $0x520] sm:$0xff]  ;;  %356 = vmatpush.msra.mxu0 %v82_v24  ;;  %v287_v24 = vld [vmem:[%s2419_s0 + $0x788] sm:$0xff]  ;;  %1078 = vset.pattern.permute.xlu2 %v1107_v21 }
  0x1b   :  { %v146_v26 = vld [vmem:[%s2419_s0 + $0x320] sm:$0xff]  ;;  %438 = vmatpush.msra.mxu2 %v210_v25  ;;  %v159_v25 = vld [vmem:[%s2419_s0 + $0x388] sm:$0xff] }
  0x1c   :  { %v274_v27 = vld [vmem:[%s2419_s0 + $0x720] sm:$0xff]  ;;  %397 = vmatpush.msra.mxu1 %v146_v26  ;;  %v219_v26 = vld [vmem:[%s2419_s0 + $0x568] sm:$0xff] }
  0x1d   :  { %v78_v28 = vld [vmem:[%s2419_s0 + $0x100] sm:$0xff]  ;;  %479 = vmatpush.msra.mxu3 %v274_v27  ;;  %v91_v27 = vld [vmem:[%s2419_s0 + $0x168] sm:$0xff] }
  0x1e   :  { %v206_v29 = vld [vmem:[%s2419_s0 + $0x500] sm:$0xff]  ;;  %357 = vmatpush.msra.mxu0 %v78_v28  ;;  %v283_v28 = vld [vmem:[%s2419_s0 + $0x768] sm:$0xff] }
  0x1f   :  { %v142_v30 = vld [vmem:[%s2419_s0 + $0x300] sm:$0xff]  ;;  %439 = vmatpush.msra.mxu2 %v206_v29  ;;  %v155_v29 = vld [vmem:[%s2419_s0 + $0x368] sm:$0xff] }
  0x20   :  { %v270_v31 = vld [vmem:[%s2419_s0 + $0x700] sm:$0xff]  ;;  %398 = vmatpush.msra.mxu1 %v142_v30 }
  0x21   :  { %v74_v32 = vld [vmem:[%s2419_s0 + $0xe0] sm:$0xff]  ;;  %480 = vmatpush.msra.mxu3 %v270_v31  ;;  %v1440_v31 = vld [vmem:[%s2420_s1 + $0x50] sm:$0xff] }
  0x22   :  { %v202_v33 = vld [vmem:[%s2419_s0 + $0x4e0] sm:$0xff]  ;;  %358 = vmatpush.msra.mxu0 %v74_v32  ;;  %v215_v32 = vld [vmem:[%s2419_s0 + $0x548] sm:$0xff] }
  0x23   :  { %v138_v34 = vld [vmem:[%s2419_s0 + $0x2e0] sm:$0xff]  ;;  %440 = vmatpush.msra.mxu2 %v202_v33  ;;  %v87_v33 = vld [vmem:[%s2419_s0 + $0x148] sm:$0xff] }
  0x24   :  { %v266_v35 = vld [vmem:[%s2419_s0 + $0x6e0] sm:$0xff]  ;;  %399 = vmatpush.msra.mxu1 %v138_v34  ;;  %v1451_v34 = vld [vmem:[%s2420_s1 + $0x48] sm:$0xff] }
  0x25   :  { %v70_v36 = vld [vmem:[%s2419_s0 + $0xc0] sm:$0xff]  ;;  %481 = vmatpush.msra.mxu3 %v266_v35  ;;  %v279_v35 = vld [vmem:[%s2419_s0 + $0x748] sm:$0xff] }
  0x26   :  { %v198_v37 = vld [vmem:[%s2419_s0 + $0x4c0] sm:$0xff]  ;;  %359 = vmatpush.msra.mxu0 %v70_v36  ;;  %v1461_v36 = vld [vmem:[%s2420_s1 + $0x58] sm:$0xff] }
  0x27   :  { %v134_v38 = vld [vmem:[%s2419_s0 + $0x2c0] sm:$0xff]  ;;  %441 = vmatpush.msra.mxu2 %v198_v37  ;;  %v151_v37 = vld [vmem:[%s2419_s0 + $0x348] sm:$0xff] }
  0x28   :  { %v262_v39 = vld [vmem:[%s2419_s0 + $0x6c0] sm:$0xff]  ;;  %400 = vmatpush.msra.mxu1 %v134_v38  ;;  %v303_v38 = vld [vmem:[%s2421_s2 + $0x8] sm:$0xff] }
  0x29   :  { %v66_v40 = vld [vmem:[%s2419_s0 + $0xa0] sm:$0xff]  ;;  %482 = vmatpush.msra.mxu3 %v262_v39  ;;  %v211_v39 = vld [vmem:[%s2419_s0 + $0x528] sm:$0xff] }
  0x2a   :  { %v194_v41 = vld [vmem:[%s2419_s0 + $0x4a0] sm:$0xff]  ;;  %360 = vmatpush.msra.mxu0 %v66_v40  ;;  %v83_v40 = vld [vmem:[%s2419_s0 + $0x128] sm:$0xff] }
  0x2b   :  { %v130_v42 = vld [vmem:[%s2419_s0 + $0x2a0] sm:$0xff]  ;;  %442 = vmatpush.msra.mxu2 %v194_v41  ;;  %v275_v41 = vld [vmem:[%s2419_s0 + $0x728] sm:$0xff] }
  0x2c   :  { %v258_v43 = vld [vmem:[%s2419_s0 + $0x6a0] sm:$0xff]  ;;  %401 = vmatpush.msra.mxu1 %v130_v42  ;;  %v147_v42 = vld [vmem:[%s2419_s0 + $0x328] sm:$0xff] }
  0x2d   :  { %v62_v44 = vld [vmem:[%s2419_s0 + $0x80] sm:$0xff]  ;;  %483 = vmatpush.msra.mxu3 %v258_v43  ;;  %v207_v43 = vld [vmem:[%s2419_s0 + $0x508] sm:$0xff] }
  0x2e   :  { %v190_v45 = vld [vmem:[%s2419_s0 + $0x480] sm:$0xff]  ;;  %361 = vmatpush.msra.mxu0 %v62_v44  ;;  %v304_v44 = vld [vmem:[%s2421_s2 + $0x10] sm:$0xff] }
  0x2f   :  { %v126_v46 = vld [vmem:[%s2419_s0 + $0x280] sm:$0xff]  ;;  %443 = vmatpush.msra.mxu2 %v190_v45  ;;  %322 = vperm.xlu1 %1077, %v304_v44   ;;  %v111_v44 = vld [vmem:[%s2419_s0 + $0x208] sm:$0xff] }
  0x30   :  { %v254_v47 = vld [vmem:[%s2419_s0 + $0x680] sm:$0xff]  ;;  %402 = vmatpush.msra.mxu1 %v126_v46  ;;  %v1497_v46 = vld [vmem:[%s2420_s1 + $0x70] sm:$0xff] }
  0x31   :  { %v58_v48 = vld [vmem:[%s2419_s0 + $0x60] sm:$0xff]  ;;  %484 = vmatpush.msra.mxu3 %v254_v47  ;;  %v79_v47 = vld [vmem:[%s2419_s0 + $0x108] sm:$0xff] }
  0x32   :  { %v186_v49 = vld [vmem:[%s2419_s0 + $0x460] sm:$0xff]  ;;  %362 = vmatpush.msra.mxu0 %v58_v48  ;;  %v271_v48 = vld [vmem:[%s2419_s0 + $0x708] sm:$0xff] }
  0x33   :  { %v122_v50 = vld [vmem:[%s2419_s0 + $0x260] sm:$0xff]  ;;  %444 = vmatpush.msra.mxu2 %v186_v49  ;;  %v1509_v49 = vld [vmem:[%s2420_s1 + $0x68] sm:$0xff] }
  0x34   :  { %v250_v51 = vld [vmem:[%s2419_s0 + $0x660] sm:$0xff]  ;;  %403 = vmatpush.msra.mxu1 %v122_v50  ;;  %v203_v50 = vld [vmem:[%s2419_s0 + $0x4e8] sm:$0xff] }
  0x35   :  { %v54_v52 = vld [vmem:[%s2419_s0 + $0x40] sm:$0xff]  ;;  %485 = vmatpush.msra.mxu3 %v250_v51  ;;  %v1519_v51 = vld [vmem:[%s2420_s1 + $0x78] sm:$0xff] }
  0x36   :  { %v182_v53 = vld [vmem:[%s2419_s0 + $0x440] sm:$0xff]  ;;  %363 = vmatpush.msra.mxu0 %v54_v52  ;;  %v143_v52 = vld [vmem:[%s2419_s0 + $0x308] sm:$0xff] }
  0x37   :  { %v118_v54 = vld [vmem:[%s2419_s0 + $0x240] sm:$0xff]  ;;  %445 = vmatpush.msra.mxu2 %v182_v53  ;;  %v75_v53 = vld [vmem:[%s2419_s0 + $0xe8] sm:$0xff] }
  0x38   :  { %v246_v55 = vld [vmem:[%s2419_s0 + $0x640] sm:$0xff]  ;;  %404 = vmatpush.msra.mxu1 %v118_v54  ;;  %v267_v54 = vld [vmem:[%s2419_s0 + $0x6e8] sm:$0xff] }
  0x39   :  { %v50_v56 = vld [vmem:[%s2419_s0 + $0x20] sm:$0xff]  ;;  %486 = vmatpush.msra.mxu3 %v246_v55  ;;  %v139_v55 = vld [vmem:[%s2419_s0 + $0x2e8] sm:$0xff] }
  0x3a   :  { %v178_v57 = vld [vmem:[%s2419_s0 + $0x420] sm:$0xff]  ;;  %364 = vmatpush.msra.mxu0 %v50_v56  ;;  %v199_v56 = vld [vmem:[%s2419_s0 + $0x4c8] sm:$0xff] }
  0x3b   :  { %v114_v58 = vld [vmem:[%s2419_s0 + $0x220] sm:$0xff]  ;;  %446 = vmatpush.msra.mxu2 %v178_v57  ;;  %v71_v57 = vld [vmem:[%s2419_s0 + $0xc8] sm:$0xff] }
  0x3c   :  { %v242_v59 = vld [vmem:[%s2419_s0 + $0x620] sm:$0xff]  ;;  %405 = vmatpush.msra.mxu1 %v114_v58  ;;  %v263_v58 = vld [vmem:[%s2419_s0 + $0x6c8] sm:$0xff] }
  0x3d   :  { %v46_v60 = vld [vmem:[%s2419_s0] sm:$0xff]  ;;  %487 = vmatpush.msra.mxu3 %v242_v59  ;;  %v305_v59 = vld [vmem:[%s2421_s2 + $0x18] sm:$0xff] }
  0x3e   :  { %v174_v61 = vld [vmem:[%s2419_s0 + $0x400] sm:$0xff]  ;;  %365 = vmatpush.msra.mxu0 %v46_v60  ;;  %v135_v60 = vld [vmem:[%s2419_s0 + $0x2c8] sm:$0xff]  ;;  %327 = vperm.xlu1 %1077, %v305_v59   ;;  %v296_v59 = vld [vmem:[%s2419_s0 + $0x7d0] sm:$0xff] }
  0x3f   :  { %v1317_v62 = vld [vmem:[%s2420_s1] sm:$0xff]  ;;  %447 = vmatpush.msra.mxu2 %v174_v61 }
  0x40   :  { %v110_v1 = vld [vmem:[%s2419_s0 + $0x200] sm:$0xff]  ;;  %366 = vmatmul.f32.vlgmr.msra.gmra.mxu0 %v1317_v62  ;;  %448 = vmatmul.f32.vlgmr.msra.gmra.mxu2 %v1322_v63 }
  0x41   :  { %v238_v2 = vld [vmem:[%s2419_s0 + $0x600] sm:$0xff]  ;;  %596 = vmatpush.msrb.mxu2 %v235_v0  ;;  %406 = vmatpush.msra.mxu1 %v110_v1  ;;  %v1558_v0 = vld [vmem:[%s2420_s1 + $0x90] sm:$0xff]  ;;  %v195_v1 = vld [vmem:[%s2419_s0 + $0x4a8] sm:$0xff] }
  0x42   :  { %488 = vmatpush.msra.mxu3 %v238_v2  ;;  %407 = vmatmul.f32.vlgmr.msra.gmra.mxu1 %v1336_v3  ;;  %v1377_v14 = vld [vmem:[%s2420_s1 + $0x20] sm:$0xff]  ;;  %v67_v2 = vld [vmem:[%s2419_s0 + $0xa8] sm:$0xff] }
  0x43   :  { %489 = vmatmul.f32.vlgmr.msra.gmra.mxu3 %v1343_v4  ;;  %514 = vmatpush.msrb.mxu0 %v107_v5  ;;  %v302_v22 = vld [vmem:[%s2421_s2] sm:$0xff]  ;;  %v1569_v5 = vld [vmem:[%s2420_s1 + $0x88] sm:$0xff] }
  0x44   :  { %637 = vmatpush.msrb.mxu3 %v299_v6  ;;  %555 = vmatpush.msrb.mxu1 %v171_v7  ;;  %v1435_v30 = vld [vmem:[%s2420_s1 + $0x40] sm:$0xff]  ;;  %v259_v6 = vld [vmem:[%s2419_s0 + $0x6a8] sm:$0xff]  ;;  %v1579_v7 = vld [vmem:[%s2420_s1 + $0x98] sm:$0xff] }
  0x45   :  { %597 = vmatpush.msrb.mxu2 %v231_v8  ;;  %515 = vmatpush.msrb.mxu0 %v103_v9  ;;  %v1492_v45 = vld [vmem:[%s2420_s1 + $0x60] sm:$0xff]  ;;  %v131_v8 = vld [vmem:[%s2419_s0 + $0x2a8] sm:$0xff] }
  0x46   :  { %638 = vmatpush.msrb.mxu3 %v295_v10  ;;  %556 = vmatpush.msrb.mxu1 %v167_v11  ;;  %v1553_v61 = vld [vmem:[%s2420_s1 + $0x80] sm:$0xff]  ;;  %v191_v9 = vld [vmem:[%s2419_s0 + $0x488] sm:$0xff] }
  0x47   :  { %598 = vmatpush.msrb.mxu2 %v227_v12  ;;  %516 = vmatpush.msrb.mxu0 %v99_v13  ;;  %v63_v10 = vld [vmem:[%s2419_s0 + $0x88] sm:$0xff]  ;;  %v1731_v21 = vld [vmem:[%s2420_s1 + $0xe0] sm:$0xff] }
  0x48   :  { %369 = vmatmul.f32.gmra.mxu0 %v1377_v14  ;;  %451 = vmatmul.f32.gmra.mxu2 %v1382_v15  ;;  %v255_v11 = vld [vmem:[%s2419_s0 + $0x688] sm:$0xff] }
  0x49   :  { %639 = vmatpush.msrb.mxu3 %v291_v16  ;;  %599 = vmatpush.msrb.mxu2 %v223_v18  ;;  %v127_v12 = vld [vmem:[%s2419_s0 + $0x288] sm:$0xff] }
  0x4a   :  { %410 = vmatmul.f32.gmra.mxu1 %v1390_v17  ;;  %312 = vperm.xlu0 %1076, %v302_v22   ;;  %v187_v13 = vld [vmem:[%s2419_s0 + $0x468] sm:$0xff]  ;;  %v1613_v22 = vld [vmem:[%s2420_s1 + $0xa0] sm:$0xff] }
  0x4b   :  { %492 = vmatmul.f32.gmra.mxu3 %v1400_v19  ;;  %557 = vmatpush.msrb.mxu1 %v163_v20  ;;  %v59_v16 = vld [vmem:[%s2419_s0 + $0x68] sm:$0xff] }
  0x4c   :  { %517 = vmatpush.msrb.mxu0 %v95_v23  ;;  %640 = vmatpush.msrb.mxu3 %v287_v24  ;;  %v251_v18 = vld [vmem:[%s2419_s0 + $0x668] sm:$0xff]  ;;  %v1618_v23 = vld [vmem:[%s2420_s1 + $0xb0] sm:$0xff] }
  0x4d   :  { %558 = vmatpush.msrb.mxu1 %v159_v25  ;;  %600 = vmatpush.msrb.mxu2 %v219_v26  ;;  %v123_v20 = vld [vmem:[%s2419_s0 + $0x268] sm:$0xff] }
  0x4e   :  { %518 = vmatpush.msrb.mxu0 %v91_v27  ;;  %641 = vmatpush.msrb.mxu3 %v283_v28  ;;  %v183_v24 = vld [vmem:[%s2419_s0 + $0x448] sm:$0xff]  ;;  %v1639_v28 = vld [vmem:[%s2420_s1 + $0xb8] sm:$0xff] }
  0x4f   :  { %559 = vmatpush.msrb.mxu1 %v155_v29  ;;  %601 = vmatpush.msrb.mxu2 %v215_v32  ;;  %v55_v25 = vld [vmem:[%s2419_s0 + $0x48] sm:$0xff] }
  0x50   :  { %372 = vmatmul.f32.gmra.mxu0 %v1435_v30  ;;  %454 = vmatmul.f32.gmra.mxu2 %v1440_v31  ;;  %v1629_v26 = vld [vmem:[%s2420_s1 + $0xa8] sm:$0xff] }
  0x51   :  { %519 = vmatpush.msrb.mxu0 %v87_v33  ;;  %642 = vmatpush.msrb.mxu3 %v279_v35  ;;  %v247_v27 = vld [vmem:[%s2419_s0 + $0x648] sm:$0xff] }
  0x52   :  { %413 = vmatmul.f32.gmra.mxu1 %v1451_v34  ;;  %317 = vperm.xlu0 %1076, %v303_v38   ;;  %v119_v29 = vld [vmem:[%s2419_s0 + $0x248] sm:$0xff] }
  0x53   :  { %495 = vmatmul.f32.gmra.mxu3 %v1461_v36  ;;  %560 = vmatpush.msrb.mxu1 %v151_v37  ;;  %v179_v32 = vld [vmem:[%s2419_s0 + $0x428] sm:$0xff] }
  0x54   :  { %602 = vmatpush.msrb.mxu2 %v211_v39  ;;  %520 = vmatpush.msrb.mxu0 %v83_v40  ;;  %v51_v33 = vld [vmem:[%s2419_s0 + $0x28] sm:$0xff]  ;;  %v308_v39 = vld [vmem:[%s2421_s2 + $0x30] sm:$0xff] }
  0x55   :  { %643 = vmatpush.msrb.mxu3 %v275_v41  ;;  %561 = vmatpush.msrb.mxu1 %v147_v42  ;;  %v243_v35 = vld [vmem:[%s2419_s0 + $0x628] sm:$0xff]  ;;  %v1673_v42 = vld [vmem:[%s2420_s1 + $0xc0] sm:$0xff] }
  0x56   :  { %603 = vmatpush.msrb.mxu2 %v207_v43  ;;  %521 = vmatpush.msrb.mxu0 %v79_v47  ;;  %v115_v37 = vld [vmem:[%s2419_s0 + $0x228] sm:$0xff]  ;;  %v1678_v43 = vld [vmem:[%s2420_s1 + $0xd0] sm:$0xff] }
  0x57   :  { %644 = vmatpush.msrb.mxu3 %v271_v48  ;;  %562 = vmatpush.msrb.mxu1 %v143_v52  ;;  %v175_v38 = vld [vmem:[%s2419_s0 + $0x408] sm:$0xff]  ;;  %v236_v47 = vld [vmem:[%s2419_s0 + $0x5f0] sm:$0xff]  ;;  %v1699_v52 = vld [vmem:[%s2420_s1 + $0xd8] sm:$0xff] }
  0x58   :  { %375 = vmatmul.f32.gmra.mxu0 %v1492_v45  ;;  %457 = vmatmul.f32.gmra.mxu2 %v1497_v46  ;;  %v47_v40 = vld [vmem:[%s2419_s0 + $0x8] sm:$0xff] }
  0x59   :  { %604 = vmatpush.msrb.mxu2 %v203_v50  ;;  %522 = vmatpush.msrb.mxu0 %v75_v53  ;;  %v239_v41 = vld [vmem:[%s2419_s0 + $0x608] sm:$0xff]  ;;  %v108_v50 = vld [vmem:[%s2419_s0 + $0x1f0] sm:$0xff] }
  0x5a   :  { %416 = vmatmul.f32.gmra.mxu1 %v1509_v49  ;;  %645 = vmatpush.msrb.mxu3 %v267_v54  ;;  %v1689_v48 = vld [vmem:[%s2420_s1 + $0xc8] sm:$0xff]  ;;  %v300_v53 = vld [vmem:[%s2419_s0 + $0x7f0] sm:$0xff] }
  0x5b   :  { %498 = vmatmul.f32.gmra.mxu3 %v1519_v51  ;;  %563 = vmatpush.msrb.mxu1 %v139_v55  ;;  %v172_v54 = vld [vmem:[%s2419_s0 + $0x3f0] sm:$0xff] }
  0x5c   :  { %605 = vmatpush.msrb.mxu2 %v199_v56  ;;  %523 = vmatpush.msrb.mxu0 %v71_v57  ;;  %v232_v55 = vld [vmem:[%s2419_s0 + $0x5d0] sm:$0xff]  ;;  %v306_v56 = vld [vmem:[%s2421_s2 + $0x20] sm:$0xff]  ;;  %v309_v57 = vld [vmem:[%s2421_s2 + $0x38] sm:$0xff] }
  0x5d   :  { %646 = vmatpush.msrb.mxu3 %v263_v58  ;;  %564 = vmatpush.msrb.mxu1 %v135_v60  ;;  %v104_v58 = vld [vmem:[%s2419_s0 + $0x1d0] sm:$0xff] }
  0x5e   :  { %606 = vmatpush.msrb.mxu2 %v195_v1  ;;  %524 = vmatpush.msrb.mxu0 %v67_v2  ;;  %v168_v60 = vld [vmem:[%s2419_s0 + $0x3d0] sm:$0xff] }
  0x5f   :  { %647 = vmatpush.msrb.mxu3 %v259_v6  ;;  %565 = vmatpush.msrb.mxu1 %v131_v8  ;;  %v1736_v1 = vld [vmem:[%s2420_s1 + $0xf0] sm:$0xff]  ;;  %v1747_v8 = vld [vmem:[%s2420_s1 + $0xe8] sm:$0xff] }
  0x60   :  { %378 = vmatmul.f32.gmra.mxu0 %v1553_v61  ;;  %460 = vmatmul.f32.gmra.mxu2 %v1558_v0  ;;  %v228_v2 = vld [vmem:[%s2419_s0 + $0x5b0] sm:$0xff] }
  0x61   :  { %607 = vmatpush.msrb.mxu2 %v191_v9  ;;  %525 = vmatpush.msrb.mxu0 %v63_v10  ;;  %v100_v6 = vld [vmem:[%s2419_s0 + $0x1b0] sm:$0xff]  ;;  %v1757_v10 = vld [vmem:[%s2420_s1 + $0xf8] sm:$0xff] }
  0x62   :  { %419 = vmatmul.f32.gmra.mxu1 %v1569_v5  ;;  %648 = vmatpush.msrb.mxu3 %v255_v11  ;;  %v292_v9 = vld [vmem:[%s2419_s0 + $0x7b0] sm:$0xff] }
  0x63   :  { %501 = vmatmul.f32.gmra.mxu3 %v1579_v7  ;;  %566 = vmatpush.msrb.mxu1 %v127_v12  ;;  %v164_v11 = vld [vmem:[%s2419_s0 + $0x3b0] sm:$0xff] }
  0x64   :  { %608 = vmatpush.msrb.mxu2 %v187_v13  ;;  %526 = vmatpush.msrb.mxu0 %v59_v16  ;;  %v224_v12 = vld [vmem:[%s2419_s0 + $0x590] sm:$0xff]  ;;  %v307_v16 = vld [vmem:[%s2421_s2 + $0x28] sm:$0xff] }
  0x65   :  { %649 = vmatpush.msrb.mxu3 %v251_v18  ;;  %567 = vmatpush.msrb.mxu1 %v123_v20  ;;  %v96_v13 = vld [vmem:[%s2419_s0 + $0x190] sm:$0xff] }
  0x66   :  { %609 = vmatpush.msrb.mxu2 %v183_v24  ;;  %527 = vmatpush.msrb.mxu0 %v55_v25  ;;  %v288_v18 = vld [vmem:[%s2419_s0 + $0x790] sm:$0xff] }
  0x67   :  { %650 = vmatpush.msrb.mxu3 %v247_v27  ;;  %568 = vmatpush.msrb.mxu1 %v119_v29  ;;  %v160_v20 = vld [vmem:[%s2419_s0 + $0x390] sm:$0xff] }
  0x68   :  { %381 = vmatmul.f32.gmra.mxu0 %v1613_v22  ;;  %463 = vmatmul.f32.gmra.mxu2 %v1618_v23  ;;  %v220_v24 = vld [vmem:[%s2419_s0 + $0x570] sm:$0xff] }
  0x69   :  { %610 = vmatpush.msrb.mxu2 %v179_v32  ;;  %528 = vmatpush.msrb.mxu0 %v51_v33  ;;  %v92_v25 = vld [vmem:[%s2419_s0 + $0x170] sm:$0xff] }
  0x6a   :  { %422 = vmatmul.f32.gmra.mxu1 %v1629_v26  ;;  %651 = vmatpush.msrb.mxu3 %v243_v35  ;;  %v284_v27 = vld [vmem:[%s2419_s0 + $0x770] sm:$0xff] }
  0x6b   :  { %504 = vmatmul.f32.gmra.mxu3 %v1639_v28  ;;  %569 = vmatpush.msrb.mxu1 %v115_v37  ;;  %v156_v29 = vld [vmem:[%s2419_s0 + $0x370] sm:$0xff] }
  0x6c   :  { %611 = vmatpush.msrb.mxu2 %v175_v38  ;;  %342 = vperm.xlu0 %1076, %v308_v39   ;;  %v216_v32 = vld [vmem:[%s2419_s0 + $0x550] sm:$0xff] }
  0x6d   :  { %529 = vmatpush.msrb.mxu0 %v47_v40  ;;  %652 = vmatpush.msrb.mxu3 %v239_v41  ;;  %v88_v33 = vld [vmem:[%s2419_s0 + $0x150] sm:$0xff] }
  0x6e   :  { %570 = vmatpush.msrb.mxu1 %v111_v44  ;;  %760 = vmatpush.msra.mxu2 %v236_v47  ;;  %v152_v35 = vld [vmem:[%s2419_s0 + $0x350] sm:$0xff] }
  0x6f   :  { %678 = vmatpush.msra.mxu0 %v108_v50  ;;  %801 = vmatpush.msra.mxu3 %v300_v53  ;;  %v280_v37 = vld [vmem:[%s2419_s0 + $0x750] sm:$0xff] }
  0x70   :  { %384 = vmatmul.f32.gmra.mxu0 %v1673_v42  ;;  %466 = vmatmul.f32.gmra.mxu2 %v1678_v43  ;;  %v212_v38 = vld [vmem:[%s2419_s0 + $0x530] sm:$0xff] }
  0x71   :  { %719 = vmatpush.msra.mxu1 %v172_v54  ;;  %761 = vmatpush.msra.mxu2 %v232_v55  ;;  %v84_v39 = vld [vmem:[%s2419_s0 + $0x130] sm:$0xff] }
  0x72   :  { %425 = vmatmul.f32.gmra.mxu1 %v1689_v48  ;;  %332 = vperm.xlu2 %1078, %v306_v56   ;;  %v148_v40 = vld [vmem:[%s2419_s0 + $0x330] sm:$0xff] }
  0x73   :  { %507 = vmatmul.f32.gmra.mxu3 %v1699_v52  ;;  %347 = vperm.xlu1 %1077, %v309_v57   ;;  %v276_v41 = vld [vmem:[%s2419_s0 + $0x730] sm:$0xff] }
  0x74   :  { %679 = vmatpush.msra.mxu0 %v104_v58  ;;  %802 = vmatpush.msra.mxu3 %v296_v59  ;;  %v208_v44 = vld [vmem:[%s2419_s0 + $0x510] sm:$0xff] }
  0x75   :  { %720 = vmatpush.msra.mxu1 %v168_v60  ;;  %762 = vmatpush.msra.mxu2 %v228_v2  ;;  %v80_v47 = vld [vmem:[%s2419_s0 + $0x110] sm:$0xff] }
  0x76   :  { %680 = vmatpush.msra.mxu0 %v100_v6  ;;  %803 = vmatpush.msra.mxu3 %v292_v9  ;;  %v144_v50 = vld [vmem:[%s2419_s0 + $0x310] sm:$0xff] }
  0x77   :  { %721 = vmatpush.msra.mxu1 %v164_v11  ;;  %763 = vmatpush.msra.mxu2 %v224_v12  ;;  %v272_v53 = vld [vmem:[%s2419_s0 + $0x710] sm:$0xff] }
  0x78   :  { %387 = vmatmul.f32.gmra.mxu0 %v1731_v21  ;;  %469 = vmatmul.f32.gmra.mxu2 %v1736_v1  ;;  %v204_v54 = vld [vmem:[%s2419_s0 + $0x4f0] sm:$0xff] }
  0x79   :  { %681 = vmatpush.msra.mxu0 %v96_v13  ;;  %804 = vmatpush.msra.mxu3 %v288_v18  ;;  %v76_v55 = vld [vmem:[%s2419_s0 + $0xf0] sm:$0xff] }
  0x7a   :  { %428 = vmatmul.f32.gmra.mxu1 %v1747_v8  ;;  %337 = vperm.xlu2 %1078, %v307_v16   ;;  %v140_v56 = vld [vmem:[%s2419_s0 + $0x2f0] sm:$0xff] }
  0x7b   :  { %510 = vmatmul.f32.gmra.mxu3 %v1757_v10  ;;  %722 = vmatpush.msra.mxu1 %v160_v20  ;;  %v268_v57 = vld [vmem:[%s2419_s0 + $0x6f0] sm:$0xff] }
  0x7c   :  { %764 = vmatpush.msra.mxu2 %v220_v24  ;;  %682 = vmatpush.msra.mxu0 %v92_v25  ;;  %v200_v58 = vld [vmem:[%s2419_s0 + $0x4d0] sm:$0xff] }
  0x7d   :  { %805 = vmatpush.msra.mxu3 %v284_v27  ;;  %723 = vmatpush.msra.mxu1 %v156_v29  ;;  %v72_v59 = vld [vmem:[%s2419_s0 + $0xd0] sm:$0xff] }
  0x7e   :  { %765 = vmatpush.msra.mxu2 %v216_v32  ;;  %683 = vmatpush.msra.mxu0 %v88_v33  ;;  %v136_v60 = vld [vmem:[%s2419_s0 + $0x2d0] sm:$0xff] }
  0x7f   :  { %724 = vmatpush.msra.mxu1 %v152_v35  ;;  %806 = vmatpush.msra.mxu3 %v280_v37  ;;  %v264_v2 = vld [vmem:[%s2419_s0 + $0x6d0] sm:$0xff] }
  0x80   :  { %530 = vmatmul.f32.vlgmr.msrb.gmra.mxu0 %v1317_v62  ;;  %612 = vmatmul.f32.vlgmr.msrb.gmra.mxu2 %v1322_v63  ;;  %v196_v6 = vld [vmem:[%s2419_s0 + $0x4b0] sm:$0xff] }
  0x81   :  { %766 = vmatpush.msra.mxu2 %v212_v38  ;;  %684 = vmatpush.msra.mxu0 %v84_v39  ;;  %v68_v9 = vld [vmem:[%s2419_s0 + $0xb0] sm:$0xff] }
  0x82   :  { %571 = vmatmul.f32.vlgmr.msrb.gmra.mxu1 %v1336_v3  ;;  %807 = vmatpush.msra.mxu3 %v276_v41  ;;  %v132_v11 = vld [vmem:[%s2419_s0 + $0x2b0] sm:$0xff] }
  0x83   :  { %653 = vmatmul.f32.vlgmr.msrb.gmra.mxu3 %v1343_v4  ;;  %725 = vmatpush.msra.mxu1 %v148_v40  ;;  %v260_v12 = vld [vmem:[%s2419_s0 + $0x6b0] sm:$0xff] }
  0x84   :  { %767 = vmatpush.msra.mxu2 %v208_v44  ;;  %685 = vmatpush.msra.mxu0 %v80_v47  ;;  %v192_v13 = vld [vmem:[%s2419_s0 + $0x490] sm:$0xff] }
  0x85   :  { %726 = vmatpush.msra.mxu1 %v144_v50  ;;  %808 = vmatpush.msra.mxu3 %v272_v53  ;;  %v64_v16 = vld [vmem:[%s2419_s0 + $0x90] sm:$0xff] }
  0x86   :  { %768 = vmatpush.msra.mxu2 %v204_v54  ;;  %686 = vmatpush.msra.mxu0 %v76_v55  ;;  %v128_v18 = vld [vmem:[%s2419_s0 + $0x290] sm:$0xff]  ;;  %v237_v54 = vld [vmem:[%s2419_s0 + $0x5f8] sm:$0xff] }
  0x87   :  { %727 = vmatpush.msra.mxu1 %v140_v56  ;;  %809 = vmatpush.msra.mxu3 %v268_v57  ;;  %v256_v20 = vld [vmem:[%s2419_s0 + $0x690] sm:$0xff]  ;;  %v109_v55 = vld [vmem:[%s2419_s0 + $0x1f8] sm:$0xff] }
  0x88   :  { %533 = vmatmul.f32.gmra.mxu0 %v1377_v14  ;;  %615 = vmatmul.f32.gmra.mxu2 %v1382_v15  ;;  %v188_v24 = vld [vmem:[%s2419_s0 + $0x470] sm:$0xff]  ;;  %v301_v56 = vld [vmem:[%s2419_s0 + $0x7f8] sm:$0xff] }
  0x89   :  { %769 = vmatpush.msra.mxu2 %v200_v58  ;;  %687 = vmatpush.msra.mxu0 %v72_v59  ;;  %v60_v25 = vld [vmem:[%s2419_s0 + $0x70] sm:$0xff]  ;;  %v173_v57 = vld [vmem:[%s2419_s0 + $0x3f8] sm:$0xff] }
  0x8a   :  { %574 = vmatmul.f32.gmra.mxu1 %v1390_v17  ;;  %810 = vmatpush.msra.mxu3 %v264_v2  ;;  %v252_v27 = vld [vmem:[%s2419_s0 + $0x670] sm:$0xff]  ;;  %v233_v58 = vld [vmem:[%s2419_s0 + $0x5d8] sm:$0xff] }
  0x8b   :  { %656 = vmatmul.f32.gmra.mxu3 %v1400_v19  ;;  %728 = vmatpush.msra.mxu1 %v136_v60  ;;  %v124_v29 = vld [vmem:[%s2419_s0 + $0x270] sm:$0xff]  ;;  %v105_v59 = vld [vmem:[%s2419_s0 + $0x1d8] sm:$0xff] }
  0x8c   :  { %770 = vmatpush.msra.mxu2 %v196_v6  ;;  %688 = vmatpush.msra.mxu0 %v68_v9  ;;  %v184_v32 = vld [vmem:[%s2419_s0 + $0x450] sm:$0xff]  ;;  %v297_v60 = vld [vmem:[%s2419_s0 + $0x7d8] sm:$0xff] }
  0x8d   :  { %729 = vmatpush.msra.mxu1 %v132_v11  ;;  %811 = vmatpush.msra.mxu3 %v260_v12  ;;  %v56_v33 = vld [vmem:[%s2419_s0 + $0x50] sm:$0xff]  ;;  %v169_v2 = vld [vmem:[%s2419_s0 + $0x3d8] sm:$0xff] }
  0x8e   :  { %771 = vmatpush.msra.mxu2 %v192_v13  ;;  %689 = vmatpush.msra.mxu0 %v64_v16  ;;  %v248_v35 = vld [vmem:[%s2419_s0 + $0x650] sm:$0xff]  ;;  %v229_v6 = vld [vmem:[%s2419_s0 + $0x5b8] sm:$0xff] }
  0x8f   :  { %730 = vmatpush.msra.mxu1 %v128_v18  ;;  %812 = vmatpush.msra.mxu3 %v256_v20  ;;  %v120_v37 = vld [vmem:[%s2419_s0 + $0x250] sm:$0xff]  ;;  %v101_v9 = vld [vmem:[%s2419_s0 + $0x1b8] sm:$0xff] }
  0x90   :  { %536 = vmatmul.f32.gmra.mxu0 %v1435_v30  ;;  %618 = vmatmul.f32.gmra.mxu2 %v1440_v31  ;;  %v180_v38 = vld [vmem:[%s2419_s0 + $0x430] sm:$0xff]  ;;  %v293_v11 = vld [vmem:[%s2419_s0 + $0x7b8] sm:$0xff] }
  0x91   :  { %772 = vmatpush.msra.mxu2 %v188_v24  ;;  %690 = vmatpush.msra.mxu0 %v60_v25  ;;  %v52_v39 = vld [vmem:[%s2419_s0 + $0x30] sm:$0xff]  ;;  %v165_v12 = vld [vmem:[%s2419_s0 + $0x3b8] sm:$0xff] }
  0x92   :  { %577 = vmatmul.f32.gmra.mxu1 %v1451_v34  ;;  %813 = vmatpush.msra.mxu3 %v252_v27  ;;  %v244_v40 = vld [vmem:[%s2419_s0 + $0x630] sm:$0xff]  ;;  %v225_v13 = vld [vmem:[%s2419_s0 + $0x598] sm:$0xff] }
  0x93   :  { %659 = vmatmul.f32.gmra.mxu3 %v1461_v36  ;;  %731 = vmatpush.msra.mxu1 %v124_v29  ;;  %v116_v41 = vld [vmem:[%s2419_s0 + $0x230] sm:$0xff]  ;;  %v97_v16 = vld [vmem:[%s2419_s0 + $0x198] sm:$0xff] }
  0x94   :  { %773 = vmatpush.msra.mxu2 %v184_v32  ;;  %691 = vmatpush.msra.mxu0 %v56_v33  ;;  %v176_v44 = vld [vmem:[%s2419_s0 + $0x410] sm:$0xff]  ;;  %v289_v18 = vld [vmem:[%s2419_s0 + $0x798] sm:$0xff] }
  0x95   :  { %814 = vmatpush.msra.mxu3 %v248_v35  ;;  %732 = vmatpush.msra.mxu1 %v120_v37  ;;  %v48_v47 = vld [vmem:[%s2419_s0 + $0x10] sm:$0xff]  ;;  %v161_v20 = vld [vmem:[%s2419_s0 + $0x398] sm:$0xff] }
  0x96   :  { %774 = vmatpush.msra.mxu2 %v180_v38  ;;  %692 = vmatpush.msra.mxu0 %v52_v39  ;;  %v240_v50 = vld [vmem:[%s2419_s0 + $0x610] sm:$0xff]  ;;  %v221_v24 = vld [vmem:[%s2419_s0 + $0x578] sm:$0xff] }
  0x97   :  { %815 = vmatpush.msra.mxu3 %v244_v40  ;;  %733 = vmatpush.msra.mxu1 %v116_v41  ;;  %v112_v53 = vld [vmem:[%s2419_s0 + $0x210] sm:$0xff]  ;;  %v93_v25 = vld [vmem:[%s2419_s0 + $0x178] sm:$0xff] }
  0x98   :  { %539 = vmatmul.f32.gmra.mxu0 %v1492_v45  ;;  %621 = vmatmul.f32.gmra.mxu2 %v1497_v46  ;;  %v285_v27 = vld [vmem:[%s2419_s0 + $0x778] sm:$0xff] }
  0x99   :  { %775 = vmatpush.msra.mxu2 %v176_v44  ;;  %693 = vmatpush.msra.mxu0 %v48_v47  ;;  %v157_v29 = vld [vmem:[%s2419_s0 + $0x378] sm:$0xff] }
  0x9a   :  { %580 = vmatmul.f32.gmra.mxu1 %v1509_v49  ;;  %816 = vmatpush.msra.mxu3 %v240_v50  ;;  %v217_v32 = vld [vmem:[%s2419_s0 + $0x558] sm:$0xff] }
  0x9b   :  { %662 = vmatmul.f32.gmra.mxu3 %v1519_v51  ;;  %924 = vmatpush.msrb.mxu2 %v237_v54  ;;  %v89_v33 = vld [vmem:[%s2419_s0 + $0x158] sm:$0xff] }
  0x9c   :  { %734 = vmatpush.msra.mxu1 %v112_v53  ;;  %842 = vmatpush.msrb.mxu0 %v109_v55  ;;  %v281_v35 = vld [vmem:[%s2419_s0 + $0x758] sm:$0xff] }
  0x9d   :  { %965 = vmatpush.msrb.mxu3 %v301_v56  ;;  %925 = vmatpush.msrb.mxu2 %v233_v58  ;;  %v153_v37 = vld [vmem:[%s2419_s0 + $0x358] sm:$0xff] }
  0x9e   :  { %883 = vmatpush.msrb.mxu1 %v173_v57  ;;  %843 = vmatpush.msrb.mxu0 %v105_v59  ;;  %v213_v38 = vld [vmem:[%s2419_s0 + $0x538] sm:$0xff] }
  0x9f   :  { %966 = vmatpush.msrb.mxu3 %v297_v60  ;;  %926 = vmatpush.msrb.mxu2 %v229_v6  ;;  %v85_v39 = vld [vmem:[%s2419_s0 + $0x138] sm:$0xff] }
  0xa0   :  { %542 = vmatmul.f32.gmra.mxu0 %v1553_v61  ;;  %624 = vmatmul.f32.gmra.mxu2 %v1558_v0  ;;  %v277_v40 = vld [vmem:[%s2419_s0 + $0x738] sm:$0xff] }
  0xa1   :  { %884 = vmatpush.msrb.mxu1 %v169_v2  ;;  %844 = vmatpush.msrb.mxu0 %v101_v9  ;;  %v149_v44 = vld [vmem:[%s2419_s0 + $0x338] sm:$0xff] }
  0xa2   :  { %583 = vmatmul.f32.gmra.mxu1 %v1569_v5  ;;  %967 = vmatpush.msrb.mxu3 %v293_v11  ;;  %v209_v47 = vld [vmem:[%s2419_s0 + $0x518] sm:$0xff] }
  0xa3   :  { %665 = vmatmul.f32.gmra.mxu3 %v1579_v7  ;;  %885 = vmatpush.msrb.mxu1 %v165_v12  ;;  %v81_v57 = vld [vmem:[%s2419_s0 + $0x118] sm:$0xff] }
  0xa4   :  { %927 = vmatpush.msrb.mxu2 %v225_v13  ;;  %845 = vmatpush.msrb.mxu0 %v97_v16  ;;  %v273_v58 = vld [vmem:[%s2419_s0 + $0x718] sm:$0xff] }
  0xa5   :  { %968 = vmatpush.msrb.mxu3 %v289_v18  ;;  %886 = vmatpush.msrb.mxu1 %v161_v20  ;;  %v141_v2 = vld [vmem:[%s2419_s0 + $0x2f8] sm:$0xff] }
  0xa6   :  { %928 = vmatpush.msrb.mxu2 %v221_v24  ;;  %846 = vmatpush.msrb.mxu0 %v93_v25  ;;  %v201_v6 = vld [vmem:[%s2419_s0 + $0x4d8] sm:$0xff]  ;;  %v2078_v24 = vpop.permute.xlu1 %322 }
  0xa7   :  { %969 = vmatpush.msrb.mxu3 %v285_v27  ;;  %887 = vmatpush.msrb.mxu1 %v157_v29  ;;  %v73_v27 = vld [vmem:[%s2419_s0 + $0xd8] sm:$0xff] }
  0xa8   :  { %545 = vmatmul.f32.gmra.mxu0 %v1613_v22  ;;  %627 = vmatmul.f32.gmra.mxu2 %v1618_v23  ;;  %v69_v29 = vld [vmem:[%s2419_s0 + $0xb8] sm:$0xff] }
  0xa9   :  { %929 = vmatpush.msrb.mxu2 %v217_v32  ;;  %847 = vmatpush.msrb.mxu0 %v89_v33  ;;  %v261_v32 = vld [vmem:[%s2419_s0 + $0x6b8] sm:$0xff] }
  0xaa   :  { %586 = vmatmul.f32.gmra.mxu1 %v1629_v26  ;;  %970 = vmatpush.msrb.mxu3 %v281_v35  ;;  %v133_v35 = vld [vmem:[%s2419_s0 + $0x2b8] sm:$0xff] }
  0xab   :  { %668 = vmatmul.f32.gmra.mxu3 %v1639_v28  ;;  %888 = vmatpush.msrb.mxu1 %v153_v37  ;;  %v193_v37 = vld [vmem:[%s2419_s0 + $0x498] sm:$0xff] }
  0xac   :  { %930 = vmatpush.msrb.mxu2 %v213_v38  ;;  %848 = vmatpush.msrb.mxu0 %v85_v39 }
  0xad   :  { %971 = vmatpush.msrb.mxu3 %v277_v40  ;;  %889 = vmatpush.msrb.mxu1 %v149_v44 }
  0xae   :  { %931 = vmatpush.msrb.mxu2 %v209_v47  ;;  %849 = vmatpush.msrb.mxu0 %v81_v57  ;;  %v253_v57 = vld [vmem:[%s2419_s0 + $0x678] sm:$0xff] }
  0xaf   :  { %972 = vmatpush.msrb.mxu3 %v273_v58 }
  0xb0   :  { %548 = vmatmul.f32.gmra.mxu0 %v1673_v42  ;;  %630 = vmatmul.f32.gmra.mxu2 %v1678_v43 }
  0xb2   :  { %589 = vmatmul.f32.gmra.mxu1 %v1689_v48 }
  0xb3   :  { %671 = vmatmul.f32.gmra.mxu3 %v1699_v52 }
  0xb8   :  { %551 = vmatmul.f32.gmra.mxu0 %v1731_v21  ;;  %633 = vmatmul.f32.gmra.mxu2 %v1736_v1 }
  0xba   :  { %592 = vmatmul.f32.gmra.mxu1 %v1747_v8 }
  0xbb   :  { %674 = vmatmul.f32.gmra.mxu3 %v1757_v10 }
  0xbc   :  { %v2042_v50 = vpop.permute.xlu0 %312 }
  0xbd   :  { %v367_v41 = vpop.f32.mrf.mxu0 }
  0xbe   :  { %v368_v53 = vadd.f32 %v367_v41, %v2042_v50 }
  0xbf   :  { %v408_v54 = vpop.f32.mrf.mxu1 }
  0xc0   :  { %694 = vmatmul.f32.vlgmr.msra.gmra.mxu0 %v1317_v62  ;;  %776 = vmatmul.f32.vlgmr.msra.gmra.mxu2 %v1322_v63  ;;  %v409_v55 = vadd.f32 %v408_v54, %v368_v53  ;;  %v145_v62 = vld [vmem:[%s2419_s0 + $0x318] sm:$0xff]  ;;  %v2117_v54 = vpop.permute.xlu1 %327 }
  0xc1   :  { %v205_v63 = vld [vmem:[%s2419_s0 + $0x4f8] sm:$0xff]  ;;  %890 = vmatpush.msrb.mxu1 %v145_v62 }
  0xc2   :  { %735 = vmatmul.f32.vlgmr.msra.gmra.mxu1 %v1336_v3  ;;  %v77_v3 = vld [vmem:[%s2419_s0 + $0xf8] sm:$0xff]  ;;  %932 = vmatpush.msrb.mxu2 %v205_v63 }
  0xc3   :  { %817 = vmatmul.f32.vlgmr.msra.gmra.mxu3 %v1343_v4  ;;  %v449_v56 = vpop.f32.mrf.mxu2  ;;  %v269_v4 = vld [vmem:[%s2419_s0 + $0x6f8] sm:$0xff]  ;;  %850 = vmatpush.msrb.mxu0 %v77_v3 }
  0xc4   :  { %v450_v59 = vadd.f32 %v449_v56, %v409_v55  ;;  %v2073_v11 = vpop.permute.xlu0 %317  ;;  %973 = vmatpush.msrb.mxu3 %v269_v4  ;;  %891 = vmatpush.msrb.mxu1 %v141_v2  ;;  %v65_v55 = vld [vmem:[%s2419_s0 + $0x98] sm:$0xff] }
  0xc5   :  { %v370_v60 = vpop.f32.mrf.mxu0  ;;  %933 = vmatpush.msrb.mxu2 %v201_v6  ;;  %851 = vmatpush.msrb.mxu0 %v73_v27  ;;  %v61_v56 = vld [vmem:[%s2419_s0 + $0x78] sm:$0xff] }
  0xc6   :  { %v490_v9 = vpop.f32.mrf.mxu3  ;;  %v371_v13 = vadd.f32 %v370_v60, %v2073_v11  ;;  %v125_v62 = vld [vmem:[%s2419_s0 + $0x278] sm:$0xff] }
  0xc7   :  { %v491_v12 = vadd.f32 %v490_v9, %v450_v59  ;;  %v411_v16 = vpop.f32.mrf.mxu1  ;;  %852 = vmatpush.msrb.mxu0 %v69_v29  ;;  %v185_v59 = vld [vmem:[%s2419_s0 + $0x458] sm:$0xff] }
  0xc8   :  { %697 = vmatmul.f32.gmra.mxu0 %v1377_v14  ;;  %779 = vmatmul.f32.gmra.mxu2 %v1382_v15  ;;  %v412_v20 = vadd.f32 %v411_v16, %v371_v13  ;;  %v265_v14 = vld [vmem:[%s2419_s0 + $0x6d8] sm:$0xff] }
  0xc9   :  { %v1006_v18 = vmax.f32 %v491_v12, 0.0  ;;  %v137_v15 = vld [vmem:[%s2419_s0 + $0x2d8] sm:$0xff]  ;;  %974 = vmatpush.msrb.mxu3 %v265_v14  ;;  %853 = vmatpush.msrb.mxu0 %v65_v55 }
  0xca   :  { %738 = vmatmul.f32.gmra.mxu1 %v1390_v17  ;;  %v57_v13 = vld [vmem:[%s2419_s0 + $0x58] sm:$0xff] }
  0xcb   :  { %1038 = vst [vmem:[%s2422_s3] sm:$0xff] %v1006_v18  ;;  %820 = vmatmul.f32.gmra.mxu3 %v1400_v19  ;;  %v452_v25 = vpop.f32.mrf.mxu2  ;;  %v197_v19 = vld [vmem:[%s2419_s0 + $0x4b8] sm:$0xff]  ;;  %892 = vmatpush.msrb.mxu1 %v137_v15 }
  0xcc   :  { %v453_v17 = vadd.f32 %v452_v25, %v412_v20  ;;  %934 = vmatpush.msrb.mxu2 %v197_v19  ;;  %975 = vmatpush.msrb.mxu3 %v261_v32  ;;  %v2146_v9 = vpop.permute.xlu2 %332  ;;  %v53_v16 = vld [vmem:[%s2419_s0 + $0x38] sm:$0xff] }
  0xcd   :  { %v373_v33 = vpop.f32.mrf.mxu0  ;;  %893 = vmatpush.msrb.mxu1 %v133_v35  ;;  %854 = vmatpush.msrb.mxu0 %v61_v56  ;;  %v245_v18 = vld [vmem:[%s2419_s0 + $0x638] sm:$0xff] }
  0xce   :  { %v493_v38 = vpop.f32.mrf.mxu3  ;;  %v374_v39 = vadd.f32 %v373_v33, %v2078_v24  ;;  %935 = vmatpush.msrb.mxu2 %v193_v37  ;;  %v117_v25 = vld [vmem:[%s2419_s0 + $0x238] sm:$0xff] }
  0xcf   :  { %v494_v40 = vadd.f32 %v493_v38, %v453_v17  ;;  %v414_v41 = vpop.f32.mrf.mxu1  ;;  %855 = vmatpush.msrb.mxu0 %v57_v13  ;;  %v177_v27 = vld [vmem:[%s2419_s0 + $0x418] sm:$0xff] }
  0xd0   :  { %v415_v44 = vadd.f32 %v414_v41, %v374_v39  ;;  %700 = vmatmul.f32.gmra.mxu0 %v1435_v30  ;;  %782 = vmatmul.f32.gmra.mxu2 %v1440_v31  ;;  %v257_v30 = vld [vmem:[%s2419_s0 + $0x698] sm:$0xff] }
  0xd1   :  { %v1010_v47 = vmax.f32 %v494_v40, 0.0  ;;  %v129_v31 = vld [vmem:[%s2419_s0 + $0x298] sm:$0xff]  ;;  %976 = vmatpush.msrb.mxu3 %v257_v30  ;;  %856 = vmatpush.msrb.mxu0 %v53_v16  ;;  %v1081_v16 = vld [vmem:[%s2420_s1 + $0x8] sm:$0xff] }
  0xd2   :  { %741 = vmatmul.f32.gmra.mxu1 %v1451_v34  ;;  %v49_v29 = vld [vmem:[%s2419_s0 + $0x18] sm:$0xff] }
  0xd3   :  { %1043 = vst [vmem:[%s2422_s3 + $0x20] sm:$0xff] %v1010_v47  ;;  %823 = vmatmul.f32.gmra.mxu3 %v1461_v36  ;;  %v455_v53 = vpop.f32.mrf.mxu2  ;;  %v189_v36 = vld [vmem:[%s2419_s0 + $0x478] sm:$0xff]  ;;  %894 = vmatpush.msrb.mxu1 %v129_v31 }
  0xd4   :  { %v456_v34 = vadd.f32 %v455_v53, %v415_v44  ;;  %936 = vmatpush.msrb.mxu2 %v189_v36  ;;  %977 = vmatpush.msrb.mxu3 %v253_v57  ;;  %v241_v35 = vld [vmem:[%s2419_s0 + $0x618] sm:$0xff] }
  0xd5   :  { %v376_v58 = vpop.f32.mrf.mxu0  ;;  %895 = vmatpush.msrb.mxu1 %v125_v62  ;;  %857 = vmatpush.msrb.mxu0 %v49_v29  ;;  %v113_v37 = vld [vmem:[%s2419_s0 + $0x218] sm:$0xff] }
  0xd6   :  { %v496_v63 = vpop.f32.mrf.mxu3  ;;  %v377_v3 = vadd.f32 %v376_v58, %v2117_v54  ;;  %937 = vmatpush.msrb.mxu2 %v185_v59 }
  0xd7   :  { %v497_v4 = vadd.f32 %v496_v63, %v456_v34  ;;  %v417_v60 = vpop.f32.mrf.mxu1 }
  0xd8   :  { %v418_v2 = vadd.f32 %v417_v60, %v377_v3  ;;  %703 = vmatmul.f32.gmra.mxu0 %v1492_v45  ;;  %785 = vmatmul.f32.gmra.mxu2 %v1497_v46  ;;  %v249_v45 = vld [vmem:[%s2419_s0 + $0x658] sm:$0xff] }
  0xd9   :  { %v1014_v6 = vmax.f32 %v497_v4, 0.0  ;;  %v121_v46 = vld [vmem:[%s2419_s0 + $0x258] sm:$0xff]  ;;  %978 = vmatpush.msrb.mxu3 %v249_v45 }
  0xda   :  { %744 = vmatmul.f32.gmra.mxu1 %v1509_v49 }
  0xdb   :  { %1047 = vst [vmem:[%s2422_s3 + $0x40] sm:$0xff] %v1014_v6  ;;  %826 = vmatmul.f32.gmra.mxu3 %v1519_v51  ;;  %v458_v12 = vpop.f32.mrf.mxu2  ;;  %v181_v51 = vld [vmem:[%s2419_s0 + $0x438] sm:$0xff]  ;;  %896 = vmatpush.msrb.mxu1 %v121_v46  ;;  %v1079_v46 = vld [vmem:[%s2420_s1] sm:$0xff] }
  0xdc   :  { %v459_v49 = vadd.f32 %v458_v12, %v418_v2  ;;  %938 = vmatpush.msrb.mxu2 %v181_v51  ;;  %979 = vmatpush.msrb.mxu3 %v245_v18  ;;  %v1082_v18 = vld [vmem:[%s2420_s1 + $0x18] sm:$0xff] }
  0xdd   :  { %v379_v20 = vpop.f32.mrf.mxu0  ;;  %897 = vmatpush.msrb.mxu1 %v117_v25 }
  0xde   :  { %v499_v14 = vpop.f32.mrf.mxu3  ;;  %v380_v15 = vadd.f32 %v379_v20, %v2146_v9  ;;  %939 = vmatpush.msrb.mxu2 %v177_v27  ;;  %980 = vmatpush.msrb.mxu3 %v241_v35  ;;  %v2204_v55 = vpop.permute.xlu0 %342 }
  0xdf   :  { %v500_v17 = vadd.f32 %v499_v14, %v459_v49  ;;  %v420_v19 = vpop.f32.mrf.mxu1  ;;  %898 = vmatpush.msrb.mxu1 %v113_v37  ;;  %v1080_v49 = vld [vmem:[%s2420_s1 + $0x10] sm:$0xff]  ;;  %v1085_v37 = vld [vmem:[%s2420_s1 + $0x28] sm:$0xff] }
  0xe0   :  { %v421_v32 = vadd.f32 %v420_v19, %v380_v15  ;;  %706 = vmatmul.f32.gmra.mxu0 %v1553_v61  ;;  %788 = vmatmul.f32.gmra.mxu2 %v1558_v0  ;;  %v2194_v0 = vpop.permute.xlu2 %337 }
  0xe1   :  { %v1018_v33 = vmax.f32 %v500_v17, 0.0 }
  0xe2   :  { %747 = vmatmul.f32.gmra.mxu1 %v1569_v5 }
  0xe3   :  { %1051 = vst [vmem:[%s2422_s3 + $0x60] sm:$0xff] %v1018_v33  ;;  %829 = vmatmul.f32.gmra.mxu3 %v1579_v7  ;;  %v461_v61 = vpop.f32.mrf.mxu2  ;;  %v1084_v33 = vld [vmem:[%s2420_s1 + $0x30] sm:$0xff] }
  0xe4   :  { %v462_v38 = vadd.f32 %v461_v61, %v421_v32  ;;  %v1083_v32 = vld [vmem:[%s2420_s1 + $0x20] sm:$0xff]  ;;  %v1086_v61 = vld [vmem:[%s2420_s1 + $0x38] sm:$0xff] }
  0xe5   :  { %v382_v39 = vpop.f32.mrf.mxu0  ;;  %v2214_v57 = vpop.permute.xlu1 %347 }
  0xe6   :  { %v502_v40 = vpop.f32.mrf.mxu3  ;;  %v383_v41 = vadd.f32 %v382_v39, %v2194_v0 }
  0xe7   :  { %v503_v44 = vadd.f32 %v502_v40, %v462_v38  ;;  %v423_v47 = vpop.f32.mrf.mxu1 }
  0xe8   :  { %v424_v53 = vadd.f32 %v423_v47, %v383_v41  ;;  %709 = vmatmul.f32.gmra.mxu0 %v1613_v22  ;;  %791 = vmatmul.f32.gmra.mxu2 %v1618_v23 }
  0xe9   :  { %v1022_v5 = vmax.f32 %v503_v44, 0.0 }
  0xea   :  { %750 = vmatmul.f32.gmra.mxu1 %v1629_v26 }
  0xeb   :  { %1055 = vst [vmem:[%s2422_s3 + $0x80] sm:$0xff] %v1022_v5  ;;  %832 = vmatmul.f32.gmra.mxu3 %v1639_v28  ;;  %v464_v7 = vpop.f32.mrf.mxu2 }
  0xec   :  { %v465_v30 = vadd.f32 %v464_v7, %v424_v53  ;;  %v1087_v7 = vld [vmem:[%s2420_s1 + $0x40] sm:$0xff] }
  0xed   :  { %v385_v31 = vpop.f32.mrf.mxu0 }
  0xee   :  { %v505_v34 = vpop.f32.mrf.mxu3  ;;  %v386_v36 = vadd.f32 %v385_v31, %v2204_v55 }
  0xef   :  { %v506_v22 = vadd.f32 %v505_v34, %v465_v30  ;;  %v426_v56 = vpop.f32.mrf.mxu1  ;;  %v1088_v30 = vld [vmem:[%s2420_s1 + $0x50] sm:$0xff]  ;;  %v1089_v34 = vld [vmem:[%s2420_s1 + $0x48] sm:$0xff] }
  0xf0   :  { %v427_v23 = vadd.f32 %v426_v56, %v386_v36  ;;  %712 = vmatmul.f32.gmra.mxu0 %v1673_v42  ;;  %794 = vmatmul.f32.gmra.mxu2 %v1678_v43  ;;  %v1090_v36 = vld [vmem:[%s2420_s1 + $0x58] sm:$0xff] }
  0xf1   :  { %v1026_v26 = vmax.f32 %v506_v22, 0.0 }
  0xf2   :  { %753 = vmatmul.f32.gmra.mxu1 %v1689_v48 }
  0xf3   :  { %1059 = vst [vmem:[%s2422_s3 + $0xa0] sm:$0xff] %v1026_v26  ;;  %835 = vmatmul.f32.gmra.mxu3 %v1699_v52  ;;  %v467_v28 = vpop.f32.mrf.mxu2 }
  0xf4   :  { %v468_v58 = vadd.f32 %v467_v28, %v427_v23 }
  0xf5   :  { %v388_v62 = vpop.f32.mrf.mxu0 }
  0xf6   :  { %v508_v59 = vpop.f32.mrf.mxu3  ;;  %v389_v63 = vadd.f32 %v388_v62, %v2214_v57 }
  0xf7   :  { %v509_v42 = vadd.f32 %v508_v59, %v468_v58  ;;  %v429_v3 = vpop.f32.mrf.mxu1 }
  0xf8   :  { %v430_v43 = vadd.f32 %v429_v3, %v389_v63  ;;  %715 = vmatmul.f32.gmra.mxu0 %v1731_v21  ;;  %797 = vmatmul.f32.gmra.mxu2 %v1736_v1  ;;  %v1091_v63 = vld [vmem:[%s2420_s1 + $0x60] sm:$0xff] }
  0xf9   :  { %v1030_v48 = vmax.f32 %v509_v42, 0.0  ;;  %v1092_v42 = vld [vmem:[%s2420_s1 + $0x70] sm:$0xff] }
  0xfa   :  { %756 = vmatmul.f32.gmra.mxu1 %v1747_v8 }
  0xfb   :  { %1063 = vst [vmem:[%s2422_s3 + $0xc0] sm:$0xff] %v1030_v48  ;;  %838 = vmatmul.f32.gmra.mxu3 %v1757_v10  ;;  %v470_v52 = vpop.f32.mrf.mxu2  ;;  %v1094_v48 = vld [vmem:[%s2420_s1 + $0x78] sm:$0xff] }
  0xfc   :  { %v471_v4 = vadd.f32 %v470_v52, %v430_v43  ;;  %v1093_v43 = vld [vmem:[%s2420_s1 + $0x68] sm:$0xff] }
  0xfd   :  { %v531_v60 = vpop.f32.mrf.mxu0 }
  0xfe   :  { %v511_v2 = vpop.f32.mrf.mxu3  ;;  %v532_v6 = vadd.f32 %v531_v60, %v2042_v50 }
  0xff   :  { %v512_v12 = vadd.f32 %v511_v2, %v471_v4  ;;  %v572_v13 = vpop.f32.mrf.mxu1 }
 0x100   :  { %v573_v45 = vadd.f32 %v572_v13, %v532_v6  ;;  %858 = vmatmul.f32.vlgmr.msrb.gmra.mxu0 %v1079_v46  ;;  %940 = vmatmul.f32.vlgmr.msrb.gmra.mxu2 %v1080_v49  ;;  %v1095_v46 = vld [vmem:[%s2420_s1 + $0x80] sm:$0xff]  ;;  %v1096_v49 = vld [vmem:[%s2420_s1 + $0x90] sm:$0xff] }
 0x101   :  { %v1034_v51 = vmax.f32 %v512_v12, 0.0 }
 0x102   :  { %899 = vmatmul.f32.vlgmr.msrb.gmra.mxu1 %v1081_v16  ;;  %v1097_v16 = vld [vmem:[%s2420_s1 + $0x88] sm:$0xff] }
 0x103   :  { %1067 = vst [vmem:[%s2422_s3 + $0xe0] sm:$0xff] %v1034_v51  ;;  %981 = vmatmul.f32.vlgmr.msrb.gmra.mxu3 %v1082_v18  ;;  %v613_v20 = vpop.f32.mrf.mxu2  ;;  %v1098_v18 = vld [vmem:[%s2420_s1 + $0x98] sm:$0xff] }
 0x104   :  { %v614_v25 = vadd.f32 %v613_v20, %v573_v45 }
 0x105   :  { %v534_v27 = vpop.f32.mrf.mxu0 }
 0x106   :  { %v535_v14 = vadd.f32 %v534_v27, %v2073_v11  ;;  %v654_v15 = vpop.f32.mrf.mxu3 }
 0x107   :  { %v655_v17 = vadd.f32 %v654_v15, %v614_v25  ;;  %v575_v19 = vpop.f32.mrf.mxu1 }
 0x108   :  { %v576_v29 = vadd.f32 %v575_v19, %v535_v14  ;;  %861 = vmatmul.f32.gmra.mxu0 %v1083_v32  ;;  %943 = vmatmul.f32.gmra.mxu2 %v1084_v33  ;;  %v1099_v32 = vld [vmem:[%s2420_s1 + $0xa0] sm:$0xff]  ;;  %v1100_v33 = vld [vmem:[%s2420_s1 + $0xb0] sm:$0xff] }
 0x109   :  { %v1007_v35 = vmax.f32 %v655_v17, 0.0 }
 0x10a   :  { %902 = vmatmul.f32.gmra.mxu1 %v1085_v37  ;;  %v1101_v37 = vld [vmem:[%s2420_s1 + $0xa8] sm:$0xff] }
 0x10b   :  { %1039 = vst [vmem:[%s2422_s3 + $0x8] sm:$0xff] %v1007_v35  ;;  %984 = vmatmul.f32.gmra.mxu3 %v1086_v61  ;;  %v616_v38 = vpop.f32.mrf.mxu2  ;;  %v1102_v61 = vld [vmem:[%s2420_s1 + $0xb8] sm:$0xff] }
 0x10c   :  { %v617_v39 = vadd.f32 %v616_v38, %v576_v29 }
 0x10d   :  { %v537_v40 = vpop.f32.mrf.mxu0 }
 0x10e   :  { %v538_v41 = vadd.f32 %v537_v40, %v2078_v24  ;;  %v657_v44 = vpop.f32.mrf.mxu3 }
 0x10f   :  { %v658_v47 = vadd.f32 %v657_v44, %v617_v39  ;;  %v578_v53 = vpop.f32.mrf.mxu1 }
 0x110   :  { %v579_v5 = vadd.f32 %v578_v53, %v538_v41  ;;  %864 = vmatmul.f32.gmra.mxu0 %v1087_v7  ;;  %946 = vmatmul.f32.gmra.mxu2 %v1088_v30  ;;  %v1103_v7 = vld [vmem:[%s2420_s1 + $0xc0] sm:$0xff]  ;;  %v1104_v30 = vld [vmem:[%s2420_s1 + $0xd0] sm:$0xff] }
 0x111   :  { %v1011_v31 = vmax.f32 %v658_v47, 0.0 }
 0x112   :  { %905 = vmatmul.f32.gmra.mxu1 %v1089_v34  ;;  %v1105_v34 = vld [vmem:[%s2420_s1 + $0xc8] sm:$0xff] }
 0x113   :  { %1044 = vst [vmem:[%s2422_s3 + $0x28] sm:$0xff] %v1011_v31  ;;  %987 = vmatmul.f32.gmra.mxu3 %v1090_v36  ;;  %v619_v22 = vpop.f32.mrf.mxu2  ;;  %v1106_v36 = vld [vmem:[%s2420_s1 + $0xd8] sm:$0xff] }
 0x114   :  { %v620_v56 = vadd.f32 %v619_v22, %v579_v5 }
 0x115   :  { %v540_v23 = vpop.f32.mrf.mxu0 }
 0x116   :  { %v541_v26 = vadd.f32 %v540_v23, %v2117_v54  ;;  %v660_v28 = vpop.f32.mrf.mxu3 }
 0x117   :  { %v661_v58 = vadd.f32 %v660_v28, %v620_v56  ;;  %v581_v62 = vpop.f32.mrf.mxu1 }
 0x118   :  { %v582_v59 = vadd.f32 %v581_v62, %v541_v26  ;;  %867 = vmatmul.f32.gmra.mxu0 %v1091_v63  ;;  %949 = vmatmul.f32.gmra.mxu2 %v1092_v42 }
 0x119   :  { %v1015_v3 = vmax.f32 %v661_v58, 0.0 }
 0x11a   :  { %908 = vmatmul.f32.gmra.mxu1 %v1093_v43 }
 0x11b   :  { %1048 = vst [vmem:[%s2422_s3 + $0x48] sm:$0xff] %v1015_v3  ;;  %990 = vmatmul.f32.gmra.mxu3 %v1094_v48  ;;  %v622_v52 = vpop.f32.mrf.mxu2 }
 0x11c   :  { %v623_v4 = vadd.f32 %v622_v52, %v582_v59 }
 0x11d   :  { %v543_v60 = vpop.f32.mrf.mxu0 }
 0x11e   :  { %v544_v2 = vadd.f32 %v543_v60, %v2146_v9  ;;  %v663_v6 = vpop.f32.mrf.mxu3 }
 0x11f   :  { %v664_v12 = vadd.f32 %v663_v6, %v623_v4  ;;  %v584_v13 = vpop.f32.mrf.mxu1 }
 0x120   :  { %v585_v45 = vadd.f32 %v584_v13, %v544_v2  ;;  %870 = vmatmul.f32.gmra.mxu0 %v1095_v46  ;;  %952 = vmatmul.f32.gmra.mxu2 %v1096_v49 }
 0x121   :  { %v1019_v51 = vmax.f32 %v664_v12, 0.0 }
 0x122   :  { %911 = vmatmul.f32.gmra.mxu1 %v1097_v16 }
 0x123   :  { %1052 = vst [vmem:[%s2422_s3 + $0x68] sm:$0xff] %v1019_v51  ;;  %993 = vmatmul.f32.gmra.mxu3 %v1098_v18  ;;  %v625_v20 = vpop.f32.mrf.mxu2 }
 0x124   :  { %v626_v25 = vadd.f32 %v625_v20, %v585_v45 }
 0x125   :  { %v546_v27 = vpop.f32.mrf.mxu0 }
 0x126   :  { %v547_v14 = vadd.f32 %v546_v27, %v2194_v0  ;;  %v666_v15 = vpop.f32.mrf.mxu3 }
 0x127   :  { %v667_v17 = vadd.f32 %v666_v15, %v626_v25  ;;  %v587_v19 = vpop.f32.mrf.mxu1 }
 0x128   :  { %v588_v29 = vadd.f32 %v587_v19, %v547_v14  ;;  %873 = vmatmul.f32.gmra.mxu0 %v1099_v32  ;;  %955 = vmatmul.f32.gmra.mxu2 %v1100_v33 }
 0x129   :  { %v1023_v35 = vmax.f32 %v667_v17, 0.0 }
 0x12a   :  { %914 = vmatmul.f32.gmra.mxu1 %v1101_v37 }
 0x12b   :  { %1056 = vst [vmem:[%s2422_s3 + $0x88] sm:$0xff] %v1023_v35  ;;  %996 = vmatmul.f32.gmra.mxu3 %v1102_v61  ;;  %v628_v38 = vpop.f32.mrf.mxu2 }
 0x12c   :  { %v629_v39 = vadd.f32 %v628_v38, %v588_v29 }
 0x12d   :  { %v549_v40 = vpop.f32.mrf.mxu0 }
 0x12e   :  { %v550_v41 = vadd.f32 %v549_v40, %v2204_v55  ;;  %v669_v44 = vpop.f32.mrf.mxu3 }
 0x12f   :  { %v670_v47 = vadd.f32 %v669_v44, %v629_v39  ;;  %v590_v53 = vpop.f32.mrf.mxu1 }
 0x130   :  { %v591_v5 = vadd.f32 %v590_v53, %v550_v41  ;;  %876 = vmatmul.f32.gmra.mxu0 %v1103_v7  ;;  %958 = vmatmul.f32.gmra.mxu2 %v1104_v30 }
 0x131   :  { %v1027_v31 = vmax.f32 %v670_v47, 0.0 }
 0x132   :  { %917 = vmatmul.f32.gmra.mxu1 %v1105_v34 }
 0x133   :  { %1060 = vst [vmem:[%s2422_s3 + $0xa8] sm:$0xff] %v1027_v31  ;;  %999 = vmatmul.f32.gmra.mxu3 %v1106_v36  ;;  %v631_v22 = vpop.f32.mrf.mxu2 }
 0x134   :  { %v632_v56 = vadd.f32 %v631_v22, %v591_v5 }
 0x135   :  { %v552_v23 = vpop.f32.mrf.mxu0 }
 0x136   :  { %v553_v26 = vadd.f32 %v552_v23, %v2214_v57  ;;  %v672_v28 = vpop.f32.mrf.mxu3 }
 0x137   :  { %v673_v58 = vadd.f32 %v672_v28, %v632_v56  ;;  %v593_v62 = vpop.f32.mrf.mxu1 }
 0x138   :  { %v594_v59 = vadd.f32 %v593_v62, %v553_v26  ;;  %879 = vmatmul.f32.gmra.mxu0 %v1731_v21  ;;  %961 = vmatmul.f32.gmra.mxu2 %v1736_v1 }
 0x139   :  { %v1031_v63 = vmax.f32 %v673_v58, 0.0 }
 0x13a   :  { %920 = vmatmul.f32.gmra.mxu1 %v1747_v8 }
 0x13b   :  { %1064 = vst [vmem:[%s2422_s3 + $0xc8] sm:$0xff] %v1031_v63  ;;  %1002 = vmatmul.f32.gmra.mxu3 %v1757_v10  ;;  %v634_v42 = vpop.f32.mrf.mxu2 }
 0x13c   :  { %v635_v3 = vadd.f32 %v634_v42, %v594_v59 }
 0x13d   :  { %v695_v43 = vpop.f32.mrf.mxu0 }
 0x13e   :  { %v675_v48 = vpop.f32.mrf.mxu3  ;;  %v696_v52 = vadd.f32 %v695_v43, %v2042_v50 }
 0x13f   :  { %v676_v4 = vadd.f32 %v675_v48, %v635_v3  ;;  %v736_v60 = vpop.f32.mrf.mxu1 }
 0x140   :  { %v737_v21 = vadd.f32 %v736_v60, %v696_v52 }
 0x141   :  { %v1035_v2 = vmax.f32 %v676_v4, 0.0 }
 0x143   :  { %1068 = vst [vmem:[%s2422_s3 + $0xe8] sm:$0xff] %v1035_v2  ;;  %v777_v1 = vpop.f32.mrf.mxu2 }
 0x144   :  { %v778_v8 = vadd.f32 %v777_v1, %v737_v21 }
 0x145   :  { %v698_v6 = vpop.f32.mrf.mxu0 }
 0x146   :  { %v699_v12 = vadd.f32 %v698_v6, %v2073_v11  ;;  %v818_v10 = vpop.f32.mrf.mxu3 }
 0x147   :  { %v819_v13 = vadd.f32 %v818_v10, %v778_v8  ;;  %v739_v45 = vpop.f32.mrf.mxu1 }
 0x148   :  { %v740_v46 = vadd.f32 %v739_v45, %v699_v12 }
 0x149   :  { %v1008_v49 = vmax.f32 %v819_v13, 0.0 }
 0x14b   :  { %1040 = vst [vmem:[%s2422_s3 + $0x10] sm:$0xff] %v1008_v49  ;;  %v780_v51 = vpop.f32.mrf.mxu2 }
 0x14c   :  { %v781_v16 = vadd.f32 %v780_v51, %v740_v46 }
 0x14d   :  { %v701_v18 = vpop.f32.mrf.mxu0 }
 0x14e   :  { %v702_v20 = vadd.f32 %v701_v18, %v2078_v24  ;;  %v821_v25 = vpop.f32.mrf.mxu3 }
 0x14f   :  { %v822_v27 = vadd.f32 %v821_v25, %v781_v16  ;;  %v742_v14 = vpop.f32.mrf.mxu1 }
 0x150   :  { %v743_v15 = vadd.f32 %v742_v14, %v702_v20 }
 0x151   :  { %v1012_v17 = vmax.f32 %v822_v27, 0.0 }
 0x153   :  { %1045 = vst [vmem:[%s2422_s3 + $0x30] sm:$0xff] %v1012_v17  ;;  %v783_v19 = vpop.f32.mrf.mxu2 }
 0x154   :  { %v784_v29 = vadd.f32 %v783_v19, %v743_v15 }
 0x155   :  { %v704_v32 = vpop.f32.mrf.mxu0 }
 0x156   :  { %v705_v33 = vadd.f32 %v704_v32, %v2117_v54  ;;  %v824_v35 = vpop.f32.mrf.mxu3 }
 0x157   :  { %v825_v37 = vadd.f32 %v824_v35, %v784_v29  ;;  %v745_v61 = vpop.f32.mrf.mxu1 }
 0x158   :  { %v746_v38 = vadd.f32 %v745_v61, %v705_v33 }
 0x159   :  { %v1016_v39 = vmax.f32 %v825_v37, 0.0 }
 0x15b   :  { %1049 = vst [vmem:[%s2422_s3 + $0x50] sm:$0xff] %v1016_v39  ;;  %v786_v40 = vpop.f32.mrf.mxu2 }
 0x15c   :  { %v787_v41 = vadd.f32 %v786_v40, %v746_v38 }
 0x15d   :  { %v707_v44 = vpop.f32.mrf.mxu0 }
 0x15e   :  { %v708_v47 = vadd.f32 %v707_v44, %v2146_v9  ;;  %v827_v53 = vpop.f32.mrf.mxu3 }
 0x15f   :  { %v828_v5 = vadd.f32 %v827_v53, %v787_v41  ;;  %v748_v7 = vpop.f32.mrf.mxu1 }
 0x160   :  { %v749_v30 = vadd.f32 %v748_v7, %v708_v47 }
 0x161   :  { %v1020_v31 = vmax.f32 %v828_v5, 0.0 }
 0x163   :  { %1053 = vst [vmem:[%s2422_s3 + $0x70] sm:$0xff] %v1020_v31  ;;  %v789_v34 = vpop.f32.mrf.mxu2 }
 0x164   :  { %v790_v36 = vadd.f32 %v789_v34, %v749_v30 }
 0x165   :  { %v710_v22 = vpop.f32.mrf.mxu0 }
 0x166   :  { %v711_v56 = vadd.f32 %v710_v22, %v2194_v0  ;;  %v830_v23 = vpop.f32.mrf.mxu3 }
 0x167   :  { %v831_v26 = vadd.f32 %v830_v23, %v790_v36  ;;  %v751_v28 = vpop.f32.mrf.mxu1 }
 0x168   :  { %v752_v58 = vadd.f32 %v751_v28, %v711_v56 }
 0x169   :  { %v1024_v62 = vmax.f32 %v831_v26, 0.0 }
 0x16b   :  { %1057 = vst [vmem:[%s2422_s3 + $0x90] sm:$0xff] %v1024_v62  ;;  %v792_v59 = vpop.f32.mrf.mxu2 }
 0x16c   :  { %v793_v63 = vadd.f32 %v792_v59, %v752_v58 }
 0x16d   :  { %v713_v42 = vpop.f32.mrf.mxu0 }
 0x16e   :  { %v714_v3 = vadd.f32 %v713_v42, %v2204_v55  ;;  %v833_v43 = vpop.f32.mrf.mxu3 }
 0x16f   :  { %v834_v48 = vadd.f32 %v833_v43, %v793_v63  ;;  %v754_v52 = vpop.f32.mrf.mxu1 }
 0x170   :  { %v755_v4 = vadd.f32 %v754_v52, %v714_v3 }
 0x171   :  { %v1028_v60 = vmax.f32 %v834_v48, 0.0 }
 0x173   :  { %1061 = vst [vmem:[%s2422_s3 + $0xb0] sm:$0xff] %v1028_v60  ;;  %v795_v21 = vpop.f32.mrf.mxu2 }
 0x174   :  { %v796_v2 = vadd.f32 %v795_v21, %v755_v4 }
 0x175   :  { %v716_v1 = vpop.f32.mrf.mxu0 }
 0x176   :  { %v717_v8 = vadd.f32 %v716_v1, %v2214_v57  ;;  %v836_v6 = vpop.f32.mrf.mxu3 }
 0x177   :  { %v837_v12 = vadd.f32 %v836_v6, %v796_v2  ;;  %v757_v10 = vpop.f32.mrf.mxu1 }
 0x178   :  { %v758_v13 = vadd.f32 %v757_v10, %v717_v8 }
 0x179   :  { %v1032_v45 = vmax.f32 %v837_v12, 0.0 }
 0x17b   :  { %1065 = vst [vmem:[%s2422_s3 + $0xd0] sm:$0xff] %v1032_v45  ;;  %v798_v46 = vpop.f32.mrf.mxu2 }
 0x17c   :  { %v799_v49 = vadd.f32 %v798_v46, %v758_v13 }
 0x17d   :  { %v859_v51 = vpop.f32.mrf.mxu0 }
 0x17e   :  { %v839_v16 = vpop.f32.mrf.mxu3  ;;  %v860_v18 = vadd.f32 %v859_v51, %v2042_v50 }
 0x17f   :  { %v840_v20 = vadd.f32 %v839_v16, %v799_v49  ;;  %v900_v25 = vpop.f32.mrf.mxu1 }
 0x180   :  { %v901_v27 = vadd.f32 %v900_v25, %v860_v18 }
 0x181   :  { %v1036_v14 = vmax.f32 %v840_v20, 0.0 }
 0x183   :  { %1069 = vst [vmem:[%s2422_s3 + $0xf0] sm:$0xff] %v1036_v14  ;;  %v941_v15 = vpop.f32.mrf.mxu2 }
 0x184   :  { %v942_v17 = vadd.f32 %v941_v15, %v901_v27 }
 0x185   :  { %v862_v19 = vpop.f32.mrf.mxu0 }
 0x186   :  { %v863_v29 = vadd.f32 %v862_v19, %v2073_v11  ;;  %v982_v32 = vpop.f32.mrf.mxu3 }
 0x187   :  { %v983_v33 = vadd.f32 %v982_v32, %v942_v17  ;;  %v903_v35 = vpop.f32.mrf.mxu1 }
 0x188   :  { %v904_v37 = vadd.f32 %v903_v35, %v863_v29 }
 0x189   :  { %v1009_v61 = vmax.f32 %v983_v33, 0.0 }
 0x18b   :  { %1042 = vst.msk [vmem:[%s2422_s3 + $0x18] sm:$0xff] %vm1041_vm0, %v1009_v61  ;;  %v944_v50 = vpop.f32.mrf.mxu2 }
 0x18c   :  { %v945_v38 = vadd.f32 %v944_v50, %v904_v37 }
 0x18d   :  { %v865_v39 = vpop.f32.mrf.mxu0 }
 0x18e   :  { %v866_v40 = vadd.f32 %v865_v39, %v2078_v24  ;;  %v985_v41 = vpop.f32.mrf.mxu3 }
 0x18f   :  { %v986_v44 = vadd.f32 %v985_v41, %v945_v38  ;;  %v906_v47 = vpop.f32.mrf.mxu1 }
 0x190   :  { %v907_v11 = vadd.f32 %v906_v47, %v866_v40 }
 0x191   :  { %v1013_v53 = vmax.f32 %v986_v44, 0.0 }
 0x193   :  { %1046 = vst.msk [vmem:[%s2422_s3 + $0x38] sm:$0xff] %vm1041_vm0, %v1013_v53  ;;  %v947_v5 = vpop.f32.mrf.mxu2 }
 0x194   :  { %v948_v7 = vadd.f32 %v947_v5, %v907_v11 }
 0x195   :  { %v868_v30 = vpop.f32.mrf.mxu0 }
 0x196   :  { %v869_v31 = vadd.f32 %v868_v30, %v2117_v54  ;;  %v988_v34 = vpop.f32.mrf.mxu3 }
 0x197   :  { %v989_v36 = vadd.f32 %v988_v34, %v948_v7  ;;  %v909_v22 = vpop.f32.mrf.mxu1 }
 0x198   :  { %v910_v56 = vadd.f32 %v909_v22, %v869_v31 }
 0x199   :  { %v1017_v24 = vmax.f32 %v989_v36, 0.0 }
 0x19b   :  { %1050 = vst.msk [vmem:[%s2422_s3 + $0x58] sm:$0xff] %vm1041_vm0, %v1017_v24  ;;  %v950_v23 = vpop.f32.mrf.mxu2 }
 0x19c   :  { %v951_v26 = vadd.f32 %v950_v23, %v910_v56 }
 0x19d   :  { %v871_v28 = vpop.f32.mrf.mxu0 }
 0x19e   :  { %v872_v58 = vadd.f32 %v871_v28, %v2146_v9  ;;  %v991_v62 = vpop.f32.mrf.mxu3 }
 0x19f   :  { %v992_v59 = vadd.f32 %v991_v62, %v951_v26  ;;  %v912_v63 = vpop.f32.mrf.mxu1 }
 0x1a0   :  { %v913_v42 = vadd.f32 %v912_v63, %v872_v58 }
 0x1a1   :  { %v1021_v54 = vmax.f32 %v992_v59, 0.0 }
 0x1a3   :  { %1054 = vst.msk [vmem:[%s2422_s3 + $0x78] sm:$0xff] %vm1041_vm0, %v1021_v54  ;;  %v953_v3 = vpop.f32.mrf.mxu2 }
 0x1a4   :  { %v954_v43 = vadd.f32 %v953_v3, %v913_v42 }
 0x1a5   :  { %v874_v48 = vpop.f32.mrf.mxu0 }
 0x1a6   :  { %v875_v52 = vadd.f32 %v874_v48, %v2194_v0  ;;  %v994_v4 = vpop.f32.mrf.mxu3 }
 0x1a7   :  { %v995_v60 = vadd.f32 %v994_v4, %v954_v43  ;;  %v915_v21 = vpop.f32.mrf.mxu1 }
 0x1a8   :  { %v916_v2 = vadd.f32 %v915_v21, %v875_v52 }
 0x1a9   :  { %v1025_v9 = vmax.f32 %v995_v60, 0.0 }
 0x1ab   :  { %1058 = vst.msk [vmem:[%s2422_s3 + $0x98] sm:$0xff] %vm1041_vm0, %v1025_v9  ;;  %v956_v1 = vpop.f32.mrf.mxu2 }
 0x1ac   :  { %v957_v8 = vadd.f32 %v956_v1, %v916_v2 }
 0x1ad   :  { %v877_v6 = vpop.f32.mrf.mxu0 }
 0x1ae   :  { %v878_v12 = vadd.f32 %v877_v6, %v2204_v55  ;;  %v997_v10 = vpop.f32.mrf.mxu3 }
 0x1af   :  { %v998_v13 = vadd.f32 %v997_v10, %v957_v8  ;;  %v918_v45 = vpop.f32.mrf.mxu1 }
 0x1b0   :  { %v919_v0 = vadd.f32 %v918_v45, %v878_v12 }
 0x1b1   :  { %v1029_v46 = vmax.f32 %v998_v13, 0.0 }
 0x1b3   :  { %1062 = vst.msk [vmem:[%s2422_s3 + $0xb8] sm:$0xff] %vm1041_vm0, %v1029_v46  ;;  %v959_v49 = vpop.f32.mrf.mxu2 }
 0x1b4   :  { %v960_v51 = vadd.f32 %v959_v49, %v919_v0 }
 0x1b5   :  { %v880_v16 = vpop.f32.mrf.mxu0 }
 0x1b6   :  { %v881_v18 = vadd.f32 %v880_v16, %v2214_v57  ;;  %v1000_v20 = vpop.f32.mrf.mxu3 }
 0x1b7   :  { %v1001_v25 = vadd.f32 %v1000_v20, %v960_v51  ;;  %v921_v27 = vpop.f32.mrf.mxu1 }
 0x1b8   :  { %v922_v55 = vadd.f32 %v921_v27, %v881_v18 }
 0x1b9   :  { %v1033_v14 = vmax.f32 %v1001_v25, 0.0 }
 0x1bb   :  { %1066 = vst.msk [vmem:[%s2422_s3 + $0xd8] sm:$0xff] %vm1041_vm0, %v1033_v14  ;;  %v962_v15 = vpop.f32.mrf.mxu2 }
 0x1bc   :  { %v963_v17 = vadd.f32 %v962_v15, %v922_v55 }
 0x1be   :  { %v1003_v19 = vpop.f32.mrf.mxu3 }
 0x1bf   :  { %v1004_v29 = vadd.f32 %v1003_v19, %v963_v17 }
 0x1c1   :  { %v1037_v32 = vmax.f32 %v1004_v29, 0.0 }
 0x1c3   :  { %1070 = vst.msk [vmem:[%s2422_s3 + $0xf8] sm:$0xff] %vm1041_vm0, %v1037_v32 }

// kernel: deep_q_network_forward.6
= control target key start
LH: loop header
LB: loop body
LE: loop exit
PB: predicated region body
PF: predicated region fallthrough
CT: control target
= control target key end

     0   :  { %v1711_v2 = vmov 0   ;;  %vm406_vm0 = vcmask 523264   ;;  %vm1480_vm1 = vcmask 392192   ;;  %s3932_s0 = inlined_call_operand.vmem [shape: f32[576,304], index: 0, kind: input, shape index: {}]   ;;  %s3933_s2 = inlined_call_operand.vmem [shape: f32[128,1], index: 2, kind: input, shape index: {}]   ;;  %s3934_s1 = inlined_call_operand.vmem [shape: f32[128,576], index: 1, kind: input, shape index: {}]   ;;  %s3935_s3 = inlined_call_operand.vmem [shape: f32[128,304], index: 3, kind: output, shape index: {}]  }
   0x1   :  { %v139_v0 = vld [vmem:[%s3932_s0 + $0x168] sm:$0xff]  ;;  %v136_v1 = vld [vmem:[%s3932_s0 + $0x150] sm:$0xff]  ;;  %1628 = vset.pattern.permute.xlu0 %v1711_v2  ;;  %1629 = vset.pattern.permute.xlu1 %v1711_v2  ;;  %v133_v4 = vld [vmem:[%s3932_s0 + $0x138] sm:$0xff] }
   0x2   :  { %1579 = vmatpush.msra.mxu3 %v139_v0  ;;  %v1741_v3 = vld [vmem:[%s3932_s0 + $0x468] sm:$0xff]  ;;  %455 = vmatpush.msra.mxu0 %v139_v0  ;;  %v1750_v5 = vld [vmem:[%s3932_s0 + $0x450] sm:$0xff]  ;;  %v1760_v7 = vld [vmem:[%s3932_s0 + $0x438] sm:$0xff] }
   0x3   :  { %585 = vmatpush.msra.mxu2 %v1741_v3  ;;  %v1755_v6 = vld [vmem:[%s3932_s0 + $0x2e8] sm:$0xff]  ;;  %1630 = vset.pattern.permute.xlu2 %v1711_v2  ;;  %v1765_v8 = vld [vmem:[%s3932_s0 + $0x2d0] sm:$0xff]  ;;  %v130_v9 = vld [vmem:[%s3932_s0 + $0x120] sm:$0xff] }
   0x4   :  { %1580 = vmatpush.msra.mxu3 %v136_v1  ;;  %456 = vmatpush.msra.mxu0 %v136_v1  ;;  %v1775_v10 = vld [vmem:[%s3932_s0 + $0x420] sm:$0xff]  ;;  %v1780_v11 = vld [vmem:[%s3932_s0 + $0x2b8] sm:$0xff]  ;;  %v127_v12 = vld [vmem:[%s3932_s0 + $0x108] sm:$0xff] }
   0x5   :  { %586 = vmatpush.msra.mxu2 %v1750_v5  ;;  %520 = vmatpush.msra.mxu1 %v1755_v6  ;;  %v310_v13 = vld [vmem:[%s3933_s2] sm:$0xff]  ;;  %v1793_v14 = vld [vmem:[%s3932_s0 + $0x408] sm:$0xff]  ;;  %v124_v15 = vld [vmem:[%s3932_s0 + $0xf0] sm:$0xff] }
   0x6   :  { %1581 = vmatpush.msra.mxu3 %v133_v4  ;;  %457 = vmatpush.msra.mxu0 %v133_v4  ;;  %v1803_v16 = vld [vmem:[%s3932_s0 + $0x2a0] sm:$0xff]  ;;  %v1808_v17 = vld [vmem:[%s3932_s0 + $0x3f0] sm:$0xff]  ;;  %v121_v18 = vld [vmem:[%s3932_s0 + $0xd8] sm:$0xff] }
   0x7   :  { %587 = vmatpush.msra.mxu2 %v1760_v7  ;;  %521 = vmatpush.msra.mxu1 %v1765_v8  ;;  %v1817_v19 = vld [vmem:[%s3932_s0 + $0x288] sm:$0xff]  ;;  %v1823_v20 = vld [vmem:[%s3932_s0 + $0x3d8] sm:$0xff]  ;;  %v118_v21 = vld [vmem:[%s3932_s0 + $0xc0] sm:$0xff] }
   0x8   :  { %1582 = vmatpush.msra.mxu3 %v130_v9  ;;  %458 = vmatpush.msra.mxu0 %v130_v9  ;;  %v1832_v22 = vld [vmem:[%s3932_s0 + $0x270] sm:$0xff]  ;;  %v1838_v23 = vld [vmem:[%s3932_s0 + $0x3c0] sm:$0xff]  ;;  %v115_v24 = vld [vmem:[%s3932_s0 + $0xa8] sm:$0xff] }
   0x9   :  { %588 = vmatpush.msra.mxu2 %v1775_v10  ;;  %522 = vmatpush.msra.mxu1 %v1780_v11  ;;  %v1847_v25 = vld [vmem:[%s3932_s0 + $0x258] sm:$0xff]  ;;  %v1853_v26 = vld [vmem:[%s3932_s0 + $0x3a8] sm:$0xff]  ;;  %v312_v27 = vld [vmem:[%s3933_s2 + $0x10] sm:$0xff] }
   0xa   :  { %1583 = vmatpush.msra.mxu3 %v127_v12  ;;  %328 = vperm.xlu0 %1628, %v310_v13   ;;  %v112_v28 = vld [vmem:[%s3932_s0 + $0x90] sm:$0xff]  ;;  %v311_v29 = vld [vmem:[%s3933_s2 + $0x8] sm:$0xff]  ;;  %v1869_v30 = vld [vmem:[%s3932_s0 + $0x240] sm:$0xff] }
   0xb   :  { %589 = vmatpush.msra.mxu2 %v1793_v14  ;;  %459 = vmatpush.msra.mxu0 %v127_v12  ;;  %v109_v31 = vld [vmem:[%s3932_s0 + $0x78] sm:$0xff]  ;;  %v1878_v32 = vld [vmem:[%s3932_s0 + $0x390] sm:$0xff]  ;;  %v1883_v33 = vld [vmem:[%s3932_s0 + $0x228] sm:$0xff] }
   0xc   :  { %1584 = vmatpush.msra.mxu3 %v124_v15  ;;  %523 = vmatpush.msra.mxu1 %v1803_v16  ;;  %v106_v34 = vld [vmem:[%s3932_s0 + $0x60] sm:$0xff]  ;;  %v1892_v35 = vld [vmem:[%s3932_s0 + $0x378] sm:$0xff]  ;;  %v1898_v36 = vld [vmem:[%s3932_s0 + $0x210] sm:$0xff] }
   0xd   :  { %590 = vmatpush.msra.mxu2 %v1808_v17  ;;  %460 = vmatpush.msra.mxu0 %v124_v15  ;;  %v103_v37 = vld [vmem:[%s3932_s0 + $0x48] sm:$0xff]  ;;  %v1907_v38 = vld [vmem:[%s3932_s0 + $0x360] sm:$0xff]  ;;  %v1913_v39 = vld [vmem:[%s3932_s0 + $0x1f8] sm:$0xff] }
   0xe   :  { %1585 = vmatpush.msra.mxu3 %v121_v18  ;;  %524 = vmatpush.msra.mxu1 %v1817_v19  ;;  %v100_v40 = vld [vmem:[%s3932_s0 + $0x30] sm:$0xff]  ;;  %v1922_v41 = vld [vmem:[%s3932_s0 + $0x348] sm:$0xff]  ;;  %v313_v42 = vld [vmem:[%s3933_s2 + $0x18] sm:$0xff] }
   0xf   :  { %591 = vmatpush.msra.mxu2 %v1823_v20  ;;  %461 = vmatpush.msra.mxu0 %v121_v18  ;;  %v316_v43 = vld [vmem:[%s3933_s2 + $0x30] sm:$0xff]  ;;  %v97_v44 = vld [vmem:[%s3932_s0 + $0x18] sm:$0xff]  ;;  %v1939_v45 = vld [vmem:[%s3932_s0 + $0x1e0] sm:$0xff] }
  0x10   :  { %1586 = vmatpush.msra.mxu3 %v118_v21  ;;  %525 = vmatpush.msra.mxu1 %v1832_v22  ;;  %v1944_v46 = vld [vmem:[%s3932_s0 + $0x330] sm:$0xff]  ;;  %v94_v47 = vld [vmem:[%s3932_s0] sm:$0xff]  ;;  %v1955_v49 = vld [vmem:[%s3932_s0 + $0x1c8] sm:$0xff] }
  0x11   :  { %592 = vmatpush.msra.mxu2 %v1838_v23  ;;  %462 = vmatpush.msra.mxu0 %v118_v21  ;;  %v74_v48 = vld [vmem:[%s3934_s1 + $0x1e0] sm:$0xff]  ;;  %v1962_v50 = vld [vmem:[%s3932_s0 + $0x318] sm:$0xff]  ;;  %v1967_v51 = vld [vmem:[%s3932_s0 + $0x1b0] sm:$0xff] }
  0x12   :  { %1587 = vmatpush.msra.mxu3 %v115_v24  ;;  %526 = vmatpush.msra.mxu1 %v1847_v25  ;;  %v1973_v52 = vld [vmem:[%s3932_s0 + $0x300] sm:$0xff]  ;;  %v16_v53 = vld [vmem:[%s3934_s1 + $0x10] sm:$0xff]  ;;  %v1989_v55 = vld [vmem:[%s3932_s0 + $0x198] sm:$0xff] }
  0x13   :  { %593 = vmatpush.msra.mxu2 %v1853_v26  ;;  %338 = vperm.xlu1 %1629, %v312_v27   ;;  %v188_v54 = vld [vmem:[%s3932_s0 + $0x2f0] sm:$0xff]  ;;  %v1994_v56 = vld [vmem:[%s3934_s1] sm:$0xff]  ;;  %v307_v57 = vld [vmem:[%s3932_s0 + $0x6a8] sm:$0xff] }
  0x14   :  { %1588 = vmatpush.msra.mxu3 %v112_v28  ;;  %333 = vperm.xlu0 %1628, %v311_v29   ;;  %v79_v58 = vld [vmem:[%s3934_s1 + $0x208] sm:$0xff]  ;;  %v317_v59 = vld [vmem:[%s3933_s2 + $0x38] sm:$0xff]  ;;  %v2015_v61 = vld [vmem:[%s3932_s0 + $0x180] sm:$0xff] }
  0x15   :  { %463 = vmatpush.msra.mxu0 %v115_v24  ;;  %527 = vmatpush.msra.mxu1 %v1869_v30  ;;  %v319_v60 = vld [vmem:[%s3933_s2 + $0x48] sm:$0xff]  ;;  %v185_v62 = vld [vmem:[%s3932_s0 + $0x2d8] sm:$0xff]  ;;  %v140_v0 = vld [vmem:[%s3932_s0 + $0x170] sm:$0xff] }
  0x16   :  { %1589 = vmatpush.msra.mxu3 %v109_v31  ;;  %594 = vmatpush.msra.mxu2 %v1878_v32  ;;  %v2023_v63 = vld [vmem:[%s3934_s1 + $0x8] sm:$0xff]  ;;  %v21_v1 = vld [vmem:[%s3934_s1 + $0x38] sm:$0xff]  ;;  %v182_v2 = vld [vmem:[%s3932_s0 + $0x2c0] sm:$0xff] }
  0x17   :  { %464 = vmatpush.msra.mxu0 %v112_v28  ;;  %528 = vmatpush.msra.mxu1 %v1883_v33  ;;  %v2041_v4 = vld [vmem:[%s3934_s1 + $0x28] sm:$0xff]  ;;  %v84_v9 = vld [vmem:[%s3934_s1 + $0x230] sm:$0xff]  ;;  %v322_v12 = vld [vmem:[%s3933_s2 + $0x60] sm:$0xff] }
  0x18   :  { %1590 = vmatpush.msra.mxu3 %v106_v34  ;;  %595 = vmatpush.msra.mxu2 %v1892_v35  ;;  %v134_v13 = vld [vmem:[%s3932_s0 + $0x140] sm:$0xff]  ;;  %v179_v15 = vld [vmem:[%s3932_s0 + $0x2a8] sm:$0xff]  ;;  %v176_v24 = vld [vmem:[%s3932_s0 + $0x290] sm:$0xff] }
  0x19   :  { %465 = vmatpush.msra.mxu0 %v109_v31  ;;  %529 = vmatpush.msra.mxu1 %v1898_v36  ;;  %v26_v18 = vld [vmem:[%s3934_s1 + $0x60] sm:$0xff]  ;;  %v131_v21 = vld [vmem:[%s3932_s0 + $0x128] sm:$0xff]  ;;  %v89_v27 = vld [vmem:[%s3934_s1 + $0x258] sm:$0xff] }
  0x1a   :  { %1591 = vmatpush.msra.mxu3 %v103_v37  ;;  %596 = vmatpush.msra.mxu2 %v1907_v38  ;;  %v323_v28 = vld [vmem:[%s3933_s2 + $0x68] sm:$0xff]  ;;  %v128_v29 = vld [vmem:[%s3932_s0 + $0x110] sm:$0xff]  ;;  %v325_v31 = vld [vmem:[%s3933_s2 + $0x78] sm:$0xff] }
  0x1b   :  { %466 = vmatpush.msra.mxu0 %v106_v34  ;;  %530 = vmatpush.msra.mxu1 %v1913_v39  ;;  %v31_v34 = vld [vmem:[%s3934_s1 + $0x88] sm:$0xff] }
  0x1c   :  { %1592 = vmatpush.msra.mxu3 %v100_v40  ;;  %597 = vmatpush.msra.mxu2 %v1922_v41 }
  0x1d   :  { %343 = vperm.xlu1 %1629, %v313_v42   ;;  %358 = vperm.xlu0 %1628, %v316_v43   ;;  %v298_v42 = vld [vmem:[%s3932_s0 + $0x660] sm:$0xff]  ;;  %v2145_v43 = vld [vmem:[%s3934_s1 + $0x1e8] sm:$0xff] }
  0x1e   :  { %1593 = vmatpush.msra.mxu3 %v97_v44  ;;  %467 = vmatpush.msra.mxu0 %v103_v37  ;;  %v125_v37 = vld [vmem:[%s3932_s0 + $0xf8] sm:$0xff] }
  0x1f   :  { %531 = vmatpush.msra.mxu1 %v1939_v45  ;;  %598 = vmatpush.msra.mxu2 %v1944_v46 }
  0x20   :  { %1594 = vmatpush.msra.mxu3 %v94_v47  ;;  %468 = vmatpush.msra.mxu0 %v100_v40  ;;  %v170_v40 = vld [vmem:[%s3932_s0 + $0x260] sm:$0xff] }
  0x21   :  { %507 = vmatmul.f32.vlgmr.msra.gmra.mxu3 %v74_v48  ;;  %532 = vmatpush.msra.mxu1 %v1955_v49  ;;  %v295_v48 = vld [vmem:[%s3932_s0 + $0x648] sm:$0xff] }
  0x22   :  { %1595 = vmatpush.msrb.mxu3 %v1755_v6  ;;  %599 = vmatpush.msra.mxu2 %v1962_v50  ;;  %v137_v6 = vld [vmem:[%s3932_s0 + $0x158] sm:$0xff] }
  0x23   :  { %469 = vmatpush.msra.mxu0 %v97_v44  ;;  %533 = vmatpush.msra.mxu1 %v1967_v51  ;;  %v122_v44 = vld [vmem:[%s3932_s0 + $0xe0] sm:$0xff] }
  0x24   :  { %1596 = vmatpush.msrb.mxu3 %v1765_v8  ;;  %600 = vmatpush.msra.mxu2 %v1973_v52  ;;  %v304_v8 = vld [vmem:[%s3932_s0 + $0x690] sm:$0xff] }
  0x25   :  { %601 = vmatmul.f32.vlgmr.msra.gmra.mxu2 %v16_v53  ;;  %470 = vmatpush.msra.mxu0 %v94_v47  ;;  %v119_v47 = vld [vmem:[%s3932_s0 + $0xc8] sm:$0xff]  ;;  %v318_v53 = vld [vmem:[%s3933_s2 + $0x40] sm:$0xff] }
  0x26   :  { %1597 = vmatpush.msrb.mxu3 %v1780_v11  ;;  %845 = vmatpush.msrb.mxu2 %v188_v54  ;;  %v320_v11 = vld [vmem:[%s3933_s2 + $0x50] sm:$0xff] }
  0x27   :  { %534 = vmatpush.msra.mxu1 %v1989_v55  ;;  %471 = vmatmul.f32.vlgmr.msra.gmra.mxu0 %v1994_v56  ;;  %v164_v54 = vld [vmem:[%s3932_s0 + $0x230] sm:$0xff] }
  0x28   :  { %1598 = vmatpush.msrb.mxu3 %v1803_v16  ;;  %723 = vmatpush.msrb.mxu0 %v307_v57  ;;  %v2070_v16 = vld [vmem:[%s3934_s1 + $0x30] sm:$0xff]  ;;  %v161_v57 = vld [vmem:[%s3932_s0 + $0x218] sm:$0xff] }
  0x29   :  { %510 = vmatmul.f32.gmra.mxu3 %v79_v58  ;;  %363 = vperm.xlu1 %1629, %v317_v59   ;;  %v113_v58 = vld [vmem:[%s3932_s0 + $0x98] sm:$0xff]  ;;  %v158_v59 = vld [vmem:[%s3932_s0 + $0x200] sm:$0xff] }
  0x2a   :  { %1599 = vmatpush.msrb.mxu3 %v1817_v19  ;;  %373 = vperm.xlu0 %1628, %v319_v60   ;;  %v314_v19 = vld [vmem:[%s3933_s2 + $0x20] sm:$0xff] }
  0x2b   :  { %535 = vmatpush.msra.mxu1 %v2015_v61  ;;  %846 = vmatpush.msrb.mxu2 %v185_v62  ;;  %v110_v60 = vld [vmem:[%s3932_s0 + $0x80] sm:$0xff]  ;;  %v321_v62 = vld [vmem:[%s3933_s2 + $0x58] sm:$0xff] }
  0x2c   :  { %1600 = vmatpush.msrb.mxu3 %v1832_v22  ;;  %536 = vmatmul.f32.vlgmr.msra.gmra.mxu1 %v2023_v63  ;;  %v2087_v22 = vld [vmem:[%s3934_s1 + $0x50] sm:$0xff] }
  0x2d   :  { %780 = vmatpush.msrb.mxu1 %v140_v0  ;;  %604 = vmatmul.f32.gmra.mxu2 %v21_v1  ;;  %v155_v0 = vld [vmem:[%s3932_s0 + $0x1e8] sm:$0xff]  ;;  %v2237_v1 = vld [vmem:[%s3934_s1 + $0x238] sm:$0xff] }
  0x2e   :  { %1601 = vmatpush.msrb.mxu3 %v1847_v25  ;;  %847 = vmatpush.msrb.mxu2 %v182_v2  ;;  %v301_v25 = vld [vmem:[%s3932_s0 + $0x678] sm:$0xff]  ;;  %v107_v2 = vld [vmem:[%s3932_s0 + $0x68] sm:$0xff] }
  0x2f   :  { %474 = vmatmul.f32.gmra.mxu0 %v2041_v4  ;;  %781 = vmatpush.msrb.mxu1 %v137_v6  ;;  %v46_v6 = vld [vmem:[%s3934_s1 + $0x100] sm:$0xff] }
  0x30   :  { %1602 = vmatpush.msrb.mxu3 %v1869_v30  ;;  %724 = vmatpush.msrb.mxu0 %v304_v8  ;;  %v173_v30 = vld [vmem:[%s3932_s0 + $0x278] sm:$0xff] }
  0x31   :  { %513 = vmatmul.f32.gmra.mxu3 %v84_v9  ;;  %378 = vperm.xlu1 %1629, %v320_v11   ;;  %v289_v8 = vld [vmem:[%s3932_s0 + $0x618] sm:$0xff]  ;;  %v104_v9 = vld [vmem:[%s3932_s0 + $0x50] sm:$0xff]  ;;  %v2277_v11 = vld [vmem:[%s3934_s1 + $0x260] sm:$0xff] }
  0x32   :  { %1603 = vmatpush.msrb.mxu3 %v1883_v33  ;;  %388 = vperm.xlu0 %1628, %v322_v12   ;;  %v2116_v33 = vld [vmem:[%s3934_s1 + $0x58] sm:$0xff]  ;;  %v51_v12 = vld [vmem:[%s3934_s1 + $0x128] sm:$0xff] }
  0x33   :  { %782 = vmatpush.msrb.mxu1 %v134_v13  ;;  %848 = vmatpush.msrb.mxu2 %v179_v15  ;;  %v101_v13 = vld [vmem:[%s3932_s0 + $0x38] sm:$0xff]  ;;  %v76_v15 = vld [vmem:[%s3934_s1 + $0x1f0] sm:$0xff] }
  0x34   :  { %1604 = vmatpush.msrb.mxu3 %v1898_v36  ;;  %539 = vmatmul.f32.gmra.mxu1 %v2070_v16  ;;  %v315_v36 = vld [vmem:[%s3933_s2 + $0x28] sm:$0xff] }
  0x35   :  { %607 = vmatmul.f32.gmra.mxu2 %v26_v18  ;;  %348 = vperm.xlu2 %1630, %v314_v19   ;;  %v283_v18 = vld [vmem:[%s3932_s0 + $0x5e8] sm:$0xff]  ;;  %v2325_v19 = vld [vmem:[%s3934_s1 + $0x120] sm:$0xff] }
  0x36   :  { %1605 = vmatpush.msrb.mxu3 %v1913_v39  ;;  %783 = vmatpush.msrb.mxu1 %v131_v21  ;;  %v2133_v39 = vld [vmem:[%s3934_s1 + $0x78] sm:$0xff]  ;;  %v280_v21 = vld [vmem:[%s3932_s0 + $0x5d0] sm:$0xff] }
  0x37   :  { %477 = vmatmul.f32.gmra.mxu0 %v2087_v22  ;;  %849 = vmatpush.msrb.mxu2 %v176_v24  ;;  %v56_v24 = vld [vmem:[%s3934_s1 + $0x150] sm:$0xff] }
  0x38   :  { %1606 = vmatpush.msrb.mxu3 %v1939_v45  ;;  %725 = vmatpush.msrb.mxu0 %v301_v25  ;;  %v167_v45 = vld [vmem:[%s3932_s0 + $0x248] sm:$0xff]  ;;  %v277_v25 = vld [vmem:[%s3932_s0 + $0x5b8] sm:$0xff] }
  0x39   :  { %516 = vmatmul.f32.gmra.mxu3 %v89_v27  ;;  %393 = vperm.xlu1 %1629, %v323_v28   ;;  %v2343_v27 = vld [vmem:[%s3934_s1 + $0x140] sm:$0xff]  ;;  %v95_v28 = vld [vmem:[%s3932_s0 + $0x8] sm:$0xff] }
  0x3a   :  { %1607 = vmatpush.msrb.mxu3 %v1955_v49  ;;  %784 = vmatpush.msrb.mxu1 %v128_v29  ;;  %v2165_v49 = vld [vmem:[%s3934_s1 + $0x80] sm:$0xff] }
  0x3b   :  { %850 = vmatpush.msrb.mxu2 %v173_v30  ;;  %403 = vperm.xlu0 %1628, %v325_v31   ;;  %v274_v29 = vld [vmem:[%s3932_s0 + $0x5a0] sm:$0xff]  ;;  %v141_v30 = vld [vmem:[%s3932_s0 + $0x178] sm:$0xff] }
  0x3c   :  { %1608 = vmatpush.msrb.mxu3 %v1967_v51  ;;  %542 = vmatmul.f32.gmra.mxu1 %v2116_v33  ;;  %v36_v51 = vld [vmem:[%s3934_s1 + $0xb0] sm:$0xff]  ;;  %v81_v31 = vld [vmem:[%s3934_s1 + $0x218] sm:$0xff] }
  0x3d   :  { %610 = vmatmul.f32.gmra.mxu2 %v31_v34  ;;  %353 = vperm.xlu2 %1630, %v315_v36   ;;  %v271_v34 = vld [vmem:[%s3932_s0 + $0x588] sm:$0xff] }
  0x3e   :  { %1609 = vmatpush.msrb.mxu3 %v1989_v55  ;;  %785 = vmatpush.msrb.mxu1 %v125_v37  ;;  %v116_v55 = vld [vmem:[%s3932_s0 + $0xb0] sm:$0xff]  ;;  %v2364_v36 = vld [vmem:[%s3934_s1 + $0x148] sm:$0xff] }
  0x3f   :  { %480 = vmatmul.f32.gmra.mxu0 %v2133_v39  ;;  %851 = vmatpush.msrb.mxu2 %v170_v40  ;;  %v268_v37 = vld [vmem:[%s3932_s0 + $0x570] sm:$0xff] }
  0x40   :  { %1610 = vmatpush.msrb.mxu3 %v2015_v61  ;;  %726 = vmatpush.msrb.mxu0 %v298_v42  ;;  %v2214_v61 = vld [vmem:[%s3934_s1 + $0xa8] sm:$0xff]  ;;  %v284_v40 = vld [vmem:[%s3932_s0 + $0x5f0] sm:$0xff]  ;;  %v61_v42 = vld [vmem:[%s3934_s1 + $0x178] sm:$0xff] }
  0x41   :  { %572 = vmatmul.f32.vlgmr.msrb.gmra.mxu3 %v2145_v43  ;;  %786 = vmatpush.msrb.mxu1 %v122_v44  ;;  %v265_v44 = vld [vmem:[%s3932_s0 + $0x558] sm:$0xff] }
  0x42   :  { %1611 = vmatpush.msra.mxu3 %v1741_v3  ;;  %852 = vmatpush.msrb.mxu2 %v167_v45  ;;  %v2182_v3 = vld [vmem:[%s3934_s1 + $0xa0] sm:$0xff]  ;;  %v2382_v45 = vld [vmem:[%s3934_s1 + $0x168] sm:$0xff] }
  0x43   :  { %787 = vmatpush.msrb.mxu1 %v119_v47  ;;  %727 = vmatpush.msrb.mxu0 %v295_v48  ;;  %v308_v47 = vld [vmem:[%s3932_s0 + $0x6b0] sm:$0xff]  ;;  %v262_v48 = vld [vmem:[%s3932_s0 + $0x540] sm:$0xff] }
  0x44   :  { %545 = vmatmul.f32.gmra.mxu1 %v2165_v49  ;;  %1612 = vmatpush.msra.mxu3 %v1750_v5  ;;  %v2194_v5 = vld [vmem:[%s3934_s1 + $0x210] sm:$0xff] }
  0x45   :  { %613 = vmatmul.f32.gmra.mxu2 %v36_v51  ;;  %368 = vperm.xlu2 %1630, %v318_v53   ;;  %v138_v51 = vld [vmem:[%s3932_s0 + $0x160] sm:$0xff] }
  0x46   :  { %1613 = vmatpush.msra.mxu3 %v1760_v7  ;;  %853 = vmatpush.msrb.mxu2 %v164_v54  ;;  %v292_v7 = vld [vmem:[%s3932_s0 + $0x630] sm:$0xff]  ;;  %v86_v53 = vld [vmem:[%s3934_s1 + $0x240] sm:$0xff]  ;;  %v259_v54 = vld [vmem:[%s3932_s0 + $0x528] sm:$0xff] }
  0x47   :  { %483 = vmatmul.f32.gmra.mxu0 %v2182_v3  ;;  %788 = vmatpush.msrb.mxu1 %v116_v55  ;;  %v2403_v55 = vld [vmem:[%s3934_s1 + $0x170] sm:$0xff] }
  0x48   :  { %1614 = vmatpush.msra.mxu3 %v1775_v10  ;;  %854 = vmatpush.msrb.mxu2 %v161_v57  ;;  %v41_v10 = vld [vmem:[%s3934_s1 + $0xd8] sm:$0xff]  ;;  %v256_v57 = vld [vmem:[%s3932_s0 + $0x510] sm:$0xff] }
  0x49   :  { %575 = vmatmul.f32.gmra.mxu3 %v2194_v5  ;;  %789 = vmatpush.msrb.mxu1 %v113_v58  ;;  %v281_v58 = vld [vmem:[%s3932_s0 + $0x5d8] sm:$0xff] }
  0x4a   :  { %1615 = vmatpush.msra.mxu3 %v1793_v14  ;;  %855 = vmatpush.msrb.mxu2 %v158_v59  ;;  %v2231_v14 = vld [vmem:[%s3934_s1 + $0xc8] sm:$0xff]  ;;  %v66_v59 = vld [vmem:[%s3934_s1 + $0x1a0] sm:$0xff] }
  0x4b   :  { %728 = vmatpush.msrb.mxu0 %v292_v7  ;;  %790 = vmatpush.msrb.mxu1 %v110_v60  ;;  %v253_v7 = vld [vmem:[%s3932_s0 + $0x4f8] sm:$0xff]  ;;  %v2421_v60 = vld [vmem:[%s3934_s1 + $0x190] sm:$0xff] }
  0x4c   :  { %548 = vmatmul.f32.gmra.mxu1 %v2214_v61  ;;  %1616 = vmatpush.msra.mxu3 %v1808_v17  ;;  %v152_v17 = vld [vmem:[%s3932_s0 + $0x1d0] sm:$0xff] }
  0x4d   :  { %616 = vmatmul.f32.gmra.mxu2 %v41_v10  ;;  %383 = vperm.xlu2 %1630, %v321_v62   ;;  %v250_v10 = vld [vmem:[%s3932_s0 + $0x4e0] sm:$0xff]  ;;  %v135_v62 = vld [vmem:[%s3932_s0 + $0x148] sm:$0xff] }
  0x4e   :  { %1617 = vmatpush.msra.mxu3 %v1823_v20  ;;  %856 = vmatpush.msrb.mxu2 %v155_v0  ;;  %v2251_v20 = vld [vmem:[%s3934_s1 + $0xd0] sm:$0xff]  ;;  %v91_v0 = vld [vmem:[%s3934_s1 + $0x268] sm:$0xff] }
  0x4f   :  { %486 = vmatmul.f32.gmra.mxu0 %v2231_v14  ;;  %791 = vmatpush.msrb.mxu1 %v107_v2  ;;  %v247_v2 = vld [vmem:[%s3932_s0 + $0x4c8] sm:$0xff] }
  0x50   :  { %1618 = vmatpush.msra.mxu3 %v1838_v23  ;;  %857 = vmatpush.msrb.mxu2 %v152_v17  ;;  %v324_v23 = vld [vmem:[%s3933_s2 + $0x70] sm:$0xff]  ;;  %v2439_v17 = vld [vmem:[%s3934_s1 + $0x198] sm:$0xff] }
  0x51   :  { %578 = vmatmul.f32.gmra.mxu3 %v2237_v1  ;;  %729 = vmatpush.msrb.mxu0 %v289_v8  ;;  %v71_v8 = vld [vmem:[%s3934_s1 + $0x1c8] sm:$0xff] }
  0x52   :  { %1619 = vmatpush.msra.mxu3 %v1853_v26  ;;  %v2268_v26 = vld [vmem:[%s3934_s1 + $0xf0] sm:$0xff]  ;;  %792 = vmatpush.msrb.mxu1 %v104_v9  ;;  %v241_v9 = vld [vmem:[%s3932_s0 + $0x498] sm:$0xff] }
  0x54   :  { %551 = vmatmul.f32.gmra.mxu1 %v2251_v20  ;;  %1620 = vmatpush.msra.mxu3 %v1878_v32  ;;  %v149_v32 = vld [vmem:[%s3932_s0 + $0x1b8] sm:$0xff] }
  0x55   :  { %619 = vmatmul.f32.gmra.mxu2 %v46_v6  ;;  %398 = vperm.xlu2 %1630, %v324_v23   ;;  %v244_v6 = vld [vmem:[%s3932_s0 + $0x4b0] sm:$0xff]  ;;  %v278_v23 = vld [vmem:[%s3932_s0 + $0x5c0] sm:$0xff] }
  0x56   :  { %1621 = vmatpush.msra.mxu3 %v1892_v35  ;;  %858 = vmatpush.msrb.mxu2 %v149_v32  ;;  %v2288_v35 = vld [vmem:[%s3934_s1 + $0xf8] sm:$0xff] }
  0x57   :  { %489 = vmatmul.f32.gmra.mxu0 %v2268_v26  ;;  %793 = vmatpush.msrb.mxu1 %v101_v13  ;;  %v2457_v32 = vld [vmem:[%s3934_s1 + $0x1b8] sm:$0xff]  ;;  %v238_v13 = vld [vmem:[%s3932_s0 + $0x480] sm:$0xff] }
  0x58   :  { %1622 = vmatpush.msra.mxu3 %v1907_v38  ;;  %v2302_v38 = vld [vmem:[%s3934_s1 + $0x118] sm:$0xff] }
  0x59   :  { %581 = vmatmul.f32.gmra.mxu3 %v2277_v11 }
  0x5a   :  { %1623 = vmatpush.msra.mxu3 %v1922_v41  ;;  %v146_v41 = vld [vmem:[%s3932_s0 + $0x1a0] sm:$0xff] }
  0x5b   :  { %859 = vmatpush.msrb.mxu2 %v146_v41  ;;  %v132_v41 = vld [vmem:[%s3932_s0 + $0x130] sm:$0xff] }
  0x5c   :  { %554 = vmatmul.f32.gmra.mxu1 %v2288_v35  ;;  %1624 = vmatpush.msra.mxu3 %v1944_v46  ;;  %v286_v46 = vld [vmem:[%s3932_s0 + $0x600] sm:$0xff] }
  0x5d   :  { %622 = vmatmul.f32.gmra.mxu2 %v51_v12  ;;  %730 = vmatpush.msrb.mxu0 %v286_v46  ;;  %v305_v12 = vld [vmem:[%s3932_s0 + $0x698] sm:$0xff]  ;;  %v236_v46 = vld [vmem:[%s3932_s0 + $0x470] sm:$0xff] }
  0x5e   :  { %1625 = vmatpush.msra.mxu3 %v1962_v50  ;;  %v98_v50 = vld [vmem:[%s3932_s0 + $0x20] sm:$0xff] }
  0x5f   :  { %492 = vmatmul.f32.gmra.mxu0 %v2302_v38  ;;  %794 = vmatpush.msrb.mxu1 %v98_v50  ;;  %v233_v50 = vld [vmem:[%s3932_s0 + $0x458] sm:$0xff] }
  0x60   :  { %1626 = vmatpush.msra.mxu3 %v1973_v52  ;;  %v143_v52 = vld [vmem:[%s3932_s0 + $0x188] sm:$0xff]  ;;  %975 = vmatpush.msra.mxu0 %v284_v40 }
  0x61   :  { %637 = vmatmul.f32.vlgmr.msra.gmra.mxu3 %v76_v15  ;;  %860 = vmatpush.msrb.mxu2 %v143_v52  ;;  %v2471_v15 = vld [vmem:[%s3934_s1 + $0x18] sm:$0xff]  ;;  %v230_v52 = vld [vmem:[%s3932_s0 + $0x440] sm:$0xff]  ;;  %v2535_v40 = vld [vmem:[%s3934_s1 + $0x68] sm:$0xff] }
  0x62   :  { %650 = vmatpush.msrb.mxu3 %v283_v18  ;;  %795 = vmatpush.msrb.mxu1 %v95_v28  ;;  %v2481_v18 = vld [vmem:[%s3934_s1 + $0x1c0] sm:$0xff] }
  0x63   :  { %1105 = vmatpush.msra.mxu2 %v141_v30  ;;  %976 = vmatpush.msra.mxu0 %v281_v58  ;;  %v2505_v28 = vld [vmem:[%s3934_s1 + $0x40] sm:$0xff]  ;;  %v221_v30 = vld [vmem:[%s3932_s0 + $0x3f8] sm:$0xff] }
  0x64   :  { %557 = vmatmul.f32.gmra.mxu1 %v2325_v19  ;;  %651 = vmatpush.msrb.mxu3 %v280_v21  ;;  %v275_v21 = vld [vmem:[%s3932_s0 + $0x5a8] sm:$0xff] }
  0x65   :  { %625 = vmatmul.f32.gmra.mxu2 %v56_v24  ;;  %1048 = vmatpush.msra.mxu1 %v308_v47  ;;  %v2496_v24 = vld [vmem:[%s3934_s1 + $0x20] sm:$0xff]  ;;  %v2559_v47 = vld [vmem:[%s3934_s1 + $0x90] sm:$0xff] }
  0x66   :  { %652 = vmatpush.msrb.mxu3 %v277_v25  ;;  %1106 = vmatpush.msra.mxu2 %v138_v51  ;;  %v227_v25 = vld [vmem:[%s3932_s0 + $0x428] sm:$0xff]  ;;  %v266_v51 = vld [vmem:[%s3932_s0 + $0x560] sm:$0xff] }
  0x67   :  { %495 = vmatmul.f32.gmra.mxu0 %v2343_v27  ;;  %1049 = vmatpush.msra.mxu1 %v305_v12  ;;  %v260_v12 = vld [vmem:[%s3932_s0 + $0x530] sm:$0xff] }
  0x68   :  { %653 = vmatpush.msrb.mxu3 %v274_v29  ;;  %1107 = vmatpush.msra.mxu2 %v135_v62  ;;  %v129_v29 = vld [vmem:[%s3932_s0 + $0x118] sm:$0xff]  ;;  %v2612_v62 = vld [vmem:[%s3934_s1 + $0xc0] sm:$0xff] }
  0x69   :  { %640 = vmatmul.f32.gmra.mxu3 %v81_v31  ;;  %977 = vmatpush.msra.mxu0 %v278_v23  ;;  %v272_v31 = vld [vmem:[%s3932_s0 + $0x590] sm:$0xff] }
  0x6a   :  { %654 = vmatpush.msrb.mxu3 %v271_v34  ;;  %1108 = vmatpush.msra.mxu2 %v132_v41  ;;  %v2526_v34 = vld [vmem:[%s3934_s1 + $0x48] sm:$0xff] }
  0x6b   :  { %978 = vmatpush.msra.mxu0 %v275_v21 }
  0x6c   :  { %560 = vmatmul.f32.gmra.mxu1 %v2364_v36  ;;  %655 = vmatpush.msrb.mxu3 %v268_v37  ;;  %v302_v37 = vld [vmem:[%s3932_s0 + $0x680] sm:$0xff] }
  0x6d   :  { %628 = vmatmul.f32.gmra.mxu2 %v61_v42  ;;  %979 = vmatpush.msra.mxu0 %v272_v31  ;;  %v269_v42 = vld [vmem:[%s3932_s0 + $0x578] sm:$0xff] }
  0x6e   :  { %656 = vmatpush.msrb.mxu3 %v265_v44  ;;  %1109 = vmatpush.msra.mxu2 %v129_v29  ;;  %v2553_v44 = vld [vmem:[%s3934_s1 + $0x70] sm:$0xff] }
  0x6f   :  { %498 = vmatmul.f32.gmra.mxu0 %v2382_v45  ;;  %1050 = vmatpush.msra.mxu1 %v302_v37 }
  0x70   :  { %657 = vmatpush.msrb.mxu3 %v262_v48  ;;  %980 = vmatpush.msra.mxu0 %v269_v42  ;;  %v123_v48 = vld [vmem:[%s3932_s0 + $0xe8] sm:$0xff] }
  0x71   :  { %643 = vmatmul.f32.gmra.mxu3 %v86_v53  ;;  %v2579_v53 = vld [vmem:[%s3934_s1 + $0x98] sm:$0xff] }
  0x72   :  { %658 = vmatpush.msrb.mxu3 %v259_v54  ;;  %981 = vmatpush.msra.mxu0 %v266_v51  ;;  %v299_v54 = vld [vmem:[%s3932_s0 + $0x668] sm:$0xff] }
  0x73   :  { %1051 = vmatpush.msra.mxu1 %v299_v54  ;;  %v254_v54 = vld [vmem:[%s3932_s0 + $0x500] sm:$0xff] }
  0x74   :  { %563 = vmatmul.f32.gmra.mxu1 %v2403_v55  ;;  %659 = vmatpush.msrb.mxu3 %v256_v57  ;;  %v2588_v57 = vld [vmem:[%s3934_s1 + $0xb8] sm:$0xff] }
  0x75   :  { %631 = vmatmul.f32.gmra.mxu2 %v66_v59 }
  0x76   :  { %660 = vmatpush.msrb.mxu3 %v253_v7  ;;  %v263_v7 = vld [vmem:[%s3932_s0 + $0x548] sm:$0xff] }
  0x77   :  { %501 = vmatmul.f32.gmra.mxu0 %v2421_v60 }
  0x78   :  { %661 = vmatpush.msrb.mxu3 %v250_v10  ;;  %982 = vmatpush.msra.mxu0 %v263_v7  ;;  %v2725_v7 = vld [vmem:[%s3934_s1 + $0x138] sm:$0xff] }
  0x79   :  { %646 = vmatmul.f32.gmra.mxu3 %v91_v0  ;;  %3981 = vst [vmem:[#allocation6_spill] sm:$0xff] %v2725_v7 }
  0x7a   :  { %662 = vmatpush.msrb.mxu3 %v247_v2  ;;  %v2620_v2 = vld [vmem:[%s3934_s1 + $0xe0] sm:$0xff]  ;;  %983 = vmatpush.msra.mxu0 %v260_v12 }
  0x7c   :  { %566 = vmatmul.f32.gmra.mxu1 %v2439_v17  ;;  %663 = vmatpush.msrb.mxu3 %v244_v6 }
  0x7d   :  { %634 = vmatmul.f32.gmra.mxu2 %v71_v8 }
  0x7e   :  { %664 = vmatpush.msrb.mxu3 %v241_v9  ;;  %v209_v9 = vld [vmem:[%s3932_s0 + $0x398] sm:$0xff] }
  0x7f   :  { %504 = vmatmul.f32.gmra.mxu0 %v2457_v32 }
  0x80   :  { %665 = vmatpush.msrb.mxu3 %v238_v13 }
  0x81   :  { %666 = vmatmul.f32.vlgmr.msrb.gmra.mxu3 %v2471_v15 }
  0x82   :  { %910 = vmatpush.msra.mxu3 %v236_v46  ;;  %v2650_v46 = vld [vmem:[%s3934_s1 + $0xe8] sm:$0xff] }
  0x84   :  { %569 = vmatmul.f32.gmra.mxu1 %v2481_v18  ;;  %911 = vmatpush.msra.mxu3 %v233_v50  ;;  %v296_v50 = vld [vmem:[%s3932_s0 + $0x650] sm:$0xff] }
  0x85   :  { %861 = vmatmul.f32.vlgmr.msrb.gmra.mxu2 %v2023_v63  ;;  %v224_v63 = vld [vmem:[%s3932_s0 + $0x410] sm:$0xff]  ;;  %v2595_v58 = vpop.permute.xlu1 %338  ;;  %1052 = vmatpush.msra.mxu1 %v296_v50 }
  0x86   :  { %912 = vmatpush.msra.mxu3 %v230_v52  ;;  %v114_v52 = vld [vmem:[%s3932_s0 + $0xa0] sm:$0xff]  ;;  %v108_v50 = vld [vmem:[%s3932_s0 + $0x70] sm:$0xff] }
  0x87   :  { %1531 = vmatmul.msk.f32.vlgmr.msrb.gmra.mxu0 %vm406_vm0, %v2496_v24 }
  0x88   :  { %913 = vmatpush.msra.mxu3 %v227_v25 }
  0x89   :  { %669 = vmatmul.f32.gmra.mxu3 %v2505_v28 }
  0x8a   :  { %914 = vmatpush.msra.mxu3 %v224_v63  ;;  %v206_v63 = vld [vmem:[%s3932_s0 + $0x380] sm:$0xff] }
  0x8c   :  { %796 = vmatmul.f32.vlgmr.msrb.gmra.mxu1 %v1994_v56  ;;  %915 = vmatpush.msra.mxu3 %v221_v30  ;;  %v126_v56 = vld [vmem:[%s3932_s0 + $0x100] sm:$0xff]  ;;  %v257_v30 = vld [vmem:[%s3932_s0 + $0x518] sm:$0xff] }
  0x8d   :  { %864 = vmatmul.f32.gmra.mxu2 %v2070_v16  ;;  %v218_v16 = vld [vmem:[%s3932_s0 + $0x3e0] sm:$0xff]  ;;  %984 = vmatpush.msra.mxu0 %v257_v30  ;;  %v200_v30 = vld [vmem:[%s3932_s0 + $0x350] sm:$0xff] }
  0x8e   :  { %1110 = vmatpush.msra.mxu2 %v126_v56  ;;  %916 = vmatpush.msra.mxu3 %v218_v16  ;;  %v2689_v56 = vld [vmem:[%s3934_s1 + $0x110] sm:$0xff] }
  0x8f   :  { %1532 = vmatmul.msk.f32.gmra.mxu0 %vm406_vm0, %v2526_v34  ;;  %v2627_v6 = vpop.permute.xlu2 %348 }
  0x90   :  { %1111 = vmatpush.msra.mxu2 %v123_v48  ;;  %v2699_v48 = vld [vmem:[%s3934_s1 + $0x130] sm:$0xff]  ;;  %985 = vmatpush.msra.mxu0 %v254_v54 }
  0x91   :  { %672 = vmatmul.f32.gmra.mxu3 %v2535_v40  ;;  %3980 = vst [vmem:[#allocation5_spill] sm:$0xff] %v2699_v48 }
  0x94   :  { %799 = vmatmul.f32.gmra.mxu1 %v2041_v4  ;;  %v2566_v4 = vpop.permute.xlu0 %328 }
  0x95   :  { %867 = vmatmul.f32.gmra.mxu2 %v2116_v33  ;;  %3977 = vst [vmem:[#allocation2_spill] sm:$0xff] %v2566_v4  ;;  %v215_v33 = vld [vmem:[%s3932_s0 + $0x3c8] sm:$0xff] }
  0x96   :  { %917 = vmatpush.msra.mxu3 %v215_v33 }
  0x97   :  { %1533 = vmatmul.msk.f32.gmra.mxu0 %vm406_vm0, %v2553_v44 }
  0x99   :  { %675 = vmatmul.f32.gmra.mxu3 %v2559_v47 }
  0x9c   :  { %802 = vmatmul.f32.gmra.mxu1 %v2087_v22  ;;  %v120_v22 = vld [vmem:[%s3932_s0 + $0xd0] sm:$0xff]  ;;  %v2598_v59 = vpop.permute.xlu0 %333 }
  0x9d   :  { %870 = vmatmul.f32.gmra.mxu2 %v2165_v49  ;;  %3978 = vst [vmem:[#allocation3_spill] sm:$0xff] %v2598_v59  ;;  %v212_v49 = vld [vmem:[%s3932_s0 + $0x3b0] sm:$0xff] }
  0x9e   :  { %1112 = vmatpush.msra.mxu2 %v120_v22  ;;  %918 = vmatpush.msra.mxu3 %v212_v49 }
  0x9f   :  { %1534 = vmatmul.msk.f32.gmra.mxu0 %vm406_vm0, %v2579_v53 }
  0xa0   :  { %919 = vmatpush.msra.mxu3 %v209_v9 }
  0xa1   :  { %678 = vmatmul.f32.gmra.mxu3 %v2588_v57 }
  0xa2   :  { %920 = vmatpush.msra.mxu3 %v206_v63 }
  0xa4   :  { %805 = vmatmul.f32.gmra.mxu1 %v2133_v39  ;;  %v2607_v10 = vpop.f32.mrf.mxu3  ;;  %v2614_v0 = vpop.f32.mrf.mxu0  ;;  %v117_v39 = vld [vmem:[%s3932_s0 + $0xb8] sm:$0xff] }
  0xa5   :  { %873 = vmatmul.f32.gmra.mxu2 %v2214_v61  ;;  %v2634_v61 = vpop.permute.xlu1 %343  ;;  %v2642_v13 = vpop.permute.xlu0 %358 }
  0xa6   :  { %1113 = vmatpush.msra.mxu2 %v117_v39  ;;  %v293_v39 = vld [vmem:[%s3932_s0 + $0x638] sm:$0xff] }
  0xa7   :  { %1535 = vmatmul.msk.f32.gmra.mxu0 %vm406_vm0, %v2612_v62  ;;  %1053 = vmatpush.msra.mxu1 %v293_v39  ;;  %v2764_v39 = vld [vmem:[%s3934_s1 + $0x160] sm:$0xff] }
  0xa8   :  { %v2629_v23 = vpop.f32.mrf.mxu2  ;;  %1114 = vmatpush.msra.mxu2 %v114_v52  ;;  %3985 = vst [vmem:[#allocation10_spill] sm:$0xff] %v2764_v39 }
  0xa9   :  { %v2631_v8 = vpop.f32.mrf.mxu1  ;;  %681 = vmatmul.f32.gmra.mxu3 %v2620_v2 }
  0xac   :  { %808 = vmatmul.f32.gmra.mxu1 %v2182_v3  ;;  %v2645_v41 = vpop.f32.mrf.mxu3  ;;  %v2655_v21 = vpop.f32.mrf.mxu0  ;;  %v2661_v3 = vld [vmem:[%s3934_s1 + $0x108] sm:$0xff] }
  0xad   :  { %876 = vmatmul.f32.gmra.mxu2 %v2251_v20  ;;  %v2673_v20 = vpop.permute.xlu2 %353  ;;  %v2681_v31 = vpop.permute.xlu1 %363 }
  0xae   :  { %v2694_v42 = vpop.permute.xlu0 %373 }
  0xaf   :  { %1536 = vmatmul.msk.f32.gmra.mxu0 %vm406_vm0, %v2650_v46  ;;  %3979 = vst [vmem:[#allocation4_spill] sm:$0xff] %v2694_v42 }
  0xb0   :  { %v2668_v25 = vpop.f32.mrf.mxu2 }
  0xb1   :  { %v2670_v29 = vpop.f32.mrf.mxu1  ;;  %684 = vmatmul.f32.gmra.mxu3 %v2661_v3 }
  0xb4   :  { %811 = vmatmul.f32.gmra.mxu1 %v2231_v14  ;;  %v2684_v37 = vpop.f32.mrf.mxu3  ;;  %v2691_v16 = vpop.f32.mrf.mxu0  ;;  %v111_v14 = vld [vmem:[%s3932_s0 + $0x88] sm:$0xff] }
  0xb5   :  { %879 = vmatmul.f32.gmra.mxu2 %v2288_v35  ;;  %v203_v35 = vld [vmem:[%s3932_s0 + $0x368] sm:$0xff]  ;;  %v2717_v22 = vpop.permute.xlu2 %368  ;;  %v2733_v12 = vpop.permute.xlu1 %378 }
  0xb6   :  { %1115 = vmatpush.msra.mxu2 %v111_v14  ;;  %921 = vmatpush.msra.mxu3 %v203_v35  ;;  %3982 = vst [vmem:[#allocation7_spill] sm:$0xff] %v2733_v12  ;;  %v2745_v52 = vpop.permute.xlu0 %388  ;;  %v251_v14 = vld [vmem:[%s3932_s0 + $0x4e8] sm:$0xff] }
  0xb7   :  { %1537 = vmatmul.msk.f32.gmra.mxu0 %vm406_vm0, %v2689_v56  ;;  %3984 = vst [vmem:[#allocation9_spill] sm:$0xff] %v2745_v52  ;;  %v509_v35 = vadd.f32 %v2607_v10, %v2745_v52  ;;  %v2776_v10 = vld [vmem:[%s3934_s1 + $0x180] sm:$0xff] }
  0xb8   :  { %v2706_v33 = vpop.f32.mrf.mxu2  ;;  %1116 = vmatpush.msra.mxu2 %v108_v50  ;;  %922 = vmatpush.msra.mxu3 %v200_v30  ;;  %3987 = vst [vmem:[#allocation12_spill] sm:$0xff] %v2776_v10 }
  0xb9   :  { %v2708_v51 = vpop.f32.mrf.mxu1  ;;  %687 = vmatmul.f32.gmra.mxu3 %v2699_v48  ;;  %986 = vmatpush.msra.mxu0 %v251_v14 }
  0xbc   :  { %814 = vmatmul.f32.gmra.mxu1 %v2268_v26  ;;  %v2720_v49 = vpop.f32.mrf.mxu3  ;;  %v2730_v9 = vpop.f32.mrf.mxu0  ;;  %v2738_v26 = vld [vmem:[%s3934_s1 + $0x158] sm:$0xff] }
  0xbd   :  { %882 = vmatmul.f32.gmra.mxu2 %v2325_v19  ;;  %3983 = vst [vmem:[#allocation8_spill] sm:$0xff] %v2738_v26  ;;  %v2783_v30 = vpop.permute.xlu1 %393 }
  0xbe   :  { %3988 = vst [vmem:[#allocation13_spill] sm:$0xff] %v2783_v30  ;;  %v512_v52 = vadd.f32 %v2645_v41, %v2783_v30  ;;  %v102_v41 = vld [vmem:[%s3932_s0 + $0x40] sm:$0xff]  ;;  %v2841_v30 = vld [vmem:[%s3934_s1 + $0x1b0] sm:$0xff] }
  0xbf   :  { %1538 = vmatmul.msk.f32.gmra.mxu0 %vm406_vm0, %v2725_v7  ;;  %3992 = vst [vmem:[#allocation17_spill] sm:$0xff] %v2841_v30 }
  0xc0   :  { %v2747_v63 = vpop.f32.mrf.mxu2 }
  0xc1   :  { %v2749_v19 = vpop.f32.mrf.mxu1  ;;  %690 = vmatmul.f32.gmra.mxu3 %v2738_v26  ;;  %v2771_v26 = vpop.permute.xlu2 %383 }
  0xc2   :  { %3986 = vst [vmem:[#allocation11_spill] sm:$0xff] %v2771_v26  ;;  %v2802_v26 = vld [vmem:[%s3934_s1 + $0x188] sm:$0xff] }
  0xc3   :  { %3989 = vst [vmem:[#allocation14_spill] sm:$0xff] %v2802_v26 }
  0xc4   :  { %817 = vmatmul.f32.gmra.mxu1 %v2302_v38  ;;  %v573_v54 = vpop.f32.mrf.mxu3  ;;  %v2768_v12 = vpop.f32.mrf.mxu0  ;;  %v105_v38 = vld [vmem:[%s3932_s0 + $0x58] sm:$0xff] }
  0xc5   :  { %v2766_v50 = vadd.f32 %v573_v54, %v509_v35  ;;  %885 = vmatmul.f32.gmra.mxu2 %v2364_v36  ;;  %v197_v35 = vld [vmem:[%s3932_s0 + $0x338] sm:$0xff]  ;;  %v248_v54 = vld [vmem:[%s3932_s0 + $0x4d0] sm:$0xff] }
  0xc6   :  { %1117 = vmatpush.msra.mxu2 %v105_v38  ;;  %923 = vmatpush.msra.mxu3 %v197_v35 }
  0xc7   :  { %1539 = vmatmul.msk.f32.gmra.mxu0 %vm406_vm0, %v2764_v39 }
  0xc8   :  { %v2785_v14 = vpop.f32.mrf.mxu2  ;;  %987 = vmatpush.msra.mxu0 %v248_v54  ;;  %1118 = vmatpush.msra.mxu2 %v102_v41 }
  0xc9   :  { %v2787_v36 = vpop.f32.mrf.mxu1  ;;  %693 = vmatmul.f32.gmra.mxu3 %v2776_v10  ;;  %v290_v10 = vld [vmem:[%s3932_s0 + $0x620] sm:$0xff] }
  0xca   :  { %1054 = vmatpush.msra.mxu1 %v290_v10  ;;  %v245_v10 = vld [vmem:[%s3932_s0 + $0x4b8] sm:$0xff] }
  0xcb   :  { %988 = vmatpush.msra.mxu0 %v245_v10 }
  0xcc   :  { %820 = vmatmul.f32.gmra.mxu1 %v2343_v27  ;;  %v576_v38 = vpop.f32.mrf.mxu3  ;;  %v2809_v7 = vpop.f32.mrf.mxu0  ;;  %v2815_v27 = vld [vmem:[%s3934_s1 + $0x1a8] sm:$0xff] }
  0xcd   :  { %v2807_v39 = vadd.f32 %v576_v38, %v512_v52  ;;  %888 = vmatmul.f32.gmra.mxu2 %v2403_v55  ;;  %3990 = vst [vmem:[#allocation15_spill] sm:$0xff] %v2815_v27  ;;  %v2822_v52 = vpop.permute.xlu2 %398  ;;  %v194_v55 = vld [vmem:[%s3932_s0 + $0x320] sm:$0xff] }
  0xce   :  { %3991 = vst [vmem:[#allocation16_spill] sm:$0xff] %v2822_v52  ;;  %v515_v38 = vadd.f32 %v2684_v37, %v2822_v52  ;;  %924 = vmatpush.msra.mxu3 %v194_v55  ;;  %v2851_v37 = vld [vmem:[%s3934_s1 + $0x1d0] sm:$0xff]  ;;  %v2858_v55 = vpop.permute.xlu0 %403 }
  0xcf   :  { %1540 = vmatmul.msk.f32.gmra.mxu0 %vm406_vm0, %v2802_v26  ;;  %3993 = vst [vmem:[#allocation18_spill] sm:$0xff] %v2851_v37  ;;  %v518_v52 = vadd.f32 %v2720_v49, %v2858_v55  ;;  %v96_v49 = vld [vmem:[%s3932_s0 + $0x10] sm:$0xff] }
  0xd0   :  { %v2824_v35 = vpop.f32.mrf.mxu2  ;;  %3994 = vst [vmem:[#allocation19_spill] sm:$0xff] %v2858_v55 }
  0xd1   :  { %v2826_v54 = vpop.f32.mrf.mxu1  ;;  %696 = vmatmul.f32.gmra.mxu3 %v2815_v27 }
  0xd4   :  { %823 = vmatmul.f32.gmra.mxu1 %v2382_v45  ;;  %v579_v41 = vpop.f32.mrf.mxu3  ;;  %v2845_v26 = vpop.f32.mrf.mxu0  ;;  %v99_v45 = vld [vmem:[%s3932_s0 + $0x28] sm:$0xff] }
  0xd5   :  { %v2843_v27 = vadd.f32 %v579_v41, %v515_v38  ;;  %891 = vmatmul.f32.gmra.mxu2 %v2439_v17  ;;  %v191_v17 = vld [vmem:[%s3932_s0 + $0x308] sm:$0xff]  ;;  %v242_v41 = vld [vmem:[%s3932_s0 + $0x4a0] sm:$0xff] }
  0xd6   :  { %1119 = vmatpush.msra.mxu2 %v99_v45  ;;  %925 = vmatpush.msra.mxu3 %v191_v17 }
  0xd7   :  { %1541 = vmatmul.msk.f32.gmra.mxu0 %vm406_vm0, %v2841_v30  ;;  %v287_v30 = vld [vmem:[%s3932_s0 + $0x608] sm:$0xff] }
  0xd8   :  { %v2860_v10 = vpop.f32.mrf.mxu2  ;;  %989 = vmatpush.msra.mxu0 %v242_v41  ;;  %1055 = vmatpush.msra.mxu1 %v287_v30  ;;  %v189_v30 = vld [vmem:[%s3932_s0 + $0x2f8] sm:$0xff] }
  0xd9   :  { %v2862_v38 = vpop.f32.mrf.mxu1  ;;  %699 = vmatmul.f32.gmra.mxu3 %v2851_v37  ;;  %v2877_v37 = vld [vmem:[%s3934_s1 + $0x1d8] sm:$0xff]  ;;  %1120 = vmatpush.msra.mxu2 %v96_v49 }
  0xda   :  { %3995 = vst [vmem:[#allocation20_spill] sm:$0xff] %v2877_v37  ;;  %1170 = vmatpush.msrb.mxu3 %v189_v30 }
  0xdc   :  { %826 = vmatmul.f32.gmra.mxu1 %v2421_v60  ;;  %v582_v45 = vpop.f32.mrf.mxu3  ;;  %v2884_v48 = vpop.f32.mrf.mxu0  ;;  %v2890_v60 = vld [vmem:[%s3934_s1 + $0x1f8] sm:$0xff] }
  0xdd   :  { %v2882_v42 = vadd.f32 %v582_v45, %v518_v52  ;;  %894 = vmatmul.f32.gmra.mxu2 %v2481_v18  ;;  %3996 = vst [vmem:[#allocation21_spill] sm:$0xff] %v2890_v60  ;;  %v239_v18 = vld [vmem:[%s3932_s0 + $0x488] sm:$0xff]  ;;  %v2912_v45 = vld [vmem:[%s3934_s1 + $0x200] sm:$0xff] }
  0xde   :  { %990 = vmatpush.msra.mxu0 %v239_v18  ;;  %3997 = vst [vmem:[#allocation22_spill] sm:$0xff] %v2912_v45  ;;  %v2923_v18 = vld [vmem:[%s3934_s1 + $0x220] sm:$0xff] }
  0xdf   :  { %1542 = vmatmul.msk.f32.gmra.mxu0 %vm406_vm0, %v2877_v37  ;;  %3999 = vst [vmem:[#allocation24_spill] sm:$0xff] %v2923_v18 }
  0xe0   :  { %v2897_v52 = vpop.f32.mrf.mxu2 }
  0xe1   :  { %v2899_v17 = vpop.f32.mrf.mxu1  ;;  %702 = vmatmul.f32.gmra.mxu3 %v2890_v60  ;;  %v2950_v60 = vld [vmem:[%s3934_s1 + $0x228] sm:$0xff] }
  0xe2   :  { %4003 = vst [vmem:[#allocation28_spill] sm:$0xff] %v2950_v60 }
  0xe4   :  { %829 = vmatmul.f32.gmra.mxu1 %v2457_v32  ;;  %v638_v41 = vpop.f32.mrf.mxu3  ;;  %v2917_v55 = vpop.f32.mrf.mxu0 }
  0xe5   :  { %v2915_v49 = vadd.f32 %v638_v41, %v2766_v50  ;;  %897 = vmatmul.f32.gmra.mxu2 %v2145_v43  ;;  %v309_v50 = vld [vmem:[%s3932_s0 + $0x6b8] sm:$0xff]  ;;  %v186_v43 = vld [vmem:[%s3932_s0 + $0x2e0] sm:$0xff] }
  0xe6   :  { %v237_v41 = vld [vmem:[%s3932_s0 + $0x478] sm:$0xff]  ;;  %1373 = vmatpush.msrb.mxu2 %v309_v50  ;;  %1171 = vmatpush.msrb.mxu3 %v186_v43  ;;  %v2988_v43 = vld [vmem:[%s3934_s1 + $0x250] sm:$0xff] }
  0xe7   :  { %3998 = vst [vmem:[#allocation23_spill] sm:$0xff] %v2915_v49  ;;  %1543 = vmatmul.msk.f32.gmra.mxu0 %vm406_vm0, %v2912_v45  ;;  %v2944_v45 = vld [vmem:[%s3934_s1 + $0x1e0] sm:$0xff]  ;;  %v285_v49 = vld [vmem:[%s3932_s0 + $0x5f8] sm:$0xff] }
  0xe8   :  { %v2927_v32 = vpop.f32.mrf.mxu2  ;;  %4002 = vst [vmem:[#allocation27_spill] sm:$0xff] %v2944_v45  ;;  %1235 = vmatpush.msrb.mxu0 %v237_v41  ;;  %1300 = vmatpush.msrb.mxu1 %v285_v49  ;;  %v2982_v49 = vld [vmem:[%s3934_s1 + $0x208] sm:$0xff]  ;;  %v282_v41 = vld [vmem:[%s3932_s0 + $0x5e0] sm:$0xff] }
  0xe9   :  { %4000 = vst [vmem:[#allocation25_spill] sm:$0xff] %v2927_v32  ;;  %v2929_v30 = vpop.f32.mrf.mxu1  ;;  %705 = vmatmul.f32.gmra.mxu3 %v2923_v18 }
  0xea   :  { %4001 = vst [vmem:[#allocation26_spill] sm:$0xff] %v2929_v30  ;;  %1301 = vmatpush.msrb.mxu1 %v282_v41  ;;  %v3025_v41 = vld [vmem:[%s3934_s1 + $0x230] sm:$0xff] }
  0xeb   :  { %4006 = vst [vmem:[#allocation31_spill] sm:$0xff] %v2982_v49 }
  0xec   :  { %832 = vmatmul.f32.gmra.mxu1 %v2944_v45  ;;  %v641_v18 = vpop.f32.mrf.mxu3  ;;  %v2958_v32 = vpop.f32.mrf.mxu0  ;;  %v2964_v45 = vld [vmem:[%s3934_s1 + $0x248] sm:$0xff]  ;;  %4007 = vst [vmem:[#allocation32_spill] sm:$0xff] %v2988_v43 }
  0xed   :  { %v2956_v37 = vadd.f32 %v641_v18, %v2807_v39  ;;  %900 = vmatmul.f32.gmra.mxu2 %v2194_v5  ;;  %4005 = vst [vmem:[#allocation30_spill] sm:$0xff] %v2964_v45  ;;  %v183_v5 = vld [vmem:[%s3932_s0 + $0x2c8] sm:$0xff]  ;;  %v234_v39 = vld [vmem:[%s3932_s0 + $0x460] sm:$0xff] }
  0xee   :  { %1172 = vmatpush.msrb.mxu3 %v183_v5  ;;  %1236 = vmatpush.msrb.mxu0 %v234_v39  ;;  %v180_v39 = vld [vmem:[%s3932_s0 + $0x2b0] sm:$0xff]  ;;  %4011 = vst [vmem:[#allocation36_spill] sm:$0xff] %v3025_v41 }
  0xef   :  { %4004 = vst [vmem:[#allocation29_spill] sm:$0xff] %v2956_v37  ;;  %1544 = vmatmul.msk.f32.gmra.mxu0 %vm406_vm0, %v2950_v60 }
  0xf0   :  { %v2968_v50 = vpop.f32.mrf.mxu2  ;;  %1173 = vmatpush.msrb.mxu3 %v180_v39  ;;  %v3067_v39 = vld [vmem:[%s3934_s1 + $0x258] sm:$0xff] }
  0xf1   :  { %v2970_v30 = vpop.f32.mrf.mxu1  ;;  %708 = vmatmul.f32.gmra.mxu3 %v2964_v45  ;;  %4014 = vst [vmem:[#allocation39_spill] sm:$0xff] %v3067_v39 }
  0xf4   :  { %835 = vmatmul.f32.gmra.mxu1 %v2982_v49  ;;  %v644_v18 = vpop.f32.mrf.mxu3  ;;  %v2996_v60 = vpop.f32.mrf.mxu0  ;;  %v3002_v49 = vld [vmem:[%s3934_s1 + $0x270] sm:$0xff] }
  0xf5   :  { %v2994_v45 = vadd.f32 %v644_v18, %v2843_v27  ;;  %903 = vmatmul.f32.gmra.mxu2 %v2237_v1  ;;  %4009 = vst [vmem:[#allocation34_spill] sm:$0xff] %v3002_v49  ;;  %v473_v27 = vadd.f32 %v2614_v0, %v2566_v4  ;;  %v306_v1 = vld [vmem:[%s3932_s0 + $0x6a0] sm:$0xff]  ;;  %v231_v18 = vld [vmem:[%s3932_s0 + $0x448] sm:$0xff] }
  0xf6   :  { %1374 = vmatpush.msrb.mxu2 %v306_v1  ;;  %v279_v4 = vld [vmem:[%s3932_s0 + $0x5c8] sm:$0xff]  ;;  %1237 = vmatpush.msrb.mxu0 %v231_v18 }
  0xf7   :  { %4008 = vst [vmem:[#allocation33_spill] sm:$0xff] %v2994_v45  ;;  %1545 = vmatmul.msk.f32.gmra.mxu0 %vm406_vm0, %v2988_v43  ;;  %1302 = vmatpush.msrb.mxu1 %v279_v4  ;;  %v476_v4 = vadd.f32 %v2655_v21, %v2598_v59 }
  0xf8   :  { %v3006_v5 = vpop.f32.mrf.mxu2 }
  0xf9   :  { %4010 = vst [vmem:[#allocation35_spill] sm:$0xff] %v3006_v5  ;;  %v3008_v37 = vpop.f32.mrf.mxu1  ;;  %711 = vmatmul.f32.gmra.mxu3 %v3002_v49  ;;  %v3031_v49 = vld [vmem:[%s3934_s1 + $0x278] sm:$0xff] }
  0xfa   :  { %4012 = vst [vmem:[#allocation37_spill] sm:$0xff] %v3031_v49 }
  0xfc   :  { %838 = vmatmul.f32.gmra.mxu1 %v3025_v41  ;;  %v647_v0 = vpop.f32.mrf.mxu3  ;;  %v3039_v45 = vpop.f32.mrf.mxu0  ;;  %v538_v41 = vadd.f32 %v2631_v8, %v473_v27  ;;  %v177_v8 = vld [vmem:[%s3932_s0 + $0x298] sm:$0xff]  ;;  %v228_v27 = vld [vmem:[%s3932_s0 + $0x430] sm:$0xff] }
  0xfd   :  { %v3037_v43 = vadd.f32 %v647_v0, %v2882_v42  ;;  %906 = vmatmul.f32.gmra.mxu2 %v2277_v11  ;;  %v3052_v42 = vld [vmem:[%s3934_s1 + $0x10] sm:$0xff]  ;;  %1174 = vmatpush.msrb.mxu3 %v177_v8  ;;  %v1636_v0 = vld [vmem:[%s3934_s1] sm:$0xff] }
  0xfe   :  { %4013 = vst [vmem:[#allocation38_spill] sm:$0xff] %v3052_v42  ;;  %v603_v11 = vadd.f32 %v2629_v23, %v538_v41  ;;  %v276_v23 = vld [vmem:[%s3932_s0 + $0x5b0] sm:$0xff]  ;;  %1238 = vmatpush.msrb.mxu0 %v228_v27 }
  0xff   :  { %1546 = vmatmul.msk.f32.gmra.mxu0 %vm406_vm0, %v3031_v49  ;;  %1303 = vmatpush.msrb.mxu1 %v276_v23  ;;  %v1638_v23 = vld [vmem:[%s3934_s1 + $0x28] sm:$0xff] }
 0x100   :  { %v3045_v1 = vpop.f32.mrf.mxu2 }
 0x101   :  { %v3047_v5 = vpop.f32.mrf.mxu1  ;;  %926 = vmatmul.f32.vlgmr.msra.gmra.mxu3 %v3052_v42  ;;  %v541_v42 = vadd.f32 %v2670_v29, %v476_v4  ;;  %v479_v29 = vadd.f32 %v2691_v16, %v2595_v58  ;;  %v225_v4 = vld [vmem:[%s3932_s0 + $0x418] sm:$0xff] }
 0x102   :  { %v273_v16 = vld [vmem:[%s3932_s0 + $0x598] sm:$0xff]  ;;  %1239 = vmatpush.msrb.mxu0 %v225_v4 }
 0x103   :  { %v606_v27 = vadd.f32 %v2668_v25, %v541_v42  ;;  %1304 = vmatpush.msrb.mxu1 %v273_v16 }
 0x104   :  { %841 = vmatmul.f32.gmra.mxu1 %v3067_v39  ;;  %v667_v18 = vpop.f32.mrf.mxu3  ;;  %v732_v41 = vpop.f32.mrf.mxu0 }
 0x105   :  { %v668_v21 = vadd.f32 %v667_v18, %v603_v11  ;;  %1121 = vmatmul.f32.vlgmr.msra.gmra.mxu2 %v1636_v0  ;;  %v3085_v11 = vld [vmem:[%s3934_s1 + $0x38] sm:$0xff] }
 0x107   :  { %v733_v59 = vadd.f32 %v732_v41, %v668_v21  ;;  %991 = vmatmul.f32.vlgmr.msra.gmra.mxu0 %v2471_v15  ;;  %v303_v15 = vld [vmem:[%s3932_s0 + $0x688] sm:$0xff]  ;;  %v544_v21 = vadd.f32 %v2708_v51, %v479_v29  ;;  %v482_v51 = vadd.f32 %v2730_v9, %v2634_v61  ;;  %v222_v29 = vld [vmem:[%s3932_s0 + $0x400] sm:$0xff] }
 0x108   :  { %v3078_v49 = vpop.f32.mrf.mxu2  ;;  %1375 = vmatpush.msrb.mxu2 %v303_v15  ;;  %1240 = vmatpush.msrb.mxu0 %v222_v29  ;;  %v1642_v29 = vld [vmem:[%s3934_s1 + $0x78] sm:$0xff] }
 0x109   :  { %v1430_v8 = vmax.f32 %v733_v59, 0.0  ;;  %v3080_v39 = vpop.f32.mrf.mxu1  ;;  %929 = vmatmul.f32.gmra.mxu3 %v3085_v11  ;;  %v174_v59 = vld [vmem:[%s3932_s0 + $0x280] sm:$0xff]  ;;  %v609_v15 = vadd.f32 %v2706_v33, %v544_v21  ;;  %v547_v16 = vadd.f32 %v2749_v19, %v482_v51  ;;  %v3152_v21 = vld [vmem:[%s3934_s1 + $0x88] sm:$0xff]  ;;  %v485_v19 = vadd.f32 %v2768_v12, %v2627_v6 }
 0x10a   :  { %1175 = vmatpush.msrb.mxu3 %v174_v59  ;;  %v270_v33 = vld [vmem:[%s3932_s0 + $0x580] sm:$0xff] }
 0x10b   :  { %1478 = vst [vmem:[%s3935_s3] sm:$0xff] %v1430_v8  ;;  %1305 = vmatpush.msrb.mxu1 %v270_v33 }
 0x10c   :  { %1547 = vmatmul.msk.f32.vlgmr.msra.gmra.mxu1 %vm406_vm0, %v2496_v24  ;;  %v670_v25 = vpop.f32.mrf.mxu3  ;;  %v735_v18 = vpop.f32.mrf.mxu0 }
 0x10d   :  { %v671_v42 = vadd.f32 %v670_v25, %v606_v27  ;;  %1124 = vmatmul.f32.gmra.mxu2 %v1638_v23  ;;  %v3120_v27 = vld [vmem:[%s3934_s1 + $0x60] sm:$0xff]  ;;  %v1640_v25 = vld [vmem:[%s3934_s1 + $0x50] sm:$0xff] }
 0x10f   :  { %v736_v41 = vadd.f32 %v735_v18, %v671_v42  ;;  %994 = vmatmul.f32.gmra.mxu0 %v2505_v28  ;;  %v171_v28 = vld [vmem:[%s3932_s0 + $0x268] sm:$0xff] }
 0x110   :  { %v3113_v24 = vpop.f32.mrf.mxu2  ;;  %1176 = vmatpush.msrb.mxu3 %v171_v28 }
 0x111   :  { %v1433_v0 = vmax.f32 %v736_v41, 0.0  ;;  %v3115_v8 = vpop.f32.mrf.mxu1  ;;  %932 = vmatmul.f32.gmra.mxu3 %v3120_v27  ;;  %v612_v41 = vadd.f32 %v2747_v63, %v547_v16  ;;  %v267_v63 = vld [vmem:[%s3932_s0 + $0x568] sm:$0xff] }
 0x112   :  { %1306 = vmatpush.msrb.mxu1 %v267_v63  ;;  %v3219_v63 = vld [vmem:[%s3934_s1 + $0xd8] sm:$0xff] }
 0x113   :  { %1482 = vst [vmem:[%s3935_s3 + $0x18] sm:$0xff] %v1433_v0  ;;  %v168_v0 = vld [vmem:[%s3932_s0 + $0x250] sm:$0xff] }
 0x114   :  { %1548 = vmatmul.msk.f32.gmra.mxu1 %vm406_vm0, %v2526_v34  ;;  %v673_v59 = vpop.f32.mrf.mxu3  ;;  %v738_v4 = vpop.f32.mrf.mxu0  ;;  %1177 = vmatpush.msrb.mxu3 %v168_v0 }
 0x115   :  { %v674_v9 = vadd.f32 %v673_v59, %v609_v15  ;;  %1127 = vmatmul.f32.gmra.mxu2 %v1640_v25  ;;  %v219_v15 = vld [vmem:[%s3932_s0 + $0x3e8] sm:$0xff]  ;;  %v550_v59 = vadd.f32 %v2787_v36, %v485_v19  ;;  %v3187_v25 = vld [vmem:[%s3934_s1 + $0xb0] sm:$0xff]  ;;  %v488_v36 = vadd.f32 %v2809_v7, %v2673_v20  ;;  %v1644_v19 = vld [vmem:[%s3934_s1 + $0xa0] sm:$0xff] }
 0x116   :  { %1241 = vmatpush.msrb.mxu0 %v219_v15  ;;  %v264_v7 = vld [vmem:[%s3932_s0 + $0x550] sm:$0xff] }
 0x117   :  { %v739_v42 = vadd.f32 %v738_v4, %v674_v9  ;;  %997 = vmatmul.f32.gmra.mxu0 %v2535_v40  ;;  %v300_v40 = vld [vmem:[%s3932_s0 + $0x670] sm:$0xff]  ;;  %v615_v16 = vadd.f32 %v2785_v14, %v550_v59  ;;  %1307 = vmatpush.msrb.mxu1 %v264_v7 }
 0x118   :  { %v3145_v34 = vpop.f32.mrf.mxu2  ;;  %1376 = vmatpush.msrb.mxu2 %v300_v40  ;;  %v553_v40 = vadd.f32 %v2826_v54, %v488_v36  ;;  %v491_v54 = vadd.f32 %v2845_v26, %v2642_v13 }
 0x119   :  { %v1436_v18 = vmax.f32 %v739_v42, 0.0  ;;  %v3147_v23 = vpop.f32.mrf.mxu1  ;;  %935 = vmatmul.f32.gmra.mxu3 %v3152_v21  ;;  %v216_v42 = vld [vmem:[%s3932_s0 + $0x3d0] sm:$0xff] }
 0x11a   :  { %1242 = vmatpush.msrb.mxu0 %v216_v42 }
 0x11b   :  { %1485 = vst [vmem:[%s3935_s3 + $0x30] sm:$0xff] %v1436_v18 }
 0x11c   :  { %1549 = vmatmul.msk.f32.gmra.mxu1 %vm406_vm0, %v2553_v44  ;;  %v676_v12 = vpop.f32.mrf.mxu3  ;;  %v741_v28 = vpop.f32.mrf.mxu0 }
 0x11d   :  { %v677_v51 = vadd.f32 %v676_v12, %v612_v41  ;;  %1130 = vmatmul.f32.gmra.mxu2 %v1642_v29  ;;  %v213_v29 = vld [vmem:[%s3932_s0 + $0x3b8] sm:$0xff] }
 0x11e   :  { %1243 = vmatpush.msrb.mxu0 %v213_v29  ;;  %v156_v29 = vld [vmem:[%s3932_s0 + $0x1f0] sm:$0xff] }
 0x11f   :  { %v742_v33 = vadd.f32 %v741_v28, %v677_v51  ;;  %1000 = vmatmul.f32.gmra.mxu0 %v2559_v47  ;;  %v165_v47 = vld [vmem:[%s3932_s0 + $0x238] sm:$0xff]  ;;  %v618_v51 = vadd.f32 %v2824_v35, %v553_v40  ;;  %v162_v28 = vld [vmem:[%s3932_s0 + $0x220] sm:$0xff]  ;;  %v1648_v40 = vld [vmem:[%s3934_s1 + $0xf0] sm:$0xff] }
 0x120   :  { %v3180_v44 = vpop.f32.mrf.mxu2  ;;  %1178 = vmatpush.msrb.mxu3 %v165_v47  ;;  %v261_v35 = vld [vmem:[%s3932_s0 + $0x538] sm:$0xff] }
 0x121   :  { %v1439_v9 = vmax.f32 %v742_v33, 0.0  ;;  %v3182_v4 = vpop.f32.mrf.mxu1  ;;  %938 = vmatmul.f32.gmra.mxu3 %v3187_v25  ;;  %1308 = vmatpush.msrb.mxu1 %v261_v35 }
 0x122   :  { %1179 = vmatpush.msrb.mxu3 %v162_v28 }
 0x123   :  { %1488 = vst [vmem:[%s3935_s3 + $0x48] sm:$0xff] %v1439_v9  ;;  %v1646_v9 = vld [vmem:[%s3934_s1 + $0xc8] sm:$0xff] }
 0x124   :  { %1550 = vmatmul.msk.f32.gmra.mxu1 %vm406_vm0, %v2579_v53  ;;  %v679_v18 = vpop.f32.mrf.mxu3  ;;  %v744_v41 = vpop.f32.mrf.mxu0 }
 0x125   :  { %v680_v14 = vadd.f32 %v679_v18, %v615_v16  ;;  %1133 = vmatmul.f32.gmra.mxu2 %v1644_v19  ;;  %v556_v16 = vadd.f32 %v2862_v38, %v491_v54  ;;  %v3254_v18 = vld [vmem:[%s3934_s1 + $0x100] sm:$0xff]  ;;  %v494_v38 = vadd.f32 %v2884_v48, %v2681_v31 }
 0x126   :  { %v258_v48 = vld [vmem:[%s3932_s0 + $0x520] sm:$0xff] }
 0x127   :  { %v745_v0 = vadd.f32 %v744_v41, %v680_v14  ;;  %1003 = vmatmul.f32.gmra.mxu0 %v2588_v57  ;;  %v297_v57 = vld [vmem:[%s3932_s0 + $0x658] sm:$0xff]  ;;  %v621_v7 = vadd.f32 %v2860_v10, %v556_v16  ;;  %v210_v14 = vld [vmem:[%s3932_s0 + $0x3a0] sm:$0xff]  ;;  %1309 = vmatpush.msrb.mxu1 %v258_v48  ;;  %v4018_v48 = vld [vmem:[#allocation4_spill] sm:$0xff] }
 0x128   :  { %v3212_v53 = vpop.f32.mrf.mxu2  ;;  %1377 = vmatpush.msrb.mxu2 %v297_v57  ;;  %1244 = vmatpush.msrb.mxu0 %v210_v14  ;;  %v3286_v57 = vld [vmem:[%s3934_s1 + $0x128] sm:$0xff]  ;;  %v4017_v14 = vld [vmem:[#allocation25_spill] sm:$0xff] }
 0x129   :  { %v1442_v15 = vmax.f32 %v745_v0, 0.0  ;;  %v3214_v12 = vpop.f32.mrf.mxu1  ;;  %941 = vmatmul.f32.gmra.mxu3 %v3219_v63  ;;  %v559_v0 = vadd.f32 %v2899_v17, %v494_v38  ;;  %v497_v17 = vadd.f32 %v2917_v55, %v2717_v22 }
 0x12b   :  { %1491 = vst [vmem:[%s3935_s3 + $0x60] sm:$0xff] %v1442_v15  ;;  %v624_v28 = vadd.f32 %v2897_v52, %v559_v0  ;;  %v255_v52 = vld [vmem:[%s3932_s0 + $0x508] sm:$0xff]  ;;  %v4019_v0 = vld [vmem:[#allocation6_spill] sm:$0xff] }
 0x12c   :  { %1551 = vmatmul.msk.f32.gmra.mxu1 %vm406_vm0, %v2612_v62  ;;  %v682_v26 = vpop.f32.mrf.mxu3  ;;  %v747_v33 = vpop.f32.mrf.mxu0 }
 0x12d   :  { %v683_v59 = vadd.f32 %v682_v26, %v618_v51  ;;  %1136 = vmatmul.f32.gmra.mxu2 %v1646_v9  ;;  %v207_v26 = vld [vmem:[%s3932_s0 + $0x388] sm:$0xff]  ;;  %1310 = vmatpush.msrb.mxu1 %v255_v52  ;;  %v4015_v9 = vld [vmem:[#allocation26_spill] sm:$0xff] }
 0x12e   :  { %1245 = vmatpush.msrb.mxu0 %v207_v26  ;;  %v562_v16 = vadd.f32 %v4015_v9, %v497_v17  ;;  %v1652_v17 = vld [vmem:[%s3934_s1 + $0x140] sm:$0xff]  ;;  %v4020_v26 = vld [vmem:[#allocation8_spill] sm:$0xff]  ;;  %v4021_v9 = vld [vmem:[#allocation7_spill] sm:$0xff] }
 0x12f   :  { %v748_v36 = vadd.f32 %v747_v33, %v683_v59  ;;  %1006 = vmatmul.f32.gmra.mxu0 %v2620_v2  ;;  %v159_v2 = vld [vmem:[%s3932_s0 + $0x208] sm:$0xff]  ;;  %v1650_v33 = vld [vmem:[%s3934_s1 + $0x118] sm:$0xff] }
 0x130   :  { %v3247_v62 = vpop.f32.mrf.mxu2  ;;  %1180 = vmatpush.msrb.mxu3 %v159_v2  ;;  %v3321_v2 = vld [vmem:[%s3934_s1 + $0x150] sm:$0xff] }
 0x131   :  { %v1445_v47 = vmax.f32 %v748_v36, 0.0  ;;  %v3249_v42 = vpop.f32.mrf.mxu1  ;;  %944 = vmatmul.f32.gmra.mxu3 %v3254_v18 }
 0x132   :  { %1181 = vmatpush.msrb.mxu3 %v156_v29 }
 0x133   :  { %1494 = vst [vmem:[%s3935_s3 + $0x78] sm:$0xff] %v1445_v47 }
 0x134   :  { %1552 = vmatmul.msk.f32.gmra.mxu1 %vm406_vm0, %v2650_v46  ;;  %v685_v41 = vpop.f32.mrf.mxu3  ;;  %v750_v19 = vpop.f32.mrf.mxu0 }
 0x135   :  { %v686_v10 = vadd.f32 %v685_v41, %v621_v7  ;;  %1139 = vmatmul.f32.gmra.mxu2 %v1648_v40  ;;  %v627_v41 = vadd.f32 %v4017_v14, %v562_v16  ;;  %v204_v40 = vld [vmem:[%s3932_s0 + $0x370] sm:$0xff]  ;;  %v291_v16 = vld [vmem:[%s3932_s0 + $0x628] sm:$0xff] }
 0x136   :  { %1246 = vmatpush.msrb.mxu0 %v204_v40 }
 0x137   :  { %v751_v15 = vadd.f32 %v750_v19, %v686_v10  ;;  %1009 = vmatmul.f32.gmra.mxu0 %v2661_v3  ;;  %v294_v3 = vld [vmem:[%s3932_s0 + $0x640] sm:$0xff]  ;;  %v500_v10 = vadd.f32 %v2958_v32, %v4018_v48  ;;  %v153_v19 = vld [vmem:[%s3932_s0 + $0x1d8] sm:$0xff]  ;;  %v252_v32 = vld [vmem:[%s3932_s0 + $0x4f0] sm:$0xff] }
 0x138   :  { %v3279_v46 = vpop.f32.mrf.mxu2  ;;  %1378 = vmatpush.msrb.mxu2 %v294_v3  ;;  %1182 = vmatpush.msrb.mxu3 %v153_v19 }
 0x139   :  { %v1448_v51 = vmax.f32 %v751_v15, 0.0  ;;  %v3281_v54 = vpop.f32.mrf.mxu1  ;;  %947 = vmatmul.f32.gmra.mxu3 %v3286_v57  ;;  %1311 = vmatpush.msrb.mxu1 %v252_v32  ;;  %v565_v3 = vadd.f32 %v2970_v30, %v500_v10  ;;  %v503_v30 = vadd.f32 %v2996_v60, %v4021_v9  ;;  %v1654_v10 = vld [vmem:[%s3934_s1 + $0x168] sm:$0xff] }
 0x13a   :  { %1379 = vmatpush.msrb.mxu2 %v291_v16 }
 0x13b   :  { %1497 = vst [vmem:[%s3935_s3 + $0x90] sm:$0xff] %v1448_v51  ;;  %v568_v19 = vadd.f32 %v3008_v37, %v503_v30 }
 0x13c   :  { %1553 = vmatmul.msk.f32.gmra.mxu1 %vm406_vm0, %v2689_v56  ;;  %v688_v55 = vpop.f32.mrf.mxu3  ;;  %v753_v59 = vpop.f32.mrf.mxu0  ;;  %v4016_v56 = vld [vmem:[#allocation5_spill] sm:$0xff] }
 0x13d   :  { %v689_v35 = vadd.f32 %v688_v55, %v624_v28  ;;  %1142 = vmatmul.f32.gmra.mxu2 %v1650_v33  ;;  %v630_v33 = vadd.f32 %v2968_v50, %v565_v3  ;;  %v4022_v50 = vld [vmem:[#allocation10_spill] sm:$0xff] }
 0x13f   :  { %v754_v36 = vadd.f32 %v753_v59, %v689_v35  ;;  %1012 = vmatmul.f32.gmra.mxu0 %v4016_v56  ;;  %v3353_v59 = vld [vmem:[%s3934_s1 + $0x178] sm:$0xff] }
 0x140   :  { %v3314_v47 = vpop.f32.mrf.mxu2  ;;  %v201_v56 = vld [vmem:[%s3932_s0 + $0x358] sm:$0xff] }
 0x141   :  { %v1451_v7 = vmax.f32 %v754_v36, 0.0  ;;  %v3316_v38 = vpop.f32.mrf.mxu1  ;;  %950 = vmatmul.f32.gmra.mxu3 %v3321_v2  ;;  %v150_v36 = vld [vmem:[%s3932_s0 + $0x1c0] sm:$0xff]  ;;  %1247 = vmatpush.msrb.mxu0 %v201_v56  ;;  %v1656_v56 = vld [vmem:[%s3934_s1 + $0x190] sm:$0xff] }
 0x142   :  { %1183 = vmatpush.msrb.mxu3 %v150_v36 }
 0x143   :  { %1500 = vst [vmem:[%s3935_s3 + $0xa8] sm:$0xff] %v1451_v7  ;;  %v249_v7 = vld [vmem:[%s3932_s0 + $0x4d8] sm:$0xff] }
 0x144   :  { %1554 = vmatmul.msk.f32.gmra.mxu1 %vm406_vm0, %v4019_v0  ;;  %v691_v15 = vpop.f32.mrf.mxu3  ;;  %v756_v28 = vpop.f32.mrf.mxu0  ;;  %v4023_v0 = vld [vmem:[#allocation12_spill] sm:$0xff] }
 0x145   :  { %v692_v51 = vadd.f32 %v691_v15, %v627_v41  ;;  %1145 = vmatmul.f32.gmra.mxu2 %v1652_v17  ;;  %1312 = vmatpush.msrb.mxu1 %v249_v7  ;;  %v4024_v17 = vld [vmem:[#allocation35_spill] sm:$0xff] }
 0x146   :  { %v633_v3 = vadd.f32 %v4024_v17, %v568_v19  ;;  %v4027_v7 = vld [vmem:[#allocation15_spill] sm:$0xff]  ;;  %v4028_v17 = vld [vmem:[#allocation17_spill] sm:$0xff] }
 0x147   :  { %v757_v29 = vadd.f32 %v756_v28, %v692_v51  ;;  %1015 = vmatmul.f32.gmra.mxu0 %v4020_v26  ;;  %v3388_v28 = vld [vmem:[%s3934_s1 + $0x1a0] sm:$0xff]  ;;  %v147_v26 = vld [vmem:[%s3932_s0 + $0x1a8] sm:$0xff] }
 0x148   :  { %v3346_v55 = vpop.f32.mrf.mxu2  ;;  %1184 = vmatpush.msrb.mxu3 %v147_v26  ;;  %v3420_v19 = vld [vmem:[%s3934_s1 + $0x1c8] sm:$0xff] }
 0x149   :  { %v1454_v52 = vmax.f32 %v757_v29, 0.0  ;;  %v3348_v35 = vpop.f32.mrf.mxu1  ;;  %953 = vmatmul.f32.gmra.mxu3 %v3353_v59  ;;  %v4025_v29 = vld [vmem:[#allocation11_spill] sm:$0xff] }
 0x14a   :  { %v506_v37 = vadd.f32 %v3039_v45, %v4025_v29  ;;  %v246_v45 = vld [vmem:[%s3932_s0 + $0x4c0] sm:$0xff] }
 0x14b   :  { %1503 = vst [vmem:[%s3935_s3 + $0xc0] sm:$0xff] %v1454_v52  ;;  %v198_v52 = vld [vmem:[%s3932_s0 + $0x340] sm:$0xff]  ;;  %1313 = vmatpush.msrb.mxu1 %v246_v45 }
 0x14c   :  { %1555 = vmatmul.msk.f32.gmra.mxu1 %vm406_vm0, %v4022_v50  ;;  %v694_v60 = vpop.f32.mrf.mxu3  ;;  %v759_v41 = vpop.f32.mrf.mxu0  ;;  %1248 = vmatpush.msrb.mxu0 %v198_v52  ;;  %v571_v50 = vadd.f32 %v3047_v5, %v506_v37  ;;  %v288_v5 = vld [vmem:[%s3932_s0 + $0x610] sm:$0xff]  ;;  %v1658_v52 = vld [vmem:[%s3934_s1 + $0x1b8] sm:$0xff] }
 0x14d   :  { %v695_v14 = vadd.f32 %v694_v60, %v630_v33  ;;  %1148 = vmatmul.f32.gmra.mxu2 %v1654_v10  ;;  %v4026_v33 = vld [vmem:[#allocation14_spill] sm:$0xff] }
 0x14e   :  { %1380 = vmatpush.msrb.mxu2 %v288_v5 }
 0x14f   :  { %v760_v40 = vadd.f32 %v759_v41, %v695_v14  ;;  %1018 = vmatmul.f32.gmra.mxu0 %v4023_v0  ;;  %v144_v0 = vld [vmem:[%s3932_s0 + $0x190] sm:$0xff] }
 0x150   :  { %v3381_v15 = vpop.f32.mrf.mxu2  ;;  %1185 = vmatpush.msrb.mxu3 %v144_v0 }
 0x151   :  { %v1457_v32 = vmax.f32 %v760_v40, 0.0  ;;  %v3383_v51 = vpop.f32.mrf.mxu1  ;;  %956 = vmatmul.f32.gmra.mxu3 %v3388_v28  ;;  %v636_v40 = vadd.f32 %v3045_v1, %v571_v50  ;;  %v192_v50 = vld [vmem:[%s3932_s0 + $0x310] sm:$0xff] }
 0x153   :  { %1506 = vst [vmem:[%s3935_s3 + $0xd8] sm:$0xff] %v1457_v32  ;;  %v195_v32 = vld [vmem:[%s3932_s0 + $0x328] sm:$0xff] }
 0x154   :  { %1556 = vmatmul.msk.f32.gmra.mxu1 %vm406_vm0, %v4026_v33  ;;  %v697_v30 = vpop.f32.mrf.mxu3  ;;  %v762_v36 = vpop.f32.mrf.mxu0  ;;  %1249 = vmatpush.msrb.mxu0 %v195_v32  ;;  %v4032_v32 = vld [vmem:[#allocation27_spill] sm:$0xff] }
 0x155   :  { %v698_v16 = vadd.f32 %v697_v30, %v633_v3  ;;  %1151 = vmatmul.f32.gmra.mxu2 %v1656_v56  ;;  %v243_v3 = vld [vmem:[%s3932_s0 + $0x4a8] sm:$0xff]  ;;  %v4029_v30 = vld [vmem:[#allocation18_spill] sm:$0xff]  ;;  %v3452_v56 = vld [vmem:[%s3934_s1 + $0x1f0] sm:$0xff] }
 0x156   :  { %1314 = vmatpush.msrb.mxu1 %v243_v3  ;;  %1250 = vmatpush.msrb.mxu0 %v192_v50 }
 0x157   :  { %v763_v60 = vadd.f32 %v762_v36, %v698_v16  ;;  %1021 = vmatmul.f32.gmra.mxu0 %v4027_v7 }
 0x158   :  { %v3413_v14 = vpop.f32.mrf.mxu2 }
 0x159   :  { %v1460_v41 = vmax.f32 %v763_v60, 0.0  ;;  %v3415_v10 = vpop.f32.mrf.mxu1  ;;  %959 = vmatmul.f32.gmra.mxu3 %v3420_v19  ;;  %v4030_v60 = vld [vmem:[#allocation20_spill] sm:$0xff] }
 0x15b   :  { %1509 = vst [vmem:[%s3935_s3 + $0xf0] sm:$0xff] %v1460_v41  ;;  %v240_v41 = vld [vmem:[%s3932_s0 + $0x490] sm:$0xff] }
 0x15c   :  { %1557 = vmatmul.msk.f32.gmra.mxu1 %vm406_vm0, %v4028_v17  ;;  %v700_v1 = vpop.f32.mrf.mxu3  ;;  %v765_v26 = vpop.f32.mrf.mxu0 }
 0x15d   :  { %v701_v37 = vadd.f32 %v700_v1, %v636_v40  ;;  %1154 = vmatmul.f32.gmra.mxu2 %v1658_v52  ;;  %v4031_v40 = vld [vmem:[#allocation23_spill] sm:$0xff]  ;;  %1315 = vmatpush.msrb.mxu1 %v240_v41  ;;  %v4033_v1 = vld [vmem:[#allocation21_spill] sm:$0xff] }
 0x15e   :  { %v3476_v52 = vld [vmem:[%s3934_s1 + $0x218] sm:$0xff] }
 0x15f   :  { %v766_v33 = vadd.f32 %v765_v26, %v701_v37  ;;  %1024 = vmatmul.f32.gmra.mxu0 %v4029_v30  ;;  %4034 = vst [vmem:[#allocation26_spill] sm:$0xff] %v3476_v52 }
 0x160   :  { %v3445_v45 = vpop.f32.mrf.mxu2 }
 0x161   :  { %v1463_v16 = vmax.f32 %v766_v33, 0.0  ;;  %v3447_v36 = vpop.f32.mrf.mxu1  ;;  %962 = vmatmul.f32.gmra.mxu3 %v3452_v56  ;;  %v4035_v33 = vld [vmem:[#allocation22_spill] sm:$0xff] }
 0x163   :  { %1512 = vst [vmem:[%s3935_s3 + $0x108] sm:$0xff] %v1463_v16  ;;  %v4036_v16 = vld [vmem:[#allocation29_spill] sm:$0xff] }
 0x164   :  { %1558 = vmatmul.msk.f32.gmra.mxu1 %vm406_vm0, %v4030_v60  ;;  %v703_v7 = vpop.f32.mrf.mxu3  ;;  %v768_v0 = vpop.f32.mrf.mxu0 }
 0x165   :  { %v704_v5 = vadd.f32 %v703_v7, %v4031_v40  ;;  %1157 = vmatmul.f32.gmra.mxu2 %v4032_v32  ;;  %v4037_v7 = vld [vmem:[#allocation31_spill] sm:$0xff]  ;;  %v4038_v40 = vld [vmem:[#allocation24_spill] sm:$0xff] }
 0x167   :  { %v769_v17 = vadd.f32 %v768_v0, %v704_v5  ;;  %1027 = vmatmul.f32.gmra.mxu0 %v4033_v1  ;;  %v4040_v1 = vld [vmem:[#allocation28_spill] sm:$0xff] }
 0x168   :  { %v3469_v3 = vpop.f32.mrf.mxu2 }
 0x169   :  { %v1466_v37 = vmax.f32 %v769_v17, 0.0  ;;  %v3471_v26 = vpop.f32.mrf.mxu1  ;;  %965 = vmatmul.f32.gmra.mxu3 %v3476_v52  ;;  %v3494_v17 = vld [vmem:[%s3934_s1 + $0x240] sm:$0xff] }
 0x16a   :  { %4039 = vst [vmem:[#allocation5_spill] sm:$0xff] %v3494_v17 }
 0x16b   :  { %1515 = vst [vmem:[%s3935_s3 + $0x120] sm:$0xff] %v1466_v37 }
 0x16c   :  { %1559 = vmatmul.msk.f32.gmra.mxu1 %vm406_vm0, %v4035_v33  ;;  %v706_v30 = vpop.f32.mrf.mxu3  ;;  %v771_v60 = vpop.f32.mrf.mxu0  ;;  %v4041_v33 = vld [vmem:[#allocation33_spill] sm:$0xff] }
 0x16d   :  { %v707_v50 = vadd.f32 %v706_v30, %v4036_v16  ;;  %1160 = vmatmul.f32.gmra.mxu2 %v4037_v7  ;;  %v4043_v7 = vld [vmem:[#allocation30_spill] sm:$0xff] }
 0x16f   :  { %v772_v41 = vadd.f32 %v771_v60, %v707_v50  ;;  %1030 = vmatmul.f32.gmra.mxu0 %v4038_v40  ;;  %v4042_v50 = vld [vmem:[#allocation36_spill] sm:$0xff] }
 0x170   :  { %v3487_v5 = vpop.f32.mrf.mxu2 }
 0x171   :  { %v1469_v0 = vmax.f32 %v772_v41, 0.0  ;;  %v3489_v32 = vpop.f32.mrf.mxu1  ;;  %968 = vmatmul.f32.gmra.mxu3 %v3494_v17 }
 0x173   :  { %1518 = vst [vmem:[%s3935_s3 + $0x138] sm:$0xff] %v1469_v0  ;;  %v3512_v0 = vld [vmem:[%s3934_s1 + $0x268] sm:$0xff] }
 0x174   :  { %1560 = vmatmul.msk.f32.gmra.mxu1 %vm406_vm0, %v4040_v1  ;;  %v709_v37 = vpop.f32.mrf.mxu3  ;;  %v774_v16 = vpop.f32.mrf.mxu0  ;;  %4046 = vst [vmem:[#allocation6_spill] sm:$0xff] %v3512_v0  ;;  %v4047_v1 = vld [vmem:[#allocation32_spill] sm:$0xff] }
 0x175   :  { %v710_v30 = vadd.f32 %v709_v37, %v4041_v33  ;;  %1163 = vmatmul.f32.gmra.mxu2 %v4042_v50  ;;  %v4049_v50 = vld [vmem:[#allocation2_spill] sm:$0xff] }
 0x177   :  { %v775_v60 = vadd.f32 %v774_v16, %v710_v30  ;;  %1033 = vmatmul.f32.gmra.mxu0 %v4043_v7  ;;  %v4048_v16 = vld [vmem:[#allocation39_spill] sm:$0xff] }
 0x178   :  { %v3505_v41 = vpop.f32.mrf.mxu2 }
 0x179   :  { %4044 = vst [vmem:[#allocation25_spill] sm:$0xff] %v3505_v41  ;;  %v1472_v40 = vmax.f32 %v775_v60, 0.0  ;;  %v3507_v17 = vpop.f32.mrf.mxu1  ;;  %971 = vmatmul.f32.gmra.mxu3 %v3512_v0  ;;  %v798_v60 = vadd.f32 %v3080_v39, %v4049_v50  ;;  %v4050_v41 = vld [vmem:[#allocation34_spill] sm:$0xff]  ;;  %v4051_v39 = vld [vmem:[#allocation37_spill] sm:$0xff] }
 0x17a   :  { %4045 = vst [vmem:[#allocation4_spill] sm:$0xff] %v3507_v17 }
 0x17b   :  { %1521 = vst [vmem:[%s3935_s3 + $0x150] sm:$0xff] %v1472_v40  ;;  %v1663_v40 = vld [vmem:[%s3934_s1 + $0x8] sm:$0xff] }
 0x17c   :  { %1561 = vmatmul.msk.f32.gmra.mxu1 %vm406_vm0, %v4047_v1  ;;  %v712_v37 = vpop.f32.mrf.mxu3  ;;  %v777_v30 = vpop.f32.mrf.mxu0 }
 0x17d   :  { %v713_v33 = vadd.f32 %v712_v37, %v3037_v43  ;;  %1166 = vmatmul.f32.gmra.mxu2 %v4048_v16  ;;  %v863_v43 = vadd.f32 %v3078_v49, %v798_v60  ;;  %v4053_v60 = vld [vmem:[#allocation38_spill] sm:$0xff] }
 0x17f   :  { %v778_v7 = vadd.f32 %v777_v30, %v713_v33  ;;  %1036 = vmatmul.f32.gmra.mxu0 %v4050_v41  ;;  %v1664_v33 = vld [vmem:[%s3934_s1 + $0x20] sm:$0xff]  ;;  %v4052_v30 = vld [vmem:[#allocation3_spill] sm:$0xff] }
 0x180   :  { %v3525_v0 = vpop.f32.mrf.mxu2  ;;  %v801_v16 = vadd.f32 %v3115_v8, %v4052_v30 }
 0x181   :  { %v1475_v52 = vmax.f32 %v778_v7, 0.0  ;;  %v3527_v17 = vpop.f32.mrf.mxu1  ;;  %1186 = vmatmul.f32.vlgmr.msrb.gmra.mxu3 %v1663_v40  ;;  %v1665_v40 = vld [vmem:[%s3934_s1 + $0x30] sm:$0xff] }
 0x183   :  { %1524 = vst [vmem:[%s3935_s3 + $0x168] sm:$0xff] %v1475_v52 }
 0x184   :  { %1562 = vmatmul.msk.f32.gmra.mxu1 %vm406_vm0, %v4051_v39  ;;  %v927_v41 = vpop.f32.mrf.mxu3  ;;  %v992_v37 = vpop.f32.mrf.mxu0  ;;  %v866_v39 = vadd.f32 %v3113_v24, %v801_v16  ;;  %v804_v24 = vadd.f32 %v3147_v23, %v2595_v58 }
 0x185   :  { %v928_v1 = vadd.f32 %v927_v41, %v863_v43  ;;  %1563 = vmatmul.msk.f32.vlgmr.msrb.gmra.mxu2 %vm406_vm0, %v1664_v33  ;;  %v1666_v33 = vld [vmem:[%s3934_s1 + $0x18] sm:$0xff] }
 0x187   :  { %v993_v49 = vadd.f32 %v992_v37, %v928_v1  ;;  %1251 = vmatmul.f32.vlgmr.msrb.gmra.mxu0 %v4053_v60  ;;  %v1667_v60 = vld [vmem:[%s3934_s1 + $0x48] sm:$0xff] }
 0x188   :  { %v3545_v7 = vpop.f32.mrf.mxu2 }
 0x189   :  { %v1057_v52 = vpop.f32.mrf.mxu1  ;;  %1189 = vmatmul.f32.gmra.mxu3 %v1665_v40  ;;  %v1668_v40 = vld [vmem:[%s3934_s1 + $0x58] sm:$0xff] }
 0x18a   :  { %v1058_v43 = vadd.f32 %v1057_v52, %v993_v49 }
 0x18c   :  { %v1431_v41 = vmax.f32 %v1058_v43, 0.0  ;;  %1316 = vmatmul.f32.vlgmr.msrb.gmra.mxu1 %v1666_v33  ;;  %v930_v8 = vpop.f32.mrf.mxu3  ;;  %v995_v37 = vpop.f32.mrf.mxu0 }
 0x18d   :  { %v931_v1 = vadd.f32 %v930_v8, %v866_v39  ;;  %1564 = vmatmul.msk.f32.gmra.mxu2 %vm406_vm0, %v1667_v60  ;;  %v869_v39 = vadd.f32 %v3145_v34, %v804_v24  ;;  %v807_v34 = vadd.f32 %v3182_v4, %v2634_v61 }
 0x18e   :  { %1479 = vst [vmem:[%s3935_s3 + $0x8] sm:$0xff] %v1431_v41  ;;  %v1669_v41 = vld [vmem:[%s3934_s1 + $0x40] sm:$0xff] }
 0x18f   :  { %v996_v16 = vadd.f32 %v995_v37, %v931_v1  ;;  %1254 = vmatmul.f32.gmra.mxu0 %v3085_v11  ;;  %v1670_v1 = vld [vmem:[%s3934_s1 + $0x70] sm:$0xff] }
 0x190   :  { %v3564_v49 = vpop.f32.mrf.mxu2 }
 0x191   :  { %v1060_v52 = vpop.f32.mrf.mxu1  ;;  %1192 = vmatmul.f32.gmra.mxu3 %v1668_v40  ;;  %v872_v40 = vadd.f32 %v3180_v44, %v807_v34  ;;  %v810_v44 = vadd.f32 %v3214_v12, %v2627_v6 }
 0x192   :  { %v1061_v43 = vadd.f32 %v1060_v52, %v996_v16  ;;  %v1671_v16 = vld [vmem:[%s3934_s1 + $0x80] sm:$0xff] }
 0x194   :  { %v1434_v33 = vmax.f32 %v1061_v43, 0.0  ;;  %1319 = vmatmul.f32.gmra.mxu1 %v1669_v41  ;;  %v933_v23 = vpop.f32.mrf.mxu3  ;;  %v998_v11 = vpop.f32.mrf.mxu0  ;;  %v1673_v41 = vld [vmem:[%s3934_s1 + $0x98] sm:$0xff] }
 0x195   :  { %v934_v8 = vadd.f32 %v933_v23, %v869_v39  ;;  %1565 = vmatmul.msk.f32.gmra.mxu2 %vm406_vm0, %v1670_v1  ;;  %v1672_v39 = vld [vmem:[%s3934_s1 + $0x68] sm:$0xff] }
 0x196   :  { %1483 = vst [vmem:[%s3935_s3 + $0x20] sm:$0xff] %v1434_v33  ;;  %v1674_v1 = vld [vmem:[%s3934_s1 + $0xa8] sm:$0xff] }
 0x197   :  { %v999_v37 = vadd.f32 %v998_v11, %v934_v8  ;;  %1257 = vmatmul.f32.gmra.mxu0 %v3120_v27 }
 0x198   :  { %v3583_v60 = vpop.f32.mrf.mxu2 }
 0x199   :  { %v1063_v24 = vpop.f32.mrf.mxu1  ;;  %1195 = vmatmul.f32.gmra.mxu3 %v1671_v16  ;;  %v1675_v16 = vld [vmem:[%s3934_s1 + $0x90] sm:$0xff] }
 0x19a   :  { %v1064_v52 = vadd.f32 %v1063_v24, %v999_v37  ;;  %v875_v37 = vadd.f32 %v3212_v53, %v810_v44  ;;  %v813_v53 = vadd.f32 %v3249_v42, %v2673_v20 }
 0x19c   :  { %v1437_v43 = vmax.f32 %v1064_v52, 0.0  ;;  %1322 = vmatmul.f32.gmra.mxu1 %v1672_v39  ;;  %v936_v4 = vpop.f32.mrf.mxu3  ;;  %v1001_v27 = vpop.f32.mrf.mxu0 }
 0x19d   :  { %v937_v33 = vadd.f32 %v936_v4, %v872_v40  ;;  %1566 = vmatmul.msk.f32.gmra.mxu2 %vm406_vm0, %v1673_v41  ;;  %v1676_v40 = vld [vmem:[%s3934_s1 + $0xc0] sm:$0xff]  ;;  %v878_v41 = vadd.f32 %v3247_v62, %v813_v53  ;;  %v816_v62 = vadd.f32 %v3281_v54, %v2642_v13 }
 0x19e   :  { %1486 = vst [vmem:[%s3935_s3 + $0x38] sm:$0xff] %v1437_v43 }
 0x19f   :  { %v1002_v23 = vadd.f32 %v1001_v27, %v937_v33  ;;  %1260 = vmatmul.f32.gmra.mxu0 %v3152_v21  ;;  %v1677_v33 = vld [vmem:[%s3934_s1 + $0xd0] sm:$0xff] }
 0x1a0   :  { %v3602_v8 = vpop.f32.mrf.mxu2 }
 0x1a1   :  { %v1066_v11 = vpop.f32.mrf.mxu1  ;;  %1198 = vmatmul.f32.gmra.mxu3 %v1674_v1  ;;  %v1679_v1 = vld [vmem:[%s3934_s1 + $0xe8] sm:$0xff] }
 0x1a2   :  { %v1067_v34 = vadd.f32 %v1066_v11, %v1002_v23  ;;  %v1678_v23 = vld [vmem:[%s3934_s1 + $0xb8] sm:$0xff] }
 0x1a4   :  { %v1440_v24 = vmax.f32 %v1067_v34, 0.0  ;;  %1325 = vmatmul.f32.gmra.mxu1 %v1675_v16  ;;  %v939_v12 = vpop.f32.mrf.mxu3  ;;  %v1004_v21 = vpop.f32.mrf.mxu0  ;;  %v1680_v16 = vld [vmem:[%s3934_s1 + $0xf8] sm:$0xff] }
 0x1a5   :  { %v940_v52 = vadd.f32 %v939_v12, %v875_v37  ;;  %1567 = vmatmul.msk.f32.gmra.mxu2 %vm406_vm0, %v1676_v40  ;;  %v1681_v40 = vld [vmem:[%s3934_s1 + $0xe0] sm:$0xff] }
 0x1a6   :  { %1489 = vst [vmem:[%s3935_s3 + $0x50] sm:$0xff] %v1440_v24 }
 0x1a7   :  { %v1005_v43 = vadd.f32 %v1004_v21, %v940_v52  ;;  %1263 = vmatmul.f32.gmra.mxu0 %v3187_v25  ;;  %v881_v52 = vadd.f32 %v3279_v46, %v816_v62  ;;  %v819_v46 = vadd.f32 %v3316_v38, %v2681_v31 }
 0x1a8   :  { %v3621_v39 = vpop.f32.mrf.mxu2 }
 0x1a9   :  { %v1069_v4 = vpop.f32.mrf.mxu1  ;;  %1201 = vmatmul.f32.gmra.mxu3 %v1677_v33 }
 0x1aa   :  { %v1070_v27 = vadd.f32 %v1069_v4, %v1005_v43  ;;  %v1682_v43 = vld [vmem:[%s3934_s1 + $0x110] sm:$0xff] }
 0x1ac   :  { %v1443_v44 = vmax.f32 %v1070_v27, 0.0  ;;  %1328 = vmatmul.f32.gmra.mxu1 %v1678_v23  ;;  %v942_v42 = vpop.f32.mrf.mxu3  ;;  %v1007_v25 = vpop.f32.mrf.mxu0  ;;  %v884_v23 = vadd.f32 %v3314_v47, %v819_v46  ;;  %v822_v47 = vadd.f32 %v3348_v35, %v2717_v22 }
 0x1ad   :  { %v943_v11 = vadd.f32 %v942_v42, %v878_v41  ;;  %1568 = vmatmul.msk.f32.gmra.mxu2 %vm406_vm0, %v1679_v1  ;;  %v1683_v41 = vld [vmem:[%s3934_s1 + $0x120] sm:$0xff]  ;;  %v1685_v1 = vld [vmem:[%s3934_s1 + $0x138] sm:$0xff] }
 0x1ae   :  { %1492 = vst [vmem:[%s3935_s3 + $0x68] sm:$0xff] %v1443_v44 }
 0x1af   :  { %v1008_v34 = vadd.f32 %v1007_v25, %v943_v11  ;;  %1266 = vmatmul.f32.gmra.mxu0 %v3219_v63  ;;  %v1684_v11 = vld [vmem:[%s3934_s1 + $0x108] sm:$0xff] }
 0x1b0   :  { %v3640_v37 = vpop.f32.mrf.mxu2 }
 0x1b1   :  { %v1072_v24 = vpop.f32.mrf.mxu1  ;;  %1204 = vmatmul.f32.gmra.mxu3 %v1680_v16  ;;  %v1686_v16 = vld [vmem:[%s3934_s1 + $0x148] sm:$0xff] }
 0x1b2   :  { %v1073_v12 = vadd.f32 %v1072_v24, %v1008_v34 }
 0x1b4   :  { %v1446_v21 = vmax.f32 %v1073_v12, 0.0  ;;  %1331 = vmatmul.f32.gmra.mxu1 %v1681_v40  ;;  %v945_v54 = vpop.f32.mrf.mxu3  ;;  %v1010_v63 = vpop.f32.mrf.mxu0  ;;  %v1687_v40 = vld [vmem:[%s3934_s1 + $0x130] sm:$0xff] }
 0x1b5   :  { %v946_v53 = vadd.f32 %v945_v54, %v881_v52  ;;  %1569 = vmatmul.msk.f32.gmra.mxu2 %vm406_vm0, %v1682_v43  ;;  %v887_v52 = vadd.f32 %v3346_v55, %v822_v47  ;;  %v825_v55 = vadd.f32 %v3383_v51, %v4018_v48 }
 0x1b6   :  { %1495 = vst [vmem:[%s3935_s3 + $0x80] sm:$0xff] %v1446_v21 }
 0x1b7   :  { %v1011_v4 = vadd.f32 %v1010_v63, %v946_v53  ;;  %1269 = vmatmul.f32.gmra.mxu0 %v3254_v18  ;;  %v1688_v53 = vld [vmem:[%s3934_s1 + $0x160] sm:$0xff] }
 0x1b8   :  { %v3659_v33 = vpop.f32.mrf.mxu2 }
 0x1b9   :  { %v1075_v27 = vpop.f32.mrf.mxu1  ;;  %1207 = vmatmul.f32.gmra.mxu3 %v1683_v41  ;;  %v890_v41 = vadd.f32 %v3381_v15, %v825_v55  ;;  %v828_v15 = vadd.f32 %v3415_v10, %v4021_v9 }
 0x1ba   :  { %v1076_v44 = vadd.f32 %v1075_v27, %v1011_v4  ;;  %v1689_v4 = vld [vmem:[%s3934_s1 + $0x170] sm:$0xff] }
 0x1bc   :  { %v1449_v42 = vmax.f32 %v1076_v44, 0.0  ;;  %1334 = vmatmul.f32.gmra.mxu1 %v1684_v11  ;;  %v948_v38 = vpop.f32.mrf.mxu3  ;;  %v1013_v18 = vpop.f32.mrf.mxu0  ;;  %v1691_v11 = vld [vmem:[%s3934_s1 + $0x188] sm:$0xff] }
 0x1bd   :  { %v949_v25 = vadd.f32 %v948_v38, %v884_v23  ;;  %1570 = vmatmul.msk.f32.gmra.mxu2 %vm406_vm0, %v1685_v1  ;;  %v1690_v23 = vld [vmem:[%s3934_s1 + $0x158] sm:$0xff] }
 0x1be   :  { %1498 = vst [vmem:[%s3935_s3 + $0x98] sm:$0xff] %v1449_v42  ;;  %v1692_v1 = vld [vmem:[%s3934_s1 + $0x198] sm:$0xff] }
 0x1bf   :  { %v1014_v62 = vadd.f32 %v1013_v18, %v949_v25  ;;  %1272 = vmatmul.f32.gmra.mxu0 %v3286_v57 }
 0x1c0   :  { %v3678_v34 = vpop.f32.mrf.mxu2 }
 0x1c1   :  { %v1078_v24 = vpop.f32.mrf.mxu1  ;;  %1210 = vmatmul.f32.gmra.mxu3 %v1686_v16  ;;  %v1693_v16 = vld [vmem:[%s3934_s1 + $0x180] sm:$0xff] }
 0x1c2   :  { %v1079_v12 = vadd.f32 %v1078_v24, %v1014_v62  ;;  %v893_v62 = vadd.f32 %v3413_v14, %v828_v15  ;;  %v831_v14 = vadd.f32 %v3447_v36, %v4025_v29  ;;  %v1699_v15 = vld [vmem:[%s3934_s1 + $0x1d0] sm:$0xff] }
 0x1c4   :  { %v1452_v21 = vmax.f32 %v1079_v12, 0.0  ;;  %1337 = vmatmul.f32.gmra.mxu1 %v1687_v40  ;;  %v951_v35 = vpop.f32.mrf.mxu3  ;;  %v1016_v57 = vpop.f32.mrf.mxu0 }
 0x1c5   :  { %v952_v54 = vadd.f32 %v951_v35, %v887_v52  ;;  %1571 = vmatmul.msk.f32.gmra.mxu2 %vm406_vm0, %v1688_v53  ;;  %v1694_v52 = vld [vmem:[%s3934_s1 + $0x1b0] sm:$0xff]  ;;  %v896_v53 = vadd.f32 %v3445_v45, %v831_v14  ;;  %v4054_v45 = vld [vmem:[#allocation9_spill] sm:$0xff] }
 0x1c6   :  { %1501 = vst [vmem:[%s3935_s3 + $0xb0] sm:$0xff] %v1452_v21 }
 0x1c7   :  { %v1017_v63 = vadd.f32 %v1016_v57, %v952_v54  ;;  %1275 = vmatmul.f32.gmra.mxu0 %v3321_v2  ;;  %v1695_v54 = vld [vmem:[%s3934_s1 + $0x1c0] sm:$0xff] }
 0x1c8   :  { %v3697_v43 = vpop.f32.mrf.mxu2 }
 0x1c9   :  { %v1081_v46 = vpop.f32.mrf.mxu1  ;;  %1213 = vmatmul.f32.gmra.mxu3 %v1689_v4  ;;  %v1697_v4 = vld [vmem:[%s3934_s1 + $0x1d8] sm:$0xff] }
 0x1ca   :  { %v1082_v27 = vadd.f32 %v1081_v46, %v1017_v63  ;;  %v1696_v63 = vld [vmem:[%s3934_s1 + $0x1a8] sm:$0xff] }
 0x1cc   :  { %v1455_v44 = vmax.f32 %v1082_v27, 0.0  ;;  %1340 = vmatmul.f32.gmra.mxu1 %v1690_v23  ;;  %v954_v51 = vpop.f32.mrf.mxu3  ;;  %v1019_v2 = vpop.f32.mrf.mxu0  ;;  %v834_v27 = vadd.f32 %v3471_v26, %v4054_v45 }
 0x1cd   :  { %v955_v42 = vadd.f32 %v954_v51, %v890_v41  ;;  %1572 = vmatmul.msk.f32.gmra.mxu2 %vm406_vm0, %v1691_v11  ;;  %v1698_v51 = vld [vmem:[%s3934_s1 + $0x1e8] sm:$0xff] }
 0x1ce   :  { %1504 = vst [vmem:[%s3935_s3 + $0xc8] sm:$0xff] %v1455_v44 }
 0x1cf   :  { %v1020_v38 = vadd.f32 %v1019_v2, %v955_v42  ;;  %1278 = vmatmul.f32.gmra.mxu0 %v3353_v59  ;;  %v899_v2 = vadd.f32 %v3469_v3, %v834_v27  ;;  %v4055_v3 = vld [vmem:[#allocation13_spill] sm:$0xff] }
 0x1d0   :  { %v3716_v25 = vpop.f32.mrf.mxu2 }
 0x1d1   :  { %v1084_v18 = vpop.f32.mrf.mxu1  ;;  %1216 = vmatmul.f32.gmra.mxu3 %v1692_v1  ;;  %v837_v1 = vadd.f32 %v3489_v32, %v4055_v3 }
 0x1d2   :  { %v1085_v47 = vadd.f32 %v1084_v18, %v1020_v38  ;;  %v1700_v18 = vld [vmem:[%s3934_s1 + $0x200] sm:$0xff] }
 0x1d4   :  { %v1458_v24 = vmax.f32 %v1085_v47, 0.0  ;;  %1343 = vmatmul.f32.gmra.mxu1 %v1693_v16  ;;  %v957_v10 = vpop.f32.mrf.mxu3  ;;  %v1022_v59 = vpop.f32.mrf.mxu0  ;;  %v1701_v16 = vld [vmem:[%s3934_s1 + $0x210] sm:$0xff] }
 0x1d5   :  { %v958_v12 = vadd.f32 %v957_v10, %v893_v62  ;;  %1573 = vmatmul.msk.f32.gmra.mxu2 %vm406_vm0, %v1694_v52  ;;  %v1702_v52 = vld [vmem:[%s3934_s1 + $0x1f8] sm:$0xff] }
 0x1d6   :  { %1507 = vst [vmem:[%s3935_s3 + $0xe0] sm:$0xff] %v1458_v24 }
 0x1d7   :  { %v1023_v21 = vadd.f32 %v1022_v59, %v958_v12  ;;  %1281 = vmatmul.f32.gmra.mxu0 %v3388_v28  ;;  %v902_v12 = vadd.f32 %v3487_v5, %v837_v1  ;;  %v4056_v5 = vld [vmem:[#allocation16_spill] sm:$0xff]  ;;  %v1707_v1 = vld [vmem:[%s3934_s1 + $0x260] sm:$0xff] }
 0x1d8   :  { %v3735_v40 = vpop.f32.mrf.mxu2 }
 0x1d9   :  { %v1087_v35 = vpop.f32.mrf.mxu1  ;;  %1219 = vmatmul.f32.gmra.mxu3 %v1695_v54 }
 0x1da   :  { %v1088_v57 = vadd.f32 %v1087_v35, %v1023_v21  ;;  %v1703_v21 = vld [vmem:[%s3934_s1 + $0x228] sm:$0xff]  ;;  %v4057_v35 = vld [vmem:[#allocation4_spill] sm:$0xff] }
 0x1db   :  { %v840_v54 = vadd.f32 %v4057_v35, %v4056_v5  ;;  %v1123_v35 = vadd.f32 %v3545_v7, %v4049_v50  ;;  %v1126_v50 = vadd.f32 %v3564_v49, %v4052_v30 }
 0x1dc   :  { %v1461_v55 = vmax.f32 %v1088_v57, 0.0  ;;  %1346 = vmatmul.f32.gmra.mxu1 %v1696_v63  ;;  %v960_v36 = vpop.f32.mrf.mxu3  ;;  %v1025_v28 = vpop.f32.mrf.mxu0 }
 0x1dd   :  { %v961_v46 = vadd.f32 %v960_v36, %v896_v53  ;;  %1574 = vmatmul.msk.f32.gmra.mxu2 %vm406_vm0, %v1697_v4  ;;  %v4058_v53 = vld [vmem:[#allocation26_spill] sm:$0xff]  ;;  %v1704_v36 = vld [vmem:[%s3934_s1 + $0x238] sm:$0xff] }
 0x1de   :  { %1510 = vst [vmem:[%s3935_s3 + $0xf8] sm:$0xff] %v1461_v55 }
 0x1df   :  { %v1026_v41 = vadd.f32 %v1025_v28, %v961_v46  ;;  %1284 = vmatmul.f32.gmra.mxu0 %v3420_v19  ;;  %v4059_v28 = vld [vmem:[#allocation25_spill] sm:$0xff] }
 0x1e0   :  { %v3754_v44 = vpop.f32.mrf.mxu2  ;;  %v905_v4 = vadd.f32 %v4059_v28, %v840_v54 }
 0x1e1   :  { %v1090_v23 = vpop.f32.mrf.mxu1  ;;  %1222 = vmatmul.f32.gmra.mxu3 %v1698_v51 }
 0x1e2   :  { %v1091_v42 = vadd.f32 %v1090_v23, %v1026_v41  ;;  %v1705_v41 = vld [vmem:[%s3934_s1 + $0x220] sm:$0xff] }
 0x1e4   :  { %v1464_v11 = vmax.f32 %v1091_v42, 0.0  ;;  %1349 = vmatmul.f32.gmra.mxu1 %v1699_v15  ;;  %v963_v26 = vpop.f32.mrf.mxu3  ;;  %v1028_v19 = vpop.f32.mrf.mxu0 }
 0x1e5   :  { %v964_v38 = vadd.f32 %v963_v26, %v899_v2  ;;  %1575 = vmatmul.msk.f32.gmra.mxu2 %vm406_vm0, %v1700_v18  ;;  %v1706_v2 = vld [vmem:[%s3934_s1 + $0x250] sm:$0xff] }
 0x1e6   :  { %1513 = vst [vmem:[%s3935_s3 + $0x110] sm:$0xff] %v1464_v11  ;;  %v4060_v11 = vld [vmem:[#allocation19_spill] sm:$0xff] }
 0x1e7   :  { %v1029_v47 = vadd.f32 %v1028_v19, %v964_v38  ;;  %1287 = vmatmul.f32.gmra.mxu0 %v3452_v56  ;;  %v843_v15 = vadd.f32 %v3527_v17, %v4060_v11  ;;  %v4061_v38 = vld [vmem:[#allocation5_spill] sm:$0xff] }
 0x1e8   :  { %v3773_v62 = vpop.f32.mrf.mxu2 }
 0x1e9   :  { %v1093_v24 = vpop.f32.mrf.mxu1  ;;  %1225 = vmatmul.f32.gmra.mxu3 %v1701_v16 }
 0x1ea   :  { %v1094_v10 = vadd.f32 %v1093_v24, %v1029_v47  ;;  %v908_v24 = vadd.f32 %v3525_v0, %v843_v15 }
 0x1ec   :  { %v1467_v59 = vmax.f32 %v1094_v10, 0.0  ;;  %1352 = vmatmul.f32.gmra.mxu1 %v1702_v52  ;;  %v966_v32 = vpop.f32.mrf.mxu3  ;;  %v1031_v56 = vpop.f32.mrf.mxu0  ;;  %v1708_v10 = vld [vmem:[%s3934_s1 + $0x248] sm:$0xff]  ;;  %v1709_v52 = vld [vmem:[%s3934_s1 + $0x278] sm:$0xff] }
 0x1ed   :  { %v967_v14 = vadd.f32 %v966_v32, %v902_v12  ;;  %1576 = vmatmul.msk.f32.gmra.mxu2 %vm406_vm0, %v1703_v21  ;;  %v4062_v32 = vld [vmem:[#allocation6_spill] sm:$0xff] }
 0x1ee   :  { %1516 = vst [vmem:[%s3935_s3 + $0x128] sm:$0xff] %v1467_v59 }
 0x1ef   :  { %v1032_v57 = vadd.f32 %v1031_v56, %v967_v14  ;;  %1290 = vmatmul.f32.gmra.mxu0 %v4058_v53 }
 0x1f0   :  { %v3792_v55 = vpop.f32.mrf.mxu2 }
 0x1f1   :  { %v1096_v63 = vpop.f32.mrf.mxu1  ;;  %1228 = vmatmul.f32.gmra.mxu3 %v1704_v36 }
 0x1f2   :  { %v1097_v46 = vadd.f32 %v1096_v63, %v1032_v57  ;;  %v1710_v57 = vld [vmem:[%s3934_s1 + $0x270] sm:$0xff] }
 0x1f4   :  { %v1470_v27 = vmax.f32 %v1097_v46, 0.0  ;;  %1355 = vmatmul.f32.gmra.mxu1 %v1705_v41  ;;  %v969_v23 = vpop.f32.mrf.mxu3  ;;  %v1034_v42 = vpop.f32.mrf.mxu0 }
 0x1f5   :  { %v970_v51 = vadd.f32 %v969_v23, %v905_v4  ;;  %1577 = vmatmul.msk.f32.gmra.mxu2 %vm406_vm0, %v1706_v2 }
 0x1f6   :  { %1519 = vst [vmem:[%s3935_s3 + $0x140] sm:$0xff] %v1470_v27 }
 0x1f7   :  { %v1035_v26 = vadd.f32 %v1034_v42, %v970_v51  ;;  %1293 = vmatmul.f32.gmra.mxu0 %v4061_v38 }
 0x1f8   :  { %v3811_v19 = vpop.f32.mrf.mxu2 }
 0x1f9   :  { %v1099_v18 = vpop.f32.mrf.mxu1  ;;  %1231 = vmatmul.f32.gmra.mxu3 %v1707_v1 }
 0x1fa   :  { %v1100_v47 = vadd.f32 %v1099_v18, %v1035_v26  ;;  %v1129_v18 = vadd.f32 %v3583_v60, %v2595_v58 }
 0x1fc   :  { %v1473_v16 = vmax.f32 %v1100_v47, 0.0  ;;  %1358 = vmatmul.f32.gmra.mxu1 %v1708_v10  ;;  %v972_v17 = vpop.f32.mrf.mxu3  ;;  %v1037_v59 = vpop.f32.mrf.mxu0 }
 0x1fd   :  { %v973_v12 = vadd.f32 %v972_v17, %v908_v24  ;;  %1578 = vmatmul.msk.f32.gmra.mxu2 %vm406_vm0, %v1709_v52 }
 0x1fe   :  { %1522 = vst [vmem:[%s3935_s3 + $0x158] sm:$0xff] %v1473_v16 }
 0x1ff   :  { %v1038_v0 = vadd.f32 %v1037_v59, %v973_v12  ;;  %1296 = vmatmul.f32.gmra.mxu0 %v4062_v32  ;;  %v1132_v59 = vadd.f32 %v3602_v8, %v2634_v61 }
 0x200   :  { %v3828_v14 = vpop.f32.mrf.mxu2 }
 0x201   :  { %v1102_v56 = vpop.f32.mrf.mxu1 }
 0x202   :  { %v1103_v21 = vadd.f32 %v1102_v56, %v1038_v0 }
 0x204   :  { %v1476_v54 = vmax.f32 %v1103_v21, 0.0  ;;  %1361 = vmatmul.f32.gmra.mxu1 %v1710_v57  ;;  %v1187_v53 = vpop.f32.mrf.mxu3  ;;  %v1252_v36 = vpop.f32.mrf.mxu0  ;;  %v1135_v57 = vadd.f32 %v3621_v39, %v2627_v6 }
 0x205   :  { %v1188_v63 = vadd.f32 %v1187_v53, %v1123_v35 }
 0x206   :  { %1525 = vst [vmem:[%s3935_s3 + $0x170] sm:$0xff] %v1476_v54 }
 0x207   :  { %v1253_v46 = vadd.f32 %v1252_v36, %v1188_v63 }
 0x208   :  { %v1382_v28 = vpop.f32.mrf.mxu2 }
 0x209   :  { %v1317_v4 = vpop.f32.mrf.mxu1 }
 0x20a   :  { %v1318_v27 = vadd.f32 %v1317_v4, %v1253_v46 }
 0x20c   :  { %v1383_v7 = vadd.f32 %v1382_v28, %v1318_v27  ;;  %v1190_v41 = vpop.f32.mrf.mxu3  ;;  %v1255_v51 = vpop.f32.mrf.mxu0 }
 0x20d   :  { %v1191_v23 = vadd.f32 %v1190_v41, %v1126_v50  ;;  %v1138_v50 = vadd.f32 %v3640_v37, %v2673_v20 }
 0x20e   :  { %v1432_v42 = vmax.f32 %v1383_v7, 0.0 }
 0x20f   :  { %v1256_v2 = vadd.f32 %v1255_v51, %v1191_v23 }
 0x210   :  { %1481 = vst.msk [vmem:[%s3935_s3 + $0x10] sm:$0xff] %vm1480_vm1, %v1432_v42  ;;  %v1385_v15 = vpop.f32.mrf.mxu2 }
 0x211   :  { %v1320_v26 = vpop.f32.mrf.mxu1 }
 0x212   :  { %v1321_v38 = vadd.f32 %v1320_v26, %v1256_v2  ;;  %v1141_v26 = vadd.f32 %v3659_v33, %v2642_v13 }
 0x214   :  { %v1386_v1 = vadd.f32 %v1385_v15, %v1321_v38  ;;  %v1193_v30 = vpop.f32.mrf.mxu3  ;;  %v1258_v47 = vpop.f32.mrf.mxu0 }
 0x215   :  { %v1194_v49 = vadd.f32 %v1193_v30, %v1129_v18 }
 0x216   :  { %v1435_v24 = vmax.f32 %v1386_v1, 0.0 }
 0x217   :  { %v1259_v16 = vadd.f32 %v1258_v47, %v1194_v49 }
 0x218   :  { %1484 = vst.msk [vmem:[%s3935_s3 + $0x28] sm:$0xff] %vm1480_vm1, %v1435_v24  ;;  %v1388_v10 = vpop.f32.mrf.mxu2 }
 0x219   :  { %v1323_v17 = vpop.f32.mrf.mxu1 }
 0x21a   :  { %v1324_v12 = vadd.f32 %v1323_v17, %v1259_v16  ;;  %v1144_v16 = vadd.f32 %v3678_v34, %v2681_v31 }
 0x21c   :  { %v1389_v52 = vadd.f32 %v1388_v10, %v1324_v12  ;;  %v1196_v0 = vpop.f32.mrf.mxu3  ;;  %v1261_v60 = vpop.f32.mrf.mxu0 }
 0x21d   :  { %v1197_v58 = vadd.f32 %v1196_v0, %v1132_v59 }
 0x21e   :  { %v1438_v32 = vmax.f32 %v1389_v52, 0.0 }
 0x21f   :  { %v1262_v56 = vadd.f32 %v1261_v60, %v1197_v58  ;;  %v1147_v60 = vadd.f32 %v3697_v43, %v2717_v22 }
 0x220   :  { %1487 = vst.msk [vmem:[%s3935_s3 + $0x40] sm:$0xff] %vm1480_vm1, %v1438_v32  ;;  %v1391_v21 = vpop.f32.mrf.mxu2 }
 0x221   :  { %v1326_v35 = vpop.f32.mrf.mxu1 }
 0x222   :  { %v1327_v54 = vadd.f32 %v1326_v35, %v1262_v56 }
 0x224   :  { %v1392_v53 = vadd.f32 %v1391_v21, %v1327_v54  ;;  %v1199_v63 = vpop.f32.mrf.mxu3  ;;  %v1264_v8 = vpop.f32.mrf.mxu0 }
 0x225   :  { %v1200_v61 = vadd.f32 %v1199_v63, %v1135_v57  ;;  %v1150_v63 = vadd.f32 %v3716_v25, %v4018_v48 }
 0x226   :  { %v1441_v36 = vmax.f32 %v1392_v53, 0.0 }
 0x227   :  { %v1265_v46 = vadd.f32 %v1264_v8, %v1200_v61 }
 0x228   :  { %1490 = vst.msk [vmem:[%s3935_s3 + $0x58] sm:$0xff] %vm1480_vm1, %v1441_v36  ;;  %v1394_v28 = vpop.f32.mrf.mxu2 }
 0x229   :  { %v1329_v4 = vpop.f32.mrf.mxu1 }
 0x22a   :  { %v1330_v27 = vadd.f32 %v1329_v4, %v1265_v46 }
 0x22c   :  { %v1395_v7 = vadd.f32 %v1394_v28, %v1330_v27  ;;  %v1202_v41 = vpop.f32.mrf.mxu3  ;;  %v1267_v39 = vpop.f32.mrf.mxu0 }
 0x22d   :  { %v1203_v6 = vadd.f32 %v1202_v41, %v1138_v50  ;;  %v1153_v50 = vadd.f32 %v3735_v40, %v4021_v9 }
 0x22e   :  { %v1444_v23 = vmax.f32 %v1395_v7, 0.0 }
 0x22f   :  { %v1268_v51 = vadd.f32 %v1267_v39, %v1203_v6 }
 0x230   :  { %1493 = vst.msk [vmem:[%s3935_s3 + $0x70] sm:$0xff] %vm1480_vm1, %v1444_v23  ;;  %v1397_v42 = vpop.f32.mrf.mxu2 }
 0x231   :  { %v1332_v2 = vpop.f32.mrf.mxu1 }
 0x232   :  { %v1333_v15 = vadd.f32 %v1332_v2, %v1268_v51  ;;  %v1156_v2 = vadd.f32 %v3754_v44, %v4025_v29 }
 0x234   :  { %v1398_v38 = vadd.f32 %v1397_v42, %v1333_v15  ;;  %v1205_v18 = vpop.f32.mrf.mxu3  ;;  %v1270_v37 = vpop.f32.mrf.mxu0 }
 0x235   :  { %v1206_v20 = vadd.f32 %v1205_v18, %v1141_v26 }
 0x236   :  { %v1447_v1 = vmax.f32 %v1398_v38, 0.0 }
 0x237   :  { %v1271_v30 = vadd.f32 %v1270_v37, %v1206_v20 }
 0x238   :  { %1496 = vst.msk [vmem:[%s3935_s3 + $0x88] sm:$0xff] %vm1480_vm1, %v1447_v1  ;;  %v1400_v49 = vpop.f32.mrf.mxu2 }
 0x239   :  { %v1335_v47 = vpop.f32.mrf.mxu1 }
 0x23a   :  { %v1336_v24 = vadd.f32 %v1335_v47, %v1271_v30  ;;  %v1159_v30 = vadd.f32 %v3773_v62, %v4054_v45 }
 0x23c   :  { %v1401_v10 = vadd.f32 %v1400_v49, %v1336_v24  ;;  %v1208_v17 = vpop.f32.mrf.mxu3  ;;  %v1273_v33 = vpop.f32.mrf.mxu0 }
 0x23d   :  { %v1209_v13 = vadd.f32 %v1208_v17, %v1144_v16 }
 0x23e   :  { %v1450_v12 = vmax.f32 %v1401_v10, 0.0 }
 0x23f   :  { %v1274_v59 = vadd.f32 %v1273_v33, %v1209_v13  ;;  %v1162_v33 = vadd.f32 %v3792_v55, %v4055_v3 }
 0x240   :  { %1499 = vst.msk [vmem:[%s3935_s3 + $0xa0] sm:$0xff] %vm1480_vm1, %v1450_v12  ;;  %v1403_v52 = vpop.f32.mrf.mxu2 }
 0x241   :  { %v1338_v0 = vpop.f32.mrf.mxu1 }
 0x242   :  { %v1339_v58 = vadd.f32 %v1338_v0, %v1274_v59 }
 0x244   :  { %v1404_v32 = vadd.f32 %v1403_v52, %v1339_v58  ;;  %v1211_v56 = vpop.f32.mrf.mxu3  ;;  %v1276_v34 = vpop.f32.mrf.mxu0 }
 0x245   :  { %v1212_v31 = vadd.f32 %v1211_v56, %v1147_v60  ;;  %v1165_v56 = vadd.f32 %v3811_v19, %v4056_v5 }
 0x246   :  { %v1453_v21 = vmax.f32 %v1404_v32, 0.0 }
 0x247   :  { %v1277_v35 = vadd.f32 %v1276_v34, %v1212_v31 }
 0x248   :  { %1502 = vst.msk [vmem:[%s3935_s3 + $0xb8] sm:$0xff] %vm1480_vm1, %v1453_v21  ;;  %v1406_v54 = vpop.f32.mrf.mxu2 }
 0x249   :  { %v1341_v57 = vpop.f32.mrf.mxu1 }
 0x24a   :  { %v1342_v53 = vadd.f32 %v1341_v57, %v1277_v35 }
 0x24c   :  { %v1407_v61 = vadd.f32 %v1406_v54, %v1342_v53  ;;  %v1214_v8 = vpop.f32.mrf.mxu3  ;;  %v1279_v43 = vpop.f32.mrf.mxu0 }
 0x24d   :  { %v1215_v22 = vadd.f32 %v1214_v8, %v1150_v63  ;;  %v1168_v63 = vadd.f32 %v3828_v14, %v4060_v11 }
 0x24e   :  { %v1456_v36 = vmax.f32 %v1407_v61, 0.0 }
 0x24f   :  { %v1280_v46 = vadd.f32 %v1279_v43, %v1215_v22 }
 0x250   :  { %1505 = vst.msk [vmem:[%s3935_s3 + $0xd0] sm:$0xff] %vm1480_vm1, %v1456_v36  ;;  %v1409_v28 = vpop.f32.mrf.mxu2 }
 0x251   :  { %v1344_v4 = vpop.f32.mrf.mxu1 }
 0x252   :  { %v1345_v27 = vadd.f32 %v1344_v4, %v1280_v46 }
 0x254   :  { %v1410_v7 = vadd.f32 %v1409_v28, %v1345_v27  ;;  %v1217_v41 = vpop.f32.mrf.mxu3  ;;  %v1282_v25 = vpop.f32.mrf.mxu0 }
 0x255   :  { %v1218_v48 = vadd.f32 %v1217_v41, %v1153_v50 }
 0x256   :  { %v1459_v6 = vmax.f32 %v1410_v7, 0.0 }
 0x257   :  { %v1283_v39 = vadd.f32 %v1282_v25, %v1218_v48 }
 0x258   :  { %1508 = vst.msk [vmem:[%s3935_s3 + $0xe8] sm:$0xff] %vm1480_vm1, %v1459_v6  ;;  %v1412_v23 = vpop.f32.mrf.mxu2 }
 0x259   :  { %v1347_v51 = vpop.f32.mrf.mxu1 }
 0x25a   :  { %v1348_v42 = vadd.f32 %v1347_v51, %v1283_v39 }
 0x25c   :  { %v1413_v15 = vadd.f32 %v1412_v23, %v1348_v42  ;;  %v1220_v26 = vpop.f32.mrf.mxu3  ;;  %v1285_v40 = vpop.f32.mrf.mxu0 }
 0x25d   :  { %v1221_v9 = vadd.f32 %v1220_v26, %v1156_v2 }
 0x25e   :  { %v1462_v38 = vmax.f32 %v1413_v15, 0.0 }
 0x25f   :  { %v1286_v18 = vadd.f32 %v1285_v40, %v1221_v9 }
 0x260   :  { %1511 = vst.msk [vmem:[%s3935_s3 + $0x100] sm:$0xff] %vm1480_vm1, %v1462_v38  ;;  %v1415_v20 = vpop.f32.mrf.mxu2 }
 0x261   :  { %v1350_v37 = vpop.f32.mrf.mxu1 }
 0x262   :  { %v1351_v1 = vadd.f32 %v1350_v37, %v1286_v18 }
 0x264   :  { %v1416_v49 = vadd.f32 %v1415_v20, %v1351_v1  ;;  %v1223_v47 = vpop.f32.mrf.mxu3  ;;  %v1288_v44 = vpop.f32.mrf.mxu0 }
 0x265   :  { %v1224_v29 = vadd.f32 %v1223_v47, %v1159_v30 }
 0x266   :  { %v1465_v24 = vmax.f32 %v1416_v49, 0.0 }
 0x267   :  { %v1289_v16 = vadd.f32 %v1288_v44, %v1224_v29 }
 0x268   :  { %1514 = vst.msk [vmem:[%s3935_s3 + $0x118] sm:$0xff] %vm1480_vm1, %v1465_v24  ;;  %v1418_v10 = vpop.f32.mrf.mxu2 }
 0x269   :  { %v1353_v17 = vpop.f32.mrf.mxu1 }
 0x26a   :  { %v1354_v13 = vadd.f32 %v1353_v17, %v1289_v16 }
 0x26c   :  { %v1419_v12 = vadd.f32 %v1418_v10, %v1354_v13  ;;  %v1226_v59 = vpop.f32.mrf.mxu3  ;;  %v1291_v62 = vpop.f32.mrf.mxu0 }
 0x26d   :  { %v1227_v45 = vadd.f32 %v1226_v59, %v1162_v33 }
 0x26e   :  { %v1468_v52 = vmax.f32 %v1419_v12, 0.0 }
 0x26f   :  { %v1292_v0 = vadd.f32 %v1291_v62, %v1227_v45 }
 0x270   :  { %1517 = vst.msk [vmem:[%s3935_s3 + $0x130] sm:$0xff] %vm1480_vm1, %v1468_v52  ;;  %v1421_v58 = vpop.f32.mrf.mxu2 }
 0x271   :  { %v1356_v60 = vpop.f32.mrf.mxu1 }
 0x272   :  { %v1357_v32 = vadd.f32 %v1356_v60, %v1292_v0 }
 0x274   :  { %v1422_v31 = vadd.f32 %v1421_v58, %v1357_v32  ;;  %v1229_v34 = vpop.f32.mrf.mxu3  ;;  %v1294_v55 = vpop.f32.mrf.mxu0 }
 0x275   :  { %v1230_v3 = vadd.f32 %v1229_v34, %v1165_v56 }
 0x276   :  { %v1471_v21 = vmax.f32 %v1422_v31, 0.0 }
 0x277   :  { %v1295_v35 = vadd.f32 %v1294_v55, %v1230_v3 }
 0x278   :  { %1520 = vst.msk [vmem:[%s3935_s3 + $0x148] sm:$0xff] %vm1480_vm1, %v1471_v21  ;;  %v1424_v54 = vpop.f32.mrf.mxu2 }
 0x279   :  { %v1359_v57 = vpop.f32.mrf.mxu1 }
 0x27a   :  { %v1360_v53 = vadd.f32 %v1359_v57, %v1295_v35 }
 0x27c   :  { %v1425_v61 = vadd.f32 %v1424_v54, %v1360_v53  ;;  %v1232_v8 = vpop.f32.mrf.mxu3  ;;  %v1297_v19 = vpop.f32.mrf.mxu0 }
 0x27d   :  { %v1233_v5 = vadd.f32 %v1232_v8, %v1168_v63 }
 0x27e   :  { %v1474_v22 = vmax.f32 %v1425_v61, 0.0 }
 0x27f   :  { %v1298_v43 = vadd.f32 %v1297_v19, %v1233_v5 }
 0x280   :  { %1523 = vst.msk [vmem:[%s3935_s3 + $0x160] sm:$0xff] %vm1480_vm1, %v1474_v22  ;;  %v1427_v46 = vpop.f32.mrf.mxu2 }
 0x281   :  { %v1362_v36 = vpop.f32.mrf.mxu1 }
 0x282   :  { %v1363_v28 = vadd.f32 %v1362_v36, %v1298_v43 }
 0x284   :  { %v1428_v4 = vadd.f32 %v1427_v46, %v1363_v28 }
 0x286   :  { %v1477_v27 = vmax.f32 %v1428_v4, 0.0 }
 0x288   :  { %1526 = vst.msk [vmem:[%s3935_s3 + $0x178] sm:$0xff] %vm1480_vm1, %v1477_v27 }

// kernel: deep_q_network_forward.7
= control target key start
LH: loop header
LB: loop body
LE: loop exit
PB: predicated region body
PF: predicated region fallthrough
CT: control target
= control target key end

     0   :  { %10 = vsyncpa [#allocation4], 0  ;;  %s8352_s18 = smov 0   ;;  %s9983_s0 = inlined_call_operand.vmem [shape: f32[2,19456], index: 0, kind: input, shape index: {}]   ;;  %s9984_s1 = inlined_call_operand.vmem [shape: bf16[19456,512], index: 1, kind: input, shape index: {}]   ;;  %s9985_s2 = inlined_call_operand.vmem [shape: f32[1,512], index: 2, kind: input, shape index: {}]   ;;  %s9986_s3 = inlined_call_operand.vmem [shape: f32[512,6], index: 3, kind: input, shape index: {}]   ;;  %s9987_s4 = inlined_call_operand.vmem [shape: f32[1,6], index: 4, kind: input, shape index: {}]   ;;  %s9988_s5 = inlined_call_operand.hbm [shape: f32[2,6], index: 5, kind: output, shape index: {}]  }
   0x1 LB: > { %s8358_s19 = sadd.s32 4294967295, %s8318_s18   ;;  %p5212_p0 = scmp.ge.s32.totalorder %s8318_s18, 1  ;;  %s8318_s18 = sphi %s8352_s18, %s16_s18  }
   0x2   : > { %p196_p1 = scmp.lt.s32.totalorder %s8318_s18, 9 }
   0x4   : > { %p197_p2 = pnand %p5212_p0, %p196_p1 }
   0x5   : > { %s225_s20 = smul.u32 (!%p197_p2), 19, %s8358_s19  ;;  %p5216_p5 = scmp.ne.s32.totalorder (!%p197_p2), %s8358_s19, 0 }
   0x6   : > { %200 = sbr.rel (%p197_p2) target bundleno = 960 (0x3c0), region = 40 }
   0x7   : > { %s231_s21 = smul.u32 (!%p197_p2), 304, %s8358_s19  ;;  %p226_p3 = scmp.lt.s32.totalorder (!%p197_p2), %s225_s20, 151 }
   0x9   : > { %p232_p4 = scmp.lt.s32.totalorder (!%p197_p2), %s231_s21, 2431 }
   0xb   : > { %s9990_s20 = smov (!%p226_p3, %s225_s20), 151  ;;  %s9992_s21 = smov (!%p232_p4, %s231_s21), 2431 }
   0xc   : > { %s5213_s22 = sshll.u32 %s9990_s20, 1  ;;  %s7654_s26 = sshll.u32 %s9992_s21, 4 }
   0xd   : > { %s8367_s25 = scalar_lea.vmem %s9983_s0, %s5213_s22  ;;  %s8372_s29 = scalar_lea.vmem %s9984_s1, %s7654_s26 }
   0xe   : > { %241 = sbr.rel (%p5216_p5) target bundleno = 21 (0x15), region = 44 }
  0x13   : > { %v8320_v0 = vmov 0.0  }
  0x14   : > { %242 = vst [vmem:[#allocation2] sm:$0xff] %v8320_v0 }
  0x15 PF: > { %v5331_v1 = vld [vmem:[%s8372_s29 + $0xe0] sm:$0xf]  ;;  %v7685_v2 = vld [vmem:[%s8372_s29 + $0xec] sm:$0xf0]  ;;  %vm4960_vm0 = vcmask 1041408   ;;  %vm4962_vm1 = vcmask 1045508  }
  0x16   : > { %v5459_v3 = vld [vmem:[%s8372_s29 + $0x1e0] sm:$0xf]  ;;  %v5332_v4 = vor.u32 %v7685_v2, %v5331_v1  ;;  %v7717_v5 = vld [vmem:[%s8372_s29 + $0x1ec] sm:$0xf0]  ;;  %vm4964_vm2 = vcmask 1043456   ;;  %p7649_p6 = scmp.ne.s32.totalorder %s8358_s19, 7 }
  0x17   : > { %v5587_v6 = vld [vmem:[%s8372_s29 + $0x2e0] sm:$0xf]  ;;  %v7749_v7 = vld [vmem:[%s8372_s29 + $0x2ec] sm:$0xf0]  ;;  %v5460_v8 = vor.u32 %v7717_v5, %v5459_v3 }
  0x18   : > { %v5588_v9 = vor.u32 %v7749_v7, %v5587_v6  ;;  %v5715_v10 = vld [vmem:[%s8372_s29 + $0x3e0] sm:$0xf]  ;;  %v7781_v11 = vld [vmem:[%s8372_s29 + $0x3ec] sm:$0xf0]  ;;  %3965 = vmatpush.bf16.msra.mxu0 %v5332_v4 }
  0x19   : > { %v5315_v12 = vld [vmem:[%s8372_s29 + $0xc0] sm:$0xf]  ;;  %v5716_v13 = vor.u32 %v7781_v11, %v5715_v10  ;;  %v7681_v14 = vld [vmem:[%s8372_s29 + $0xcc] sm:$0xf0]  ;;  %3978 = vmatpush.bf16.msra.mxu1 %v5460_v8 }
  0x1a   : > { %v5443_v15 = vld [vmem:[%s8372_s29 + $0x1c0] sm:$0xf]  ;;  %v7713_v16 = vld [vmem:[%s8372_s29 + $0x1cc] sm:$0xf0]  ;;  %3991 = vmatpush.bf16.msra.mxu2 %v5588_v9  ;;  %v5316_v17 = vor.u32 %v7681_v14, %v5315_v12 }
  0x1b   : > { %v5444_v18 = vor.u32 %v7713_v16, %v5443_v15  ;;  %v5571_v19 = vld [vmem:[%s8372_s29 + $0x2c0] sm:$0xf]  ;;  %v7745_v20 = vld [vmem:[%s8372_s29 + $0x2cc] sm:$0xf0]  ;;  %4004 = vmatpush.bf16.msra.mxu3 %v5716_v13 }
  0x1c   : > { %v5699_v21 = vld [vmem:[%s8372_s29 + $0x3c0] sm:$0xf]  ;;  %v5572_v22 = vor.u32 %v7745_v20, %v5571_v19  ;;  %v7777_v23 = vld [vmem:[%s8372_s29 + $0x3cc] sm:$0xf0]  ;;  %3966 = vmatpush.bf16.msra.mxu0 %v5316_v17 }
  0x1d   : > { %v5299_v24 = vld [vmem:[%s8372_s29 + $0xa0] sm:$0xf]  ;;  %v7677_v25 = vld [vmem:[%s8372_s29 + $0xac] sm:$0xf0]  ;;  %v5700_v26 = vor.u32 %v7777_v23, %v5699_v21  ;;  %3979 = vmatpush.bf16.msra.mxu1 %v5444_v18 }
  0x1e   : > { %v5427_v27 = vld [vmem:[%s8372_s29 + $0x1a0] sm:$0xf]  ;;  %v7709_v28 = vld [vmem:[%s8372_s29 + $0x1ac] sm:$0xf0]  ;;  %v5300_v30 = vor.u32 %v7677_v25, %v5299_v24  ;;  %3992 = vmatpush.bf16.msra.mxu2 %v5572_v22 }
  0x1f   : > { %v5555_v29 = vld [vmem:[%s8372_s29 + $0x2a0] sm:$0xf]  ;;  %v7741_v31 = vld [vmem:[%s8372_s29 + $0x2ac] sm:$0xf0]  ;;  %v5428_v34 = vor.u32 %v7709_v28, %v5427_v27  ;;  %4005 = vmatpush.bf16.msra.mxu3 %v5700_v26 }
  0x20   : > { %v5683_v32 = vld [vmem:[%s8372_s29 + $0x3a0] sm:$0xf]  ;;  %v7773_v33 = vld [vmem:[%s8372_s29 + $0x3ac] sm:$0xf0]  ;;  %v5556_v35 = vor.u32 %v7741_v31, %v5555_v29  ;;  %3967 = vmatpush.bf16.msra.mxu0 %v5300_v30 }
  0x21   : > { %v5283_v36 = vld [vmem:[%s8372_s29 + $0x80] sm:$0xf]  ;;  %v7673_v37 = vld [vmem:[%s8372_s29 + $0x8c] sm:$0xf0]  ;;  %v5684_v39 = vor.u32 %v7773_v33, %v5683_v32  ;;  %3980 = vmatpush.bf16.msra.mxu1 %v5428_v34 }
  0x22   : > { %v5411_v38 = vld [vmem:[%s8372_s29 + $0x180] sm:$0xf]  ;;  %v7705_v40 = vld [vmem:[%s8372_s29 + $0x18c] sm:$0xf0]  ;;  %v5284_v45 = vor.u32 %v7673_v37, %v5283_v36  ;;  %3993 = vmatpush.bf16.msra.mxu2 %v5556_v35 }
  0x23   : > { %v5539_v41 = vld [vmem:[%s8372_s29 + $0x280] sm:$0xf]  ;;  %v7737_v42 = vld [vmem:[%s8372_s29 + $0x28c] sm:$0xf0]  ;;  %v5412_v46 = vor.u32 %v7705_v40, %v5411_v38  ;;  %4006 = vmatpush.bf16.msra.mxu3 %v5684_v39 }
  0x24   : > { %v5667_v43 = vld [vmem:[%s8372_s29 + $0x380] sm:$0xf]  ;;  %v7769_v44 = vld [vmem:[%s8372_s29 + $0x38c] sm:$0xf0]  ;;  %v5540_v47 = vor.u32 %v7737_v42, %v5539_v41  ;;  %3968 = vmatpush.bf16.msra.mxu0 %v5284_v45 }
  0x25   : > { %v5267_v48 = vld [vmem:[%s8372_s29 + $0x60] sm:$0xf]  ;;  %v7669_v49 = vld [vmem:[%s8372_s29 + $0x6c] sm:$0xf0]  ;;  %v5668_v51 = vor.u32 %v7769_v44, %v5667_v43  ;;  %3981 = vmatpush.bf16.msra.mxu1 %v5412_v46 }
  0x26   : > { %v5395_v50 = vld [vmem:[%s8372_s29 + $0x160] sm:$0xf]  ;;  %v7701_v52 = vld [vmem:[%s8372_s29 + $0x16c] sm:$0xf0]  ;;  %v5268_v57 = vor.u32 %v7669_v49, %v5267_v48  ;;  %3994 = vmatpush.bf16.msra.mxu2 %v5540_v47 }
  0x27   : > { %v5523_v53 = vld [vmem:[%s8372_s29 + $0x260] sm:$0xf]  ;;  %v7733_v54 = vld [vmem:[%s8372_s29 + $0x26c] sm:$0xf0]  ;;  %v5396_v58 = vor.u32 %v7701_v52, %v5395_v50  ;;  %4007 = vmatpush.bf16.msra.mxu3 %v5668_v51 }
  0x28   : > { %v5651_v55 = vld [vmem:[%s8372_s29 + $0x360] sm:$0xf]  ;;  %v7765_v56 = vld [vmem:[%s8372_s29 + $0x36c] sm:$0xf0]  ;;  %v5524_v59 = vor.u32 %v7733_v54, %v5523_v53  ;;  %3969 = vmatpush.bf16.msra.mxu0 %v5268_v57 }
  0x29   : > { %v5251_v60 = vld [vmem:[%s8372_s29 + $0x40] sm:$0xf]  ;;  %v7665_v61 = vld [vmem:[%s8372_s29 + $0x4c] sm:$0xf0]  ;;  %v5652_v63 = vor.u32 %v7765_v56, %v5651_v55  ;;  %3982 = vmatpush.bf16.msra.mxu1 %v5396_v58 }
  0x2a   : > { %v5379_v62 = vld [vmem:[%s8372_s29 + $0x140] sm:$0xf]  ;;  %v7697_v0 = vld [vmem:[%s8372_s29 + $0x14c] sm:$0xf0]  ;;  %v5252_v5 = vor.u32 %v7665_v61, %v5251_v60  ;;  %3995 = vmatpush.bf16.msra.mxu2 %v5524_v59 }
  0x2b   : > { %v5507_v1 = vld [vmem:[%s8372_s29 + $0x240] sm:$0xf]  ;;  %v7729_v2 = vld [vmem:[%s8372_s29 + $0x24c] sm:$0xf0]  ;;  %v5380_v6 = vor.u32 %v7697_v0, %v5379_v62  ;;  %4008 = vmatpush.bf16.msra.mxu3 %v5652_v63 }
  0x2c   : > { %v5635_v3 = vld [vmem:[%s8372_s29 + $0x340] sm:$0xf]  ;;  %v7761_v4 = vld [vmem:[%s8372_s29 + $0x34c] sm:$0xf0]  ;;  %v5508_v7 = vor.u32 %v7729_v2, %v5507_v1  ;;  %3970 = vmatpush.bf16.msra.mxu0 %v5252_v5 }
  0x2d   : > { %v5235_v8 = vld [vmem:[%s8372_s29 + $0x20] sm:$0xf]  ;;  %v7661_v9 = vld [vmem:[%s8372_s29 + $0x2c] sm:$0xf0]  ;;  %v5636_v11 = vor.u32 %v7761_v4, %v5635_v3  ;;  %3983 = vmatpush.bf16.msra.mxu1 %v5380_v6 }
  0x2e   : > { %v5363_v10 = vld [vmem:[%s8372_s29 + $0x120] sm:$0xf]  ;;  %v7693_v12 = vld [vmem:[%s8372_s29 + $0x12c] sm:$0xf0]  ;;  %v5236_v17 = vor.u32 %v7661_v9, %v5235_v8  ;;  %3996 = vmatpush.bf16.msra.mxu2 %v5508_v7 }
  0x2f   : > { %v5491_v13 = vld [vmem:[%s8372_s29 + $0x220] sm:$0xf]  ;;  %v7725_v14 = vld [vmem:[%s8372_s29 + $0x22c] sm:$0xf0]  ;;  %v5364_v20 = vor.u32 %v7693_v12, %v5363_v10  ;;  %4009 = vmatpush.bf16.msra.mxu3 %v5636_v11 }
  0x30   : > { %v5619_v15 = vld [vmem:[%s8372_s29 + $0x320] sm:$0xf]  ;;  %v7757_v16 = vld [vmem:[%s8372_s29 + $0x32c] sm:$0xf0]  ;;  %v5492_v21 = vor.u32 %v7725_v14, %v5491_v13  ;;  %3971 = vmatpush.bf16.msra.mxu0 %v5236_v17 }
  0x31   : > { %v5219_v18 = vld [vmem:[%s8372_s29] sm:$0xf]  ;;  %v7657_v19 = vld [vmem:[%s8372_s29 + $0xc] sm:$0xf0]  ;;  %v5620_v25 = vor.u32 %v7757_v16, %v5619_v15  ;;  %3984 = vmatpush.bf16.msra.mxu1 %v5364_v20 }
  0x32   : > { %v5347_v22 = vld [vmem:[%s8372_s29 + $0x100] sm:$0xf]  ;;  %v7689_v23 = vld [vmem:[%s8372_s29 + $0x10c] sm:$0xf0]  ;;  %v5220_v32 = vor.u32 %v7657_v19, %v5219_v18  ;;  %3997 = vmatpush.bf16.msra.mxu2 %v5492_v21 }
  0x33   : > { %v5475_v24 = vld [vmem:[%s8372_s29 + $0x200] sm:$0xf]  ;;  %v7721_v26 = vld [vmem:[%s8372_s29 + $0x20c] sm:$0xf0]  ;;  %v5348_v36 = vor.u32 %v7689_v23, %v5347_v22  ;;  %4010 = vmatpush.bf16.msra.mxu3 %v5620_v25 }
  0x34   : > { %v5603_v27 = vld [vmem:[%s8372_s29 + $0x300] sm:$0xf]  ;;  %v7753_v28 = vld [vmem:[%s8372_s29 + $0x30c] sm:$0xf0]  ;;  %v5476_v37 = vor.u32 %v7721_v26, %v5475_v24  ;;  %3972 = vmatpush.bf16.msra.mxu0 %v5220_v32 }
  0x35   : > { %v5843_v29 = vld [vmem:[%s8372_s29 + $0x4e0] sm:$0xf]  ;;  %v7813_v30 = vld [vmem:[%s8372_s29 + $0x4ec] sm:$0xf0]  ;;  %v5604_v40 = vor.u32 %v7753_v28, %v5603_v27  ;;  %3985 = vmatpush.bf16.msra.mxu1 %v5348_v36 }
  0x36   : > { %v5971_v31 = vld [vmem:[%s8372_s29 + $0x5e0] sm:$0xf]  ;;  %v7845_v33 = vld [vmem:[%s8372_s29 + $0x5ec] sm:$0xf0]  ;;  %v5844_v41 = vor.u32 %v7813_v30, %v5843_v29  ;;  %3998 = vmatpush.bf16.msra.mxu2 %v5476_v37 }
  0x37   : > { %v6099_v34 = vld [vmem:[%s8372_s29 + $0x6e0] sm:$0xf]  ;;  %v7877_v35 = vld [vmem:[%s8372_s29 + $0x6ec] sm:$0xf0]  ;;  %v5972_v42 = vor.u32 %v7845_v33, %v5971_v31  ;;  %4011 = vmatpush.bf16.msra.mxu3 %v5604_v40 }
  0x38   : > { %v6227_v38 = vld [vmem:[%s8372_s29 + $0x7e0] sm:$0xf]  ;;  %v7909_v39 = vld [vmem:[%s8372_s29 + $0x7ec] sm:$0xf0]  ;;  %v6100_v43 = vor.u32 %v7877_v35, %v6099_v34  ;;  %4017 = vmatpush.bf16.msrb.mxu0 %v5844_v41 }
  0x39   : > { %v5827_v44 = vld [vmem:[%s8372_s29 + $0x4c0] sm:$0xf]  ;;  %v7809_v45 = vld [vmem:[%s8372_s29 + $0x4cc] sm:$0xf0]  ;;  %v6228_v47 = vor.u32 %v7909_v39, %v6227_v38  ;;  %4030 = vmatpush.bf16.msrb.mxu1 %v5972_v42 }
  0x3a   : > { %v5955_v46 = vld [vmem:[%s8372_s29 + $0x5c0] sm:$0xf]  ;;  %v7841_v48 = vld [vmem:[%s8372_s29 + $0x5cc] sm:$0xf0]  ;;  %v5828_v53 = vor.u32 %v7809_v45, %v5827_v44  ;;  %4043 = vmatpush.bf16.msrb.mxu2 %v6100_v43 }
  0x3b   : > { %v6083_v49 = vld [vmem:[%s8372_s29 + $0x6c0] sm:$0xf]  ;;  %v7873_v50 = vld [vmem:[%s8372_s29 + $0x6cc] sm:$0xf0]  ;;  %v5956_v56 = vor.u32 %v7841_v48, %v5955_v46  ;;  %4056 = vmatpush.bf16.msrb.mxu3 %v6228_v47 }
  0x3c   : > { %v6211_v51 = vld [vmem:[%s8372_s29 + $0x7c0] sm:$0xf]  ;;  %v7905_v52 = vld [vmem:[%s8372_s29 + $0x7cc] sm:$0xf0]  ;;  %v6084_v57 = vor.u32 %v7873_v50, %v6083_v49  ;;  %4018 = vmatpush.bf16.msrb.mxu0 %v5828_v53 }
  0x3d   : > { %v5811_v54 = vld [vmem:[%s8372_s29 + $0x4a0] sm:$0xf]  ;;  %v7805_v55 = vld [vmem:[%s8372_s29 + $0x4ac] sm:$0xf0]  ;;  %v6212_v61 = vor.u32 %v7905_v52, %v6211_v51  ;;  %4031 = vmatpush.bf16.msrb.mxu1 %v5956_v56 }
  0x3e   : > { %v5939_v58 = vld [vmem:[%s8372_s29 + $0x5a0] sm:$0xf]  ;;  %v7837_v59 = vld [vmem:[%s8372_s29 + $0x5ac] sm:$0xf0]  ;;  %v5812_v2 = vor.u32 %v7805_v55, %v5811_v54  ;;  %4044 = vmatpush.bf16.msrb.mxu2 %v6084_v57 }
  0x3f   : > { %v244_v60 = vld [vmem:[%s8367_s25] sm:$0xff]  ;;  %v7869_v63 = vld [vmem:[%s8372_s29 + $0x6ac] sm:$0xf0]  ;;  %v5940_v4 = vor.u32 %v7837_v59, %v5939_v58  ;;  %4057 = vmatpush.bf16.msrb.mxu3 %v6212_v61  ;;  %v245_v58 = vld [vmem:[%s8367_s25 + $0x8] sm:$0xff] }
  0x40   : > { %v6067_v62 = vld [vmem:[%s8372_s29 + $0x6a0] sm:$0xf]  ;;  %254 = vst [vmem:[#allocation1] ss:$4 sm:$0xff] %v244_v60  ;;  %v7901_v1 = vld [vmem:[%s8372_s29 + $0x7ac] sm:$0xf0]  ;;  %4019 = vmatpush.bf16.msrb.mxu0 %v5812_v2 }
  0x41   : > { %v6195_v0 = vld [vmem:[%s8372_s29 + $0x7a0] sm:$0xf]  ;;  %v6068_v5 = vor.u32 %v7869_v63, %v6067_v62  ;;  %v7801_v6 = vld [vmem:[%s8372_s29 + $0x48c] sm:$0xf0]  ;;  %4032 = vmatpush.bf16.msrb.mxu1 %v5940_v4  ;;  %256 = vst [vmem:[#allocation1 + $0x20] ss:$4 sm:$0xff] %v245_v58 }
  0x42   : > { %v5795_v3 = vld [vmem:[%s8372_s29 + $0x480] sm:$0xf]  ;;  %v7833_v8 = vld [vmem:[%s8372_s29 + $0x58c] sm:$0xf0]  ;;  %v6196_v9 = vor.u32 %v7901_v1, %v6195_v0 }
  0x43   : > { %v5923_v7 = vld [vmem:[%s8372_s29 + $0x580] sm:$0xf]  ;;  %v7865_v11 = vld [vmem:[%s8372_s29 + $0x68c] sm:$0xf0]  ;;  %v5796_v16 = vor.u32 %v7801_v6, %v5795_v3  ;;  %4045 = vmatpush.bf16.msrb.mxu2 %v6068_v5 }
  0x44   : > { %v6051_v10 = vld [vmem:[%s8372_s29 + $0x680] sm:$0xf]  ;;  %v7897_v13 = vld [vmem:[%s8372_s29 + $0x78c] sm:$0xf0]  ;;  %v5924_v22 = vor.u32 %v7833_v8, %v5923_v7  ;;  %4058 = vmatpush.bf16.msrb.mxu3 %v6196_v9 }
  0x45   : > { %v6179_v12 = vld [vmem:[%s8372_s29 + $0x780] sm:$0xf]  ;;  %v7797_v15 = vld [vmem:[%s8372_s29 + $0x46c] sm:$0xf0]  ;;  %v6052_v23 = vor.u32 %v7865_v11, %v6051_v10  ;;  %4020 = vmatpush.bf16.msrb.mxu0 %v5796_v16 }
  0x46   : > { %v5779_v14 = vld [vmem:[%s8372_s29 + $0x460] sm:$0xf]  ;;  %v7829_v18 = vld [vmem:[%s8372_s29 + $0x56c] sm:$0xf0]  ;;  %v6180_v26 = vor.u32 %v7897_v13, %v6179_v12  ;;  %4033 = vmatpush.bf16.msrb.mxu1 %v5924_v22 }
  0x47   : > { %v5907_v17 = vld [vmem:[%s8372_s29 + $0x560] sm:$0xf]  ;;  %v7861_v20 = vld [vmem:[%s8372_s29 + $0x66c] sm:$0xf0]  ;;  %v5780_v35 = vor.u32 %v7797_v15, %v5779_v14  ;;  %4046 = vmatpush.bf16.msrb.mxu2 %v6052_v23 }
  0x48   : > { %v6035_v19 = vld [vmem:[%s8372_s29 + $0x660] sm:$0xf]  ;;  %v246_v21 = vld [vmem:[%s8367_s25 + $0x10] sm:$0xff]  ;;  %v260_v29 = vld.sshfl [vmem:[#allocation1 + $0x18] sm:$0xff pattern:$0x73625140]  ;;  %v5908_v36 = vor.u32 %v7829_v18, %v5907_v17  ;;  %4059 = vmatpush.bf16.msrb.mxu3 %v6180_v26 }
  0x49   : > { %v259_v24 = vld.sshfl [vmem:[#allocation1 + $0x10] sm:$0xff pattern:$0x73625140]  ;;  %v257_v25 = vld.sshfl [vmem:[#allocation1] sm:$0xff pattern:$0x73625140]  ;;  %v8485_v33 = vpack.c.bf16 %v260_v29, %v260_v29  ;;  %v6036_v37 = vor.u32 %v7861_v20, %v6035_v19  ;;  %4021 = vmatpush.bf16.msrb.mxu0 %v5780_v35 }
  0x4a   : > { %v8479_v27 = vpack.c.bf16 %v259_v24, %v259_v24  ;;  %v8481_v28 = vpack.c.bf16 %v257_v25, %v257_v25  ;;  %v258_v30 = vld.sshfl [vmem:[#allocation1 + $0x8] sm:$0xff pattern:$0x73625140]  ;;  %v6163_v31 = vld [vmem:[%s8372_s29 + $0x760] sm:$0xf]  ;;  %4034 = vmatpush.bf16.msrb.mxu1 %v5908_v36 }
  0x4b   : > { %v7893_v32 = vld [vmem:[%s8372_s29 + $0x76c] sm:$0xf0]  ;;  %265 = vst [vmem:[#allocation1] ss:$4 sm:$0xff] %v246_v21  ;;  %v8487_v34 = vpack.c.bf16 %v258_v30, %v258_v30  ;;  %v5763_v38 = vld [vmem:[%s8372_s29 + $0x440] sm:$0xf]  ;;  %4012 = vmatmul.bf16.vlgmr.msra.gmra.mxu3 %v8485_v33  ;;  %4047 = vmatpush.bf16.msrb.mxu2 %v6036_v37 }
  0x4c   : > { %3999 = vmatmul.bf16.vlgmr.msra.gmra.mxu2 %v8479_v27  ;;  %v7793_v39 = vld [vmem:[%s8372_s29 + $0x44c] sm:$0xf0]  ;;  %v5891_v40 = vld [vmem:[%s8372_s29 + $0x540] sm:$0xf]  ;;  %v6164_v41 = vor.u32 %v7893_v32, %v6163_v31  ;;  %3973 = vmatmul.bf16.vlgmr.msra.gmra.mxu0 %v8481_v28  ;;  %v247_v21 = vld [vmem:[%s8367_s25 + $0x18] sm:$0xff] }
  0x4d   : > { %v7825_v42 = vld [vmem:[%s8372_s29 + $0x54c] sm:$0xf0]  ;;  %v6019_v43 = vld [vmem:[%s8372_s29 + $0x640] sm:$0xf]  ;;  %3986 = vmatmul.bf16.vlgmr.msra.gmra.mxu1 %v8487_v34  ;;  %v5764_v47 = vor.u32 %v7793_v39, %v5763_v38 }
  0x4e   : > { %v7857_v44 = vld [vmem:[%s8372_s29 + $0x64c] sm:$0xf0]  ;;  %v6147_v45 = vld [vmem:[%s8372_s29 + $0x740] sm:$0xf]  ;;  %v5892_v50 = vor.u32 %v7825_v42, %v5891_v40  ;;  %4060 = vmatpush.bf16.msrb.mxu3 %v6164_v41 }
  0x4f   : > { %v7889_v46 = vld [vmem:[%s8372_s29 + $0x74c] sm:$0xf0]  ;;  %v5747_v48 = vld [vmem:[%s8372_s29 + $0x420] sm:$0xf]  ;;  %v6020_v51 = vor.u32 %v7857_v44, %v6019_v43  ;;  %4022 = vmatpush.bf16.msrb.mxu0 %v5764_v47 }
  0x50   : > { %v7789_v49 = vld [vmem:[%s8372_s29 + $0x42c] sm:$0xf0]  ;;  %v5875_v52 = vld [vmem:[%s8372_s29 + $0x520] sm:$0xf]  ;;  %v6148_v55 = vor.u32 %v7889_v46, %v6147_v45  ;;  %4035 = vmatpush.bf16.msrb.mxu1 %v5892_v50 }
  0x51   : > { %v7821_v53 = vld [vmem:[%s8372_s29 + $0x52c] sm:$0xf0]  ;;  %v6003_v54 = vld [vmem:[%s8372_s29 + $0x620] sm:$0xf]  ;;  %v5748_v61 = vor.u32 %v7789_v49, %v5747_v48  ;;  %4048 = vmatpush.bf16.msrb.mxu2 %v6020_v51 }
  0x52   : > { %v7853_v56 = vld [vmem:[%s8372_s29 + $0x62c] sm:$0xf0]  ;;  %v6131_v57 = vld [vmem:[%s8372_s29 + $0x720] sm:$0xf]  ;;  %v5876_v1 = vor.u32 %v7821_v53, %v5875_v52  ;;  %4061 = vmatpush.bf16.msrb.mxu3 %v6148_v55 }
  0x53   : > { %v7885_v59 = vld [vmem:[%s8372_s29 + $0x72c] sm:$0xf0]  ;;  %v5731_v60 = vld [vmem:[%s8372_s29 + $0x400] sm:$0xf]  ;;  %v6004_v2 = vor.u32 %v7853_v56, %v6003_v54  ;;  %4023 = vmatpush.bf16.msrb.mxu0 %v5748_v61 }
  0x54   : > { %v7785_v62 = vld [vmem:[%s8372_s29 + $0x40c] sm:$0xf0]  ;;  %v5859_v63 = vld [vmem:[%s8372_s29 + $0x500] sm:$0xf]  ;;  %v6132_v6 = vor.u32 %v7885_v59, %v6131_v57  ;;  %4036 = vmatpush.bf16.msrb.mxu1 %v5876_v1 }
  0x55   : > { %v7817_v0 = vld [vmem:[%s8372_s29 + $0x50c] sm:$0xf0]  ;;  %v5987_v3 = vld [vmem:[%s8372_s29 + $0x600] sm:$0xf]  ;;  %v5732_v13 = vor.u32 %v7785_v62, %v5731_v60  ;;  %4049 = vmatpush.bf16.msrb.mxu2 %v6004_v2 }
  0x56   : > { %v7849_v4 = vld [vmem:[%s8372_s29 + $0x60c] sm:$0xf0]  ;;  %v6115_v5 = vld [vmem:[%s8372_s29 + $0x700] sm:$0xf]  ;;  %v5860_v17 = vor.u32 %v7817_v0, %v5859_v63  ;;  %4062 = vmatpush.bf16.msrb.mxu3 %v6132_v6 }
  0x57   : > { %v7881_v7 = vld [vmem:[%s8372_s29 + $0x70c] sm:$0xf0]  ;;  %v6355_v8 = vld [vmem:[%s8372_s29 + $0x8e0] sm:$0xf]  ;;  %v5988_v18 = vor.u32 %v7849_v4, %v5987_v3  ;;  %4024 = vmatpush.bf16.msrb.mxu0 %v5732_v13 }
  0x58   : > { %v7941_v9 = vld [vmem:[%s8372_s29 + $0x8ec] sm:$0xf0]  ;;  %v6483_v10 = vld [vmem:[%s8372_s29 + $0x9e0] sm:$0xf]  ;;  %v6116_v22 = vor.u32 %v7881_v7, %v6115_v5  ;;  %4037 = vmatpush.bf16.msrb.mxu1 %v5860_v17 }
  0x59   : > { %v7973_v11 = vld [vmem:[%s8372_s29 + $0x9ec] sm:$0xf0]  ;;  %v6611_v12 = vld [vmem:[%s8372_s29 + $0xae0] sm:$0xf]  ;;  %v6356_v23 = vor.u32 %v7941_v9, %v6355_v8  ;;  %4050 = vmatpush.bf16.msrb.mxu2 %v5988_v18 }
  0x5a   : > { %v8005_v14 = vld [vmem:[%s8372_s29 + $0xaec] sm:$0xf0]  ;;  %v6739_v15 = vld [vmem:[%s8372_s29 + $0xbe0] sm:$0xf]  ;;  %v6484_v30 = vor.u32 %v7973_v11, %v6483_v10  ;;  %4063 = vmatpush.bf16.msrb.mxu3 %v6116_v22 }
  0x5b   : > { %v8037_v16 = vld [vmem:[%s8372_s29 + $0xbec] sm:$0xf0]  ;;  %v6339_v19 = vld [vmem:[%s8372_s29 + $0x8c0] sm:$0xf]  ;;  %v6612_v31 = vor.u32 %v8005_v14, %v6611_v12  ;;  %4069 = vmatpush.bf16.msra.mxu0 %v6356_v23 }
  0x5c   : > { %v7937_v20 = vld [vmem:[%s8372_s29 + $0x8cc] sm:$0xf0]  ;;  %v6467_v24 = vld [vmem:[%s8372_s29 + $0x9c0] sm:$0xf]  ;;  %v6740_v36 = vor.u32 %v8037_v16, %v6739_v15  ;;  %4082 = vmatpush.bf16.msra.mxu1 %v6484_v30 }
  0x5d   : > { %v7969_v25 = vld [vmem:[%s8372_s29 + $0x9cc] sm:$0xf0]  ;;  %v261_v29 = vld.sshfl [vmem:[#allocation1 + $0x20] sm:$0xff pattern:$0x73625140]  ;;  %v6340_v44 = vor.u32 %v7937_v20, %v6339_v19  ;;  %4095 = vmatpush.bf16.msra.mxu2 %v6612_v31 }
  0x5e   : > { %v263_v26 = vld.sshfl [vmem:[#allocation1 + $0x30] sm:$0xff pattern:$0x73625140]  ;;  %v264_v32 = vld.sshfl [vmem:[#allocation1 + $0x38] sm:$0xff pattern:$0x73625140]  ;;  %v8537_v42 = vpack.c.bf16 %v261_v29, %v261_v29  ;;  %v6468_v46 = vor.u32 %v7969_v25, %v6467_v24  ;;  %4108 = vmatpush.bf16.msra.mxu3 %v6740_v36 }
  0x5f   : > { %v262_v35 = vld.sshfl [vmem:[#allocation1 + $0x28] sm:$0xff pattern:$0x73625140]  ;;  %v6595_v37 = vld [vmem:[%s8372_s29 + $0xac0] sm:$0xf]  ;;  %v8533_v39 = vpack.c.bf16 %v263_v26, %v263_v26  ;;  %v8539_v43 = vpack.c.bf16 %v264_v32, %v264_v32  ;;  %4070 = vmatpush.bf16.msra.mxu0 %v6340_v44 }
  0x60   : > { %v8001_v38 = vld [vmem:[%s8372_s29 + $0xacc] sm:$0xf0]  ;;  %266 = vst [vmem:[#allocation1 + $0x20] ss:$4 sm:$0xff] %v247_v21  ;;  %v6723_v40 = vld [vmem:[%s8372_s29 + $0xbc0] sm:$0xf]  ;;  %v8541_v45 = vpack.c.bf16 %v262_v35, %v262_v35  ;;  %4025 = vmatmul.bf16.vlgmr.msrb.gmra.mxu0 %v8537_v42  ;;  %4083 = vmatpush.bf16.msra.mxu1 %v6468_v46 }
  0x61   : > { %v8033_v41 = vld [vmem:[%s8372_s29 + $0xbcc] sm:$0xf0]  ;;  %v6596_v47 = vor.u32 %v8001_v38, %v6595_v37  ;;  %v6323_v48 = vld [vmem:[%s8372_s29 + $0x8a0] sm:$0xf]  ;;  %4051 = vmatmul.bf16.vlgmr.msrb.gmra.mxu2 %v8533_v39  ;;  %4064 = vmatmul.bf16.vlgmr.msrb.gmra.mxu3 %v8539_v43 }
  0x62   : > { %v7933_v49 = vld [vmem:[%s8372_s29 + $0x8ac] sm:$0xf0]  ;;  %v6451_v50 = vld [vmem:[%s8372_s29 + $0x9a0] sm:$0xf]  ;;  %v6724_v51 = vor.u32 %v8033_v41, %v6723_v40  ;;  %4038 = vmatmul.bf16.vlgmr.msrb.gmra.mxu1 %v8541_v45 }
  0x63   : > { %v7965_v52 = vld [vmem:[%s8372_s29 + $0x9ac] sm:$0xf0]  ;;  %v6579_v53 = vld [vmem:[%s8372_s29 + $0xaa0] sm:$0xf]  ;;  %v6324_v57 = vor.u32 %v7933_v49, %v6323_v48  ;;  %4096 = vmatpush.bf16.msra.mxu2 %v6596_v47 }
  0x64   : > { %v7997_v54 = vld [vmem:[%s8372_s29 + $0xaac] sm:$0xf0]  ;;  %v6707_v55 = vld [vmem:[%s8372_s29 + $0xba0] sm:$0xf]  ;;  %v6452_v58 = vor.u32 %v7965_v52, %v6451_v50  ;;  %4109 = vmatpush.bf16.msra.mxu3 %v6724_v51 }
  0x65   : > { %v8029_v56 = vld [vmem:[%s8372_s29 + $0xbac] sm:$0xf0]  ;;  %v6580_v59 = vor.u32 %v7997_v54, %v6579_v53  ;;  %v6307_v60 = vld [vmem:[%s8372_s29 + $0x880] sm:$0xf]  ;;  %4071 = vmatpush.bf16.msra.mxu0 %v6324_v57 }
  0x66   : > { %v7929_v61 = vld [vmem:[%s8372_s29 + $0x88c] sm:$0xf0]  ;;  %v6435_v62 = vld [vmem:[%s8372_s29 + $0x980] sm:$0xf]  ;;  %v6708_v63 = vor.u32 %v8029_v56, %v6707_v55  ;;  %4084 = vmatpush.bf16.msra.mxu1 %v6452_v58 }
  0x67   : > { %v7961_v0 = vld [vmem:[%s8372_s29 + $0x98c] sm:$0xf0]  ;;  %v6563_v1 = vld [vmem:[%s8372_s29 + $0xa80] sm:$0xf]  ;;  %v6308_v6 = vor.u32 %v7929_v61, %v6307_v60  ;;  %4097 = vmatpush.bf16.msra.mxu2 %v6580_v59 }
  0x68   : > { %v7993_v2 = vld [vmem:[%s8372_s29 + $0xa8c] sm:$0xf0]  ;;  %v6691_v3 = vld [vmem:[%s8372_s29 + $0xb80] sm:$0xf]  ;;  %v6436_v10 = vor.u32 %v7961_v0, %v6435_v62  ;;  %4110 = vmatpush.bf16.msra.mxu3 %v6708_v63 }
  0x69   : > { %v8025_v4 = vld [vmem:[%s8372_s29 + $0xb8c] sm:$0xf0]  ;;  %v6291_v5 = vld [vmem:[%s8372_s29 + $0x860] sm:$0xf]  ;;  %v6564_v11 = vor.u32 %v7993_v2, %v6563_v1  ;;  %4072 = vmatpush.bf16.msra.mxu0 %v6308_v6 }
  0x6a   : > { %v7925_v7 = vld [vmem:[%s8372_s29 + $0x86c] sm:$0xf0]  ;;  %v6419_v8 = vld [vmem:[%s8372_s29 + $0x960] sm:$0xf]  ;;  %v6692_v15 = vor.u32 %v8025_v4, %v6691_v3  ;;  %4085 = vmatpush.bf16.msra.mxu1 %v6436_v10 }
  0x6b   : > { %v7957_v9 = vld [vmem:[%s8372_s29 + $0x96c] sm:$0xf0]  ;;  %v6547_v12 = vld [vmem:[%s8372_s29 + $0xa60] sm:$0xf]  ;;  %v6292_v21 = vor.u32 %v7925_v7, %v6291_v5  ;;  %4098 = vmatpush.bf16.msra.mxu2 %v6564_v11 }
  0x6c   : > { %v7989_v13 = vld [vmem:[%s8372_s29 + $0xa6c] sm:$0xf0]  ;;  %v6675_v14 = vld [vmem:[%s8372_s29 + $0xb60] sm:$0xf]  ;;  %v6420_v24 = vor.u32 %v7957_v9, %v6419_v8  ;;  %4111 = vmatpush.bf16.msra.mxu3 %v6692_v15 }
  0x6d   : > { %v8021_v16 = vld [vmem:[%s8372_s29 + $0xb6c] sm:$0xf0]  ;;  %v8571_v17 = vld.sshfl [vmem:[#allocation1] sm:$0xff pattern:$0x73625140]  ;;  %v6548_v25 = vor.u32 %v7989_v13, %v6547_v12  ;;  %4073 = vmatpush.bf16.msra.mxu0 %v6292_v21 }
  0x6e   : > { %v6275_v18 = vld [vmem:[%s8372_s29 + $0x840] sm:$0xf]  ;;  %v8574_v19 = vld.sshfl [vmem:[#allocation1 + $0x10] sm:$0xff pattern:$0x73625140]  ;;  %v6676_v30 = vor.u32 %v8021_v16, %v6675_v14  ;;  %4086 = vmatpush.bf16.msra.mxu1 %v6420_v24 }
  0x6f   : > { %v8576_v20 = vld.sshfl [vmem:[#allocation1 + $0x8] sm:$0xff pattern:$0x73625140]  ;;  %v248_v22 = vld [vmem:[%s8367_s25 + $0x20] sm:$0x3f]  ;;  %4099 = vmatpush.bf16.msra.mxu2 %v6548_v25  ;;  %v8617_v25 = vpack.c.bf16 %v8571_v17, %v8571_v17 }
  0x70   : > { %v8579_v23 = vld.sshfl [vmem:[#allocation1 + $0x18] sm:$0xff pattern:$0x73625140]  ;;  %v7921_v26 = vld [vmem:[%s8372_s29 + $0x84c] sm:$0xf0]  ;;  %4112 = vmatpush.bf16.msra.mxu3 %v6676_v30 }
  0x71   : > { %v6403_v29 = vld [vmem:[%s8372_s29 + $0x940] sm:$0xf]  ;;  %275 = vst [vmem:[#allocation1] ss:$4 sm:$0xff] %v248_v22  ;;  %v7953_v31 = vld [vmem:[%s8372_s29 + $0x94c] sm:$0xf0]  ;;  %v6276_v38 = vor.u32 %v7921_v26, %v6275_v18 }
  0x72   : > { %v6531_v32 = vld [vmem:[%s8372_s29 + $0xa40] sm:$0xf]  ;;  %v7985_v35 = vld [vmem:[%s8372_s29 + $0xa4c] sm:$0xf0]  ;;  %v6404_v40 = vor.u32 %v7953_v31, %v6403_v29  ;;  %v8624_v31 = vpack.c.bf16 %v8574_v19, %v8574_v19 }
  0x73   : > { %v6659_v36 = vld [vmem:[%s8372_s29 + $0xb40] sm:$0xf]  ;;  %v8017_v37 = vld [vmem:[%s8372_s29 + $0xb4c] sm:$0xf0]  ;;  %v6532_v41 = vor.u32 %v7985_v35, %v6531_v32  ;;  %4074 = vmatpush.bf16.msra.mxu0 %v6276_v38  ;;  %v8628_v32 = vpack.c.bf16 %v8576_v20, %v8576_v20 }
  0x74   : > { %v6259_v44 = vld [vmem:[%s8372_s29 + $0x820] sm:$0xf]  ;;  %v7917_v46 = vld [vmem:[%s8372_s29 + $0x82c] sm:$0xf0]  ;;  %v6660_v48 = vor.u32 %v8017_v37, %v6659_v36  ;;  %4087 = vmatpush.bf16.msra.mxu1 %v6404_v40  ;;  %v8634_v36 = vpack.c.bf16 %v8579_v23, %v8579_v23 }
  0x75   : > { %v6387_v47 = vld [vmem:[%s8372_s29 + $0x920] sm:$0xf]  ;;  %v7949_v49 = vld [vmem:[%s8372_s29 + $0x92c] sm:$0xf0]  ;;  %v6260_v54 = vor.u32 %v7917_v46, %v6259_v44  ;;  %4100 = vmatpush.bf16.msra.mxu2 %v6532_v41 }
  0x76   : > { %v6515_v50 = vld [vmem:[%s8372_s29 + $0xa20] sm:$0xf]  ;;  %v7981_v51 = vld [vmem:[%s8372_s29 + $0xa2c] sm:$0xf0]  ;;  %v6388_v57 = vor.u32 %v7949_v49, %v6387_v47  ;;  %4113 = vmatpush.bf16.msra.mxu3 %v6660_v48 }
  0x77   : > { %v6643_v52 = vld [vmem:[%s8372_s29 + $0xb20] sm:$0xf]  ;;  %v8013_v53 = vld [vmem:[%s8372_s29 + $0xb2c] sm:$0xf0]  ;;  %v6516_v58 = vor.u32 %v7981_v51, %v6515_v50  ;;  %4075 = vmatpush.bf16.msra.mxu0 %v6260_v54 }
  0x78   : > { %v6243_v55 = vld [vmem:[%s8372_s29 + $0x800] sm:$0xf]  ;;  %v7913_v56 = vld [vmem:[%s8372_s29 + $0x80c] sm:$0xf0]  ;;  %v6644_v62 = vor.u32 %v8013_v53, %v6643_v52  ;;  %4088 = vmatpush.bf16.msra.mxu1 %v6388_v57 }
  0x79   : > { %v6371_v59 = vld [vmem:[%s8372_s29 + $0x900] sm:$0xf]  ;;  %v7945_v60 = vld [vmem:[%s8372_s29 + $0x90c] sm:$0xf0]  ;;  %v6244_v5 = vor.u32 %v7913_v56, %v6243_v55  ;;  %4101 = vmatpush.bf16.msra.mxu2 %v6516_v58 }
  0x7a   : > { %v6499_v61 = vld [vmem:[%s8372_s29 + $0xa00] sm:$0xf]  ;;  %v7977_v63 = vld [vmem:[%s8372_s29 + $0xa0c] sm:$0xf0]  ;;  %v6372_v9 = vor.u32 %v7945_v60, %v6371_v59  ;;  %4114 = vmatpush.bf16.msra.mxu3 %v6644_v62 }
  0x7b   : > { %v6627_v0 = vld [vmem:[%s8372_s29 + $0xb00] sm:$0xf]  ;;  %v8009_v1 = vld [vmem:[%s8372_s29 + $0xb0c] sm:$0xf0]  ;;  %v6500_v10 = vor.u32 %v7977_v63, %v6499_v61  ;;  %4076 = vmatpush.bf16.msra.mxu0 %v6244_v5 }
  0x7c   : > { %v6867_v2 = vld [vmem:[%s8372_s29 + $0xce0] sm:$0xf]  ;;  %v8069_v3 = vld [vmem:[%s8372_s29 + $0xcec] sm:$0xf0]  ;;  %v6628_v13 = vor.u32 %v8009_v1, %v6627_v0  ;;  %4089 = vmatpush.bf16.msra.mxu1 %v6372_v9 }
  0x7d   : > { %v6995_v4 = vld [vmem:[%s8372_s29 + $0xde0] sm:$0xf]  ;;  %v8101_v6 = vld [vmem:[%s8372_s29 + $0xdec] sm:$0xf0]  ;;  %v6868_v14 = vor.u32 %v8069_v3, %v6867_v2  ;;  %4102 = vmatpush.bf16.msra.mxu2 %v6500_v10 }
  0x7e   : > { %v7123_v7 = vld [vmem:[%s8372_s29 + $0xee0] sm:$0xf]  ;;  %v8133_v8 = vld [vmem:[%s8372_s29 + $0xeec] sm:$0xf0]  ;;  %v6996_v15 = vor.u32 %v8101_v6, %v6995_v4  ;;  %4115 = vmatpush.bf16.msra.mxu3 %v6628_v13  ;;  %4077 = vmatmul.bf16.vlgmr.msra.gmra.mxu0 %v8617_v25 }
  0x7f   : > { %v7251_v11 = vld [vmem:[%s8372_s29 + $0xfe0] sm:$0xf]  ;;  %v8165_v12 = vld [vmem:[%s8372_s29 + $0xfec] sm:$0xf0]  ;;  %v7124_v16 = vor.u32 %v8133_v8, %v7123_v7  ;;  %4121 = vmatpush.bf16.msrb.mxu0 %v6868_v14  ;;  %4090 = vmatmul.bf16.vlgmr.msra.gmra.mxu1 %v8628_v32 }
  0x80   : > { %v6851_v18 = vld [vmem:[%s8372_s29 + $0xcc0] sm:$0xf]  ;;  %v8065_v21 = vld [vmem:[%s8372_s29 + $0xccc] sm:$0xf0]  ;;  %v7252_v24 = vor.u32 %v8165_v12, %v7251_v11  ;;  %4134 = vmatpush.bf16.msrb.mxu1 %v6996_v15  ;;  %4103 = vmatmul.bf16.vlgmr.msra.gmra.mxu2 %v8624_v31 }
  0x81   : > { %v6979_v22 = vld [vmem:[%s8372_s29 + $0xdc0] sm:$0xf]  ;;  %v8097_v26 = vld [vmem:[%s8372_s29 + $0xdcc] sm:$0xf0]  ;;  %v6852_v37 = vor.u32 %v8065_v21, %v6851_v18  ;;  %4147 = vmatpush.bf16.msrb.mxu2 %v7124_v16  ;;  %4116 = vmatmul.bf16.vlgmr.msra.gmra.mxu3 %v8634_v36 }
  0x82   : > { %v7107_v29 = vld [vmem:[%s8372_s29 + $0xec0] sm:$0xf]  ;;  %v8129_v30 = vld [vmem:[%s8372_s29 + $0xecc] sm:$0xf0]  ;;  %v6980_v19 = vor.u32 %v8097_v26, %v6979_v22  ;;  %4160 = vmatpush.bf16.msrb.mxu3 %v7252_v24 }
  0x83   : > { %v7235_v35 = vld [vmem:[%s8372_s29 + $0xfc0] sm:$0xf]  ;;  %v8161_v17 = vld [vmem:[%s8372_s29 + $0xfcc] sm:$0xf0]  ;;  %v7108_v38 = vor.u32 %v8129_v30, %v7107_v29  ;;  %4122 = vmatpush.bf16.msrb.mxu0 %v6852_v37 }
  0x84   : > { %v6835_v20 = vld [vmem:[%s8372_s29 + $0xca0] sm:$0xf]  ;;  %v8061_v40 = vld [vmem:[%s8372_s29 + $0xcac] sm:$0xf0]  ;;  %v7236_v44 = vor.u32 %v8161_v17, %v7235_v35  ;;  %4135 = vmatpush.bf16.msrb.mxu1 %v6980_v19 }
  0x85   : > { %v6963_v41 = vld [vmem:[%s8372_s29 + $0xda0] sm:$0xf]  ;;  %v8093_v46 = vld [vmem:[%s8372_s29 + $0xdac] sm:$0xf0]  ;;  %v6836_v50 = vor.u32 %v8061_v40, %v6835_v20  ;;  %4148 = vmatpush.bf16.msrb.mxu2 %v7108_v38 }
  0x86   : > { %v7091_v23 = vld [vmem:[%s8372_s29 + $0xea0] sm:$0xf]  ;;  %v8125_v47 = vld [vmem:[%s8372_s29 + $0xeac] sm:$0xf0]  ;;  %v6964_v51 = vor.u32 %v8093_v46, %v6963_v41  ;;  %4161 = vmatpush.bf16.msrb.mxu3 %v7236_v44 }
  0x87   : > { %v7219_v48 = vld [vmem:[%s8372_s29 + $0xfa0] sm:$0xf]  ;;  %v8157_v49 = vld [vmem:[%s8372_s29 + $0xfac] sm:$0xf0]  ;;  %v7092_v52 = vor.u32 %v8125_v47, %v7091_v23  ;;  %4123 = vmatpush.bf16.msrb.mxu0 %v6836_v50 }
  0x88   : > { %v6819_v53 = vld [vmem:[%s8372_s29 + $0xc80] sm:$0xf]  ;;  %v8057_v54 = vld [vmem:[%s8372_s29 + $0xc8c] sm:$0xf0]  ;;  %v7220_v56 = vor.u32 %v8157_v49, %v7219_v48  ;;  %4136 = vmatpush.bf16.msrb.mxu1 %v6964_v51 }
  0x89   : > { %v6947_v55 = vld [vmem:[%s8372_s29 + $0xd80] sm:$0xf]  ;;  %v8089_v57 = vld [vmem:[%s8372_s29 + $0xd8c] sm:$0xf0]  ;;  %v6820_v62 = vor.u32 %v8057_v54, %v6819_v53  ;;  %4149 = vmatpush.bf16.msrb.mxu2 %v7092_v52 }
  0x8a   : > { %v7075_v58 = vld [vmem:[%s8372_s29 + $0xe80] sm:$0xf]  ;;  %v8121_v59 = vld [vmem:[%s8372_s29 + $0xe8c] sm:$0xf0]  ;;  %v6948_v63 = vor.u32 %v8089_v57, %v6947_v55  ;;  %4162 = vmatpush.bf16.msrb.mxu3 %v7220_v56 }
  0x8b   : > { %v7203_v60 = vld [vmem:[%s8372_s29 + $0xf80] sm:$0xf]  ;;  %v8153_v61 = vld [vmem:[%s8372_s29 + $0xf8c] sm:$0xf0]  ;;  %v7076_v0 = vor.u32 %v8121_v59, %v7075_v58  ;;  %4124 = vmatpush.bf16.msrb.mxu0 %v6820_v62 }
  0x8c   : > { %v6803_v1 = vld [vmem:[%s8372_s29 + $0xc60] sm:$0xf]  ;;  %v8053_v2 = vld [vmem:[%s8372_s29 + $0xc6c] sm:$0xf0]  ;;  %v7204_v4 = vor.u32 %v8153_v61, %v7203_v60  ;;  %4137 = vmatpush.bf16.msrb.mxu1 %v6948_v63 }
  0x8d   : > { %v6931_v3 = vld [vmem:[%s8372_s29 + $0xd60] sm:$0xf]  ;;  %v8085_v5 = vld [vmem:[%s8372_s29 + $0xd6c] sm:$0xf0]  ;;  %v6804_v10 = vor.u32 %v8053_v2, %v6803_v1  ;;  %4150 = vmatpush.bf16.msrb.mxu2 %v7076_v0  ;;  %v7683_v1 = vld [vmem:[%s8372_s29 + $0xe4] sm:$0xf] }
  0x8e   : > { %v7059_v6 = vld [vmem:[%s8372_s29 + $0xe60] sm:$0xf]  ;;  %v8117_v7 = vld [vmem:[%s8372_s29 + $0xe6c] sm:$0xf0]  ;;  %v6932_v11 = vor.u32 %v8085_v5, %v6931_v3  ;;  %4163 = vmatpush.bf16.msrb.mxu3 %v7204_v4  ;;  %v5333_v2 = vld [vmem:[%s8372_s29 + $0xf0] sm:$0xf0] }
  0x8f   : > { %v7187_v8 = vld [vmem:[%s8372_s29 + $0xf60] sm:$0xf]  ;;  %v8149_v9 = vld [vmem:[%s8372_s29 + $0xf6c] sm:$0xf0]  ;;  %v7060_v12 = vor.u32 %v8117_v7, %v7059_v6  ;;  %4125 = vmatpush.bf16.msrb.mxu0 %v6804_v10 }
  0x90   : > { %v6787_v13 = vld [vmem:[%s8372_s29 + $0xc40] sm:$0xf]  ;;  %v8049_v14 = vld [vmem:[%s8372_s29 + $0xc4c] sm:$0xf0]  ;;  %v7188_v16 = vor.u32 %v8149_v9, %v7187_v8  ;;  %4138 = vmatpush.bf16.msrb.mxu1 %v6932_v11 }
  0x91   : > { %v6915_v15 = vld [vmem:[%s8372_s29 + $0xd40] sm:$0xf]  ;;  %v8081_v18 = vld [vmem:[%s8372_s29 + $0xd4c] sm:$0xf0]  ;;  %v6788_v29 = vor.u32 %v8049_v14, %v6787_v13  ;;  %4151 = vmatpush.bf16.msrb.mxu2 %v7060_v12 }
  0x92   : > { %v7043_v21 = vld [vmem:[%s8372_s29 + $0xe40] sm:$0xf]  ;;  %v8113_v22 = vld [vmem:[%s8372_s29 + $0xe4c] sm:$0xf0]  ;;  %v6916_v30 = vor.u32 %v8081_v18, %v6915_v15  ;;  %4164 = vmatpush.bf16.msrb.mxu3 %v7188_v16  ;;  %v5336_v16 = vor.u32 %v7683_v1, %v5333_v2 }
  0x93   : > { %v7171_v24 = vld [vmem:[%s8372_s29 + $0xf40] sm:$0xf]  ;;  %v8145_v26 = vld [vmem:[%s8372_s29 + $0xf4c] sm:$0xf0]  ;;  %v7044_v35 = vor.u32 %v8113_v22, %v7043_v21  ;;  %4126 = vmatpush.bf16.msrb.mxu0 %v6788_v29 }
  0x94   : > { %v6771_v17 = vld [vmem:[%s8372_s29 + $0xc20] sm:$0xf]  ;;  %v8045_v37 = vld [vmem:[%s8372_s29 + $0xc2c] sm:$0xf0]  ;;  %v7172_v38 = vor.u32 %v8145_v26, %v7171_v24  ;;  %4139 = vmatpush.bf16.msrb.mxu1 %v6916_v30  ;;  %v7679_v30 = vld [vmem:[%s8372_s29 + $0xc4] sm:$0xf] }
  0x95   : > { %v6899_v19 = vld [vmem:[%s8372_s29 + $0xd20] sm:$0xf]  ;;  %v8077_v20 = vld [vmem:[%s8372_s29 + $0xd2c] sm:$0xf0]  ;;  %v6772_v47 = vor.u32 %v8045_v37, %v6771_v17  ;;  %4152 = vmatpush.bf16.msrb.mxu2 %v7044_v35  ;;  %v5317_v35 = vld [vmem:[%s8372_s29 + $0xd0] sm:$0xf0] }
  0x96   : > { %v7027_v40 = vld [vmem:[%s8372_s29 + $0xe20] sm:$0xf]  ;;  %v8109_v41 = vld [vmem:[%s8372_s29 + $0xe2c] sm:$0xf0]  ;;  %v6900_v51 = vor.u32 %v8077_v20, %v6899_v19  ;;  %4165 = vmatpush.bf16.msrb.mxu3 %v7172_v38 }
  0x97   : > { %v7155_v44 = vld [vmem:[%s8372_s29 + $0xf20] sm:$0xf]  ;;  %v8141_v46 = vld [vmem:[%s8372_s29 + $0xf2c] sm:$0xf0]  ;;  %v7028_v52 = vor.u32 %v8109_v41, %v7027_v40  ;;  %4127 = vmatpush.bf16.msrb.mxu0 %v6772_v47 }
  0x98   : > { %v6755_v23 = vld [vmem:[%s8372_s29 + $0xc00] sm:$0xf]  ;;  %v8041_v48 = vld [vmem:[%s8372_s29 + $0xc0c] sm:$0xf0]  ;;  %v7156_v56 = vor.u32 %v8141_v46, %v7155_v44  ;;  %4140 = vmatpush.bf16.msrb.mxu1 %v6900_v51  ;;  %v5320_v44 = vor.u32 %v7679_v30, %v5317_v35  ;;  %v7663_v30 = vld [vmem:[%s8372_s29 + $0x44] sm:$0xf] }
  0x99   : > { %v6883_v49 = vld [vmem:[%s8372_s29 + $0xd00] sm:$0xf]  ;;  %v8073_v50 = vld [vmem:[%s8372_s29 + $0xd0c] sm:$0xf0]  ;;  %v6756_v63 = vor.u32 %v8041_v48, %v6755_v23  ;;  %4153 = vmatpush.bf16.msrb.mxu2 %v7028_v52  ;;  %v7675_v48 = vld [vmem:[%s8372_s29 + $0xa4] sm:$0xf] }
  0x9a   : > { %v7011_v53 = vld [vmem:[%s8372_s29 + $0xe00] sm:$0xf]  ;;  %v8105_v54 = vld [vmem:[%s8372_s29 + $0xe0c] sm:$0xf0]  ;;  %v6884_v3 = vor.u32 %v8073_v50, %v6883_v49  ;;  %4166 = vmatpush.bf16.msrb.mxu3 %v7156_v56  ;;  %v5301_v49 = vld [vmem:[%s8372_s29 + $0xb0] sm:$0xf0] }
  0x9b   : > { %v7139_v55 = vld [vmem:[%s8372_s29 + $0xf00] sm:$0xf]  ;;  %v8137_v57 = vld [vmem:[%s8372_s29 + $0xf0c] sm:$0xf0]  ;;  %v7012_v4 = vor.u32 %v8105_v54, %v7011_v53  ;;  %4128 = vmatpush.bf16.msrb.mxu0 %v6756_v63  ;;  %v5304_v56 = vor.u32 %v7675_v48, %v5301_v49  ;;  %v5253_v35 = vld [vmem:[%s8372_s29 + $0x50] sm:$0xf0] }
  0x9c   : > { %v7379_v58 = vld [vmem:[%s8372_s29 + $0x10e0] sm:$0xf]  ;;  %v8197_v59 = vld [vmem:[%s8372_s29 + $0x10ec] sm:$0xf0]  ;;  %v7140_v7 = vor.u32 %v8137_v57, %v7139_v55  ;;  %4141 = vmatpush.bf16.msrb.mxu1 %v6884_v3  ;;  %v7659_v48 = vld [vmem:[%s8372_s29 + $0x24] sm:$0xf] }
  0x9d   : > { %v7507_v60 = vld [vmem:[%s8372_s29 + $0x11e0] sm:$0xf]  ;;  %v8229_v61 = vld [vmem:[%s8372_s29 + $0x11ec] sm:$0xf0]  ;;  %v7380_v8 = vor.u32 %v8197_v59, %v7379_v58  ;;  %4154 = vmatpush.bf16.msrb.mxu2 %v7012_v4  ;;  %v5237_v49 = vld [vmem:[%s8372_s29 + $0x30] sm:$0xf0] }
  0x9e   : > { %v7635_v62 = vld [vmem:[%s8372_s29 + $0x12e0] sm:$0xf]  ;;  %v8261_v0 = vld [vmem:[%s8372_s29 + $0x12ec] sm:$0xf0]  ;;  %v7508_v11 = vor.u32 %v8229_v61, %v7507_v60  ;;  %4167 = vmatpush.bf16.msrb.mxu3 %v7140_v7  ;;  %v7671_v60 = vld [vmem:[%s8372_s29 + $0x84] sm:$0xf] }
  0x9f   : > { %v271_v5 = vld.sshfl [vmem:[#allocation1 + $0x20] sm:$0xff pattern:$0x73625140]  ;;  %v273_v6 = vld.sshfl [vmem:[#allocation1 + $0x30] sm:$0xff pattern:$0x73625140]  ;;  %v7636_v12 = vor.u32 %v8261_v0, %v7635_v62  ;;  %4173 = vmatpush.bf16.msra.mxu0 %v7380_v8 }
  0xa0   : > { %v272_v9 = vld.sshfl [vmem:[#allocation1 + $0x28] sm:$0xff pattern:$0x73625140]  ;;  %v274_v10 = vld.sshfl [vmem:[#allocation1 + $0x38] sm:$0xff pattern:$0x73625140]  ;;  %v8699_v18 = vpack.c.bf16 %v271_v5, %v271_v5  ;;  %v8704_v26 = vpack.c.bf16 %v273_v6, %v273_v6  ;;  %4186 = vmatpush.bf16.msra.mxu1 %v7508_v11 }
  0xa1   : > { %v7363_v13 = vld [vmem:[%s8372_s29 + $0x10c0] sm:$0xf]  ;;  %v8193_v14 = vld [vmem:[%s8372_s29 + $0x10cc] sm:$0xf0]  ;;  %v8706_v29 = vpack.c.bf16 %v272_v9, %v272_v9  ;;  %v8710_v17 = vpack.c.bf16 %v274_v10, %v274_v10  ;;  %4199 = vmatpush.bf16.msra.mxu2 %v7636_v12  ;;  %v5285_v61 = vld [vmem:[%s8372_s29 + $0x90] sm:$0xf0] }
  0xa2   : > { %v7491_v15 = vld [vmem:[%s8372_s29 + $0x11c0] sm:$0xf]  ;;  %v8225_v21 = vld [vmem:[%s8372_s29 + $0x11cc] sm:$0xf0]  ;;  %v7364_v37 = vor.u32 %v8193_v14, %v7363_v13  ;;  %4212 = vmatpush.bf16.msra.mxu3 %v5336_v16  ;;  %4129 = vmatmul.bf16.vlgmr.msrb.gmra.mxu0 %v8699_v18  ;;  %v5288_v4 = vor.u32 %v7671_v60, %v5285_v61  ;;  %v7667_v8 = vld [vmem:[%s8372_s29 + $0x64] sm:$0xf] }
  0xa3   : > { %v7619_v22 = vld [vmem:[%s8372_s29 + $0x12c0] sm:$0xf]  ;;  %v8257_v24 = vld [vmem:[%s8372_s29 + $0x12cc] sm:$0xf0]  ;;  %v7492_v19 = vor.u32 %v8225_v21, %v7491_v15  ;;  %4155 = vmatmul.bf16.vlgmr.msrb.gmra.mxu2 %v8704_v26  ;;  %4142 = vmatmul.bf16.vlgmr.msrb.gmra.mxu1 %v8706_v29  ;;  %v5269_v9 = vld [vmem:[%s8372_s29 + $0x70] sm:$0xf0] }
  0xa4   : > { %v7620_v38 = vor.u32 %v8257_v24, %v7619_v22  ;;  %v7347_v20 = vld [vmem:[%s8372_s29 + $0x10a0] sm:$0xf]  ;;  %v8189_v40 = vld [vmem:[%s8372_s29 + $0x10ac] sm:$0xf0]  ;;  %4168 = vmatmul.bf16.vlgmr.msrb.gmra.mxu3 %v8710_v17  ;;  %4174 = vmatpush.bf16.msra.mxu0 %v7364_v37  ;;  %v5272_v16 = vor.u32 %v7667_v8, %v5269_v9  ;;  %v7655_v60 = vld [vmem:[%s8372_s29 + $0x4] sm:$0xf] }
  0xa5   : > { %v7475_v41 = vld [vmem:[%s8372_s29 + $0x11a0] sm:$0xf]  ;;  %v8221_v46 = vld [vmem:[%s8372_s29 + $0x11ac] sm:$0xf0]  ;;  %v7348_v50 = vor.u32 %v8189_v40, %v7347_v20  ;;  %4187 = vmatpush.bf16.msra.mxu1 %v7492_v19  ;;  %v5221_v61 = vld [vmem:[%s8372_s29 + $0x10] sm:$0xf0] }
  0xa6   : > { %v7603_v23 = vld [vmem:[%s8372_s29 + $0x12a0] sm:$0xf]  ;;  %v8253_v47 = vld [vmem:[%s8372_s29 + $0x12ac] sm:$0xf0]  ;;  %4200 = vmatpush.bf16.msra.mxu2 %v7620_v38  ;;  %v7476_v51 = vor.u32 %v8221_v46, %v7475_v41  ;;  %4213 = vmatpush.bf16.msra.mxu3 %v5320_v44  ;;  %v5256_v44 = vor.u32 %v7663_v30, %v5253_v35  ;;  %v5845_v8 = vld [vmem:[%s8372_s29 + $0x4f0] sm:$0xf0] }
  0xa7   : > { %v7604_v52 = vor.u32 %v8253_v47, %v7603_v23  ;;  %v7331_v53 = vld [vmem:[%s8372_s29 + $0x1080] sm:$0xf]  ;;  %v8185_v54 = vld [vmem:[%s8372_s29 + $0x108c] sm:$0xf0]  ;;  %v5573_v35 = vld [vmem:[%s8372_s29 + $0x2d0] sm:$0xf0] }
  0xa8   : > { %v7459_v55 = vld [vmem:[%s8372_s29 + $0x1180] sm:$0xf]  ;;  %v8217_v57 = vld [vmem:[%s8372_s29 + $0x118c] sm:$0xf0]  ;;  %4175 = vmatpush.bf16.msra.mxu0 %v7348_v50  ;;  %v7332_v62 = vor.u32 %v8185_v54, %v7331_v53 }
  0xa9   : > { %v7587_v58 = vld [vmem:[%s8372_s29 + $0x1280] sm:$0xf]  ;;  %v8249_v59 = vld [vmem:[%s8372_s29 + $0x128c] sm:$0xf0]  ;;  %4188 = vmatpush.bf16.msra.mxu1 %v7476_v51  ;;  %v7460_v63 = vor.u32 %v8217_v57, %v7459_v55 }
  0xaa   : > { %4201 = vmatpush.bf16.msra.mxu2 %v7604_v52  ;;  %v7588_v0 = vor.u32 %v8249_v59, %v7587_v58  ;;  %v7315_v1 = vld [vmem:[%s8372_s29 + $0x1060] sm:$0xf]  ;;  %v8181_v2 = vld [vmem:[%s8372_s29 + $0x106c] sm:$0xf0]  ;;  %4214 = vmatpush.bf16.msra.mxu3 %v5304_v56  ;;  %v5240_v59 = vor.u32 %v7659_v48, %v5237_v49  ;;  %v5429_v48 = vld [vmem:[%s8372_s29 + $0x1b0] sm:$0xf0] }
  0xab   : > { %v7443_v3 = vld [vmem:[%s8372_s29 + $0x1160] sm:$0xf]  ;;  %v8213_v5 = vld [vmem:[%s8372_s29 + $0x116c] sm:$0xf0]  ;;  %v7316_v10 = vor.u32 %v8181_v2, %v7315_v1  ;;  %v5589_v1 = vld [vmem:[%s8372_s29 + $0x2f0] sm:$0xf0] }
  0xac   : > { %v7571_v6 = vld [vmem:[%s8372_s29 + $0x1260] sm:$0xf]  ;;  %v8245_v7 = vld [vmem:[%s8372_s29 + $0x126c] sm:$0xf0]  ;;  %4176 = vmatpush.bf16.msra.mxu0 %v7332_v62  ;;  %v7444_v11 = vor.u32 %v8213_v5, %v7443_v3  ;;  %v7715_v62 = vld [vmem:[%s8372_s29 + $0x1e4] sm:$0xf] }
  0xad   : > { %4189 = vmatpush.bf16.msra.mxu1 %v7460_v63  ;;  %v7572_v12 = vor.u32 %v8245_v7, %v7571_v6  ;;  %v7299_v13 = vld [vmem:[%s8372_s29 + $0x1040] sm:$0xf]  ;;  %v8177_v14 = vld [vmem:[%s8372_s29 + $0x104c] sm:$0xf0]  ;;  %v5461_v63 = vld [vmem:[%s8372_s29 + $0x1f0] sm:$0xf0] }
  0xae   : > { %4202 = vmatpush.bf16.msra.mxu2 %v7588_v0  ;;  %v7427_v15 = vld [vmem:[%s8372_s29 + $0x1140] sm:$0xf]  ;;  %4215 = vmatpush.bf16.msra.mxu3 %v5288_v4  ;;  %v8209_v21 = vld [vmem:[%s8372_s29 + $0x114c] sm:$0xf0]  ;;  %v7300_v37 = vor.u32 %v8177_v14, %v7299_v13  ;;  %v7747_v0 = vld [vmem:[%s8372_s29 + $0x2e4] sm:$0xf] }
  0xaf   : > { %v7555_v22 = vld [vmem:[%s8372_s29 + $0x1240] sm:$0xf]  ;;  %v8241_v24 = vld [vmem:[%s8372_s29 + $0x124c] sm:$0xf0]  ;;  %v7428_v19 = vor.u32 %v8209_v21, %v7427_v15  ;;  %v7779_v3 = vld [vmem:[%s8372_s29 + $0x3e4] sm:$0xf]  ;;  %v5592_v14 = vor.u32 %v7747_v0, %v5589_v1 }
  0xb0   : > { %4177 = vmatpush.bf16.msra.mxu0 %v7316_v10  ;;  %v7556_v38 = vor.u32 %v8241_v24, %v7555_v22  ;;  %v7283_v20 = vld [vmem:[%s8372_s29 + $0x1020] sm:$0xf]  ;;  %v8173_v40 = vld [vmem:[%s8372_s29 + $0x102c] sm:$0xf0]  ;;  %v5717_v4 = vld [vmem:[%s8372_s29 + $0x3f0] sm:$0xf0]  ;;  %v5224_v10 = vor.u32 %v7655_v60, %v5221_v61 }
  0xb1   : > { %4190 = vmatpush.bf16.msra.mxu1 %v7444_v11  ;;  %v7411_v41 = vld [vmem:[%s8372_s29 + $0x1120] sm:$0xf]  ;;  %v8205_v46 = vld [vmem:[%s8372_s29 + $0x112c] sm:$0xf0]  ;;  %v7284_v50 = vor.u32 %v8173_v40, %v7283_v20  ;;  %v7811_v5 = vld [vmem:[%s8372_s29 + $0x4e4] sm:$0xf]  ;;  %v5464_v11 = vor.u32 %v7715_v62, %v5461_v63  ;;  %v5720_v15 = vor.u32 %v7779_v3, %v5717_v4 }
  0xb2   : > { %4203 = vmatpush.bf16.msra.mxu2 %v7572_v12  ;;  %4216 = vmatpush.bf16.msra.mxu3 %v5272_v16  ;;  %v7539_v23 = vld [vmem:[%s8372_s29 + $0x1220] sm:$0xf]  ;;  %v8237_v47 = vld [vmem:[%s8372_s29 + $0x122c] sm:$0xf0]  ;;  %v7412_v54 = vor.u32 %v8205_v46, %v7411_v41  ;;  %v7711_v16 = vld [vmem:[%s8372_s29 + $0x1c4] sm:$0xf]  ;;  %v5848_v24 = vor.u32 %v7811_v5, %v5845_v8 }
  0xb3   : > { %v7267_v51 = vld [vmem:[%s8372_s29 + $0x1000] sm:$0xf]  ;;  %v8169_v52 = vld [vmem:[%s8372_s29 + $0x100c] sm:$0xf0]  ;;  %v7540_v55 = vor.u32 %v8237_v47, %v7539_v23  ;;  %v5445_v21 = vld [vmem:[%s8372_s29 + $0x1d0] sm:$0xf0] }
  0xb4   : > { %4178 = vmatpush.bf16.msra.mxu0 %v7300_v37  ;;  %v7395_v53 = vld [vmem:[%s8372_s29 + $0x1100] sm:$0xf]  ;;  %v8201_v56 = vld [vmem:[%s8372_s29 + $0x110c] sm:$0xf0]  ;;  %v7268_v2 = vor.u32 %v8169_v52, %v7267_v51  ;;  %v7743_v22 = vld [vmem:[%s8372_s29 + $0x2c4] sm:$0xf] }
  0xb5   : > { %4191 = vmatpush.bf16.msra.mxu1 %v7428_v19  ;;  %v7523_v57 = vld [vmem:[%s8372_s29 + $0x1200] sm:$0xf]  ;;  %v8233_v58 = vld [vmem:[%s8372_s29 + $0x120c] sm:$0xf0]  ;;  %v7396_v6 = vor.u32 %v8201_v56, %v7395_v53  ;;  %v7775_v37 = vld [vmem:[%s8372_s29 + $0x3c4] sm:$0xf]  ;;  %v5576_v46 = vor.u32 %v7743_v22, %v5573_v35 }
  0xb6   : > { %4204 = vmatpush.bf16.msra.mxu2 %v7556_v38  ;;  %4217 = vmatpush.bf16.msra.mxu3 %v5256_v44  ;;  %v7524_v7 = vor.u32 %v8233_v58, %v7523_v57  ;;  %v276_v9 = vld.sshfl [vmem:[#allocation1] sm:$0xff pattern:$0x73625140]  ;;  %v278_v12 = vld.sshfl [vmem:[#allocation1 + $0x10] sm:$0xff pattern:$0x73625140]  ;;  %v5448_v44 = vor.u32 %v7711_v16, %v5445_v21 }
  0xb7   : > { %v277_v13 = vld.sshfl [vmem:[#allocation1 + $0x8] sm:$0xff pattern:$0x73625140]  ;;  %v8775_v30 = vpack.c.bf16 %v276_v9, %v276_v9  ;;  %v5701_v19 = vld [vmem:[%s8372_s29 + $0x3d0] sm:$0xf0]  ;;  %v8780_v38 = vpack.c.bf16 %v278_v12, %v278_v12 }
  0xb8   : > { %4179 = vmatpush.bf16.msra.mxu0 %v7284_v50  ;;  %v8782_v20 = vpack.c.bf16 %v277_v13, %v277_v13  ;;  %v7807_v40 = vld [vmem:[%s8372_s29 + $0x4c4] sm:$0xf]  ;;  %v5829_v41 = vld [vmem:[%s8372_s29 + $0x4d0] sm:$0xf0]  ;;  %v5704_v23 = vor.u32 %v7775_v37, %v5701_v19 }
  0xb9   : > { %4192 = vmatpush.bf16.msra.mxu1 %v7412_v54  ;;  %v7707_v47 = vld [vmem:[%s8372_s29 + $0x1a4] sm:$0xf]  ;;  %v5832_v50 = vor.u32 %v7807_v40, %v5829_v41  ;;  %v5557_v51 = vld [vmem:[%s8372_s29 + $0x2b0] sm:$0xf0] }
  0xba   : > { %4205 = vmatpush.bf16.msra.mxu2 %v7540_v55  ;;  %4218 = vmatpush.bf16.msra.mxu3 %v5240_v59  ;;  %v7739_v49 = vld [vmem:[%s8372_s29 + $0x2a4] sm:$0xf]  ;;  %v5685_v53 = vld [vmem:[%s8372_s29 + $0x3b0] sm:$0xf0]  ;;  %v5432_v56 = vor.u32 %v7707_v47, %v5429_v48 }
  0xbb   : > { %v7771_v52 = vld [vmem:[%s8372_s29 + $0x3a4] sm:$0xf]  ;;  %v5813_v55 = vld [vmem:[%s8372_s29 + $0x4b0] sm:$0xf0]  ;;  %v5560_v57 = vor.u32 %v7739_v49, %v5557_v51 }
  0xbc   : > { %4180 = vmatpush.bf16.msra.mxu0 %v7268_v2  ;;  %v7803_v54 = vld [vmem:[%s8372_s29 + $0x4a4] sm:$0xf]  ;;  %v5688_v58 = vor.u32 %v7771_v52, %v5685_v53  ;;  %v5413_v60 = vld [vmem:[%s8372_s29 + $0x190] sm:$0xf0] }
  0xbd   : > { %4193 = vmatpush.bf16.msra.mxu1 %v7396_v6  ;;  %v7703_v59 = vld [vmem:[%s8372_s29 + $0x184] sm:$0xf]  ;;  %v5816_v62 = vor.u32 %v7803_v54, %v5813_v55  ;;  %v5541_v63 = vld [vmem:[%s8372_s29 + $0x290] sm:$0xf0] }
  0xbe   : > { %4206 = vmatpush.bf16.msra.mxu2 %v7524_v7  ;;  %4219 = vmatpush.bf16.msra.mxu3 %v5224_v10  ;;  %v7735_v61 = vld [vmem:[%s8372_s29 + $0x284] sm:$0xf]  ;;  %v5669_v1 = vld [vmem:[%s8372_s29 + $0x390] sm:$0xf0]  ;;  %v5416_v4 = vor.u32 %v7703_v59, %v5413_v60 }
  0xbf   : > { %4181 = vmatmul.bf16.vlgmr.msra.gmra.mxu0 %v8775_v30  ;;  %v7767_v0 = vld [vmem:[%s8372_s29 + $0x384] sm:$0xf]  ;;  %v5797_v3 = vld [vmem:[%s8372_s29 + $0x490] sm:$0xf0]  ;;  %v5544_v5 = vor.u32 %v7735_v61, %v5541_v63 }
  0xc0   : > { %4225 = vmatpush.bf16.msrb.mxu0 %v5464_v11  ;;  %4194 = vmatmul.bf16.vlgmr.msra.gmra.mxu1 %v8782_v20  ;;  %v7799_v2 = vld [vmem:[%s8372_s29 + $0x484] sm:$0xf]  ;;  %v5672_v6 = vor.u32 %v7767_v0, %v5669_v1  ;;  %v5397_v8 = vld [vmem:[%s8372_s29 + $0x170] sm:$0xf0] }
  0xc1   : > { %4238 = vmatpush.bf16.msrb.mxu1 %v5592_v14  ;;  %4207 = vmatmul.bf16.vlgmr.msra.gmra.mxu2 %v8780_v38  ;;  %v7699_v7 = vld [vmem:[%s8372_s29 + $0x164] sm:$0xf]  ;;  %v5800_v10 = vor.u32 %v7799_v2, %v5797_v3  ;;  %v5525_v11 = vld [vmem:[%s8372_s29 + $0x270] sm:$0xf0] }
  0xc2   : > { %4251 = vmatpush.bf16.msrb.mxu2 %v5720_v15  ;;  %4264 = vmatpush.bf16.msrb.mxu3 %v5848_v24  ;;  %v7731_v9 = vld [vmem:[%s8372_s29 + $0x264] sm:$0xf]  ;;  %v5653_v13 = vld [vmem:[%s8372_s29 + $0x370] sm:$0xf0]  ;;  %v5400_v16 = vor.u32 %v7699_v7, %v5397_v8 }
  0xc3   : > { %4220 = vmatmul.bf16.vlgmr.msra.gmra.mxu3 %v8481_v28  ;;  %v7763_v12 = vld [vmem:[%s8372_s29 + $0x364] sm:$0xf]  ;;  %v5781_v15 = vld [vmem:[%s8372_s29 + $0x470] sm:$0xf0]  ;;  %v5528_v21 = vor.u32 %v7731_v9, %v5525_v11 }
  0xc4   : > { %4226 = vmatpush.bf16.msrb.mxu0 %v5448_v44  ;;  %v7795_v14 = vld [vmem:[%s8372_s29 + $0x464] sm:$0xf]  ;;  %v5656_v22 = vor.u32 %v7763_v12, %v5653_v13  ;;  %v5381_v35 = vld [vmem:[%s8372_s29 + $0x150] sm:$0xf0] }
  0xc5   : > { %4239 = vmatpush.bf16.msrb.mxu1 %v5576_v46  ;;  %v7695_v24 = vld [vmem:[%s8372_s29 + $0x144] sm:$0xf]  ;;  %v5784_v19 = vor.u32 %v7795_v14, %v5781_v15  ;;  %v5509_v40 = vld [vmem:[%s8372_s29 + $0x250] sm:$0xf0] }
  0xc6   : > { %4252 = vmatpush.bf16.msrb.mxu2 %v5704_v23  ;;  %4265 = vmatpush.bf16.msrb.mxu3 %v5832_v50  ;;  %v7727_v37 = vld [vmem:[%s8372_s29 + $0x244] sm:$0xf]  ;;  %v5637_v44 = vld [vmem:[%s8372_s29 + $0x350] sm:$0xf0]  ;;  %v5384_v47 = vor.u32 %v7695_v24, %v5381_v35 }
  0xc7   : > { %v7759_v41 = vld [vmem:[%s8372_s29 + $0x344] sm:$0xf]  ;;  %v5765_v23 = vld [vmem:[%s8372_s29 + $0x450] sm:$0xf0]  ;;  %v5512_v48 = vor.u32 %v7727_v37, %v5509_v40 }
  0xc8   : > { %4227 = vmatpush.bf16.msrb.mxu0 %v5432_v56  ;;  %v7791_v46 = vld [vmem:[%s8372_s29 + $0x444] sm:$0xf]  ;;  %v5640_v49 = vor.u32 %v7759_v41, %v5637_v44  ;;  %v5365_v51 = vld [vmem:[%s8372_s29 + $0x130] sm:$0xf0] }
  0xc9   : > { %4240 = vmatpush.bf16.msrb.mxu1 %v5560_v57  ;;  %v7691_v50 = vld [vmem:[%s8372_s29 + $0x124] sm:$0xf]  ;;  %v5768_v53 = vor.u32 %v7791_v46, %v5765_v23  ;;  %v5493_v54 = vld [vmem:[%s8372_s29 + $0x230] sm:$0xf0]  ;;  %v3974_v59 = vpop.f32.mrf.mxu0 }
  0xca   : > { %4253 = vmatpush.bf16.msrb.mxu2 %v5688_v58  ;;  %4266 = vmatpush.bf16.msrb.mxu3 %v5816_v62  ;;  %v7723_v52 = vld [vmem:[%s8372_s29 + $0x224] sm:$0xf]  ;;  %v5621_v56 = vld [vmem:[%s8372_s29 + $0x330] sm:$0xf0]  ;;  %v5368_v60 = vor.u32 %v7691_v50, %v5365_v51  ;;  %v3987_v63 = vpop.f32.mrf.mxu1 }
  0xcb   : > { %v7755_v55 = vld [vmem:[%s8372_s29 + $0x324] sm:$0xf]  ;;  %v5749_v58 = vld [vmem:[%s8372_s29 + $0x430] sm:$0xf0]  ;;  %v5496_v0 = vor.u32 %v7723_v52, %v5493_v54 }
  0xcc   : > { %4228 = vmatpush.bf16.msrb.mxu0 %v5416_v4  ;;  %v7787_v57 = vld [vmem:[%s8372_s29 + $0x424] sm:$0xf]  ;;  %v5349_v62 = vld [vmem:[%s8372_s29 + $0x110] sm:$0xf0]  ;;  %v5624_v1 = vor.u32 %v7755_v55, %v5621_v56 }
  0xcd   : > { %4241 = vmatpush.bf16.msrb.mxu1 %v5544_v5  ;;  %v7687_v61 = vld [vmem:[%s8372_s29 + $0x104] sm:$0xf]  ;;  %v5477_v3 = vld [vmem:[%s8372_s29 + $0x210] sm:$0xf0]  ;;  %v3988_v5 = vadd.f32 %v3987_v63, %v3974_v59 }
  0xce   : > { %4254 = vmatpush.bf16.msrb.mxu2 %v5672_v6  ;;  %4267 = vmatpush.bf16.msrb.mxu3 %v5800_v10  ;;  %v7719_v2 = vld [vmem:[%s8372_s29 + $0x204] sm:$0xf]  ;;  %v5752_v6 = vor.u32 %v7787_v57, %v5749_v58  ;;  %v5605_v7 = vld [vmem:[%s8372_s29 + $0x310] sm:$0xf0]  ;;  %v5352_v14 = vor.u32 %v7687_v61, %v5349_v62  ;;  %v4013_v44 = vpop.f32.mrf.mxu3 }
  0xcf   : > { %v7751_v4 = vld [vmem:[%s8372_s29 + $0x304] sm:$0xf]  ;;  %v5733_v9 = vld [vmem:[%s8372_s29 + $0x410] sm:$0xf0]  ;;  %v4000_v13 = vpop.f32.mrf.mxu2  ;;  %v5480_v24 = vor.u32 %v7719_v2, %v5477_v3 }
  0xd0   : > { %4229 = vmatpush.bf16.msrb.mxu0 %v5400_v16  ;;  %v7783_v8 = vld [vmem:[%s8372_s29 + $0x404] sm:$0xf]  ;;  %v5973_v11 = vld [vmem:[%s8372_s29 + $0x5f0] sm:$0xf0]  ;;  %v5608_v35 = vor.u32 %v7751_v4, %v5605_v7 }
  0xd1   : > { %4242 = vmatpush.bf16.msrb.mxu1 %v5528_v21  ;;  %v7843_v10 = vld [vmem:[%s8372_s29 + $0x5e4] sm:$0xf]  ;;  %v6101_v15 = vld [vmem:[%s8372_s29 + $0x6f0] sm:$0xf0]  ;;  %v5736_v40 = vor.u32 %v7783_v8, %v5733_v9  ;;  %v3976_v51 = vpop.f32.mrf.mxu0 }
  0xd2   : > { %4255 = vmatpush.bf16.msrb.mxu2 %v5656_v22  ;;  %4268 = vmatpush.bf16.msrb.mxu3 %v5784_v19  ;;  %v7875_v12 = vld [vmem:[%s8372_s29 + $0x6e4] sm:$0xf]  ;;  %v6229_v21 = vld [vmem:[%s8372_s29 + $0x7f0] sm:$0xf0]  ;;  %v4001_v22 = vadd.f32 %v4000_v13, %v3988_v5  ;;  %v5976_v41 = vor.u32 %v7843_v10, %v5973_v11  ;;  %v3989_v56 = vpop.f32.mrf.mxu1 }
  0xd3   : > { %v7907_v16 = vld [vmem:[%s8372_s29 + $0x7e4] sm:$0xf]  ;;  %v6357_v19 = vld [vmem:[%s8372_s29 + $0x8f0] sm:$0xf0]  ;;  %v6104_v46 = vor.u32 %v7875_v12, %v6101_v15 }
  0xd4   : > { %4230 = vmatpush.bf16.msrb.mxu0 %v5384_v47  ;;  %v7939_v37 = vld [vmem:[%s8372_s29 + $0x8e4] sm:$0xf]  ;;  %v6232_v23 = vor.u32 %v7907_v16, %v6229_v21  ;;  %v4014_v50 = vadd.f32 %v4013_v44, %v4001_v22  ;;  %v6213_v55 = vld [vmem:[%s8372_s29 + $0x7d0] sm:$0xf0] }
  0xd5   : > { %4243 = vmatpush.bf16.msrb.mxu1 %v5512_v48  ;;  %v7839_v47 = vld [vmem:[%s8372_s29 + $0x5c4] sm:$0xf]  ;;  %v5957_v48 = vld [vmem:[%s8372_s29 + $0x5d0] sm:$0xf0]  ;;  %v6360_v52 = vor.u32 %v7939_v37, %v6357_v19 }
  0xd6   : > { %4256 = vmatpush.bf16.msrb.mxu2 %v5640_v49  ;;  %4269 = vmatpush.bf16.msrb.mxu3 %v5768_v53  ;;  %v7871_v49 = vld [vmem:[%s8372_s29 + $0x6c4] sm:$0xf]  ;;  %v6085_v53 = vld [vmem:[%s8372_s29 + $0x6d0] sm:$0xf0]  ;;  %v5960_v59 = vor.u32 %v7839_v47, %v5957_v48  ;;  %v4015_v9 = vpop.f32.mrf.mxu3 }
  0xd7   : > { %v7903_v54 = vld [vmem:[%s8372_s29 + $0x7c4] sm:$0xf]  ;;  %v6341_v58 = vld [vmem:[%s8372_s29 + $0x8d0] sm:$0xf0] }
  0xd8   : > { %4231 = vmatpush.bf16.msrb.mxu0 %v5368_v60  ;;  %v7935_v57 = vld [vmem:[%s8372_s29 + $0x8c4] sm:$0xf]  ;;  %v6088_v60 = vor.u32 %v7871_v49, %v6085_v53  ;;  %v6216_v61 = vor.u32 %v7903_v54, %v6213_v55  ;;  %v5941_v63 = vld [vmem:[%s8372_s29 + $0x5b0] sm:$0xf0] }
  0xd9   : > { %4244 = vmatpush.bf16.msrb.mxu1 %v5496_v0  ;;  %v7835_v62 = vld [vmem:[%s8372_s29 + $0x5a4] sm:$0xf]  ;;  %v6344_v2 = vor.u32 %v7935_v57, %v6341_v58  ;;  %v6069_v3 = vld [vmem:[%s8372_s29 + $0x6b0] sm:$0xf0] }
  0xda   : > { %4257 = vmatpush.bf16.msrb.mxu2 %v5624_v1  ;;  %4270 = vmatpush.bf16.msrb.mxu3 %v5752_v6  ;;  %v7867_v0 = vld [vmem:[%s8372_s29 + $0x6a4] sm:$0xf]  ;;  %v4002_v1 = vpop.f32.mrf.mxu2  ;;  %v6197_v5 = vld [vmem:[%s8372_s29 + $0x7b0] sm:$0xf0]  ;;  %v5944_v8 = vor.u32 %v7835_v62, %v5941_v63 }
  0xdb   : > { %v7899_v4 = vld [vmem:[%s8372_s29 + $0x7a4] sm:$0xf]  ;;  %v6325_v7 = vld [vmem:[%s8372_s29 + $0x8b0] sm:$0xf0]  ;;  %v6072_v10 = vor.u32 %v7867_v0, %v6069_v3 }
  0xdc   : > { %4232 = vmatpush.bf16.msrb.mxu0 %v5352_v14  ;;  %v7931_v6 = vld [vmem:[%s8372_s29 + $0x8a4] sm:$0xf]  ;;  %v6200_v11 = vor.u32 %v7899_v4, %v6197_v5  ;;  %v5925_v13 = vld [vmem:[%s8372_s29 + $0x590] sm:$0xf0] }
  0xdd   : > { %4245 = vmatpush.bf16.msrb.mxu1 %v5480_v24  ;;  %v7831_v12 = vld [vmem:[%s8372_s29 + $0x584] sm:$0xf]  ;;  %v6328_v15 = vor.u32 %v7931_v6, %v6325_v7  ;;  %v6053_v16 = vld [vmem:[%s8372_s29 + $0x690] sm:$0xf0]  ;;  %v4026_v19 = vpop.f32.mrf.mxu0 }
  0xde   : > { %4258 = vmatpush.bf16.msrb.mxu2 %v5608_v35  ;;  %4271 = vmatpush.bf16.msrb.mxu3 %v5736_v40  ;;  %v7863_v14 = vld [vmem:[%s8372_s29 + $0x684] sm:$0xf]  ;;  %v6181_v22 = vld [vmem:[%s8372_s29 + $0x790] sm:$0xf0]  ;;  %v5928_v37 = vor.u32 %v7831_v12, %v5925_v13  ;;  %v4027_v47 = vadd.f32 %v4026_v19, %v4014_v50 }
  0xdf   : > { %4233 = vmatmul.bf16.vlgmr.msrb.gmra.mxu0 %v8487_v34  ;;  %v7895_v21 = vld [vmem:[%s8372_s29 + $0x784] sm:$0xf]  ;;  %v6309_v35 = vld [vmem:[%s8372_s29 + $0x890] sm:$0xf0]  ;;  %v6056_v40 = vor.u32 %v7863_v14, %v6053_v16  ;;  %v4039_v48 = vpop.f32.mrf.mxu1 }
  0xe0   : > { %4277 = vmatpush.bf16.msra.mxu0 %v5976_v41  ;;  %4246 = vmatmul.bf16.vlgmr.msrb.gmra.mxu1 %v8479_v27  ;;  %v7927_v24 = vld [vmem:[%s8372_s29 + $0x884] sm:$0xf]  ;;  %v6184_v41 = vor.u32 %v7895_v21, %v6181_v22  ;;  %v6037_v51 = vld [vmem:[%s8372_s29 + $0x670] sm:$0xf0]  ;;  %v4040_v56 = vadd.f32 %v4039_v48, %v4027_v47 }
  0xe1   : > { %4290 = vmatpush.bf16.msra.mxu1 %v6104_v46  ;;  %4259 = vmatmul.bf16.vlgmr.msrb.gmra.mxu2 %v8485_v33  ;;  %v7827_v44 = vld [vmem:[%s8372_s29 + $0x564] sm:$0xf]  ;;  %v5909_v46 = vld [vmem:[%s8372_s29 + $0x570] sm:$0xf0]  ;;  %v6312_v49 = vor.u32 %v7927_v24, %v6309_v35 }
  0xe2   : > { %4303 = vmatpush.bf16.msra.mxu2 %v6232_v23  ;;  %4316 = vmatpush.bf16.msra.mxu3 %v6360_v52  ;;  %v7859_v23 = vld [vmem:[%s8372_s29 + $0x664] sm:$0xf]  ;;  %v6165_v53 = vld [vmem:[%s8372_s29 + $0x770] sm:$0xf0]  ;;  %v5912_v57 = vor.u32 %v7827_v44, %v5909_v46 }
  0xe3   : > { %4272 = vmatmul.bf16.vlgmr.msrb.gmra.mxu3 %v8537_v42  ;;  %v7891_v52 = vld [vmem:[%s8372_s29 + $0x764] sm:$0xf]  ;;  %v6293_v55 = vld [vmem:[%s8372_s29 + $0x870] sm:$0xf0]  ;;  %v6040_v50 = vor.u32 %v7859_v23, %v6037_v51 }
  0xe4   : > { %4278 = vmatpush.bf16.msra.mxu0 %v5960_v59  ;;  %v7923_v54 = vld [vmem:[%s8372_s29 + $0x864] sm:$0xf]  ;;  %v6168_v58 = vor.u32 %v7891_v52, %v6165_v53  ;;  %v4052_v62 = vpop.f32.mrf.mxu2  ;;  %v6021_v0 = vld [vmem:[%s8372_s29 + $0x650] sm:$0xf0]  ;;  %v4065_v4 = vpop.f32.mrf.mxu3 }
  0xe5   : > { %4291 = vmatpush.bf16.msra.mxu1 %v6088_v60  ;;  %v7823_v59 = vld [vmem:[%s8372_s29 + $0x544] sm:$0xf]  ;;  %v5893_v60 = vld [vmem:[%s8372_s29 + $0x550] sm:$0xf0]  ;;  %v6296_v63 = vor.u32 %v7923_v54, %v6293_v55  ;;  %v4053_v3 = vadd.f32 %v4052_v62, %v4040_v56  ;;  %v4028_v9 = vpop.f32.mrf.mxu0 }
  0xe6   : > { %4304 = vmatpush.bf16.msra.mxu2 %v6216_v61  ;;  %4317 = vmatpush.bf16.msra.mxu3 %v6344_v2  ;;  %v7855_v61 = vld [vmem:[%s8372_s29 + $0x644] sm:$0xf]  ;;  %v6149_v2 = vld [vmem:[%s8372_s29 + $0x750] sm:$0xf0]  ;;  %v5896_v7 = vor.u32 %v7823_v59, %v5893_v60 }
  0xe7   : > { %v7887_v1 = vld [vmem:[%s8372_s29 + $0x744] sm:$0xf]  ;;  %v6277_v6 = vld [vmem:[%s8372_s29 + $0x850] sm:$0xf0] }
  0xe8   : > { %4279 = vmatpush.bf16.msra.mxu0 %v5944_v8  ;;  %v7919_v5 = vld [vmem:[%s8372_s29 + $0x844] sm:$0xf]  ;;  %v8890_v8 = vadd.f32 %v4065_v4, %v4053_v3  ;;  %v5877_v13 = vld [vmem:[%s8372_s29 + $0x530] sm:$0xf0] }
  0xe9   : > { %4292 = vmatpush.bf16.msra.mxu1 %v6072_v10  ;;  %v6024_v10 = vor.u32 %v7855_v61, %v6021_v0  ;;  %v7819_v12 = vld [vmem:[%s8372_s29 + $0x524] sm:$0xf]  ;;  %v6280_v16 = vor.u32 %v7919_v5, %v6277_v6  ;;  %v6005_v21 = vld [vmem:[%s8372_s29 + $0x630] sm:$0xf0] }
  0xea   : > { %4305 = vmatpush.bf16.msra.mxu2 %v6200_v11  ;;  %4318 = vmatpush.bf16.msra.mxu3 %v6328_v15  ;;  %v6152_v11 = vor.u32 %v7887_v1, %v6149_v2  ;;  %v7851_v14 = vld [vmem:[%s8372_s29 + $0x624] sm:$0xf]  ;;  %v4041_v15 = vpop.f32.mrf.mxu1  ;;  %v6133_v24 = vld [vmem:[%s8372_s29 + $0x730] sm:$0xf0]  ;;  %v5880_v19 = vor.u32 %v7819_v12, %v5877_v13 }
  0xeb   : > { %v7883_v22 = vld [vmem:[%s8372_s29 + $0x724] sm:$0xf]  ;;  %v6008_v44 = vor.u32 %v7851_v14, %v6005_v21  ;;  %v5989_v47 = vld [vmem:[%s8372_s29 + $0x610] sm:$0xf0] }
  0xec   : > { %4280 = vmatpush.bf16.msra.mxu0 %v5928_v37  ;;  %v7915_v35 = vld [vmem:[%s8372_s29 + $0x824] sm:$0xf]  ;;  %v6261_v37 = vld [vmem:[%s8372_s29 + $0x830] sm:$0xf0]  ;;  %v6136_v46 = vor.u32 %v7883_v22, %v6133_v24  ;;  %v4067_v55 = vpop.f32.mrf.mxu3 }
  0xed   : > { %4293 = vmatpush.bf16.msra.mxu1 %v6056_v40  ;;  %v7815_v40 = vld [vmem:[%s8372_s29 + $0x504] sm:$0xf]  ;;  %v6264_v51 = vor.u32 %v7915_v35, %v6261_v37  ;;  %v6117_v52 = vld [vmem:[%s8372_s29 + $0x710] sm:$0xf0] }
  0xee   : > { %4306 = vmatpush.bf16.msra.mxu2 %v6184_v41  ;;  %4319 = vmatpush.bf16.msra.mxu3 %v6312_v49  ;;  %v5861_v41 = vld [vmem:[%s8372_s29 + $0x510] sm:$0xf0]  ;;  %v7847_v23 = vld [vmem:[%s8372_s29 + $0x604] sm:$0xf]  ;;  %v4054_v49 = vpop.f32.mrf.mxu2 }
  0xef   : > { %v7879_v48 = vld [vmem:[%s8372_s29 + $0x704] sm:$0xf]  ;;  %v6245_v54 = vld [vmem:[%s8372_s29 + $0x810] sm:$0xf0]  ;;  %v5992_v62 = vor.u32 %v7847_v23, %v5989_v47 }
  0xf0   : > { %4281 = vmatpush.bf16.msra.mxu0 %v5912_v57  ;;  %v7911_v53 = vld [vmem:[%s8372_s29 + $0x804] sm:$0xf]  ;;  %v6485_v57 = vld [vmem:[%s8372_s29 + $0x9f0] sm:$0xf0] }
  0xf1   : > { %4294 = vmatpush.bf16.msra.mxu1 %v6040_v50  ;;  %v7971_v56 = vld [vmem:[%s8372_s29 + $0x9e4] sm:$0xf]  ;;  %v6613_v59 = vld [vmem:[%s8372_s29 + $0xaf0] sm:$0xf0]  ;;  %v6248_v2 = vor.u32 %v7911_v53, %v6245_v54 }
  0xf2   : > { %4307 = vmatpush.bf16.msra.mxu2 %v6168_v58  ;;  %4320 = vmatpush.bf16.msra.mxu3 %v6296_v63  ;;  %v8003_v50 = vld [vmem:[%s8372_s29 + $0xae4] sm:$0xf]  ;;  %v5864_v58 = vor.u32 %v7815_v40, %v5861_v41  ;;  %v6741_v61 = vld [vmem:[%s8372_s29 + $0xbf0] sm:$0xf0]  ;;  %v6120_v63 = vor.u32 %v7879_v48, %v6117_v52  ;;  %v6488_v3 = vor.u32 %v7971_v56, %v6485_v57 }
  0xf3   : > { %v8035_v60 = vld [vmem:[%s8372_s29 + $0xbe4] sm:$0xf]  ;;  %v6869_v1 = vld [vmem:[%s8372_s29 + $0xcf0] sm:$0xf0]  ;;  %v6616_v4 = vor.u32 %v8003_v50, %v6613_v59 }
  0xf4   : > { %4282 = vmatpush.bf16.msra.mxu0 %v5896_v7  ;;  %v8067_v0 = vld [vmem:[%s8372_s29 + $0xce4] sm:$0xf]  ;;  %v6744_v5 = vor.u32 %v8035_v60, %v6741_v61  ;;  %v6469_v7 = vld [vmem:[%s8372_s29 + $0x9d0] sm:$0xf0] }
  0xf5   : > { %4295 = vmatpush.bf16.msra.mxu1 %v6024_v10  ;;  %v7967_v6 = vld [vmem:[%s8372_s29 + $0x9c4] sm:$0xf]  ;;  %v6872_v10 = vor.u32 %v8067_v0, %v6869_v1  ;;  %v6725_v13 = vld [vmem:[%s8372_s29 + $0xbd0] sm:$0xf0] }
  0xf6   : > { %4308 = vmatpush.bf16.msra.mxu2 %v6152_v11  ;;  %4321 = vmatpush.bf16.msra.mxu3 %v6280_v16  ;;  %v7999_v9 = vld [vmem:[%s8372_s29 + $0xac4] sm:$0xf]  ;;  %v6597_v11 = vld [vmem:[%s8372_s29 + $0xad0] sm:$0xf0]  ;;  %v6472_v16 = vor.u32 %v7967_v6, %v6469_v7 }
  0xf7   : > { %v8031_v12 = vld [vmem:[%s8372_s29 + $0xbc4] sm:$0xf]  ;;  %v6853_v15 = vld [vmem:[%s8372_s29 + $0xcd0] sm:$0xf0]  ;;  %v6600_v21 = vor.u32 %v7999_v9, %v6597_v11 }
  0xf8   : > { %4283 = vmatpush.bf16.msra.mxu0 %v5880_v19  ;;  %v8063_v14 = vld [vmem:[%s8372_s29 + $0xcc4] sm:$0xf]  ;;  %v6728_v22 = vor.u32 %v8031_v12, %v6725_v13  ;;  %v6453_v35 = vld [vmem:[%s8372_s29 + $0x9b0] sm:$0xf0] }
  0xf9   : > { %4296 = vmatpush.bf16.msra.mxu1 %v6008_v44  ;;  %v7963_v24 = vld [vmem:[%s8372_s29 + $0x9a4] sm:$0xf]  ;;  %v6856_v19 = vor.u32 %v8063_v14, %v6853_v15  ;;  %v6581_v40 = vld [vmem:[%s8372_s29 + $0xab0] sm:$0xf0] }
  0xfa   : > { %4309 = vmatpush.bf16.msra.mxu2 %v6136_v46  ;;  %4322 = vmatpush.bf16.msra.mxu3 %v6264_v51  ;;  %v7995_v37 = vld [vmem:[%s8372_s29 + $0xaa4] sm:$0xf]  ;;  %v6709_v44 = vld [vmem:[%s8372_s29 + $0xbb0] sm:$0xf0]  ;;  %v6456_v47 = vor.u32 %v7963_v24, %v6453_v35 }
  0xfb   : > { %v8027_v41 = vld [vmem:[%s8372_s29 + $0xba4] sm:$0xf]  ;;  %v6837_v23 = vld [vmem:[%s8372_s29 + $0xcb0] sm:$0xf0]  ;;  %v6584_v48 = vor.u32 %v7995_v37, %v6581_v40  ;;  %v4078_v50 = vpop.f32.mrf.mxu0 }
  0xfc   : > { %4284 = vmatpush.bf16.msra.mxu0 %v5864_v58  ;;  %v8059_v46 = vld [vmem:[%s8372_s29 + $0xca4] sm:$0xf]  ;;  %v6712_v49 = vor.u32 %v8027_v41, %v6709_v44  ;;  %v6437_v52 = vld [vmem:[%s8372_s29 + $0x990] sm:$0xf0]  ;;  %v4079_v60 = vadd.f32 %v4078_v50, %v8890_v8 }
  0xfd   : > { %4297 = vmatpush.bf16.msra.mxu1 %v5992_v62  ;;  %v7959_v51 = vld [vmem:[%s8372_s29 + $0x984] sm:$0xf]  ;;  %v6840_v54 = vor.u32 %v8059_v46, %v6837_v23  ;;  %v6565_v55 = vld [vmem:[%s8372_s29 + $0xa90] sm:$0xf0]  ;;  %v4091_v62 = vpop.f32.mrf.mxu1 }
  0xfe   : > { %4310 = vmatpush.bf16.msra.mxu2 %v6120_v63  ;;  %4323 = vmatpush.bf16.msra.mxu3 %v6248_v2  ;;  %v7991_v53 = vld [vmem:[%s8372_s29 + $0xa84] sm:$0xf]  ;;  %v6693_v57 = vld [vmem:[%s8372_s29 + $0xb90] sm:$0xf0]  ;;  %v6440_v61 = vor.u32 %v7959_v51, %v6437_v52 }
  0xff   : > { %4285 = vmatmul.bf16.vlgmr.msra.gmra.mxu0 %v8541_v45  ;;  %v8023_v56 = vld [vmem:[%s8372_s29 + $0xb84] sm:$0xf]  ;;  %v6821_v59 = vld [vmem:[%s8372_s29 + $0xc90] sm:$0xf0]  ;;  %v6568_v63 = vor.u32 %v7991_v53, %v6565_v55 }
 0x100   : > { %4329 = vmatpush.bf16.msrb.mxu0 %v6488_v3  ;;  %4298 = vmatmul.bf16.vlgmr.msra.gmra.mxu1 %v8533_v39  ;;  %v8055_v58 = vld [vmem:[%s8372_s29 + $0xc84] sm:$0xf]  ;;  %v6696_v0 = vor.u32 %v8023_v56, %v6693_v57  ;;  %v6421_v2 = vld [vmem:[%s8372_s29 + $0x970] sm:$0xf0] }
 0x101   : > { %4342 = vmatpush.bf16.msrb.mxu1 %v6616_v4  ;;  %4311 = vmatmul.bf16.vlgmr.msra.gmra.mxu2 %v8539_v43  ;;  %v7955_v1 = vld [vmem:[%s8372_s29 + $0x964] sm:$0xf]  ;;  %v6824_v4 = vor.u32 %v8055_v58, %v6821_v59  ;;  %v6549_v6 = vld [vmem:[%s8372_s29 + $0xa70] sm:$0xf0] }
 0x102   : > { %4355 = vmatpush.bf16.msrb.mxu2 %v6744_v5  ;;  %4368 = vmatpush.bf16.msrb.mxu3 %v6872_v10  ;;  %v7987_v3 = vld [vmem:[%s8372_s29 + $0xa64] sm:$0xf]  ;;  %v4092_v5 = vadd.f32 %v4091_v62, %v4079_v60  ;;  %v6677_v8 = vld [vmem:[%s8372_s29 + $0xb70] sm:$0xf0]  ;;  %v6424_v11 = vor.u32 %v7955_v1, %v6421_v2 }
 0x103   : > { %4324 = vmatmul.bf16.vlgmr.msra.gmra.mxu3 %v8617_v25  ;;  %v8019_v7 = vld [vmem:[%s8372_s29 + $0xb64] sm:$0xf]  ;;  %v6805_v10 = vld [vmem:[%s8372_s29 + $0xc70] sm:$0xf0]  ;;  %v6552_v12 = vor.u32 %v7987_v3, %v6549_v6  ;;  %v4080_v46 = vpop.f32.mrf.mxu0 }
 0x104   : > { %4330 = vmatpush.bf16.msrb.mxu0 %v6472_v16  ;;  %v8051_v9 = vld [vmem:[%s8372_s29 + $0xc64] sm:$0xf]  ;;  %v6680_v13 = vor.u32 %v8019_v7, %v6677_v8  ;;  %v6405_v15 = vld [vmem:[%s8372_s29 + $0x950] sm:$0xf0]  ;;  %v4117_v40 = vpop.f32.mrf.mxu3 }
 0x105   : > { %4343 = vmatpush.bf16.msrb.mxu1 %v6600_v21  ;;  %v7951_v14 = vld [vmem:[%s8372_s29 + $0x944] sm:$0xf]  ;;  %v6808_v21 = vor.u32 %v8051_v9, %v6805_v10  ;;  %v6533_v24 = vld [vmem:[%s8372_s29 + $0xa50] sm:$0xf0] }
 0x106   : > { %4356 = vmatpush.bf16.msrb.mxu2 %v6728_v22  ;;  %4369 = vmatpush.bf16.msrb.mxu3 %v6856_v19  ;;  %v7983_v16 = vld [vmem:[%s8372_s29 + $0xa44] sm:$0xf]  ;;  %v4104_v22 = vpop.f32.mrf.mxu2  ;;  %v6661_v37 = vld [vmem:[%s8372_s29 + $0xb50] sm:$0xf0]  ;;  %v6408_v23 = vor.u32 %v7951_v14, %v6405_v15 }
 0x107   : > { %v8015_v35 = vld [vmem:[%s8372_s29 + $0xb44] sm:$0xf]  ;;  %v4105_v19 = vadd.f32 %v4104_v22, %v4092_v5  ;;  %v6789_v44 = vld [vmem:[%s8372_s29 + $0xc50] sm:$0xf0] }
 0x108   : > { %4331 = vmatpush.bf16.msrb.mxu0 %v6456_v47  ;;  %v8047_v41 = vld [vmem:[%s8372_s29 + $0xc44] sm:$0xf]  ;;  %v4093_v47 = vpop.f32.mrf.mxu1  ;;  %v6664_v51 = vor.u32 %v8015_v35, %v6661_v37  ;;  %v6389_v53 = vld [vmem:[%s8372_s29 + $0x930] sm:$0xf0] }
 0x109   : > { %4344 = vmatpush.bf16.msrb.mxu1 %v6584_v48  ;;  %v8961_v48 = vadd.f32 %v4117_v40, %v4105_v19  ;;  %v7947_v52 = vld [vmem:[%s8372_s29 + $0x924] sm:$0xf]  ;;  %v6792_v55 = vor.u32 %v8047_v41, %v6789_v44  ;;  %v6517_v56 = vld [vmem:[%s8372_s29 + $0xa30] sm:$0xf0] }
 0x10a   : > { %4357 = vmatpush.bf16.msrb.mxu2 %v6712_v49  ;;  %4370 = vmatpush.bf16.msrb.mxu3 %v6840_v54  ;;  %v6536_v49 = vor.u32 %v7983_v16, %v6533_v24  ;;  %v7979_v54 = vld [vmem:[%s8372_s29 + $0xa24] sm:$0xf]  ;;  %v6645_v50 = vld [vmem:[%s8372_s29 + $0xb30] sm:$0xf0]  ;;  %v6392_v60 = vor.u32 %v7947_v52, %v6389_v53 }
 0x10b   : > { %v8011_v57 = vld [vmem:[%s8372_s29 + $0xb24] sm:$0xf]  ;;  %v6773_v59 = vld [vmem:[%s8372_s29 + $0xc30] sm:$0xf0] }
 0x10c   : > { %4332 = vmatpush.bf16.msrb.mxu0 %v6440_v61  ;;  %v8043_v58 = vld [vmem:[%s8372_s29 + $0xc24] sm:$0xf]  ;;  %v6373_v62 = vld [vmem:[%s8372_s29 + $0x910] sm:$0xf0] }
 0x10d   : > { %4345 = vmatpush.bf16.msrb.mxu1 %v6568_v63  ;;  %v7943_v61 = vld [vmem:[%s8372_s29 + $0x904] sm:$0xf]  ;;  %v6520_v63 = vor.u32 %v7979_v54, %v6517_v56  ;;  %v6501_v2 = vld [vmem:[%s8372_s29 + $0xa10] sm:$0xf0] }
 0x10e   : > { %4358 = vmatpush.bf16.msrb.mxu2 %v6696_v0  ;;  %4371 = vmatpush.bf16.msrb.mxu3 %v6824_v4  ;;  %v6648_v0 = vor.u32 %v8011_v57, %v6645_v50  ;;  %v7975_v1 = vld [vmem:[%s8372_s29 + $0xa04] sm:$0xf]  ;;  %v6776_v4 = vor.u32 %v8043_v58, %v6773_v59  ;;  %v6629_v5 = vld [vmem:[%s8372_s29 + $0xb10] sm:$0xf0]  ;;  %v4106_v8 = vpop.f32.mrf.mxu2 }
 0x10f   : > { %v8007_v3 = vld [vmem:[%s8372_s29 + $0xb04] sm:$0xf]  ;;  %v6757_v7 = vld [vmem:[%s8372_s29 + $0xc10] sm:$0xf0] }
 0x110   : > { %4333 = vmatpush.bf16.msrb.mxu0 %v6424_v11  ;;  %v8039_v6 = vld [vmem:[%s8372_s29 + $0xc04] sm:$0xf]  ;;  %v6997_v10 = vld [vmem:[%s8372_s29 + $0xdf0] sm:$0xf0]  ;;  %v6632_v22 = vor.u32 %v8007_v3, %v6629_v5 }
 0x111   : > { %4346 = vmatpush.bf16.msrb.mxu1 %v6552_v12  ;;  %v8099_v9 = vld [vmem:[%s8372_s29 + $0xde4] sm:$0xf]  ;;  %v4119_v12 = vpop.f32.mrf.mxu3  ;;  %v7125_v14 = vld [vmem:[%s8372_s29 + $0xef0] sm:$0xf0]  ;;  %v6760_v37 = vor.u32 %v8039_v6, %v6757_v7 }
 0x112   : > { %4359 = vmatpush.bf16.msrb.mxu2 %v6680_v13  ;;  %4372 = vmatpush.bf16.msrb.mxu3 %v6808_v21  ;;  %v8131_v11 = vld [vmem:[%s8372_s29 + $0xee4] sm:$0xf]  ;;  %v6376_v13 = vor.u32 %v7943_v61, %v6373_v62  ;;  %v7253_v16 = vld [vmem:[%s8372_s29 + $0xff0] sm:$0xf0]  ;;  %v6504_v21 = vor.u32 %v7975_v1, %v6501_v2  ;;  %v7000_v19 = vor.u32 %v8099_v9, %v6997_v10 }
 0x113   : > { %v8163_v15 = vld [vmem:[%s8372_s29 + $0xfe4] sm:$0xf]  ;;  %v7381_v35 = vld [vmem:[%s8372_s29 + $0x10f0] sm:$0xf0]  ;;  %v7128_v40 = vor.u32 %v8131_v11, %v7125_v14 }
 0x114   : > { %4334 = vmatpush.bf16.msrb.mxu0 %v6408_v23  ;;  %v8195_v24 = vld [vmem:[%s8372_s29 + $0x10e4] sm:$0xf]  ;;  %v7256_v41 = vor.u32 %v8163_v15, %v7253_v16  ;;  %v6981_v46 = vld [vmem:[%s8372_s29 + $0xdd0] sm:$0xf0] }
 0x115   : > { %4347 = vmatpush.bf16.msrb.mxu1 %v6536_v49  ;;  %v8095_v44 = vld [vmem:[%s8372_s29 + $0xdc4] sm:$0xf]  ;;  %v7384_v47 = vor.u32 %v8195_v24, %v7381_v35  ;;  %v7109_v49 = vld [vmem:[%s8372_s29 + $0xed0] sm:$0xf0] }
 0x116   : > { %4360 = vmatpush.bf16.msrb.mxu2 %v6664_v51  ;;  %4373 = vmatpush.bf16.msrb.mxu3 %v6792_v55  ;;  %v8127_v23 = vld [vmem:[%s8372_s29 + $0xec4] sm:$0xf]  ;;  %v7237_v52 = vld [vmem:[%s8372_s29 + $0xfd0] sm:$0xf0]  ;;  %v6984_v55 = vor.u32 %v8095_v44, %v6981_v46 }
 0x117   : > { %v8159_v51 = vld [vmem:[%s8372_s29 + $0xfc4] sm:$0xf]  ;;  %v7365_v54 = vld [vmem:[%s8372_s29 + $0x10d0] sm:$0xf0]  ;;  %v7112_v56 = vor.u32 %v8127_v23, %v7109_v49 }
 0x118   : > { %4335 = vmatpush.bf16.msrb.mxu0 %v6392_v60  ;;  %v8191_v53 = vld [vmem:[%s8372_s29 + $0x10c4] sm:$0xf]  ;;  %v7240_v57 = vor.u32 %v8159_v51, %v7237_v52  ;;  %v6965_v58 = vld [vmem:[%s8372_s29 + $0xdb0] sm:$0xf0] }
 0x119   : > { %4348 = vmatpush.bf16.msrb.mxu1 %v6520_v63  ;;  %v8091_v50 = vld [vmem:[%s8372_s29 + $0xda4] sm:$0xf]  ;;  %v7368_v60 = vor.u32 %v8191_v53, %v7365_v54  ;;  %v7093_v61 = vld [vmem:[%s8372_s29 + $0xeb0] sm:$0xf0] }
 0x11a   : > { %4361 = vmatpush.bf16.msrb.mxu2 %v6648_v0  ;;  %4374 = vmatpush.bf16.msrb.mxu3 %v6776_v4  ;;  %v8123_v59 = vld [vmem:[%s8372_s29 + $0xea4] sm:$0xf]  ;;  %v7221_v63 = vld [vmem:[%s8372_s29 + $0xfb0] sm:$0xf0]  ;;  %v6968_v2 = vor.u32 %v8091_v50, %v6965_v58 }
 0x11b   : > { %v8155_v62 = vld [vmem:[%s8372_s29 + $0xfa4] sm:$0xf]  ;;  %v7349_v1 = vld [vmem:[%s8372_s29 + $0x10b0] sm:$0xf0]  ;;  %v7096_v3 = vor.u32 %v8123_v59, %v7093_v61 }
 0x11c   : > { %4336 = vmatpush.bf16.msrb.mxu0 %v6376_v13  ;;  %v8187_v0 = vld [vmem:[%s8372_s29 + $0x10a4] sm:$0xf]  ;;  %v7224_v4 = vor.u32 %v8155_v62, %v7221_v63  ;;  %v6949_v6 = vld [vmem:[%s8372_s29 + $0xd90] sm:$0xf0] }
 0x11d   : > { %4349 = vmatpush.bf16.msrb.mxu1 %v6504_v21  ;;  %v8087_v5 = vld [vmem:[%s8372_s29 + $0xd84] sm:$0xf]  ;;  %v7352_v8 = vor.u32 %v8187_v0, %v7349_v1  ;;  %v7077_v9 = vld [vmem:[%s8372_s29 + $0xe90] sm:$0xf0] }
 0x11e   : > { %4362 = vmatpush.bf16.msrb.mxu2 %v6632_v22  ;;  %4375 = vmatpush.bf16.msrb.mxu3 %v6760_v37  ;;  %v8119_v7 = vld [vmem:[%s8372_s29 + $0xe84] sm:$0xf]  ;;  %v7205_v11 = vld [vmem:[%s8372_s29 + $0xf90] sm:$0xf0]  ;;  %v6952_v16 = vor.u32 %v8087_v5, %v6949_v6 }
 0x11f   : > { %4337 = vmatmul.bf16.vlgmr.msrb.gmra.mxu0 %v8628_v32  ;;  %v8151_v10 = vld [vmem:[%s8372_s29 + $0xf84] sm:$0xf]  ;;  %v4130_v12 = vpop.f32.mrf.mxu0  ;;  %v7333_v14 = vld [vmem:[%s8372_s29 + $0x1090] sm:$0xf0]  ;;  %v7080_v22 = vor.u32 %v8119_v7, %v7077_v9 }
 0x120   : > { %4381 = vmatpush.bf16.msra.mxu0 %v7000_v19  ;;  %4350 = vmatmul.bf16.vlgmr.msrb.gmra.mxu1 %v8624_v31  ;;  %v8183_v13 = vld [vmem:[%s8372_s29 + $0x1084] sm:$0xf]  ;;  %v4131_v15 = vadd.f32 %v4130_v12, %v8961_v48  ;;  %v4143_v21 = vpop.f32.mrf.mxu1  ;;  %v7208_v24 = vor.u32 %v8151_v10, %v7205_v11  ;;  %v6933_v37 = vld [vmem:[%s8372_s29 + $0xd70] sm:$0xf0] }
 0x121   : > { %4394 = vmatpush.bf16.msra.mxu1 %v7128_v40  ;;  %4363 = vmatmul.bf16.vlgmr.msrb.gmra.mxu2 %v8634_v36  ;;  %v8083_v35 = vld [vmem:[%s8372_s29 + $0xd64] sm:$0xf]  ;;  %v7336_v40 = vor.u32 %v8183_v13, %v7333_v14  ;;  %v7061_v44 = vld [vmem:[%s8372_s29 + $0xe70] sm:$0xf0] }
 0x122   : > { %4407 = vmatpush.bf16.msra.mxu2 %v7256_v41  ;;  %4420 = vmatpush.bf16.msra.mxu3 %v7384_v47  ;;  %v8115_v19 = vld [vmem:[%s8372_s29 + $0xe64] sm:$0xf]  ;;  %v4144_v41 = vadd.f32 %v4143_v21, %v4131_v15  ;;  %v7189_v48 = vld [vmem:[%s8372_s29 + $0xf70] sm:$0xf0]  ;;  %v6936_v49 = vor.u32 %v8083_v35, %v6933_v37 }
 0x123   : > { %4376 = vmatmul.bf16.vlgmr.msrb.gmra.mxu3 %v8699_v18  ;;  %v8147_v46 = vld [vmem:[%s8372_s29 + $0xf64] sm:$0xf]  ;;  %v7317_v47 = vld [vmem:[%s8372_s29 + $0x1070] sm:$0xf0]  ;;  %v7064_v51 = vor.u32 %v8115_v19, %v7061_v44 }
 0x124   : > { %4382 = vmatpush.bf16.msra.mxu0 %v6984_v55  ;;  %v8179_v23 = vld [vmem:[%s8372_s29 + $0x1064] sm:$0xf]  ;;  %v7192_v52 = vor.u32 %v8147_v46, %v7189_v48  ;;  %v6917_v54 = vld [vmem:[%s8372_s29 + $0xd50] sm:$0xf0] }
 0x125   : > { %4395 = vmatpush.bf16.msra.mxu1 %v7112_v56  ;;  %v8079_v53 = vld [vmem:[%s8372_s29 + $0xd44] sm:$0xf]  ;;  %v7320_v56 = vor.u32 %v8179_v23, %v7317_v47  ;;  %v7045_v50 = vld [vmem:[%s8372_s29 + $0xe50] sm:$0xf0] }
 0x126   : > { %4408 = vmatpush.bf16.msra.mxu2 %v7240_v57  ;;  %4421 = vmatpush.bf16.msra.mxu3 %v7368_v60  ;;  %v8111_v55 = vld [vmem:[%s8372_s29 + $0xe44] sm:$0xf]  ;;  %v4156_v57 = vpop.f32.mrf.mxu2  ;;  %v7173_v59 = vld [vmem:[%s8372_s29 + $0xf50] sm:$0xf0]  ;;  %v6920_v1 = vor.u32 %v8079_v53, %v6917_v54  ;;  %v5339_v54 = vld [vmem:[%s8372_s29 + $0xe8] sm:$0xf] }
 0x127   : > { %v8143_v58 = vld [vmem:[%s8372_s29 + $0xf44] sm:$0xf]  ;;  %v4157_v60 = vadd.f32 %v4156_v57, %v4144_v41  ;;  %v4169_v61 = vpop.f32.mrf.mxu3  ;;  %v7301_v63 = vld [vmem:[%s8372_s29 + $0x1050] sm:$0xf0]  ;;  %v4132_v0 = vpop.f32.mrf.mxu0 }
 0x128   : > { %4383 = vmatpush.bf16.msra.mxu0 %v6968_v2  ;;  %v8175_v62 = vld [vmem:[%s8372_s29 + $0x1044] sm:$0xf]  ;;  %v4145_v2 = vpop.f32.mrf.mxu1  ;;  %v7176_v5 = vor.u32 %v8143_v58, %v7173_v59  ;;  %v6901_v7 = vld [vmem:[%s8372_s29 + $0xd30] sm:$0xf0]  ;;  %v7718_v58 = vld [vmem:[%s8372_s29 + $0x1f4] sm:$0xf0] }
 0x129   : > { %4396 = vmatpush.bf16.msra.mxu1 %v7096_v3  ;;  %v9032_v3 = vadd.f32 %v4169_v61, %v4157_v60  ;;  %v8075_v6 = vld [vmem:[%s8372_s29 + $0xd24] sm:$0xf]  ;;  %v7304_v9 = vor.u32 %v8175_v62, %v7301_v63  ;;  %v7029_v10 = vld [vmem:[%s8372_s29 + $0xe30] sm:$0xf0] }
 0x12a   : > { %4409 = vmatpush.bf16.msra.mxu2 %v7224_v4  ;;  %4422 = vmatpush.bf16.msra.mxu3 %v7352_v8  ;;  %v7048_v4 = vor.u32 %v8111_v55, %v7045_v50  ;;  %v8107_v8 = vld [vmem:[%s8372_s29 + $0xe24] sm:$0xf]  ;;  %v7157_v12 = vld [vmem:[%s8372_s29 + $0xf30] sm:$0xf0]  ;;  %v6904_v15 = vor.u32 %v8075_v6, %v6901_v7  ;;  %v7686_v55 = vld [vmem:[%s8372_s29 + $0xf4] sm:$0xf0] }
 0x12b   : > { %v8139_v11 = vld [vmem:[%s8372_s29 + $0xf24] sm:$0xf]  ;;  %v7285_v14 = vld [vmem:[%s8372_s29 + $0x1030] sm:$0xf0]  ;;  %v5467_v50 = vld [vmem:[%s8372_s29 + $0x1e8] sm:$0xf]  ;;  %v5340_v62 = vor.u32 %v7686_v55, %v5339_v54 }
 0x12c   : > { %4384 = vmatpush.bf16.msra.mxu0 %v6952_v16  ;;  %v8171_v13 = vld [vmem:[%s8372_s29 + $0x1024] sm:$0xf]  ;;  %v6885_v21 = vld [vmem:[%s8372_s29 + $0xd10] sm:$0xf0]  ;;  %v5468_v2 = vor.u32 %v7718_v58, %v5467_v50  ;;  %v7682_v6 = vld [vmem:[%s8372_s29 + $0xd4] sm:$0xf0] }
 0x12d   : > { %4397 = vmatpush.bf16.msra.mxu1 %v7080_v22  ;;  %v8071_v16 = vld [vmem:[%s8372_s29 + $0xd04] sm:$0xf]  ;;  %v7032_v22 = vor.u32 %v8107_v8, %v7029_v10  ;;  %v7013_v37 = vld [vmem:[%s8372_s29 + $0xe10] sm:$0xf0]  ;;  %v5451_v7 = vld [vmem:[%s8372_s29 + $0x1c8] sm:$0xf] }
 0x12e   : > { %4410 = vmatpush.bf16.msra.mxu2 %v7208_v24  ;;  %4423 = vmatpush.bf16.msra.mxu3 %v7336_v40  ;;  %v7160_v24 = vor.u32 %v8139_v11, %v7157_v12  ;;  %v8103_v35 = vld [vmem:[%s8372_s29 + $0xe04] sm:$0xf]  ;;  %v7288_v40 = vor.u32 %v8171_v13, %v7285_v14  ;;  %v7141_v41 = vld [vmem:[%s8372_s29 + $0xf10] sm:$0xf0]  ;;  %v4158_v48 = vpop.f32.mrf.mxu2  ;;  %v7714_v8 = vld [vmem:[%s8372_s29 + $0x1d4] sm:$0xf0] }
 0x12f   : > { %v8135_v19 = vld [vmem:[%s8372_s29 + $0xf04] sm:$0xf]  ;;  %v7269_v46 = vld [vmem:[%s8372_s29 + $0x1010] sm:$0xf0] }
 0x130   : > { %4385 = vmatpush.bf16.msra.mxu0 %v6936_v49  ;;  %v8167_v44 = vld [vmem:[%s8372_s29 + $0x1004] sm:$0xf]  ;;  %v7509_v47 = vld [vmem:[%s8372_s29 + $0x11f0] sm:$0xf0]  ;;  %v7144_v57 = vor.u32 %v8135_v19, %v7141_v41 }
 0x131   : > { %4398 = vmatpush.bf16.msra.mxu1 %v7064_v51  ;;  %v8227_v23 = vld [vmem:[%s8372_s29 + $0x11e4] sm:$0xf]  ;;  %v4171_v51 = vpop.f32.mrf.mxu3  ;;  %v7637_v53 = vld [vmem:[%s8372_s29 + $0x12f0] sm:$0xf0]  ;;  %v7272_v59 = vor.u32 %v8167_v44, %v7269_v46 }
 0x132   : > { %4411 = vmatpush.bf16.msra.mxu2 %v7192_v52  ;;  %4424 = vmatpush.bf16.msra.mxu3 %v7320_v56  ;;  %v8259_v49 = vld [vmem:[%s8372_s29 + $0x12e4] sm:$0xf]  ;;  %v6888_v52 = vor.u32 %v8071_v16, %v6885_v21  ;;  %v7016_v56 = vor.u32 %v8103_v35, %v7013_v37  ;;  %v7512_v60 = vor.u32 %v8227_v23, %v7509_v47  ;;  %v7493_v0 = vld [vmem:[%s8372_s29 + $0x11d0] sm:$0xf0]  ;;  %v5307_v21 = vld [vmem:[%s8372_s29 + $0xa8] sm:$0xf] }
 0x133   : > { %v7640_v61 = vor.u32 %v8259_v49, %v7637_v53  ;;  %v8223_v63 = vld [vmem:[%s8372_s29 + $0x11c4] sm:$0xf]  ;;  %v7477_v13 = vld [vmem:[%s8372_s29 + $0x11b0] sm:$0xf0]  ;;  %v7710_v35 = vld [vmem:[%s8372_s29 + $0x1b4] sm:$0xf0] }
 0x134   : > { %4386 = vmatpush.bf16.msra.mxu0 %v6920_v1  ;;  %v8255_v1 = vld [vmem:[%s8372_s29 + $0x12c4] sm:$0xf]  ;;  %v7605_v16 = vld [vmem:[%s8372_s29 + $0x12b0] sm:$0xf0]  ;;  %v5291_v47 = vld [vmem:[%s8372_s29 + $0x88] sm:$0xf] }
 0x135   : > { %4399 = vmatpush.bf16.msra.mxu1 %v7048_v4  ;;  %v7621_v4 = vld [vmem:[%s8372_s29 + $0x12d0] sm:$0xf0]  ;;  %v8219_v12 = vld [vmem:[%s8372_s29 + $0x11a4] sm:$0xf]  ;;  %v7674_v49 = vld [vmem:[%s8372_s29 + $0x94] sm:$0xf0] }
 0x136   : > { %4412 = vmatpush.bf16.msra.mxu2 %v7176_v5  ;;  %4425 = vmatpush.bf16.msra.mxu3 %v7304_v9  ;;  %v5323_v5 = vld [vmem:[%s8372_s29 + $0xc8] sm:$0xf]  ;;  %v7496_v9 = vor.u32 %v8223_v63, %v7493_v0  ;;  %v7624_v10 = vor.u32 %v8255_v1, %v7621_v4  ;;  %v8251_v14 = vld [vmem:[%s8372_s29 + $0x12a4] sm:$0xf]  ;;  %v7480_v37 = vor.u32 %v8219_v12, %v7477_v13  ;;  %v7461_v44 = vld [vmem:[%s8372_s29 + $0x1190] sm:$0xf0] }
 0x137   : > { %v5324_v11 = vor.u32 %v7682_v6, %v5323_v5  ;;  %v7608_v19 = vor.u32 %v8251_v14, %v7605_v16  ;;  %v8215_v41 = vld [vmem:[%s8372_s29 + $0x1184] sm:$0xf]  ;;  %v7589_v23 = vld [vmem:[%s8372_s29 + $0x1290] sm:$0xf0]  ;;  %v7706_v53 = vld [vmem:[%s8372_s29 + $0x194] sm:$0xf0]  ;;  %v5292_v50 = vor.u32 %v7674_v49, %v5291_v47 }
 0x138   : > { %4387 = vmatpush.bf16.msra.mxu0 %v6904_v15  ;;  %v5452_v15 = vor.u32 %v7714_v8, %v5451_v7  ;;  %v8247_v46 = vld [vmem:[%s8372_s29 + $0x1284] sm:$0xf]  ;;  %v7464_v55 = vor.u32 %v8215_v41, %v7461_v44  ;;  %v7573_v63 = vld [vmem:[%s8372_s29 + $0x1270] sm:$0xf0]  ;;  %v5275_v0 = vld [vmem:[%s8372_s29 + $0x68] sm:$0xf] }
 0x139   : > { %4400 = vmatpush.bf16.msra.mxu1 %v7032_v22  ;;  %v7678_v22 = vld [vmem:[%s8372_s29 + $0xb4] sm:$0xf0]  ;;  %v8211_v58 = vld [vmem:[%s8372_s29 + $0x1164] sm:$0xf]  ;;  %v5403_v1 = vld [vmem:[%s8372_s29 + $0x168] sm:$0xf] }
 0x13a   : > { %4413 = vmatpush.bf16.msra.mxu2 %v7160_v24  ;;  %4426 = vmatpush.bf16.msra.mxu3 %v7288_v40  ;;  %v5435_v24 = vld [vmem:[%s8372_s29 + $0x1a8] sm:$0xf]  ;;  %v5308_v40 = vor.u32 %v7678_v22, %v5307_v21  ;;  %v8207_v7 = vld [vmem:[%s8372_s29 + $0x1144] sm:$0xf]  ;;  %v7429_v8 = vld [vmem:[%s8372_s29 + $0x1150] sm:$0xf0] }
 0x13b   : > { %v5436_v48 = vor.u32 %v7710_v35, %v5435_v24  ;;  %v7557_v12 = vld [vmem:[%s8372_s29 + $0x1250] sm:$0xf0]  ;;  %v5259_v13 = vld [vmem:[%s8372_s29 + $0x48] sm:$0xf]  ;;  %v7666_v14 = vld [vmem:[%s8372_s29 + $0x54] sm:$0xf0]  ;;  %v7432_v35 = vor.u32 %v8207_v7, %v7429_v8 }
 0x13c   : > { %4388 = vmatpush.bf16.msra.mxu0 %v6888_v52  ;;  %v4182_v51 = vpop.f32.mrf.mxu0  ;;  %v5419_v52 = vld [vmem:[%s8372_s29 + $0x188] sm:$0xf]  ;;  %v7698_v21 = vld [vmem:[%s8372_s29 + $0x154] sm:$0xf0]  ;;  %v8203_v41 = vld [vmem:[%s8372_s29 + $0x1124] sm:$0xf] }
 0x13d   : > { %4401 = vmatpush.bf16.msra.mxu1 %v7016_v56  ;;  %v4183_v54 = vadd.f32 %v4182_v51, %v9032_v3  ;;  %v4195_v56 = vpop.f32.mrf.mxu1  ;;  %v7670_v3 = vld [vmem:[%s8372_s29 + $0x74] sm:$0xf0]  ;;  %v5387_v16 = vld [vmem:[%s8372_s29 + $0x148] sm:$0xf]  ;;  %v7413_v44 = vld [vmem:[%s8372_s29 + $0x1130] sm:$0xf0] }
 0x13e   : > { %4414 = vmatpush.bf16.msra.mxu2 %v7144_v57  ;;  %4427 = vmatpush.bf16.msra.mxu3 %v7272_v59  ;;  %v7592_v57 = vor.u32 %v8247_v46, %v7589_v23  ;;  %v7445_v59 = vld [vmem:[%s8372_s29 + $0x1170] sm:$0xf0]  ;;  %v5276_v6 = vor.u32 %v7670_v3, %v5275_v0  ;;  %v8235_v46 = vld [vmem:[%s8372_s29 + $0x1224] sm:$0xf]  ;;  %v5243_v47 = vld [vmem:[%s8372_s29 + $0x28] sm:$0xf] }
 0x13f   : > { %4389 = vmatmul.bf16.vlgmr.msra.gmra.mxu0 %v8706_v29  ;;  %v7448_v4 = vor.u32 %v8211_v58, %v7445_v59  ;;  %v7541_v23 = vld [vmem:[%s8372_s29 + $0x1230] sm:$0xf0]  ;;  %v7662_v49 = vld [vmem:[%s8372_s29 + $0x34] sm:$0xf0]  ;;  %v5371_v51 = vld [vmem:[%s8372_s29 + $0x128] sm:$0xf] }
 0x140   : > { %4433 = vmatpush.bf16.msrb.mxu0 %v7512_v60  ;;  %4402 = vmatmul.bf16.vlgmr.msra.gmra.mxu1 %v8704_v26  ;;  %v8243_v60 = vld [vmem:[%s8372_s29 + $0x1264] sm:$0xf]  ;;  %v7525_v58 = vld [vmem:[%s8372_s29 + $0x1210] sm:$0xf0]  ;;  %v5227_v59 = vld [vmem:[%s8372_s29 + $0x8] sm:$0xf] }
 0x141   : > { %4446 = vmatpush.bf16.msrb.mxu1 %v7640_v61  ;;  %4415 = vmatmul.bf16.vlgmr.msra.gmra.mxu2 %v8710_v17  ;;  %v5420_v61 = vor.u32 %v7706_v53, %v5419_v52  ;;  %v7576_v5 = vor.u32 %v8243_v60, %v7573_v63  ;;  %v7694_v52 = vld [vmem:[%s8372_s29 + $0x134] sm:$0xf0]  ;;  %v7416_v53 = vor.u32 %v8203_v41, %v7413_v44  ;;  %v5595_v3 = vld [vmem:[%s8372_s29 + $0x2e8] sm:$0xf] }
 0x142   : > { %4459 = vmatpush.bf16.msrb.mxu2 %v5340_v62  ;;  %4472 = vmatpush.bf16.msrb.mxu3 %v5468_v2  ;;  %v4196_v62 = vadd.f32 %v4195_v56, %v4183_v54  ;;  %v7702_v2 = vld [vmem:[%s8372_s29 + $0x174] sm:$0xf0]  ;;  %v8199_v54 = vld [vmem:[%s8372_s29 + $0x1104] sm:$0xf]  ;;  %v7544_v56 = vor.u32 %v8235_v46, %v7541_v23  ;;  %v5372_v60 = vor.u32 %v7694_v52, %v5371_v51  ;;  %v5851_v7 = vld [vmem:[%s8372_s29 + $0x4e8] sm:$0xf] }
 0x143   : > { %4428 = vmatmul.bf16.vlgmr.msra.gmra.mxu3 %v8775_v30  ;;  %v7690_v63 = vld [vmem:[%s8372_s29 + $0x114] sm:$0xf0]  ;;  %v5835_v41 = vld [vmem:[%s8372_s29 + $0x4c8] sm:$0xf] }
 0x144   : > { %4434 = vmatpush.bf16.msrb.mxu0 %v7496_v9  ;;  %v8239_v9 = vld [vmem:[%s8372_s29 + $0x1244] sm:$0xf]  ;;  %v4184_v24 = vpop.f32.mrf.mxu0  ;;  %v7814_v8 = vld [vmem:[%s8372_s29 + $0x4f4] sm:$0xf0]  ;;  %v5963_v46 = vld [vmem:[%s8372_s29 + $0x5c8] sm:$0xf] }
 0x145   : > { %4447 = vmatpush.bf16.msrb.mxu1 %v7624_v10  ;;  %v5404_v10 = vor.u32 %v7702_v2, %v5403_v1  ;;  %v7750_v1 = vld [vmem:[%s8372_s29 + $0x2f4] sm:$0xf0]  ;;  %v5723_v2 = vld [vmem:[%s8372_s29 + $0x3e8] sm:$0xf] }
 0x146   : > { %4460 = vmatpush.bf16.msrb.mxu2 %v5324_v11  ;;  %4473 = vmatpush.bf16.msrb.mxu3 %v5452_v15  ;;  %v4208_v11 = vpop.f32.mrf.mxu2  ;;  %v9105_v22 = vpop.f32.mrf.mxu3  ;;  %v5579_v24 = vld [vmem:[%s8372_s29 + $0x2c8] sm:$0xf]  ;;  %v7810_v44 = vld [vmem:[%s8372_s29 + $0x4d4] sm:$0xf0] }
 0x147   : > { %v9101_v15 = vadd.f32 %v4208_v11, %v4196_v62  ;;  %v5355_v62 = vld [vmem:[%s8372_s29 + $0x108] sm:$0xf]  ;;  %v7742_v52 = vld [vmem:[%s8372_s29 + $0x2b4] sm:$0xf0] }
 0x148   : > { %4435 = vmatpush.bf16.msrb.mxu0 %v7480_v37  ;;  %v4197_v37 = vpop.f32.mrf.mxu1  ;;  %v5979_v11 = vld [vmem:[%s8372_s29 + $0x5e8] sm:$0xf] }
 0x149   : > { %4448 = vmatpush.bf16.msrb.mxu1 %v7608_v19  ;;  %v7560_v19 = vor.u32 %v8239_v9, %v7557_v12  ;;  %v7846_v12 = vld [vmem:[%s8372_s29 + $0x5f4] sm:$0xf0]  ;;  %v5707_v37 = vld [vmem:[%s8372_s29 + $0x3c8] sm:$0xf] }
 0x14a   : > { %4461 = vmatpush.bf16.msrb.mxu2 %v5308_v40  ;;  %4474 = vmatpush.bf16.msrb.mxu3 %v5436_v48  ;;  %v5260_v40 = vor.u32 %v7666_v14, %v5259_v13  ;;  %v5388_v48 = vor.u32 %v7698_v21, %v5387_v16  ;;  %v5356_v13 = vor.u32 %v7690_v63, %v5355_v62  ;;  %v5563_v51 = vld [vmem:[%s8372_s29 + $0x2a8] sm:$0xf]  ;;  %v7738_v63 = vld [vmem:[%s8372_s29 + $0x294] sm:$0xf0] }
 0x14b   : > { %v5596_v14 = vor.u32 %v7750_v1, %v5595_v3  ;;  %v5852_v21 = vor.u32 %v7814_v8, %v5851_v7  ;;  %v5547_v62 = vld [vmem:[%s8372_s29 + $0x288] sm:$0xf]  ;;  %v7770_v1 = vld [vmem:[%s8372_s29 + $0x394] sm:$0xf0] }
 0x14c   : > { %4436 = vmatpush.bf16.msrb.mxu0 %v7464_v55  ;;  %v7397_v55 = vld [vmem:[%s8372_s29 + $0x1110] sm:$0xf0]  ;;  %v5548_v7 = vor.u32 %v7738_v63, %v5547_v62  ;;  %v5499_v63 = vld [vmem:[%s8372_s29 + $0x228] sm:$0xf] }
 0x14d   : > { %4449 = vmatpush.bf16.msrb.mxu1 %v7592_v57  ;;  %v5244_v57 = vor.u32 %v7662_v49, %v5243_v47  ;;  %v5836_v49 = vor.u32 %v7810_v44, %v5835_v41 }
 0x14e   : > { %4462 = vmatpush.bf16.msrb.mxu2 %v5292_v50  ;;  %4475 = vmatpush.bf16.msrb.mxu3 %v5420_v61  ;;  %v8231_v50 = vld [vmem:[%s8372_s29 + $0x1204] sm:$0xf]  ;;  %v7658_v61 = vld [vmem:[%s8372_s29 + $0x14] sm:$0xf0]  ;;  %v4210_v0 = vpop.f32.mrf.mxu2 }
 0x14f   : > { %v7528_v9 = vor.u32 %v8231_v50, %v7525_v58  ;;  %v5947_v50 = vld [vmem:[%s8372_s29 + $0x5a8] sm:$0xf]  ;;  %v7838_v58 = vld [vmem:[%s8372_s29 + $0x5b4] sm:$0xf0] }
 0x150   : > { %4437 = vmatpush.bf16.msrb.mxu0 %v7448_v4  ;;  %v4223_v4 = vpop.f32.mrf.mxu3  ;;  %v5675_v0 = vld [vmem:[%s8372_s29 + $0x388] sm:$0xf]  ;;  %v5948_v3 = vor.u32 %v7838_v58, %v5947_v50  ;;  %v7826_v50 = vld [vmem:[%s8372_s29 + $0x554] sm:$0xf0] }
 0x151   : > { %4450 = vmatpush.bf16.msrb.mxu1 %v7576_v5  ;;  %v7400_v5 = vor.u32 %v8199_v54, %v7397_v55  ;;  %v7774_v55 = vld [vmem:[%s8372_s29 + $0x3b4] sm:$0xf0] }
 0x152   : > { %4463 = vmatpush.bf16.msrb.mxu2 %v5276_v6  ;;  %4476 = vmatpush.bf16.msrb.mxu3 %v5404_v10  ;;  %v7782_v6 = vld [vmem:[%s8372_s29 + $0x3f4] sm:$0xf0]  ;;  %v5228_v10 = vor.u32 %v7658_v61, %v5227_v59  ;;  %v5564_v59 = vor.u32 %v7742_v52, %v5563_v51 }
 0x153   : > { %v5724_v16 = vor.u32 %v7782_v6, %v5723_v2  ;;  %v5803_v2 = vld [vmem:[%s8372_s29 + $0x488] sm:$0xf]  ;;  %v7802_v4 = vld [vmem:[%s8372_s29 + $0x494] sm:$0xf0] }
 0x154   : > { %4438 = vmatpush.bf16.msrb.mxu0 %v7432_v35  ;;  %v7746_v35 = vld [vmem:[%s8372_s29 + $0x2d4] sm:$0xf0] }
 0x155   : > { %4451 = vmatpush.bf16.msrb.mxu1 %v7560_v19  ;;  %v5980_v19 = vor.u32 %v7846_v12, %v5979_v11  ;;  %v5580_v23 = vor.u32 %v7746_v35, %v5579_v24  ;;  %v7834_v6 = vld [vmem:[%s8372_s29 + $0x594] sm:$0xf0]  ;;  %v5531_v11 = vld [vmem:[%s8372_s29 + $0x268] sm:$0xf] }
 0x156   : > { %4464 = vmatpush.bf16.msrb.mxu2 %v5260_v40  ;;  %4477 = vmatpush.bf16.msrb.mxu3 %v5388_v48  ;;  %v7778_v40 = vld [vmem:[%s8372_s29 + $0x3d4] sm:$0xf0]  ;;  %v5787_v35 = vld [vmem:[%s8372_s29 + $0x468] sm:$0xf] }
 0x157   : > { %v7842_v48 = vld [vmem:[%s8372_s29 + $0x5d4] sm:$0xf0]  ;;  %v5708_v47 = vor.u32 %v7778_v40, %v5707_v37 }
 0x158   : > { %4439 = vmatpush.bf16.msrb.mxu0 %v7416_v53  ;;  %v5691_v53 = vld [vmem:[%s8372_s29 + $0x3a8] sm:$0xf]  ;;  %v5964_v54 = vor.u32 %v7842_v48, %v5963_v46  ;;  %v7734_v12 = vld [vmem:[%s8372_s29 + $0x274] sm:$0xf0] }
 0x159   : > { %4452 = vmatpush.bf16.msrb.mxu1 %v7544_v56  ;;  %v5819_v56 = vld [vmem:[%s8372_s29 + $0x4a8] sm:$0xf]  ;;  %v7766_v24 = vld [vmem:[%s8372_s29 + $0x374] sm:$0xf0]  ;;  %v5532_v44 = vor.u32 %v7734_v12, %v5531_v11 }
 0x15a   : > { %4465 = vmatpush.bf16.msrb.mxu2 %v5244_v57  ;;  %4478 = vmatpush.bf16.msrb.mxu3 %v5372_v60  ;;  %v7806_v57 = vld [vmem:[%s8372_s29 + $0x4b4] sm:$0xf0]  ;;  %v5692_v60 = vor.u32 %v7774_v55, %v5691_v53  ;;  %v5515_v48 = vld [vmem:[%s8372_s29 + $0x248] sm:$0xf] }
 0x15b   : > { %v5820_v61 = vor.u32 %v7806_v57, %v5819_v56  ;;  %v7798_v37 = vld [vmem:[%s8372_s29 + $0x474] sm:$0xf0]  ;;  %v5771_v53 = vld [vmem:[%s8372_s29 + $0x448] sm:$0xf] }
 0x15c   : > { %4440 = vmatpush.bf16.msrb.mxu0 %v7400_v5  ;;  %v5931_v5 = vld [vmem:[%s8372_s29 + $0x588] sm:$0xf]  ;;  %v4234_v8 = vpop.f32.mrf.mxu0  ;;  %v7830_v40 = vld [vmem:[%s8372_s29 + $0x574] sm:$0xf0]  ;;  %v5788_v46 = vor.u32 %v7798_v37, %v5787_v35 }
 0x15d   : > { %4453 = vmatpush.bf16.msrb.mxu1 %v7528_v9  ;;  %v5676_v9 = vor.u32 %v7770_v1, %v5675_v0  ;;  %v7762_v52 = vld [vmem:[%s8372_s29 + $0x354] sm:$0xf0]  ;;  %v5899_v57 = vld [vmem:[%s8372_s29 + $0x548] sm:$0xf] }
 0x15e   : > { %4466 = vmatpush.bf16.msrb.mxu2 %v5228_v10  ;;  %4479 = vmatpush.bf16.msrb.mxu3 %v5356_v13  ;;  %v5804_v10 = vor.u32 %v7802_v4, %v5803_v2  ;;  %v5659_v13 = vld [vmem:[%s8372_s29 + $0x368] sm:$0xf]  ;;  %v7726_v0 = vld [vmem:[%s8372_s29 + $0x234] sm:$0xf0]  ;;  %v5900_v2 = vor.u32 %v7826_v50, %v5899_v57 }
 0x15f   : > { %4441 = vmatmul.bf16.vlgmr.msrb.gmra.mxu0 %v8782_v20  ;;  %v7758_v4 = vld [vmem:[%s8372_s29 + $0x334] sm:$0xf0] }
 0x160   : > { %4485 = vmatpush.bf16.msra.mxu0 %v5596_v14  ;;  %4454 = vmatmul.bf16.vlgmr.msrb.gmra.mxu1 %v8780_v38  ;;  %v4235_v14 = vadd.f32 %v4234_v8, %v9105_v22  ;;  %v5660_v22 = vor.u32 %v7766_v24, %v5659_v13  ;;  %v7822_v8 = vld [vmem:[%s8372_s29 + $0x534] sm:$0xf0] }
 0x161   : > { %4498 = vmatpush.bf16.msra.mxu1 %v5724_v16  ;;  %4467 = vmatmul.bf16.vlgmr.msrb.gmra.mxu2 %v8481_v28  ;;  %v4247_v16 = vpop.f32.mrf.mxu1  ;;  %v7722_v11 = vld [vmem:[%s8372_s29 + $0x214] sm:$0xf0] }
 0x162   : > { %4511 = vmatpush.bf16.msra.mxu2 %v5852_v21  ;;  %4524 = vmatpush.bf16.msra.mxu3 %v5980_v19  ;;  %v5932_v21 = vor.u32 %v7834_v6, %v5931_v5  ;;  %v5915_v19 = vld [vmem:[%s8372_s29 + $0x568] sm:$0xf]  ;;  %v4248_v41 = vadd.f32 %v4247_v16, %v4235_v14  ;;  %v7790_v6 = vld [vmem:[%s8372_s29 + $0x434] sm:$0xf0] }
 0x163   : > { %4480 = vmatmul.bf16.vlgmr.msrb.gmra.mxu3 %v8487_v34  ;;  %v5916_v51 = vor.u32 %v7830_v40, %v5915_v19  ;;  %v5755_v5 = vld [vmem:[%s8372_s29 + $0x428] sm:$0xf]  ;;  %v7754_v16 = vld [vmem:[%s8372_s29 + $0x314] sm:$0xf0] }
 0x164   : > { %4486 = vmatpush.bf16.msra.mxu0 %v5580_v23  ;;  %v7730_v23 = vld [vmem:[%s8372_s29 + $0x254] sm:$0xf0]  ;;  %v5756_v13 = vor.u32 %v7790_v6, %v5755_v5  ;;  %v5611_v14 = vld [vmem:[%s8372_s29 + $0x308] sm:$0xf] }
 0x165   : > { %4499 = vmatpush.bf16.msra.mxu1 %v5708_v47  ;;  %v5643_v47 = vld [vmem:[%s8372_s29 + $0x348] sm:$0xf]  ;;  %v5516_v58 = vor.u32 %v7730_v23, %v5515_v48  ;;  %v7786_v37 = vld [vmem:[%s8372_s29 + $0x414] sm:$0xf0] }
 0x166   : > { %4512 = vmatpush.bf16.msra.mxu2 %v5836_v49  ;;  %4525 = vmatpush.bf16.msra.mxu3 %v5964_v54  ;;  %v4260_v49 = vpop.f32.mrf.mxu2  ;;  %v7794_v54 = vld [vmem:[%s8372_s29 + $0x454] sm:$0xf0]  ;;  %v4273_v56 = vpop.f32.mrf.mxu3  ;;  %v5867_v19 = vld [vmem:[%s8372_s29 + $0x508] sm:$0xf] }
 0x167   : > { %v4261_v55 = vadd.f32 %v4260_v49, %v4248_v41  ;;  %v5772_v62 = vor.u32 %v7794_v54, %v5771_v53  ;;  %v7818_v40 = vld [vmem:[%s8372_s29 + $0x514] sm:$0xf0]  ;;  %v6491_v53 = vld [vmem:[%s8372_s29 + $0x9e8] sm:$0xf] }
 0x168   : > { %4487 = vmatpush.bf16.msra.mxu0 %v5564_v59  ;;  %v7910_v23 = vld [vmem:[%s8372_s29 + $0x7f4] sm:$0xf0] }
 0x169   : > { %4500 = vmatpush.bf16.msra.mxu1 %v5692_v60  ;;  %v9176_v59 = vadd.f32 %v4273_v56, %v4261_v55  ;;  %v4236_v60 = vpop.f32.mrf.mxu0  ;;  %v4249_v1 = vpop.f32.mrf.mxu1  ;;  %v7942_v49 = vld [vmem:[%s8372_s29 + $0x8f4] sm:$0xf0]  ;;  %v5868_v55 = vor.u32 %v7818_v40, %v5867_v19  ;;  %v6187_v40 = vld [vmem:[%s8372_s29 + $0x788] sm:$0xf] }
 0x16a   : > { %4513 = vmatpush.bf16.msra.mxu2 %v5820_v61  ;;  %4526 = vmatpush.bf16.msra.mxu3 %v5948_v3  ;;  %v5644_v61 = vor.u32 %v7762_v52, %v5643_v47  ;;  %v5627_v3 = vld [vmem:[%s8372_s29 + $0x328] sm:$0xf]  ;;  %v7974_v54 = vld [vmem:[%s8372_s29 + $0x9f4] sm:$0xf0] }
 0x16b   : > { %v5628_v12 = vor.u32 %v7758_v4, %v5627_v3  ;;  %v6363_v47 = vld [vmem:[%s8372_s29 + $0x8e8] sm:$0xf]  ;;  %v7874_v60 = vld [vmem:[%s8372_s29 + $0x6d4] sm:$0xf0] }
 0x16c   : > { %4488 = vmatpush.bf16.msra.mxu0 %v5548_v7  ;;  %v5883_v7 = vld [vmem:[%s8372_s29 + $0x528] sm:$0xf]  ;;  %v6364_v50 = vor.u32 %v7942_v49, %v6363_v47  ;;  %v7938_v3 = vld [vmem:[%s8372_s29 + $0x8d4] sm:$0xf0] }
 0x16d   : > { %4501 = vmatpush.bf16.msra.mxu1 %v5676_v9  ;;  %v5500_v9 = vor.u32 %v7726_v0, %v5499_v63  ;;  %v5884_v35 = vor.u32 %v7822_v8, %v5883_v7  ;;  %v7906_v63 = vld [vmem:[%s8372_s29 + $0x7d4] sm:$0xf0]  ;;  %v6347_v0 = vld [vmem:[%s8372_s29 + $0x8c8] sm:$0xf] }
 0x16e   : > { %4514 = vmatpush.bf16.msra.mxu2 %v5804_v10  ;;  %4527 = vmatpush.bf16.msra.mxu3 %v5932_v21  ;;  %v5483_v10 = vld [vmem:[%s8372_s29 + $0x208] sm:$0xf]  ;;  %v4262_v24 = vpop.f32.mrf.mxu2  ;;  %v4275_v41 = vpop.f32.mrf.mxu3  ;;  %v6348_v6 = vor.u32 %v7938_v3, %v6347_v0  ;;  %v7870_v8 = vld [vmem:[%s8372_s29 + $0x6b4] sm:$0xf0] }
 0x16f   : > { %v5739_v21 = vld [vmem:[%s8372_s29 + $0x408] sm:$0xf]  ;;  %v5484_v48 = vor.u32 %v7722_v11, %v5483_v10  ;;  %v7902_v11 = vld [vmem:[%s8372_s29 + $0x7b4] sm:$0xf0] }
 0x170   : > { %4489 = vmatpush.bf16.msra.mxu0 %v5532_v44  ;;  %v6107_v44 = vld [vmem:[%s8372_s29 + $0x6e8] sm:$0xf]  ;;  %v5740_v52 = vor.u32 %v7786_v37, %v5739_v21  ;;  %v7866_v19 = vld [vmem:[%s8372_s29 + $0x694] sm:$0xf0] }
 0x171   : > { %4502 = vmatpush.bf16.msra.mxu1 %v5660_v22  ;;  %v7878_v22 = vld [vmem:[%s8372_s29 + $0x6f4] sm:$0xf0]  ;;  %v6475_v1 = vld [vmem:[%s8372_s29 + $0x9c8] sm:$0xf] }
 0x172   : > { %4515 = vmatpush.bf16.msra.mxu2 %v5788_v46  ;;  %4528 = vmatpush.bf16.msra.mxu3 %v5916_v51  ;;  %v6235_v46 = vld [vmem:[%s8372_s29 + $0x7e8] sm:$0xf]  ;;  %v5612_v51 = vor.u32 %v7754_v16, %v5611_v14  ;;  %v6108_v56 = vor.u32 %v7878_v22, %v6107_v44  ;;  %v7966_v16 = vld [vmem:[%s8372_s29 + $0x9b4] sm:$0xf0] }
 0x173   : > { %v6236_v57 = vor.u32 %v7910_v23, %v6235_v46  ;;  %v6075_v7 = vld [vmem:[%s8372_s29 + $0x6a8] sm:$0xf]  ;;  %v7898_v44 = vld [vmem:[%s8372_s29 + $0x794] sm:$0xf0] }
 0x174   : > { %4490 = vmatpush.bf16.msra.mxu0 %v5516_v58  ;;  %v6091_v58 = vld [vmem:[%s8372_s29 + $0x6c8] sm:$0xf]  ;;  %v6076_v21 = vor.u32 %v7870_v8, %v6075_v7  ;;  %v7930_v46 = vld [vmem:[%s8372_s29 + $0x894] sm:$0xf0] }
 0x175   : > { %4503 = vmatpush.bf16.msra.mxu1 %v5644_v61  ;;  %v6219_v61 = vld [vmem:[%s8372_s29 + $0x7c8] sm:$0xf]  ;;  %v6092_v4 = vor.u32 %v7874_v60, %v6091_v58  ;;  %v7962_v47 = vld [vmem:[%s8372_s29 + $0x994] sm:$0xf0] }
 0x176   : > { %4516 = vmatpush.bf16.msra.mxu2 %v5772_v62  ;;  %4529 = vmatpush.bf16.msra.mxu3 %v5900_v2  ;;  %v6492_v62 = vor.u32 %v7974_v54, %v6491_v53  ;;  %v7970_v2 = vld [vmem:[%s8372_s29 + $0x9d4] sm:$0xf0]  ;;  %v6220_v5 = vor.u32 %v7906_v63, %v6219_v61  ;;  %v6459_v14 = vld [vmem:[%s8372_s29 + $0x9a8] sm:$0xf]  ;;  %v6188_v53 = vor.u32 %v7898_v44, %v6187_v40 }
 0x177   : > { %v6476_v10 = vor.u32 %v7970_v2, %v6475_v1  ;;  %v6059_v37 = vld [vmem:[%s8372_s29 + $0x688] sm:$0xf]  ;;  %v6460_v41 = vor.u32 %v7966_v16, %v6459_v14  ;;  %v7894_v60 = vld [vmem:[%s8372_s29 + $0x774] sm:$0xf0] }
 0x178   : > { %4491 = vmatpush.bf16.msra.mxu0 %v5500_v9  ;;  %v6203_v9 = vld [vmem:[%s8372_s29 + $0x7a8] sm:$0xf]  ;;  %v7958_v63 = vld [vmem:[%s8372_s29 + $0x974] sm:$0xf0] }
 0x179   : > { %4504 = vmatpush.bf16.msra.mxu1 %v5628_v12  ;;  %v6331_v12 = vld [vmem:[%s8372_s29 + $0x8a8] sm:$0xf]  ;;  %v6204_v24 = vor.u32 %v7902_v11, %v6203_v9  ;;  %v7890_v8 = vld [vmem:[%s8372_s29 + $0x754] sm:$0xf0] }
 0x17a   : > { %4517 = vmatpush.bf16.msra.mxu2 %v5756_v13  ;;  %4530 = vmatpush.bf16.msra.mxu3 %v5884_v35  ;;  %v7934_v13 = vld [vmem:[%s8372_s29 + $0x8b4] sm:$0xf0]  ;;  %v6315_v22 = vld [vmem:[%s8372_s29 + $0x888] sm:$0xf] }
 0x17b   : > { %v6332_v35 = vor.u32 %v7934_v13, %v6331_v12  ;;  %v6443_v23 = vld [vmem:[%s8372_s29 + $0x988] sm:$0xf]  ;;  %v6316_v54 = vor.u32 %v7930_v46, %v6315_v22  ;;  %v7954_v14 = vld [vmem:[%s8372_s29 + $0x954] sm:$0xf0] }
 0x17c   : > { %4492 = vmatpush.bf16.msra.mxu0 %v5484_v48  ;;  %v4286_v48 = vpop.f32.mrf.mxu0  ;;  %v6299_v61 = vld [vmem:[%s8372_s29 + $0x868] sm:$0xf]  ;;  %v7886_v46 = vld [vmem:[%s8372_s29 + $0x734] sm:$0xf0] }
 0x17d   : > { %4505 = vmatpush.bf16.msra.mxu1 %v5612_v51  ;;  %v4287_v49 = vadd.f32 %v4286_v48, %v9176_v59  ;;  %v6060_v51 = vor.u32 %v7866_v19, %v6059_v37  ;;  %v7926_v59 = vld [vmem:[%s8372_s29 + $0x874] sm:$0xf0]  ;;  %v6027_v2 = vld [vmem:[%s8372_s29 + $0x648] sm:$0xf] }
 0x17e   : > { %4518 = vmatpush.bf16.msra.mxu2 %v5740_v52  ;;  %4531 = vmatpush.bf16.msra.mxu3 %v5868_v55  ;;  %v4299_v52 = vpop.f32.mrf.mxu1  ;;  %v6043_v55 = vld [vmem:[%s8372_s29 + $0x668] sm:$0xf]  ;;  %v6300_v1 = vor.u32 %v7926_v59, %v6299_v61  ;;  %v7946_v59 = vld [vmem:[%s8372_s29 + $0x914] sm:$0xf0] }
 0x17f   : > { %4493 = vmatmul.bf16.vlgmr.msra.gmra.mxu0 %v8479_v27  ;;  %v4300_v58 = vadd.f32 %v4299_v52, %v4287_v49  ;;  %v6283_v9 = vld [vmem:[%s8372_s29 + $0x848] sm:$0xf]  ;;  %v7950_v49 = vld [vmem:[%s8372_s29 + $0x934] sm:$0xf0] }
 0x180   : > { %4537 = vmatpush.bf16.msrb.mxu0 %v6108_v56  ;;  %4506 = vmatmul.bf16.vlgmr.msra.gmra.mxu1 %v8485_v33  ;;  %v7862_v56 = vld [vmem:[%s8372_s29 + $0x674] sm:$0xf0]  ;;  %v6411_v13 = vld [vmem:[%s8372_s29 + $0x948] sm:$0xf] }
 0x181   : > { %4550 = vmatpush.bf16.msrb.mxu1 %v6236_v57  ;;  %4519 = vmatmul.bf16.vlgmr.msra.gmra.mxu2 %v8537_v42  ;;  %v6171_v57 = vld [vmem:[%s8372_s29 + $0x768] sm:$0xf]  ;;  %v6044_v0 = vor.u32 %v7862_v56, %v6043_v55  ;;  %v6412_v22 = vor.u32 %v7954_v14, %v6411_v13 }
 0x182   : > { %4563 = vmatpush.bf16.msrb.mxu2 %v6364_v50  ;;  %4576 = vmatpush.bf16.msrb.mxu3 %v6492_v62  ;;  %v6444_v50 = vor.u32 %v7962_v47, %v6443_v23  ;;  %v6427_v62 = vld [vmem:[%s8372_s29 + $0x968] sm:$0xf]  ;;  %v6172_v3 = vor.u32 %v7894_v60, %v6171_v57  ;;  %v7918_v23 = vld [vmem:[%s8372_s29 + $0x834] sm:$0xf0] }
 0x183   : > { %4532 = vmatmul.bf16.vlgmr.msra.gmra.mxu3 %v8541_v45  ;;  %v6011_v40 = vld [vmem:[%s8372_s29 + $0x628] sm:$0xf]  ;;  %v7882_v57 = vld [vmem:[%s8372_s29 + $0x714] sm:$0xf0] }
 0x184   : > { %4538 = vmatpush.bf16.msrb.mxu0 %v6092_v4  ;;  %v7858_v4 = vld [vmem:[%s8372_s29 + $0x654] sm:$0xf0]  ;;  %v4312_v7 = vpop.f32.mrf.mxu2  ;;  %v4288_v16 = vpop.f32.mrf.mxu0  ;;  %v6139_v44 = vld [vmem:[%s8372_s29 + $0x728] sm:$0xf] }
 0x185   : > { %4551 = vmatpush.bf16.msrb.mxu1 %v6220_v5  ;;  %v6155_v5 = vld [vmem:[%s8372_s29 + $0x748] sm:$0xf]  ;;  %v4313_v11 = vadd.f32 %v4312_v7, %v4300_v58  ;;  %v7914_v60 = vld [vmem:[%s8372_s29 + $0x814] sm:$0xf0] }
 0x186   : > { %4564 = vmatpush.bf16.msrb.mxu2 %v6348_v6  ;;  %4577 = vmatpush.bf16.msrb.mxu3 %v6476_v10  ;;  %v6428_v6 = vor.u32 %v7958_v63, %v6427_v62  ;;  %v7922_v10 = vld [vmem:[%s8372_s29 + $0x854] sm:$0xf0]  ;;  %v4325_v12 = vpop.f32.mrf.mxu3  ;;  %v6156_v37 = vor.u32 %v7890_v8, %v6155_v5  ;;  %v6267_v48 = vld [vmem:[%s8372_s29 + $0x828] sm:$0xf] }
 0x187   : > { %v6284_v19 = vor.u32 %v7922_v10, %v6283_v9  ;;  %v6395_v47 = vld [vmem:[%s8372_s29 + $0x928] sm:$0xf]  ;;  %v6268_v55 = vor.u32 %v7918_v23, %v6267_v48  ;;  %v8102_v10 = vld [vmem:[%s8372_s29 + $0xdf4] sm:$0xf0] }
 0x188   : > { %4539 = vmatpush.bf16.msrb.mxu0 %v6076_v21  ;;  %v6028_v21 = vor.u32 %v7858_v4, %v6027_v2  ;;  %v5995_v52 = vld [vmem:[%s8372_s29 + $0x608] sm:$0xf]  ;;  %v6396_v58 = vor.u32 %v7950_v49, %v6395_v47  ;;  %v8038_v4 = vld [vmem:[%s8372_s29 + $0xbf4] sm:$0xf0] }
 0x189   : > { %4552 = vmatpush.bf16.msrb.mxu1 %v6204_v24  ;;  %v4301_v24 = vpop.f32.mrf.mxu1  ;;  %v6123_v56 = vld [vmem:[%s8372_s29 + $0x708] sm:$0xf]  ;;  %v7998_v49 = vld [vmem:[%s8372_s29 + $0xab4] sm:$0xf0] }
 0x18a   : > { %4565 = vmatpush.bf16.msrb.mxu2 %v6332_v35  ;;  %4578 = vmatpush.bf16.msrb.mxu3 %v6460_v41  ;;  %v9247_v35 = vadd.f32 %v4325_v12, %v4313_v11  ;;  %v7854_v41 = vld [vmem:[%s8372_s29 + $0x634] sm:$0xf0]  ;;  %v6379_v61 = vld [vmem:[%s8372_s29 + $0x908] sm:$0xf]  ;;  %v6124_v7 = vor.u32 %v7882_v57, %v6123_v56 }
 0x18b   : > { %v6619_v63 = vld [vmem:[%s8372_s29 + $0xae8] sm:$0xf]  ;;  %v6380_v11 = vor.u32 %v7946_v59, %v6379_v61  ;;  %v8094_v57 = vld [vmem:[%s8372_s29 + $0xdb4] sm:$0xf0] }
 0x18c   : > { %4540 = vmatpush.bf16.msrb.mxu0 %v6060_v51  ;;  %v6012_v51 = vor.u32 %v7854_v41, %v6011_v40  ;;  %v4314_v62 = vpop.f32.mrf.mxu2  ;;  %v6875_v5 = vld [vmem:[%s8372_s29 + $0xce8] sm:$0xf]  ;;  %v8066_v41 = vld [vmem:[%s8372_s29 + $0xcd4] sm:$0xf0] }
 0x18d   : > { %4553 = vmatpush.bf16.msrb.mxu1 %v6188_v53  ;;  %v7850_v53 = vld [vmem:[%s8372_s29 + $0x614] sm:$0xf0]  ;;  %v7003_v9 = vld [vmem:[%s8372_s29 + $0xde8] sm:$0xf] }
 0x18e   : > { %4566 = vmatpush.bf16.msrb.mxu2 %v6316_v54  ;;  %4579 = vmatpush.bf16.msrb.mxu3 %v6444_v50  ;;  %v6140_v54 = vor.u32 %v7886_v46, %v6139_v44  ;;  %v6251_v50 = vld [vmem:[%s8372_s29 + $0x808] sm:$0xf]  ;;  %v5996_v2 = vor.u32 %v7850_v53, %v5995_v52  ;;  %v8030_v53 = vld [vmem:[%s8372_s29 + $0xbb4] sm:$0xf0] }
 0x18f   : > { %v6252_v8 = vor.u32 %v7914_v60, %v6251_v50  ;;  %v6603_v16 = vld [vmem:[%s8372_s29 + $0xac8] sm:$0xf]  ;;  %v7994_v59 = vld [vmem:[%s8372_s29 + $0xa94] sm:$0xf0] }
 0x190   : > { %4541 = vmatpush.bf16.msrb.mxu0 %v6044_v0  ;;  %v8006_v0 = vld [vmem:[%s8372_s29 + $0xaf4] sm:$0xf0]  ;;  %v6731_v24 = vld [vmem:[%s8372_s29 + $0xbc8] sm:$0xf] }
 0x191   : > { %4554 = vmatpush.bf16.msrb.mxu1 %v6172_v3  ;;  %v6747_v3 = vld [vmem:[%s8372_s29 + $0xbe8] sm:$0xf]  ;;  %v6620_v12 = vor.u32 %v8006_v0, %v6619_v63  ;;  %v8026_v0 = vld [vmem:[%s8372_s29 + $0xb94] sm:$0xf0] }
 0x192   : > { %4567 = vmatpush.bf16.msrb.mxu2 %v6300_v1  ;;  %4580 = vmatpush.bf16.msrb.mxu3 %v6428_v6  ;;  %v4327_v1 = vpop.f32.mrf.mxu3  ;;  %v8070_v6 = vld [vmem:[%s8372_s29 + $0xcf4] sm:$0xf0]  ;;  %v6748_v13 = vor.u32 %v8038_v4, %v6747_v3  ;;  %v6859_v40 = vld [vmem:[%s8372_s29 + $0xcc8] sm:$0xf] }
 0x193   : > { %v6876_v14 = vor.u32 %v8070_v6, %v6875_v5  ;;  %v6987_v44 = vld [vmem:[%s8372_s29 + $0xdc8] sm:$0xf]  ;;  %v6860_v23 = vor.u32 %v8066_v41, %v6859_v40  ;;  %v8058_v1 = vld [vmem:[%s8372_s29 + $0xc94] sm:$0xf0] }
 0x194   : > { %4542 = vmatpush.bf16.msrb.mxu0 %v6028_v21  ;;  %v8002_v21 = vld [vmem:[%s8372_s29 + $0xad4] sm:$0xf0]  ;;  %v6587_v47 = vld [vmem:[%s8372_s29 + $0xaa8] sm:$0xf] }
 0x195   : > { %4555 = vmatpush.bf16.msrb.mxu1 %v6156_v37  ;;  %v7004_v37 = vor.u32 %v8102_v10, %v7003_v9  ;;  %v6604_v46 = vor.u32 %v8002_v21, %v6603_v16  ;;  %v6971_v56 = vld [vmem:[%s8372_s29 + $0xda8] sm:$0xf]  ;;  %v6588_v50 = vor.u32 %v7998_v49, %v6587_v47  ;;  %v8090_v5 = vld [vmem:[%s8372_s29 + $0xd94] sm:$0xf0] }
 0x196   : > { %4568 = vmatpush.bf16.msrb.mxu2 %v6284_v19  ;;  %4581 = vmatpush.bf16.msrb.mxu3 %v6412_v22  ;;  %v8034_v19 = vld [vmem:[%s8372_s29 + $0xbd4] sm:$0xf0]  ;;  %v6571_v61 = vld [vmem:[%s8372_s29 + $0xa88] sm:$0xf]  ;;  %v6972_v63 = vor.u32 %v8094_v57, %v6971_v56 }
 0x197   : > { %v8098_v22 = vld [vmem:[%s8372_s29 + $0xdd4] sm:$0xf0]  ;;  %v6732_v48 = vor.u32 %v8034_v19, %v6731_v24  ;;  %v6699_v62 = vld [vmem:[%s8372_s29 + $0xb88] sm:$0xf] }
 0x198   : > { %4543 = vmatpush.bf16.msrb.mxu0 %v6012_v51  ;;  %v6715_v51 = vld [vmem:[%s8372_s29 + $0xba8] sm:$0xf]  ;;  %v6988_v52 = vor.u32 %v8098_v22, %v6987_v44  ;;  %v6700_v9 = vor.u32 %v8026_v0, %v6699_v62  ;;  %v8022_v21 = vld [vmem:[%s8372_s29 + $0xb74] sm:$0xf0] }
 0x199   : > { %4556 = vmatpush.bf16.msrb.mxu1 %v6140_v54  ;;  %v6843_v54 = vld [vmem:[%s8372_s29 + $0xca8] sm:$0xf]  ;;  %v8086_v19 = vld [vmem:[%s8372_s29 + $0xd74] sm:$0xf0] }
 0x19a   : > { %4569 = vmatpush.bf16.msrb.mxu2 %v6268_v55  ;;  %4582 = vmatpush.bf16.msrb.mxu3 %v6396_v58  ;;  %v8062_v55 = vld [vmem:[%s8372_s29 + $0xcb4] sm:$0xf0]  ;;  %v6716_v58 = vor.u32 %v8030_v53, %v6715_v51  ;;  %v6827_v3 = vld [vmem:[%s8372_s29 + $0xc88] sm:$0xf] }
 0x19b   : > { %v6844_v60 = vor.u32 %v8062_v55, %v6843_v54  ;;  %v6955_v4 = vld [vmem:[%s8372_s29 + $0xd88] sm:$0xf]  ;;  %v6828_v10 = vor.u32 %v8058_v1, %v6827_v3  ;;  %v8018_v49 = vld [vmem:[%s8372_s29 + $0xb54] sm:$0xf0] }
 0x19c   : > { %4544 = vmatpush.bf16.msrb.mxu0 %v5996_v2  ;;  %v4338_v2 = vpop.f32.mrf.mxu0  ;;  %v6811_v24 = vld [vmem:[%s8372_s29 + $0xc68] sm:$0xf]  ;;  %v8082_v56 = vld [vmem:[%s8372_s29 + $0xd54] sm:$0xf0] }
 0x19d   : > { %4557 = vmatpush.bf16.msrb.mxu1 %v6124_v7  ;;  %v4339_v6 = vadd.f32 %v4338_v2, %v9247_v35  ;;  %v6572_v7 = vor.u32 %v7994_v59, %v6571_v61  ;;  %v8054_v35 = vld [vmem:[%s8372_s29 + $0xc74] sm:$0xf0]  ;;  %v6539_v22 = vld [vmem:[%s8372_s29 + $0xa48] sm:$0xf] }
 0x19e   : > { %4570 = vmatpush.bf16.msrb.mxu2 %v6252_v8  ;;  %4583 = vmatpush.bf16.msrb.mxu3 %v6380_v11  ;;  %v4351_v8 = vpop.f32.mrf.mxu1  ;;  %v6555_v11 = vld [vmem:[%s8372_s29 + $0xa68] sm:$0xf]  ;;  %v6812_v44 = vor.u32 %v8054_v35, %v6811_v24  ;;  %v8014_v1 = vld [vmem:[%s8372_s29 + $0xb34] sm:$0xf0] }
 0x19f   : > { %4545 = vmatmul.bf16.vlgmr.msrb.gmra.mxu0 %v8533_v39  ;;  %v4352_v16 = vadd.f32 %v4351_v8, %v4339_v6  ;;  %v6795_v51 = vld [vmem:[%s8372_s29 + $0xc48] sm:$0xf]  ;;  %v8078_v6 = vld [vmem:[%s8372_s29 + $0xd34] sm:$0xf0] }
 0x1a0   : > { %4589 = vmatpush.bf16.msra.mxu0 %v6620_v12  ;;  %4558 = vmatmul.bf16.vlgmr.msrb.gmra.mxu1 %v8539_v43  ;;  %v7990_v12 = vld [vmem:[%s8372_s29 + $0xa74] sm:$0xf0]  ;;  %v6923_v55 = vld [vmem:[%s8372_s29 + $0xd48] sm:$0xf] }
 0x1a1   : > { %4602 = vmatpush.bf16.msra.mxu1 %v6748_v13  ;;  %4571 = vmatmul.bf16.vlgmr.msrb.gmra.mxu2 %v8617_v25  ;;  %v6683_v13 = vld [vmem:[%s8372_s29 + $0xb68] sm:$0xf]  ;;  %v6556_v40 = vor.u32 %v7990_v12, %v6555_v11  ;;  %v6924_v3 = vor.u32 %v8082_v56, %v6923_v55  ;;  %v8074_v35 = vld [vmem:[%s8372_s29 + $0xd14] sm:$0xf0] }
 0x1a2   : > { %4615 = vmatpush.bf16.msra.mxu2 %v6876_v14  ;;  %4628 = vmatpush.bf16.msra.mxu3 %v7004_v37  ;;  %v6956_v14 = vor.u32 %v8090_v5, %v6955_v4  ;;  %v6939_v37 = vld [vmem:[%s8372_s29 + $0xd68] sm:$0xf]  ;;  %v6684_v41 = vor.u32 %v8022_v21, %v6683_v13  ;;  %v8046_v4 = vld [vmem:[%s8372_s29 + $0xc34] sm:$0xf0] }
 0x1a3   : > { %4584 = vmatmul.bf16.vlgmr.msrb.gmra.mxu3 %v8628_v32  ;;  %v6523_v62 = vld [vmem:[%s8372_s29 + $0xa28] sm:$0xf]  ;;  %v8010_v13 = vld [vmem:[%s8372_s29 + $0xb14] sm:$0xf0] }
 0x1a4   : > { %4590 = vmatpush.bf16.msra.mxu0 %v6604_v46  ;;  %v7986_v46 = vld [vmem:[%s8372_s29 + $0xa54] sm:$0xf0]  ;;  %v4364_v47 = vpop.f32.mrf.mxu2  ;;  %v4340_v57 = vpop.f32.mrf.mxu0  ;;  %v6651_v0 = vld [vmem:[%s8372_s29 + $0xb28] sm:$0xf] }
 0x1a5   : > { %4603 = vmatpush.bf16.msra.mxu1 %v6732_v48  ;;  %v6667_v48 = vld [vmem:[%s8372_s29 + $0xb48] sm:$0xf]  ;;  %v4365_v53 = vadd.f32 %v4364_v47, %v4352_v16  ;;  %v8042_v21 = vld [vmem:[%s8372_s29 + $0xc14] sm:$0xf0] }
 0x1a6   : > { %4616 = vmatpush.bf16.msra.mxu2 %v6860_v23  ;;  %4629 = vmatpush.bf16.msra.mxu3 %v6988_v52  ;;  %v6940_v23 = vor.u32 %v8086_v19, %v6939_v37  ;;  %v8050_v52 = vld [vmem:[%s8372_s29 + $0xc54] sm:$0xf0]  ;;  %v4377_v54 = vpop.f32.mrf.mxu3  ;;  %v6668_v61 = vor.u32 %v8018_v49, %v6667_v48  ;;  %v6779_v2 = vld [vmem:[%s8372_s29 + $0xc28] sm:$0xf] }
 0x1a7   : > { %v6796_v59 = vor.u32 %v8050_v52, %v6795_v51  ;;  %v6907_v5 = vld [vmem:[%s8372_s29 + $0xd28] sm:$0xf]  ;;  %v6780_v11 = vor.u32 %v8046_v4, %v6779_v2  ;;  %v8230_v52 = vld [vmem:[%s8372_s29 + $0x11f4] sm:$0xf0] }
 0x1a8   : > { %4591 = vmatpush.bf16.msra.mxu0 %v6588_v50  ;;  %v6540_v50 = vor.u32 %v7986_v46, %v6539_v22  ;;  %v6507_v8 = vld [vmem:[%s8372_s29 + $0xa08] sm:$0xf]  ;;  %v6908_v16 = vor.u32 %v8078_v6, %v6907_v5  ;;  %v8166_v46 = vld [vmem:[%s8372_s29 + $0xff4] sm:$0xf0] }
 0x1a9   : > { %4604 = vmatpush.bf16.msra.mxu1 %v6716_v58  ;;  %v4353_v58 = vpop.f32.mrf.mxu1  ;;  %v6635_v12 = vld [vmem:[%s8372_s29 + $0xb08] sm:$0xf]  ;;  %v8126_v6 = vld [vmem:[%s8372_s29 + $0xeb4] sm:$0xf0] }
 0x1aa   : > { %4617 = vmatpush.bf16.msra.mxu2 %v6844_v60  ;;  %4630 = vmatpush.bf16.msra.mxu3 %v6972_v63  ;;  %v9318_v60 = vadd.f32 %v4377_v54, %v4365_v53  ;;  %v7982_v63 = vld [vmem:[%s8372_s29 + $0xa34] sm:$0xf0]  ;;  %v6891_v24 = vld [vmem:[%s8372_s29 + $0xd08] sm:$0xf]  ;;  %v6636_v47 = vor.u32 %v8010_v13, %v6635_v12 }
 0x1ab   : > { %v7131_v19 = vld [vmem:[%s8372_s29 + $0xee8] sm:$0xf]  ;;  %v6892_v53 = vor.u32 %v8074_v35, %v6891_v24  ;;  %v8222_v13 = vld [vmem:[%s8372_s29 + $0x11b4] sm:$0xf0] }
 0x1ac   : > { %4592 = vmatpush.bf16.msra.mxu0 %v6572_v7  ;;  %v6524_v7 = vor.u32 %v7982_v63, %v6523_v62  ;;  %v4366_v37 = vpop.f32.mrf.mxu2  ;;  %v7387_v48 = vld [vmem:[%s8372_s29 + $0x10e8] sm:$0xf]  ;;  %v8194_v63 = vld [vmem:[%s8372_s29 + $0x10d4] sm:$0xf0] }
 0x1ad   : > { %4605 = vmatpush.bf16.msra.mxu1 %v6700_v9  ;;  %v7978_v9 = vld [vmem:[%s8372_s29 + $0xa14] sm:$0xf0]  ;;  %v7515_v51 = vld [vmem:[%s8372_s29 + $0x11e8] sm:$0xf] }
 0x1ae   : > { %4618 = vmatpush.bf16.msra.mxu2 %v6828_v10  ;;  %4631 = vmatpush.bf16.msra.mxu3 %v6956_v14  ;;  %v6652_v10 = vor.u32 %v8014_v1, %v6651_v0  ;;  %v6763_v14 = vld [vmem:[%s8372_s29 + $0xc08] sm:$0xf]  ;;  %v6508_v22 = vor.u32 %v7978_v9, %v6507_v8  ;;  %v8158_v9 = vld [vmem:[%s8372_s29 + $0xfb4] sm:$0xf0] }
 0x1af   : > { %v6764_v49 = vor.u32 %v8042_v21, %v6763_v14  ;;  %v7115_v57 = vld [vmem:[%s8372_s29 + $0xec8] sm:$0xf]  ;;  %v8122_v35 = vld [vmem:[%s8372_s29 + $0xe94] sm:$0xf0] }
 0x1b0   : > { %4593 = vmatpush.bf16.msra.mxu0 %v6556_v40  ;;  %v8134_v40 = vld [vmem:[%s8372_s29 + $0xef4] sm:$0xf0]  ;;  %v7243_v58 = vld [vmem:[%s8372_s29 + $0xfc8] sm:$0xf] }
 0x1b1   : > { %4606 = vmatpush.bf16.msra.mxu1 %v6684_v41  ;;  %v7259_v41 = vld [vmem:[%s8372_s29 + $0xfe8] sm:$0xf]  ;;  %v7132_v54 = vor.u32 %v8134_v40, %v7131_v19  ;;  %v8154_v40 = vld [vmem:[%s8372_s29 + $0xf94] sm:$0xf0] }
 0x1b2   : > { %4619 = vmatpush.bf16.msra.mxu2 %v6812_v44  ;;  %4632 = vmatpush.bf16.msra.mxu3 %v6940_v23  ;;  %v4379_v44 = vpop.f32.mrf.mxu3  ;;  %v8198_v23 = vld [vmem:[%s8372_s29 + $0x10f4] sm:$0xf0]  ;;  %v7260_v55 = vor.u32 %v8166_v46, %v7259_v41  ;;  %v7371_v62 = vld [vmem:[%s8372_s29 + $0x10c8] sm:$0xf] }
 0x1b3   : > { %v7388_v56 = vor.u32 %v8198_v23, %v7387_v48  ;;  %v7499_v0 = vld [vmem:[%s8372_s29 + $0x11c8] sm:$0xf]  ;;  %v7372_v4 = vor.u32 %v8194_v63, %v7371_v62  ;;  %v8186_v44 = vld [vmem:[%s8372_s29 + $0x1094] sm:$0xf0] }
 0x1b4   : > { %4594 = vmatpush.bf16.msra.mxu0 %v6540_v50  ;;  %v8130_v50 = vld [vmem:[%s8372_s29 + $0xed4] sm:$0xf0]  ;;  %v7099_v5 = vld [vmem:[%s8372_s29 + $0xea8] sm:$0xf] }
 0x1b5   : > { %4607 = vmatpush.bf16.msra.mxu1 %v6668_v61  ;;  %v7516_v61 = vor.u32 %v8230_v52, %v7515_v51  ;;  %v7116_v1 = vor.u32 %v8130_v50, %v7115_v57  ;;  %v7483_v12 = vld [vmem:[%s8372_s29 + $0x11a8] sm:$0xf]  ;;  %v7100_v14 = vor.u32 %v8126_v6, %v7099_v5  ;;  %v8218_v48 = vld [vmem:[%s8372_s29 + $0x1194] sm:$0xf0] }
 0x1b6   : > { %4620 = vmatpush.bf16.msra.mxu2 %v6796_v59  ;;  %4633 = vmatpush.bf16.msra.mxu3 %v6924_v3  ;;  %v8162_v59 = vld [vmem:[%s8372_s29 + $0xfd4] sm:$0xf0]  ;;  %v7083_v24 = vld [vmem:[%s8372_s29 + $0xe88] sm:$0xf]  ;;  %v7484_v19 = vor.u32 %v8222_v13, %v7483_v12 }
 0x1b7   : > { %v8226_v3 = vld [vmem:[%s8372_s29 + $0x11d4] sm:$0xf0]  ;;  %v7244_v2 = vor.u32 %v8162_v59, %v7243_v58  ;;  %v7211_v37 = vld [vmem:[%s8372_s29 + $0xf88] sm:$0xf] }
 0x1b8   : > { %4595 = vmatpush.bf16.msra.mxu0 %v6524_v7  ;;  %v7227_v7 = vld [vmem:[%s8372_s29 + $0xfa8] sm:$0xf]  ;;  %v7500_v8 = vor.u32 %v8226_v3, %v7499_v0  ;;  %v7212_v51 = vor.u32 %v8154_v40, %v7211_v37  ;;  %v8150_v50 = vld [vmem:[%s8372_s29 + $0xf74] sm:$0xf0] }
 0x1b9   : > { %4608 = vmatpush.bf16.msra.mxu1 %v6652_v10  ;;  %v7355_v10 = vld [vmem:[%s8372_s29 + $0x10a8] sm:$0xf]  ;;  %v8214_v59 = vld [vmem:[%s8372_s29 + $0x1174] sm:$0xf0] }
 0x1ba   : > { %4621 = vmatpush.bf16.msra.mxu2 %v6780_v11  ;;  %4634 = vmatpush.bf16.msra.mxu3 %v6908_v16  ;;  %v8190_v11 = vld [vmem:[%s8372_s29 + $0x10b4] sm:$0xf0]  ;;  %v7228_v16 = vor.u32 %v8158_v9, %v7227_v7  ;;  %v7339_v41 = vld [vmem:[%s8372_s29 + $0x1088] sm:$0xf] }
 0x1bb   : > { %v7356_v21 = vor.u32 %v8190_v11, %v7355_v10  ;;  %v7467_v46 = vld [vmem:[%s8372_s29 + $0x1188] sm:$0xf]  ;;  %v7340_v52 = vor.u32 %v8186_v44, %v7339_v41  ;;  %v8146_v6 = vld [vmem:[%s8372_s29 + $0xf54] sm:$0xf0] }
 0x1bc   : > { %4596 = vmatpush.bf16.msra.mxu0 %v6508_v22  ;;  %v4390_v22 = vpop.f32.mrf.mxu0  ;;  %v7323_v58 = vld [vmem:[%s8372_s29 + $0x1068] sm:$0xf]  ;;  %v8210_v12 = vld [vmem:[%s8372_s29 + $0x1154] sm:$0xf0] }
 0x1bd   : > { %4609 = vmatpush.bf16.msra.mxu1 %v6636_v47  ;;  %v4391_v23 = vadd.f32 %v4390_v22, %v9318_v60  ;;  %v7084_v47 = vor.u32 %v8122_v35, %v7083_v24  ;;  %v8182_v60 = vld [vmem:[%s8372_s29 + $0x1074] sm:$0xf0]  ;;  %v7051_v3 = vld [vmem:[%s8372_s29 + $0xe48] sm:$0xf] }
 0x1be   : > { %4622 = vmatpush.bf16.msra.mxu2 %v6764_v49  ;;  %4635 = vmatpush.bf16.msra.mxu3 %v6892_v53  ;;  %v4403_v49 = vpop.f32.mrf.mxu1  ;;  %v7067_v53 = vld [vmem:[%s8372_s29 + $0xe68] sm:$0xf]  ;;  %v7324_v0 = vor.u32 %v8182_v60, %v7323_v58  ;;  %v8142_v44 = vld [vmem:[%s8372_s29 + $0xf34] sm:$0xf0] }
 0x1bf   : > { %4597 = vmatmul.bf16.vlgmr.msra.gmra.mxu0 %v8624_v31  ;;  %v4404_v57 = vadd.f32 %v4403_v49, %v4391_v23  ;;  %v7307_v7 = vld [vmem:[%s8372_s29 + $0x1048] sm:$0xf]  ;;  %v8206_v23 = vld [vmem:[%s8372_s29 + $0x1134] sm:$0xf0] }
 0x1c0   : > { %4641 = vmatpush.bf16.msrb.mxu0 %v7132_v54  ;;  %4610 = vmatmul.bf16.vlgmr.msra.gmra.mxu1 %v8634_v36  ;;  %v8118_v54 = vld [vmem:[%s8372_s29 + $0xe74] sm:$0xf0]  ;;  %v7435_v11 = vld [vmem:[%s8372_s29 + $0x1148] sm:$0xf] }
 0x1c1   : > { %4654 = vmatpush.bf16.msrb.mxu1 %v7260_v55  ;;  %4623 = vmatmul.bf16.vlgmr.msra.gmra.mxu2 %v8699_v18  ;;  %v7195_v55 = vld [vmem:[%s8372_s29 + $0xf68] sm:$0xf]  ;;  %v7068_v62 = vor.u32 %v8118_v54, %v7067_v53  ;;  %v7436_v41 = vor.u32 %v8210_v12, %v7435_v11  ;;  %v8202_v60 = vld [vmem:[%s8372_s29 + $0x1114] sm:$0xf0] }
 0x1c2   : > { %4667 = vmatpush.bf16.msrb.mxu2 %v7388_v56  ;;  %4680 = vmatpush.bf16.msrb.mxu3 %v7516_v61  ;;  %v7468_v56 = vor.u32 %v8218_v48, %v7467_v46  ;;  %v7451_v61 = vld [vmem:[%s8372_s29 + $0x1168] sm:$0xf]  ;;  %v7196_v63 = vor.u32 %v8150_v50, %v7195_v55  ;;  %v8174_v46 = vld [vmem:[%s8372_s29 + $0x1034] sm:$0xf0] }
 0x1c3   : > { %4636 = vmatmul.bf16.vlgmr.msra.gmra.mxu3 %v8706_v29  ;;  %v7035_v37 = vld [vmem:[%s8372_s29 + $0xe28] sm:$0xf]  ;;  %v8138_v55 = vld [vmem:[%s8372_s29 + $0xf14] sm:$0xf0] }
 0x1c4   : > { %4642 = vmatpush.bf16.msrb.mxu0 %v7116_v1  ;;  %v8114_v1 = vld [vmem:[%s8372_s29 + $0xe54] sm:$0xf0]  ;;  %v4416_v5 = vpop.f32.mrf.mxu2  ;;  %v4392_v13 = vpop.f32.mrf.mxu0  ;;  %v7163_v40 = vld [vmem:[%s8372_s29 + $0xf28] sm:$0xf] }
 0x1c5   : > { %4655 = vmatpush.bf16.msrb.mxu1 %v7244_v2  ;;  %v7179_v2 = vld [vmem:[%s8372_s29 + $0xf48] sm:$0xf]  ;;  %v4417_v9 = vadd.f32 %v4416_v5, %v4404_v57  ;;  %v8170_v50 = vld [vmem:[%s8372_s29 + $0x1014] sm:$0xf0] }
 0x1c6   : > { %4668 = vmatpush.bf16.msrb.mxu2 %v7372_v4  ;;  %4681 = vmatpush.bf16.msrb.mxu3 %v7500_v8  ;;  %v7452_v4 = vor.u32 %v8214_v59, %v7451_v61  ;;  %v8178_v8 = vld [vmem:[%s8372_s29 + $0x1054] sm:$0xf0]  ;;  %v4429_v10 = vpop.f32.mrf.mxu3  ;;  %v7180_v24 = vor.u32 %v8146_v6, %v7179_v2  ;;  %v7291_v22 = vld [vmem:[%s8372_s29 + $0x1028] sm:$0xf]  ;;  %v7716_v2 = vld [vmem:[%s8372_s29 + $0x1ec] sm:$0xf] }
 0x1c7   : > { %v7308_v35 = vor.u32 %v8178_v8, %v7307_v7  ;;  %v7419_v48 = vld [vmem:[%s8372_s29 + $0x1128] sm:$0xf]  ;;  %v7292_v53 = vor.u32 %v8174_v46, %v7291_v22  ;;  %v7748_v7 = vld [vmem:[%s8372_s29 + $0x2ec] sm:$0xf]  ;;  %v5597_v8 = vld [vmem:[%s8372_s29 + $0x2f8] sm:$0xf0] }
 0x1c8   : > { %4643 = vmatpush.bf16.msrb.mxu0 %v7100_v14  ;;  %v7052_v14 = vor.u32 %v8114_v1, %v7051_v3  ;;  %v7019_v49 = vld [vmem:[%s8372_s29 + $0xe08] sm:$0xf]  ;;  %v7420_v57 = vor.u32 %v8206_v23, %v7419_v48  ;;  %v5341_v1 = vld [vmem:[%s8372_s29 + $0xf8] sm:$0xf0]  ;;  %v8254_v23 = vld [vmem:[%s8372_s29 + $0x12b4] sm:$0xf0] }
 0x1c9   : > { %4656 = vmatpush.bf16.msrb.mxu1 %v7228_v16  ;;  %v4405_v16 = vpop.f32.mrf.mxu1  ;;  %v7147_v54 = vld [vmem:[%s8372_s29 + $0xf08] sm:$0xf] }
 0x1ca   : > { %4669 = vmatpush.bf16.msrb.mxu2 %v7356_v21  ;;  %4682 = vmatpush.bf16.msrb.mxu3 %v7484_v19  ;;  %v9389_v21 = vadd.f32 %v4429_v10, %v4417_v9  ;;  %v8110_v19 = vld [vmem:[%s8372_s29 + $0xe34] sm:$0xf0]  ;;  %v7403_v58 = vld [vmem:[%s8372_s29 + $0x1108] sm:$0xf]  ;;  %v7148_v5 = vor.u32 %v8138_v55, %v7147_v54  ;;  %v7680_v16 = vld [vmem:[%s8372_s29 + $0xcc] sm:$0xf] }
 0x1cb   : > { %v7643_v59 = vld [vmem:[%s8372_s29 + $0x12e8] sm:$0xf]  ;;  %v7404_v9 = vor.u32 %v8202_v60, %v7403_v58  ;;  %v7740_v54 = vld [vmem:[%s8372_s29 + $0x2ac] sm:$0xf]  ;;  %v5565_v55 = vld [vmem:[%s8372_s29 + $0x2b8] sm:$0xf0] }
 0x1cc   : > { %4644 = vmatpush.bf16.msrb.mxu0 %v7084_v47  ;;  %v7036_v47 = vor.u32 %v8110_v19, %v7035_v37  ;;  %v4418_v61 = vpop.f32.mrf.mxu2  ;;  %v7627_v13 = vld [vmem:[%s8372_s29 + $0x12c8] sm:$0xf]  ;;  %v7712_v37 = vld [vmem:[%s8372_s29 + $0x1cc] sm:$0xf]  ;;  %v5453_v19 = vld [vmem:[%s8372_s29 + $0x1d8] sm:$0xf0] }
 0x1cd   : > { %4657 = vmatpush.bf16.msrb.mxu1 %v7212_v51  ;;  %v8106_v51 = vld [vmem:[%s8372_s29 + $0xe14] sm:$0xf0]  ;;  %v5456_v46 = vor.u32 %v7712_v37, %v5453_v19  ;;  %v7611_v48 = vld [vmem:[%s8372_s29 + $0x12a8] sm:$0xf]  ;;  %v7672_v61 = vld [vmem:[%s8372_s29 + $0x8c] sm:$0xf] }
 0x1ce   : > { %4670 = vmatpush.bf16.msrb.mxu2 %v7340_v52  ;;  %4683 = vmatpush.bf16.msrb.mxu3 %v7468_v56  ;;  %v7164_v52 = vor.u32 %v8142_v44, %v7163_v40  ;;  %v7275_v56 = vld [vmem:[%s8372_s29 + $0x1008] sm:$0xf]  ;;  %v7020_v3 = vor.u32 %v8106_v51, %v7019_v49  ;;  %v7744_v40 = vld [vmem:[%s8372_s29 + $0x2cc] sm:$0xf]  ;;  %v5309_v51 = vld [vmem:[%s8372_s29 + $0xb8] sm:$0xf0] }
 0x1cf   : > { %v7276_v6 = vor.u32 %v8170_v50, %v7275_v56  ;;  %v7612_v56 = vor.u32 %v8254_v23, %v7611_v48  ;;  %v7595_v58 = vld [vmem:[%s8372_s29 + $0x1288] sm:$0xf]  ;;  %v8250_v60 = vld [vmem:[%s8372_s29 + $0x1294] sm:$0xf0] }
 0x1d0   : > { %4645 = vmatpush.bf16.msrb.mxu0 %v7068_v62  ;;  %v8262_v62 = vld [vmem:[%s8372_s29 + $0x12f4] sm:$0xf0] }
 0x1d1   : > { %4658 = vmatpush.bf16.msrb.mxu1 %v7196_v63  ;;  %v7684_v63 = vld [vmem:[%s8372_s29 + $0xec] sm:$0xf]  ;;  %v7644_v10 = vor.u32 %v8262_v62, %v7643_v59  ;;  %v5568_v59 = vor.u32 %v7740_v54, %v5565_v55  ;;  %v5293_v62 = vld [vmem:[%s8372_s29 + $0x98] sm:$0xf0] }
 0x1d2   : > { %4671 = vmatpush.bf16.msrb.mxu2 %v7324_v0  ;;  %4684 = vmatpush.bf16.msrb.mxu3 %v7452_v4  ;;  %v4431_v0 = vpop.f32.mrf.mxu3  ;;  %v5469_v4 = vld [vmem:[%s8372_s29 + $0x1f8] sm:$0xf0]  ;;  %v5344_v11 = vor.u32 %v7684_v63, %v5341_v1  ;;  %v7704_v63 = vld [vmem:[%s8372_s29 + $0x18c] sm:$0xf] }
 0x1d3   : > { %v5472_v12 = vor.u32 %v7716_v2, %v5469_v4  ;;  %v5421_v0 = vld [vmem:[%s8372_s29 + $0x198] sm:$0xf0]  ;;  %v7736_v1 = vld [vmem:[%s8372_s29 + $0x28c] sm:$0xf] }
 0x1d4   : > { %4646 = vmatpush.bf16.msrb.mxu0 %v7052_v14  ;;  %v8258_v14 = vld [vmem:[%s8372_s29 + $0x12d4] sm:$0xf0]  ;;  %v5549_v2 = vld [vmem:[%s8372_s29 + $0x298] sm:$0xf0] }
 0x1d5   : > { %4659 = vmatpush.bf16.msrb.mxu1 %v7180_v24  ;;  %v5600_v24 = vor.u32 %v7748_v7, %v5597_v8  ;;  %v7628_v44 = vor.u32 %v8258_v14, %v7627_v13  ;;  %v5296_v7 = vor.u32 %v7672_v61, %v5293_v62  ;;  %v5424_v8 = vor.u32 %v7704_v63, %v5421_v0  ;;  %v5277_v14 = vld [vmem:[%s8372_s29 + $0x78] sm:$0xf0]  ;;  %v7547_v61 = vld [vmem:[%s8372_s29 + $0x1228] sm:$0xf]  ;;  %v7660_v62 = vld [vmem:[%s8372_s29 + $0x2c] sm:$0xf] }
 0x1d6   : > { %4672 = vmatpush.bf16.msrb.mxu2 %v7308_v35  ;;  %4685 = vmatpush.bf16.msrb.mxu3 %v7436_v41  ;;  %v5325_v35 = vld [vmem:[%s8372_s29 + $0xd8] sm:$0xf0] }
 0x1d7   : > { %v5581_v41 = vld [vmem:[%s8372_s29 + $0x2d8] sm:$0xf0]  ;;  %v5328_v22 = vor.u32 %v7680_v16, %v5325_v35  ;;  %v7700_v16 = vld [vmem:[%s8372_s29 + $0x16c] sm:$0xf] }
 0x1d8   : > { %4647 = vmatpush.bf16.msrb.mxu0 %v7036_v47  ;;  %v7676_v47 = vld [vmem:[%s8372_s29 + $0xac] sm:$0xf]  ;;  %v5584_v49 = vor.u32 %v7744_v40, %v5581_v41  ;;  %v5533_v35 = vld [vmem:[%s8372_s29 + $0x278] sm:$0xf0] }
 0x1d9   : > { %4660 = vmatpush.bf16.msrb.mxu1 %v7164_v52  ;;  %v7708_v52 = vld [vmem:[%s8372_s29 + $0x1ac] sm:$0xf]  ;;  %v5517_v54 = vld [vmem:[%s8372_s29 + $0x258] sm:$0xf0] }
 0x1da   : > { %4673 = vmatpush.bf16.msrb.mxu2 %v7292_v53  ;;  %4686 = vmatpush.bf16.msrb.mxu3 %v7420_v57  ;;  %v5437_v53 = vld [vmem:[%s8372_s29 + $0x1b8] sm:$0xf0]  ;;  %v5312_v57 = vor.u32 %v7676_v47, %v5309_v51 }
 0x1db   : > { %v5440_v50 = vor.u32 %v7708_v52, %v5437_v53  ;;  %v5261_v47 = vld [vmem:[%s8372_s29 + $0x58] sm:$0xf0]  ;;  %v7728_v53 = vld [vmem:[%s8372_s29 + $0x24c] sm:$0xf] }
 0x1dc   : > { %4648 = vmatpush.bf16.msrb.mxu0 %v7020_v3  ;;  %v4442_v3 = vpop.f32.mrf.mxu0  ;;  %v5389_v51 = vld [vmem:[%s8372_s29 + $0x158] sm:$0xf0]  ;;  %v5520_v63 = vor.u32 %v7728_v53, %v5517_v54 }
 0x1dd   : > { %4661 = vmatpush.bf16.msrb.mxu1 %v7148_v5  ;;  %v4443_v4 = vadd.f32 %v4442_v3, %v9389_v21  ;;  %v7596_v5 = vor.u32 %v8250_v60, %v7595_v58  ;;  %v5405_v21 = vld [vmem:[%s8372_s29 + $0x178] sm:$0xf0]  ;;  %v7692_v3 = vld [vmem:[%s8372_s29 + $0x12c] sm:$0xf] }
 0x1de   : > { %4674 = vmatpush.bf16.msrb.mxu2 %v7276_v6  ;;  %4687 = vmatpush.bf16.msrb.mxu3 %v7404_v9  ;;  %v4455_v6 = vpop.f32.mrf.mxu1  ;;  %v7579_v9 = vld [vmem:[%s8372_s29 + $0x1268] sm:$0xf]  ;;  %v5408_v41 = vor.u32 %v7700_v16, %v5405_v21  ;;  %v5245_v0 = vld [vmem:[%s8372_s29 + $0x38] sm:$0xf0]  ;;  %v7720_v16 = vld [vmem:[%s8372_s29 + $0x20c] sm:$0xf] }
 0x1df   : > { %4649 = vmatmul.bf16.vlgmr.msrb.gmra.mxu0 %v8704_v26  ;;  %v4456_v13 = vadd.f32 %v4455_v6, %v4443_v4  ;;  %v5501_v4 = vld [vmem:[%s8372_s29 + $0x238] sm:$0xf0]  ;;  %v7531_v6 = vld [vmem:[%s8372_s29 + $0x1208] sm:$0xf] }
 0x1e0   : > { %4693 = vmatpush.bf16.msra.mxu0 %v7644_v10  ;;  %4662 = vmatmul.bf16.vlgmr.msrb.gmra.mxu1 %v8710_v17  ;;  %v8246_v10 = vld [vmem:[%s8372_s29 + $0x1274] sm:$0xf0]  ;;  %v5485_v21 = vld [vmem:[%s8372_s29 + $0x218] sm:$0xf0] }
 0x1e1   : > { %4706 = vmatpush.bf16.msra.mxu1 %v5344_v11  ;;  %4675 = vmatmul.bf16.vlgmr.msrb.gmra.mxu2 %v8775_v30  ;;  %v7668_v11 = vld [vmem:[%s8372_s29 + $0x6c] sm:$0xf]  ;;  %v4957_v37 = vrot.slane %v4456_v13, 6  ;;  %v7580_v19 = vor.u32 %v8246_v10, %v7579_v9 }
 0x1e2   : > { %4719 = vmatpush.bf16.msra.mxu2 %v5472_v12  ;;  %4732 = vmatpush.bf16.msra.mxu3 %v5600_v24  ;;  %v5552_v12 = vor.u32 %v7736_v1, %v5549_v2  ;;  %v7732_v24 = vld [vmem:[%s8372_s29 + $0x26c] sm:$0xf]  ;;  %v5280_v40 = vor.u32 %v7668_v11, %v5277_v14  ;;  %v5373_v1 = vld [vmem:[%s8372_s29 + $0x138] sm:$0xf0] }
 0x1e3   : > { %4688 = vmatmul.bf16.vlgmr.msrb.gmra.mxu3 %v8782_v20  ;;  %v9457_v48 = vsel %vm4960_vm0, %v9101_v15, %v4957_v37  ;;  %v5536_v23 = vor.u32 %v7732_v24, %v5533_v35  ;;  %v7724_v2 = vld [vmem:[%s8372_s29 + $0x22c] sm:$0xf]  ;;  %v5376_v9 = vor.u32 %v7692_v3, %v5373_v1  ;;  %v5229_v11 = vld [vmem:[%s8372_s29 + $0x18] sm:$0xf0] }
 0x1e4   : > { %4694 = vmatpush.bf16.msra.mxu0 %v7628_v44  ;;  %v7563_v44 = vld [vmem:[%s8372_s29 + $0x1248] sm:$0xf]  ;;  %v4468_v52 = vpop.f32.mrf.mxu2  ;;  %v7656_v10 = vld [vmem:[%s8372_s29 + $0xc] sm:$0xf]  ;;  %v5504_v13 = vor.u32 %v7724_v2, %v5501_v4  ;;  %v5357_v14 = vld [vmem:[%s8372_s29 + $0x118] sm:$0xf0] }
 0x1e5   : > { %4707 = vmatpush.bf16.msra.mxu1 %v5328_v22  ;;  %v8242_v22 = vld [vmem:[%s8372_s29 + $0x1254] sm:$0xf0]  ;;  %v7780_v35 = vld [vmem:[%s8372_s29 + $0x3ec] sm:$0xf]  ;;  %v5725_v37 = vld [vmem:[%s8372_s29 + $0x3f8] sm:$0xf0] }
 0x1e6   : > { %4720 = vmatpush.bf16.msra.mxu2 %v5456_v46  ;;  %4733 = vmatpush.bf16.msra.mxu3 %v5584_v49  ;;  %v7664_v46 = vld [vmem:[%s8372_s29 + $0x4c] sm:$0xf]  ;;  %v4481_v55 = vpop.f32.mrf.mxu3  ;;  %v5728_v53 = vor.u32 %v7780_v35, %v5725_v37  ;;  %v5693_v4 = vld [vmem:[%s8372_s29 + $0x3b8] sm:$0xf0] }
 0x1e7   : > { %v7696_v49 = vld [vmem:[%s8372_s29 + $0x14c] sm:$0xf]  ;;  %v9464_v15 = vadd.f32 %v4481_v55, %v4468_v52  ;;  %v5264_v58 = vor.u32 %v7664_v46, %v5261_v47  ;;  %v5981_v46 = vld [vmem:[%s8372_s29 + $0x5f8] sm:$0xf0]  ;;  %v5488_v52 = vor.u32 %v7720_v16, %v5485_v21 }
 0x1e8   : > { %4695 = vmatpush.bf16.msra.mxu0 %v7612_v56  ;;  %v4444_v56 = vpop.f32.mrf.mxu0  ;;  %v5392_v60 = vor.u32 %v7696_v49, %v5389_v51  ;;  %v7876_v49 = vld [vmem:[%s8372_s29 + $0x6ec] sm:$0xf]  ;;  %v6109_v51 = vld [vmem:[%s8372_s29 + $0x6f8] sm:$0xf0] }
 0x1e9   : > { %4708 = vmatpush.bf16.msra.mxu1 %v5312_v57  ;;  %v7564_v57 = vor.u32 %v8242_v22, %v7563_v44  ;;  %v5853_v44 = vld [vmem:[%s8372_s29 + $0x4f8] sm:$0xf0]  ;;  %v7844_v22 = vld [vmem:[%s8372_s29 + $0x5ec] sm:$0xf] }
 0x1ea   : > { %4721 = vmatpush.bf16.msra.mxu2 %v5440_v50  ;;  %4734 = vmatpush.bf16.msra.mxu3 %v5568_v59  ;;  %v4457_v50 = vpop.f32.mrf.mxu1  ;;  %v8238_v59 = vld [vmem:[%s8372_s29 + $0x1234] sm:$0xf0]  ;;  %v5984_v55 = vor.u32 %v7844_v22, %v5981_v46  ;;  %v7776_v56 = vld [vmem:[%s8372_s29 + $0x3cc] sm:$0xf]  ;;  %v5677_v21 = vld [vmem:[%s8372_s29 + $0x398] sm:$0xf0] }
 0x1eb   : > { %v7808_v50 = vld [vmem:[%s8372_s29 + $0x4cc] sm:$0xf]  ;;  %v5805_v35 = vld [vmem:[%s8372_s29 + $0x498] sm:$0xf0] }
 0x1ec   : > { %4696 = vmatpush.bf16.msra.mxu0 %v7596_v5  ;;  %v7548_v5 = vor.u32 %v8238_v59, %v7547_v61  ;;  %v4470_v24 = vpop.f32.mrf.mxu2  ;;  %v7840_v61 = vld [vmem:[%s8372_s29 + $0x5cc] sm:$0xf]  ;;  %v5965_v59 = vld [vmem:[%s8372_s29 + $0x5d8] sm:$0xf0] }
 0x1ed   : > { %4709 = vmatpush.bf16.msra.mxu1 %v5296_v7  ;;  %v8234_v7 = vld [vmem:[%s8372_s29 + $0x1214] sm:$0xf0]  ;;  %v5968_v1 = vor.u32 %v7840_v61, %v5965_v59  ;;  %v7772_v2 = vld [vmem:[%s8372_s29 + $0x3ac] sm:$0xf]  ;;  %v5933_v37 = vld [vmem:[%s8372_s29 + $0x598] sm:$0xf0] }
 0x1ee   : > { %4722 = vmatpush.bf16.msra.mxu2 %v5424_v8  ;;  %4735 = vmatpush.bf16.msra.mxu3 %v5552_v12  ;;  %v5248_v8 = vor.u32 %v7660_v62, %v5245_v0  ;;  %v7688_v12 = vld [vmem:[%s8372_s29 + $0x10c] sm:$0xf]  ;;  %v5645_v59 = vld [vmem:[%s8372_s29 + $0x358] sm:$0xf0] }
 0x1ef   : > { %v5360_v47 = vor.u32 %v7688_v12, %v5357_v14  ;;  %v7872_v62 = vld [vmem:[%s8372_s29 + $0x6cc] sm:$0xf]  ;;  %v5696_v12 = vor.u32 %v7772_v2, %v5693_v4  ;;  %v5901_v2 = vld [vmem:[%s8372_s29 + $0x558] sm:$0xf0] }
 0x1f0   : > { %4697 = vmatpush.bf16.msra.mxu0 %v7580_v19  ;;  %v7812_v19 = vld [vmem:[%s8372_s29 + $0x4ec] sm:$0xf] }
 0x1f1   : > { %4710 = vmatpush.bf16.msra.mxu1 %v5280_v40  ;;  %v4483_v40 = vpop.f32.mrf.mxu3  ;;  %v5856_v54 = vor.u32 %v7812_v19, %v5853_v44  ;;  %v7768_v16 = vld [vmem:[%s8372_s29 + $0x38c] sm:$0xf] }
 0x1f2   : > { %4723 = vmatpush.bf16.msra.mxu2 %v5408_v41  ;;  %4736 = vmatpush.bf16.msra.mxu3 %v5536_v23  ;;  %v7532_v41 = vor.u32 %v8234_v7, %v7531_v6  ;;  %v5232_v23 = vor.u32 %v7656_v10, %v5229_v11  ;;  %v5821_v7 = vld [vmem:[%s8372_s29 + $0x4b8] sm:$0xf0]  ;;  %v7868_v10 = vld [vmem:[%s8372_s29 + $0x6ac] sm:$0xf] }
 0x1f3   : > { %v6077_v11 = vld [vmem:[%s8372_s29 + $0x6b8] sm:$0xf0]  ;;  %v7800_v24 = vld [vmem:[%s8372_s29 + $0x48c] sm:$0xf] }
 0x1f4   : > { %4698 = vmatpush.bf16.msra.mxu0 %v7564_v57  ;;  %v5709_v57 = vld [vmem:[%s8372_s29 + $0x3d8] sm:$0xf0]  ;;  %v7864_v19 = vld [vmem:[%s8372_s29 + $0x68c] sm:$0xf]  ;;  %v5808_v44 = vor.u32 %v7800_v24, %v5805_v35 }
 0x1f5   : > { %4711 = vmatpush.bf16.msra.mxu1 %v5264_v58  ;;  %v6112_v58 = vor.u32 %v7876_v49, %v6109_v51  ;;  %v5712_v0 = vor.u32 %v7776_v56, %v5709_v57  ;;  %v6061_v40 = vld [vmem:[%s8372_s29 + $0x698] sm:$0xf0]  ;;  %v7764_v46 = vld [vmem:[%s8372_s29 + $0x36c] sm:$0xf] }
 0x1f6   : > { %4724 = vmatpush.bf16.msra.mxu2 %v5392_v60  ;;  %4737 = vmatpush.bf16.msra.mxu3 %v5520_v63  ;;  %v5837_v60 = vld [vmem:[%s8372_s29 + $0x4d8] sm:$0xf0]  ;;  %v7860_v56 = vld [vmem:[%s8372_s29 + $0x66c] sm:$0xf] }
 0x1f7   : > { %v6093_v63 = vld [vmem:[%s8372_s29 + $0x6d8] sm:$0xf0]  ;;  %v5840_v3 = vor.u32 %v7808_v50, %v5837_v60  ;;  %v7760_v61 = vld [vmem:[%s8372_s29 + $0x34c] sm:$0xf] }
 0x1f8   : > { %4699 = vmatpush.bf16.msra.mxu0 %v7548_v5  ;;  %v7804_v5 = vld [vmem:[%s8372_s29 + $0x4ac] sm:$0xf]  ;;  %v6096_v6 = vor.u32 %v7872_v62, %v6093_v63  ;;  %v6045_v57 = vld [vmem:[%s8372_s29 + $0x678] sm:$0xf0] }
 0x1f9   : > { %4712 = vmatpush.bf16.msra.mxu1 %v5248_v8  ;;  %v7836_v8 = vld [vmem:[%s8372_s29 + $0x5ac] sm:$0xf] }
 0x1fa   : > { %4725 = vmatpush.bf16.msra.mxu2 %v5376_v9  ;;  %4738 = vmatpush.bf16.msra.mxu3 %v5504_v13  ;;  %v5949_v9 = vld [vmem:[%s8372_s29 + $0x5b8] sm:$0xf0]  ;;  %v5824_v13 = vor.u32 %v7804_v5, %v5821_v7  ;;  %v7792_v62 = vld [vmem:[%s8372_s29 + $0x44c] sm:$0xf] }
 0x1fb   : > { %v5952_v14 = vor.u32 %v7836_v8, %v5949_v9  ;;  %v6029_v7 = vld [vmem:[%s8372_s29 + $0x658] sm:$0xf0]  ;;  %v5648_v8 = vor.u32 %v7760_v61, %v5645_v59  ;;  %v7820_v35 = vld [vmem:[%s8372_s29 + $0x52c] sm:$0xf] }
 0x1fc   : > { %4700 = vmatpush.bf16.msra.mxu0 %v7532_v41  ;;  %v4494_v41 = vpop.f32.mrf.mxu0  ;;  %v6493_v61 = vld [vmem:[%s8372_s29 + $0x9f8] sm:$0xf0] }
 0x1fd   : > { %4713 = vmatpush.bf16.msra.mxu1 %v5232_v23  ;;  %v5661_v23 = vld [vmem:[%s8372_s29 + $0x378] sm:$0xf0]  ;;  %v4495_v49 = vadd.f32 %v4494_v41, %v9464_v15  ;;  %v4507_v51 = vpop.f32.mrf.mxu1 }
 0x1fe   : > { %4726 = vmatpush.bf16.msra.mxu2 %v5360_v47  ;;  %4739 = vmatpush.bf16.msra.mxu3 %v5488_v52  ;;  %v7796_v47 = vld [vmem:[%s8372_s29 + $0x46c] sm:$0xf]  ;;  %v6064_v52 = vor.u32 %v7864_v19, %v6061_v40  ;;  %v6013_v19 = vld [vmem:[%s8372_s29 + $0x638] sm:$0xf0] }
 0x1ff   : > { %4701 = vmatmul.bf16.vlgmr.msra.gmra.mxu0 %v8780_v38  ;;  %v4508_v50 = vadd.f32 %v4507_v51, %v4495_v49  ;;  %v5613_v41 = vld [vmem:[%s8372_s29 + $0x318] sm:$0xf0] }
 0x200   : > { %4745 = vmatpush.bf16.msrb.mxu0 %v5728_v53  ;;  %4714 = vmatmul.bf16.vlgmr.msra.gmra.mxu1 %v8481_v28  ;;  %v5680_v28 = vor.u32 %v7768_v16, %v5677_v21  ;;  %v5789_v53 = vld [vmem:[%s8372_s29 + $0x478] sm:$0xf0]  ;;  %v7788_v16 = vld [vmem:[%s8372_s29 + $0x42c] sm:$0xf] }
 0x201   : > { %4758 = vmatpush.bf16.msrb.mxu1 %v5856_v54  ;;  %4727 = vmatmul.bf16.vlgmr.msra.gmra.mxu2 %v8487_v34  ;;  %v6080_v34 = vor.u32 %v7868_v10, %v6077_v11  ;;  %v7828_v54 = vld [vmem:[%s8372_s29 + $0x56c] sm:$0xf]  ;;  %v5792_v15 = vor.u32 %v7796_v47, %v5789_v53 }
 0x202   : > { %4771 = vmatpush.bf16.msrb.mxu2 %v5984_v55  ;;  %4784 = vmatpush.bf16.msrb.mxu3 %v6112_v58  ;;  %v5917_v55 = vld [vmem:[%s8372_s29 + $0x578] sm:$0xf0]  ;;  %v5664_v58 = vor.u32 %v7764_v46, %v5661_v23  ;;  %v7784_v46 = vld [vmem:[%s8372_s29 + $0x40c] sm:$0xf] }
 0x203   : > { %4740 = vmatmul.bf16.vlgmr.msra.gmra.mxu3 %v8479_v27  ;;  %v7832_v27 = vld [vmem:[%s8372_s29 + $0x58c] sm:$0xf]  ;;  %v5920_v60 = vor.u32 %v7828_v54, %v5917_v55  ;;  %v5741_v23 = vld [vmem:[%s8372_s29 + $0x418] sm:$0xf0] }
 0x204   : > { %4746 = vmatpush.bf16.msrb.mxu0 %v5712_v0  ;;  %v5936_v22 = vor.u32 %v7832_v27, %v5933_v37  ;;  %v4520_v63 = vpop.f32.mrf.mxu2  ;;  %v6048_v0 = vor.u32 %v7860_v56, %v6045_v57  ;;  %v4496_v10 = vpop.f32.mrf.mxu0  ;;  %v5885_v27 = vld [vmem:[%s8372_s29 + $0x538] sm:$0xf0]  ;;  %v7852_v37 = vld [vmem:[%s8372_s29 + $0x62c] sm:$0xf]  ;;  %v5744_v59 = vor.u32 %v7784_v46, %v5741_v23 }
 0x205   : > { %4759 = vmatpush.bf16.msrb.mxu1 %v5840_v3  ;;  %v5773_v3 = vld [vmem:[%s8372_s29 + $0x458] sm:$0xf0]  ;;  %v4521_v4 = vadd.f32 %v4520_v63, %v4508_v50  ;;  %v4509_v21 = vpop.f32.mrf.mxu1  ;;  %v7816_v47 = vld [vmem:[%s8372_s29 + $0x50c] sm:$0xf]  ;;  %v6016_v51 = vor.u32 %v7852_v37, %v6013_v19 }
 0x206   : > { %4772 = vmatpush.bf16.msrb.mxu2 %v5968_v1  ;;  %4785 = vmatpush.bf16.msrb.mxu3 %v6096_v6  ;;  %v7824_v1 = vld [vmem:[%s8372_s29 + $0x54c] sm:$0xf]  ;;  %v4533_v5 = vpop.f32.mrf.mxu3  ;;  %v5776_v11 = vor.u32 %v7792_v62, %v5773_v3  ;;  %v5997_v54 = vld [vmem:[%s8372_s29 + $0x618] sm:$0xf0] }
 0x207   : > { %v7856_v6 = vld [vmem:[%s8372_s29 + $0x64c] sm:$0xf]  ;;  %v9535_v9 = vadd.f32 %v4533_v5, %v4521_v4  ;;  %v6237_v57 = vld [vmem:[%s8372_s29 + $0x7f8] sm:$0xf0] }
 0x208   : > { %4747 = vmatpush.bf16.msrb.mxu0 %v5696_v12  ;;  %v5904_v12 = vor.u32 %v7824_v1, %v5901_v2  ;;  %v6032_v24 = vor.u32 %v7856_v6, %v6029_v7  ;;  %v7848_v53 = vld [vmem:[%s8372_s29 + $0x60c] sm:$0xf]  ;;  %v6221_v6 = vld [vmem:[%s8372_s29 + $0x7d8] sm:$0xf0] }
 0x209   : > { %4760 = vmatpush.bf16.msrb.mxu1 %v5824_v13  ;;  %v7756_v13 = vld [vmem:[%s8372_s29 + $0x32c] sm:$0xf]  ;;  %v6000_v3 = vor.u32 %v7848_v53, %v5997_v54  ;;  %v6349_v10 = vld [vmem:[%s8372_s29 + $0x8d8] sm:$0xf0] }
 0x20a   : > { %4773 = vmatpush.bf16.msrb.mxu2 %v5952_v14  ;;  %4786 = vmatpush.bf16.msrb.mxu3 %v6080_v34  ;;  %v5629_v14 = vld [vmem:[%s8372_s29 + $0x338] sm:$0xf0]  ;;  %v7908_v56 = vld [vmem:[%s8372_s29 + $0x7ec] sm:$0xf] }
 0x20b   : > { %v5757_v34 = vld [vmem:[%s8372_s29 + $0x438] sm:$0xf0]  ;;  %v5632_v40 = vor.u32 %v7756_v13, %v5629_v14  ;;  %v7940_v50 = vld [vmem:[%s8372_s29 + $0x8ec] sm:$0xf]  ;;  %v6240_v1 = vor.u32 %v7908_v56, %v6237_v57 }
 0x20c   : > { %4748 = vmatpush.bf16.msrb.mxu0 %v5680_v28  ;;  %v7752_v28 = vld [vmem:[%s8372_s29 + $0x30c] sm:$0xf]  ;;  %v4522_v49 = vpop.f32.mrf.mxu2  ;;  %v6605_v14 = vld [vmem:[%s8372_s29 + $0xad8] sm:$0xf0] }
 0x20d   : > { %4761 = vmatpush.bf16.msrb.mxu1 %v5808_v44  ;;  %v5760_v44 = vor.u32 %v7788_v16, %v5757_v34  ;;  %v8004_v63 = vld [vmem:[%s8372_s29 + $0xaec] sm:$0xf]  ;;  %v6333_v19 = vld [vmem:[%s8372_s29 + $0x8b8] sm:$0xf0] }
 0x20e   : > { %4774 = vmatpush.bf16.msrb.mxu2 %v5936_v22  ;;  %4787 = vmatpush.bf16.msrb.mxu3 %v6064_v52  ;;  %v5888_v22 = vor.u32 %v7820_v35, %v5885_v27  ;;  %v5869_v52 = vld [vmem:[%s8372_s29 + $0x518] sm:$0xf0]  ;;  %v4535_v55 = vpop.f32.mrf.mxu3  ;;  %v7904_v5 = vld [vmem:[%s8372_s29 + $0x7cc] sm:$0xf] }
 0x20f   : > { %v5872_v62 = vor.u32 %v7816_v47, %v5869_v52  ;;  %v7936_v7 = vld [vmem:[%s8372_s29 + $0x8cc] sm:$0xf]  ;;  %v6224_v16 = vor.u32 %v7904_v5, %v6221_v6  ;;  %v6205_v35 = vld [vmem:[%s8372_s29 + $0x7b8] sm:$0xf0] }
 0x210   : > { %4749 = vmatpush.bf16.msrb.mxu0 %v5664_v58  ;;  %v5616_v58 = vor.u32 %v7752_v28, %v5613_v41  ;;  %v8000_v13 = vld [vmem:[%s8372_s29 + $0xacc] sm:$0xf]  ;;  %v6352_v21 = vor.u32 %v7936_v7, %v6349_v10  ;;  %v6461_v28 = vld [vmem:[%s8372_s29 + $0x9b8] sm:$0xf0] }
 0x211   : > { %4762 = vmatpush.bf16.msrb.mxu1 %v5792_v15  ;;  %v6365_v15 = vld [vmem:[%s8372_s29 + $0x8f8] sm:$0xf0]  ;;  %v7900_v34 = vld [vmem:[%s8372_s29 + $0x7ac] sm:$0xf]  ;;  %v6608_v37 = vor.u32 %v8000_v13, %v6605_v14 }
 0x212   : > { %4775 = vmatpush.bf16.msrb.mxu2 %v5920_v60  ;;  %4788 = vmatpush.bf16.msrb.mxu3 %v6048_v0  ;;  %v7972_v60 = vld [vmem:[%s8372_s29 + $0x9ec] sm:$0xf]  ;;  %v6621_v0 = vld [vmem:[%s8372_s29 + $0xaf8] sm:$0xf0]  ;;  %v6368_v2 = vor.u32 %v7940_v50, %v6365_v15 }
 0x213   : > { %v6496_v4 = vor.u32 %v7972_v60, %v6493_v61  ;;  %v7932_v27 = vld [vmem:[%s8372_s29 + $0x8ac] sm:$0xf]  ;;  %v6189_v47 = vld [vmem:[%s8372_s29 + $0x798] sm:$0xf0] }
 0x214   : > { %4750 = vmatpush.bf16.msrb.mxu0 %v5648_v8  ;;  %v6624_v8 = vor.u32 %v8004_v63, %v6621_v0  ;;  %v7996_v41 = vld [vmem:[%s8372_s29 + $0xaac] sm:$0xf]  ;;  %v6317_v49 = vld [vmem:[%s8372_s29 + $0x898] sm:$0xf0] }
 0x215   : > { %4763 = vmatpush.bf16.msrb.mxu1 %v5776_v11  ;;  %v7968_v11 = vld [vmem:[%s8372_s29 + $0x9cc] sm:$0xf]  ;;  %v6445_v52 = vld [vmem:[%s8372_s29 + $0x998] sm:$0xf0] }
 0x216   : > { %4776 = vmatpush.bf16.msrb.mxu2 %v5904_v12  ;;  %4789 = vmatpush.bf16.msrb.mxu3 %v6032_v24  ;;  %v6477_v12 = vld [vmem:[%s8372_s29 + $0x9d8] sm:$0xf0]  ;;  %v7896_v23 = vld [vmem:[%s8372_s29 + $0x78c] sm:$0xf] }
 0x217   : > { %v6480_v24 = vor.u32 %v7968_v11, %v6477_v12  ;;  %v7992_v54 = vld [vmem:[%s8372_s29 + $0xa8c] sm:$0xf]  ;;  %v6573_v55 = vld [vmem:[%s8372_s29 + $0xa98] sm:$0xf0]  ;;  %v6192_v56 = vor.u32 %v7896_v23, %v6189_v47 }
 0x218   : > { %4751 = vmatpush.bf16.msrb.mxu0 %v5632_v40  ;;  %v7964_v40 = vld [vmem:[%s8372_s29 + $0x9ac] sm:$0xf]  ;;  %v6173_v60 = vld [vmem:[%s8372_s29 + $0x778] sm:$0xf0] }
 0x219   : > { %4764 = vmatpush.bf16.msrb.mxu1 %v5760_v44  ;;  %v6589_v44 = vld [vmem:[%s8372_s29 + $0xab8] sm:$0xf0]  ;;  %v6464_v46 = vor.u32 %v7964_v40, %v6461_v28  ;;  %v7892_v15 = vld [vmem:[%s8372_s29 + $0x76c] sm:$0xf] }
 0x21a   : > { %4777 = vmatpush.bf16.msrb.mxu2 %v5888_v22  ;;  %4790 = vmatpush.bf16.msrb.mxu3 %v6016_v51  ;;  %v6208_v22 = vor.u32 %v7900_v34, %v6205_v35  ;;  %v7960_v51 = vld [vmem:[%s8372_s29 + $0x98c] sm:$0xf]  ;;  %v6301_v63 = vld [vmem:[%s8372_s29 + $0x878] sm:$0xf0] }
 0x21b   : > { %v7924_v61 = vld [vmem:[%s8372_s29 + $0x86c] sm:$0xf]  ;;  %v6157_v7 = vld [vmem:[%s8372_s29 + $0x758] sm:$0xf0] }
 0x21c   : > { %4752 = vmatpush.bf16.msrb.mxu0 %v5616_v58  ;;  %v4546_v53 = vpop.f32.mrf.mxu0  ;;  %v6448_v58 = vor.u32 %v7960_v51, %v6445_v52  ;;  %v7956_v0 = vld [vmem:[%s8372_s29 + $0x96c] sm:$0xf]  ;;  %v6285_v12 = vld [vmem:[%s8372_s29 + $0x858] sm:$0xf0] }
 0x21d   : > { %4765 = vmatpush.bf16.msrb.mxu1 %v5744_v59  ;;  %v4559_v57 = vpop.f32.mrf.mxu1  ;;  %v6576_v59 = vor.u32 %v7992_v54, %v6573_v55  ;;  %v7888_v6 = vld [vmem:[%s8372_s29 + $0x74c] sm:$0xf]  ;;  %v6413_v14 = vld [vmem:[%s8372_s29 + $0x958] sm:$0xf0] }
 0x21e   : > { %4778 = vmatpush.bf16.msrb.mxu2 %v5872_v62  ;;  %4791 = vmatpush.bf16.msrb.mxu3 %v6000_v3  ;;  %v7988_v3 = vld [vmem:[%s8372_s29 + $0xa6c] sm:$0xf]  ;;  %v6541_v34 = vld [vmem:[%s8372_s29 + $0xa58] sm:$0xf0] }
 0x21f   : > { %4753 = vmatmul.bf16.vlgmr.msrb.gmra.mxu0 %v8485_v33  ;;  %v7928_v33 = vld [vmem:[%s8372_s29 + $0x88c] sm:$0xf]  ;;  %v6397_v47 = vld [vmem:[%s8372_s29 + $0x938] sm:$0xf0] }
 0x220   : > { %4797 = vmatpush.bf16.msra.mxu0 %v6240_v1  ;;  %4766 = vmatmul.bf16.vlgmr.msrb.gmra.mxu1 %v8537_v42  ;;  %v4547_v42 = vadd.f32 %v4546_v53, %v9535_v9  ;;  %v6320_v50 = vor.u32 %v7928_v33, %v6317_v49  ;;  %v6429_v9 = vld [vmem:[%s8372_s29 + $0x978] sm:$0xf0]  ;;  %v7952_v13 = vld [vmem:[%s8372_s29 + $0x94c] sm:$0xf] }
 0x221   : > { %4810 = vmatpush.bf16.msra.mxu1 %v6368_v2  ;;  %4779 = vmatmul.bf16.vlgmr.msrb.gmra.mxu2 %v8541_v45  ;;  %v6336_v45 = vor.u32 %v7932_v27, %v6333_v19  ;;  %v6557_v1 = vld [vmem:[%s8372_s29 + $0xa78] sm:$0xf0]  ;;  %v6176_v2 = vor.u32 %v7892_v15, %v6173_v60  ;;  %v6432_v5 = vor.u32 %v7956_v0, %v6429_v9  ;;  %v7948_v23 = vld [vmem:[%s8372_s29 + $0x92c] sm:$0xf] }
 0x222   : > { %4823 = vmatpush.bf16.msra.mxu2 %v6496_v4  ;;  %4836 = vmatpush.bf16.msra.mxu3 %v6624_v8  ;;  %v4560_v62 = vadd.f32 %v4559_v57, %v4547_v42  ;;  %v6304_v4 = vor.u32 %v7924_v61, %v6301_v63  ;;  %v7920_v8 = vld [vmem:[%s8372_s29 + $0x84c] sm:$0xf]  ;;  %v6560_v10 = vor.u32 %v7988_v3, %v6557_v1  ;;  %v6125_v52 = vld [vmem:[%s8372_s29 + $0x718] sm:$0xf0] }
 0x223   : > { %4792 = vmatmul.bf16.vlgmr.msrb.gmra.mxu3 %v8533_v39  ;;  %v6592_v39 = vor.u32 %v7996_v41, %v6589_v44  ;;  %v6160_v27 = vor.u32 %v7888_v6, %v6157_v7  ;;  %v6288_v40 = vor.u32 %v7920_v8, %v6285_v12  ;;  %v6416_v28 = vor.u32 %v7952_v13, %v6413_v14  ;;  %v7884_v41 = vld [vmem:[%s8372_s29 + $0x72c] sm:$0xf]  ;;  %v6141_v44 = vld [vmem:[%s8372_s29 + $0x738] sm:$0xf0] }
 0x224   : > { %4798 = vmatpush.bf16.msra.mxu0 %v6224_v16  ;;  %v4572_v11 = vpop.f32.mrf.mxu2  ;;  %v4548_v35 = vpop.f32.mrf.mxu0  ;;  %v7980_v33 = vld [vmem:[%s8372_s29 + $0xa2c] sm:$0xf]  ;;  %v6144_v49 = vor.u32 %v7884_v41, %v6141_v44  ;;  %v6400_v54 = vor.u32 %v7948_v23, %v6397_v47  ;;  %v6253_v42 = vld [vmem:[%s8372_s29 + $0x818] sm:$0xf0] }
 0x225   : > { %4811 = vmatpush.bf16.msra.mxu1 %v6352_v21  ;;  %v4573_v16 = vadd.f32 %v4572_v11, %v4560_v62  ;;  %v7880_v51 = vld [vmem:[%s8372_s29 + $0x70c] sm:$0xf]  ;;  %v6509_v15 = vld [vmem:[%s8372_s29 + $0xa18] sm:$0xf0] }
 0x226   : > { %4824 = vmatpush.bf16.msra.mxu2 %v6480_v24  ;;  %4837 = vmatpush.bf16.msra.mxu3 %v6608_v37  ;;  %v4585_v21 = vpop.f32.mrf.mxu3  ;;  %v7984_v24 = vld [vmem:[%s8372_s29 + $0xa4c] sm:$0xf]  ;;  %v4561_v37 = vpop.f32.mrf.mxu1  ;;  %v6128_v0 = vor.u32 %v7880_v51, %v6125_v52  ;;  %v6877_v9 = vld [vmem:[%s8372_s29 + $0xcf8] sm:$0xf0] }
 0x227   : > { %v9606_v19 = vadd.f32 %v4585_v21, %v4573_v16  ;;  %v7912_v55 = vld [vmem:[%s8372_s29 + $0x80c] sm:$0xf]  ;;  %v7005_v1 = vld [vmem:[%s8372_s29 + $0xdf8] sm:$0xf0] }
 0x228   : > { %4799 = vmatpush.bf16.msra.mxu0 %v6208_v22  ;;  %v7916_v22 = vld [vmem:[%s8372_s29 + $0x82c] sm:$0xf]  ;;  %v7133_v6 = vld [vmem:[%s8372_s29 + $0xef8] sm:$0xf0] }
 0x229   : > { %4812 = vmatpush.bf16.msra.mxu1 %v6336_v45  ;;  %v6544_v45 = vor.u32 %v7984_v24, %v6541_v34  ;;  %v8036_v61 = vld [vmem:[%s8372_s29 + $0xbec] sm:$0xf]  ;;  %v6733_v13 = vld [vmem:[%s8372_s29 + $0xbd8] sm:$0xf0] }
 0x22a   : > { %4825 = vmatpush.bf16.msra.mxu2 %v6464_v46  ;;  %4838 = vmatpush.bf16.msra.mxu3 %v6592_v39  ;;  %v6269_v46 = vld [vmem:[%s8372_s29 + $0x838] sm:$0xf0]  ;;  %v8068_v62 = vld [vmem:[%s8372_s29 + $0xcec] sm:$0xf] }
 0x22b   : > { %v6525_v39 = vld [vmem:[%s8372_s29 + $0xa38] sm:$0xf0]  ;;  %v6272_v53 = vor.u32 %v7916_v22, %v6269_v46  ;;  %v8100_v3 = vld [vmem:[%s8372_s29 + $0xdec] sm:$0xf] }
 0x22c   : > { %4800 = vmatpush.bf16.msra.mxu0 %v6192_v56  ;;  %v7944_v56 = vld [vmem:[%s8372_s29 + $0x90c] sm:$0xf]  ;;  %v6528_v57 = vor.u32 %v7980_v33, %v6525_v39  ;;  %v4574_v60 = vpop.f32.mrf.mxu2  ;;  %v7008_v11 = vor.u32 %v8100_v3, %v7005_v1  ;;  %v6861_v21 = vld [vmem:[%s8372_s29 + $0xcd8] sm:$0xf0] }
 0x22d   : > { %4813 = vmatpush.bf16.msra.mxu1 %v6320_v50  ;;  %v6381_v50 = vld [vmem:[%s8372_s29 + $0x918] sm:$0xf0]  ;;  %v8032_v12 = vld [vmem:[%s8372_s29 + $0xbcc] sm:$0xf] }
 0x22e   : > { %4826 = vmatpush.bf16.msra.mxu2 %v6448_v58  ;;  %4839 = vmatpush.bf16.msra.mxu3 %v6576_v59  ;;  %v7976_v58 = vld [vmem:[%s8372_s29 + $0xa0c] sm:$0xf]  ;;  %v6749_v59 = vld [vmem:[%s8372_s29 + $0xbf8] sm:$0xf0]  ;;  %v4587_v63 = vpop.f32.mrf.mxu3  ;;  %v6736_v37 = vor.u32 %v8032_v12, %v6733_v13 }
 0x22f   : > { %v6512_v7 = vor.u32 %v7976_v58, %v6509_v15  ;;  %v6752_v8 = vor.u32 %v8036_v61, %v6749_v59  ;;  %v8064_v14 = vld [vmem:[%s8372_s29 + $0xccc] sm:$0xf]  ;;  %v6989_v34 = vld [vmem:[%s8372_s29 + $0xdd8] sm:$0xf0] }
 0x230   : > { %4801 = vmatpush.bf16.msra.mxu0 %v6176_v2  ;;  %v6256_v2 = vor.u32 %v7912_v55, %v6253_v42  ;;  %v8096_v24 = vld [vmem:[%s8372_s29 + $0xdcc] sm:$0xf]  ;;  %v6717_v44 = vld [vmem:[%s8372_s29 + $0xbb8] sm:$0xf0] }
 0x231   : > { %4814 = vmatpush.bf16.msra.mxu1 %v6304_v4  ;;  %v6384_v4 = vor.u32 %v7944_v56, %v6381_v50  ;;  %v8128_v35 = vld [vmem:[%s8372_s29 + $0xecc] sm:$0xf]  ;;  %v6845_v46 = vld [vmem:[%s8372_s29 + $0xcb8] sm:$0xf0] }
 0x232   : > { %4827 = vmatpush.bf16.msra.mxu2 %v6432_v5  ;;  %4840 = vmatpush.bf16.msra.mxu3 %v6560_v10  ;;  %v8132_v5 = vld [vmem:[%s8372_s29 + $0xeec] sm:$0xf]  ;;  %v6880_v10 = vor.u32 %v8068_v62, %v6877_v9  ;;  %v6973_v47 = vld [vmem:[%s8372_s29 + $0xdb8] sm:$0xf0] }
 0x233   : > { %v7136_v16 = vor.u32 %v8132_v5, %v7133_v6  ;;  %v8028_v41 = vld [vmem:[%s8372_s29 + $0xbac] sm:$0xf]  ;;  %v7101_v39 = vld [vmem:[%s8372_s29 + $0xeb8] sm:$0xf0] }
 0x234   : > { %4802 = vmatpush.bf16.msra.mxu0 %v6160_v27  ;;  %v7117_v27 = vld [vmem:[%s8372_s29 + $0xed8] sm:$0xf0]  ;;  %v8060_v22 = vld [vmem:[%s8372_s29 + $0xcac] sm:$0xf] }
 0x235   : > { %4815 = vmatpush.bf16.msra.mxu1 %v6288_v40  ;;  %v6864_v40 = vor.u32 %v8064_v14, %v6861_v21  ;;  %v8092_v23 = vld [vmem:[%s8372_s29 + $0xdac] sm:$0xf]  ;;  %v6957_v42 = vld [vmem:[%s8372_s29 + $0xd98] sm:$0xf0] }
 0x236   : > { %4828 = vmatpush.bf16.msra.mxu2 %v6416_v28  ;;  %4841 = vmatpush.bf16.msra.mxu3 %v6544_v45  ;;  %v6992_v28 = vor.u32 %v8096_v24, %v6989_v34  ;;  %v7120_v45 = vor.u32 %v8128_v35, %v7117_v27  ;;  %v8124_v33 = vld [vmem:[%s8372_s29 + $0xeac] sm:$0xf]  ;;  %v6976_v51 = vor.u32 %v8092_v23, %v6973_v47  ;;  %v6685_v62 = vld [vmem:[%s8372_s29 + $0xb78] sm:$0xf0] }
 0x237   : > { %v8024_v52 = vld [vmem:[%s8372_s29 + $0xb8c] sm:$0xf]  ;;  %v6813_v3 = vld [vmem:[%s8372_s29 + $0xc78] sm:$0xf0] }
 0x238   : > { %4803 = vmatpush.bf16.msra.mxu0 %v6144_v49  ;;  %v6848_v49 = vor.u32 %v8060_v22, %v6845_v46  ;;  %v8088_v55 = vld [vmem:[%s8372_s29 + $0xd8c] sm:$0xf]  ;;  %v6797_v14 = vld [vmem:[%s8372_s29 + $0xc58] sm:$0xf0] }
 0x239   : > { %4816 = vmatpush.bf16.msra.mxu1 %v6272_v53  ;;  %v6701_v53 = vld [vmem:[%s8372_s29 + $0xb98] sm:$0xf0]  ;;  %v8120_v56 = vld [vmem:[%s8372_s29 + $0xe8c] sm:$0xf]  ;;  %v6960_v61 = vor.u32 %v8088_v55, %v6957_v42 }
 0x23a   : > { %4829 = vmatpush.bf16.msra.mxu2 %v6400_v54  ;;  %4842 = vmatpush.bf16.msra.mxu3 %v6528_v57  ;;  %v6829_v54 = vld [vmem:[%s8372_s29 + $0xc98] sm:$0xf0]  ;;  %v6704_v58 = vor.u32 %v8024_v52, %v6701_v53  ;;  %v8020_v59 = vld [vmem:[%s8372_s29 + $0xb6c] sm:$0xf] }
 0x23b   : > { %v7085_v57 = vld [vmem:[%s8372_s29 + $0xe98] sm:$0xf0]  ;;  %v8052_v63 = vld [vmem:[%s8372_s29 + $0xc6c] sm:$0xf]  ;;  %v6688_v5 = vor.u32 %v8020_v59, %v6685_v62 }
 0x23c   : > { %4804 = vmatpush.bf16.msra.mxu0 %v6128_v0  ;;  %v7088_v0 = vor.u32 %v8120_v56, %v7085_v57  ;;  %v8084_v1 = vld [vmem:[%s8372_s29 + $0xd6c] sm:$0xf]  ;;  %v6816_v6 = vor.u32 %v8052_v63, %v6813_v3  ;;  %v6925_v21 = vld [vmem:[%s8372_s29 + $0xd58] sm:$0xf0] }
 0x23d   : > { %4817 = vmatpush.bf16.msra.mxu1 %v6256_v2  ;;  %v4611_v15 = vpop.f32.mrf.mxu1  ;;  %v8116_v2 = vld [vmem:[%s8372_s29 + $0xe6c] sm:$0xf]  ;;  %v7053_v27 = vld [vmem:[%s8372_s29 + $0xe58] sm:$0xf0] }
 0x23e   : > { %4830 = vmatpush.bf16.msra.mxu2 %v6384_v4  ;;  %4843 = vmatpush.bf16.msra.mxu3 %v6512_v7  ;;  %v7069_v4 = vld [vmem:[%s8372_s29 + $0xe78] sm:$0xf0]  ;;  %v8112_v35 = vld [vmem:[%s8372_s29 + $0xe4c] sm:$0xf] }
 0x23f   : > { %4805 = vmatmul.bf16.vlgmr.msra.gmra.mxu0 %v8539_v43  ;;  %v6720_v43 = vor.u32 %v8028_v41, %v6717_v44  ;;  %v7072_v12 = vor.u32 %v8116_v2, %v7069_v4  ;;  %v6653_v46 = vld [vmem:[%s8372_s29 + $0xb38] sm:$0xf0]  ;;  %v8044_v23 = vld [vmem:[%s8372_s29 + $0xc2c] sm:$0xf]  ;;  %v7056_v47 = vor.u32 %v8112_v35, %v7053_v27 }
 0x240   : > { %4849 = vmatpush.bf16.msrb.mxu0 %v6752_v8  ;;  %4818 = vmatmul.bf16.vlgmr.msra.gmra.mxu1 %v8617_v25  ;;  %v7104_v25 = vor.u32 %v8124_v33, %v7101_v39  ;;  %v8016_v8 = vld [vmem:[%s8372_s29 + $0xb4c] sm:$0xf]  ;;  %v6781_v33 = vld [vmem:[%s8372_s29 + $0xc38] sm:$0xf0] }
 0x241   : > { %4862 = vmatpush.bf16.msrb.mxu1 %v6880_v10  ;;  %4831 = vmatmul.bf16.vlgmr.msra.gmra.mxu2 %v8628_v32  ;;  %v8056_v32 = vld [vmem:[%s8372_s29 + $0xc8c] sm:$0xf]  ;;  %v6669_v10 = vld [vmem:[%s8372_s29 + $0xb58] sm:$0xf0] }
 0x242   : > { %4875 = vmatpush.bf16.msrb.mxu2 %v7008_v11  ;;  %4888 = vmatpush.bf16.msrb.mxu3 %v7136_v16  ;;  %v6832_v60 = vor.u32 %v8056_v32, %v6829_v54  ;;  %v8048_v11 = vld [vmem:[%s8372_s29 + $0xc4c] sm:$0xf]  ;;  %v6637_v32 = vld [vmem:[%s8372_s29 + $0xb18] sm:$0xf0] }
 0x243   : > { %4844 = vmatmul.bf16.vlgmr.msra.gmra.mxu3 %v8624_v31  ;;  %v4598_v31 = vpop.f32.mrf.mxu0  ;;  %v8080_v16 = vld [vmem:[%s8372_s29 + $0xd4c] sm:$0xf]  ;;  %v6800_v44 = vor.u32 %v8048_v11, %v6797_v14  ;;  %v6765_v42 = vld [vmem:[%s8372_s29 + $0xc18] sm:$0xf0] }
 0x244   : > { %4850 = vmatpush.bf16.msrb.mxu0 %v6736_v37  ;;  %v4599_v50 = vadd.f32 %v4598_v31, %v9606_v19  ;;  %v6941_v19 = vld [vmem:[%s8372_s29 + $0xd78] sm:$0xf0]  ;;  %v4624_v13 = vpop.f32.mrf.mxu2  ;;  %v6928_v22 = vor.u32 %v8080_v16, %v6925_v21  ;;  %v8076_v39 = vld [vmem:[%s8372_s29 + $0xd2c] sm:$0xf] }
 0x245   : > { %4863 = vmatpush.bf16.msrb.mxu1 %v6864_v40  ;;  %v6944_v7 = vor.u32 %v8084_v1, %v6941_v19  ;;  %v6672_v40 = vor.u32 %v8016_v8, %v6669_v10  ;;  %v8008_v53 = vld [vmem:[%s8372_s29 + $0xb0c] sm:$0xf]  ;;  %v6893_v57 = vld [vmem:[%s8372_s29 + $0xd18] sm:$0xf0] }
 0x246   : > { %4876 = vmatpush.bf16.msrb.mxu2 %v6992_v28  ;;  %4889 = vmatpush.bf16.msrb.mxu3 %v7120_v45  ;;  %v4612_v9 = vadd.f32 %v4611_v15, %v4599_v50  ;;  %v4637_v34 = vpop.f32.mrf.mxu3  ;;  %v4613_v28 = vpop.f32.mrf.mxu1  ;;  %v8012_v45 = vld [vmem:[%s8372_s29 + $0xb2c] sm:$0xf]  ;;  %v6640_v63 = vor.u32 %v8008_v53, %v6637_v32  ;;  %v7517_v3 = vld [vmem:[%s8372_s29 + $0x11f8] sm:$0xf0] }
 0x247   : > { %v6656_v52 = vor.u32 %v8012_v45, %v6653_v46  ;;  %v8040_v55 = vld [vmem:[%s8372_s29 + $0xc0c] sm:$0xf]  ;;  %v7645_v4 = vld [vmem:[%s8372_s29 + $0x12f8] sm:$0xf0] }
 0x248   : > { %4851 = vmatpush.bf16.msrb.mxu0 %v6720_v43  ;;  %v4625_v24 = vadd.f32 %v4624_v13, %v4612_v9  ;;  %v6909_v43 = vld [vmem:[%s8372_s29 + $0xd38] sm:$0xf0]  ;;  %v8072_v31 = vld [vmem:[%s8372_s29 + $0xd0c] sm:$0xf]  ;;  %v6768_v1 = vor.u32 %v8040_v55, %v6765_v42 }
 0x249   : > { %4864 = vmatpush.bf16.msrb.mxu1 %v6848_v49  ;;  %v8108_v49 = vld [vmem:[%s8372_s29 + $0xe2c] sm:$0xf]  ;;  %v6912_v54 = vor.u32 %v8076_v39, %v6909_v43  ;;  %v6896_v19 = vor.u32 %v8072_v31, %v6893_v57  ;;  %v7245_v11 = vld [vmem:[%s8372_s29 + $0xfd8] sm:$0xf0] }
 0x24a   : > { %4877 = vmatpush.bf16.msrb.mxu2 %v6976_v51  ;;  %4890 = vmatpush.bf16.msrb.mxu3 %v7104_v25  ;;  %v9677_v41 = vadd.f32 %v4637_v34, %v4625_v24  ;;  %v7037_v51 = vld [vmem:[%s8372_s29 + $0xe38] sm:$0xf0]  ;;  %v6784_v25 = vor.u32 %v8044_v23, %v6781_v33  ;;  %v8104_v50 = vld [vmem:[%s8372_s29 + $0xe0c] sm:$0xf] }
 0x24b   : > { %v4600_v37 = vpop.f32.mrf.mxu0  ;;  %v7040_v56 = vor.u32 %v8108_v49, %v7037_v51  ;;  %v8196_v59 = vld [vmem:[%s8372_s29 + $0x10ec] sm:$0xf]  ;;  %v7373_v14 = vld [vmem:[%s8372_s29 + $0x10d8] sm:$0xf0] }
 0x24c   : > { %4852 = vmatpush.bf16.msrb.mxu0 %v6704_v58  ;;  %v7021_v58 = vld [vmem:[%s8372_s29 + $0xe18] sm:$0xf0]  ;;  %v4626_v15 = vpop.f32.mrf.mxu2  ;;  %v8228_v9 = vld [vmem:[%s8372_s29 + $0x11ec] sm:$0xf] }
 0x24d   : > { %4865 = vmatpush.bf16.msrb.mxu1 %v6832_v60  ;;  %v8164_v60 = vld [vmem:[%s8372_s29 + $0xfec] sm:$0xf]  ;;  %v7520_v8 = vor.u32 %v8228_v9, %v7517_v3  ;;  %v7501_v21 = vld [vmem:[%s8372_s29 + $0x11d8] sm:$0xf0] }
 0x24e   : > { %4878 = vmatpush.bf16.msrb.mxu2 %v6960_v61  ;;  %4891 = vmatpush.bf16.msrb.mxu3 %v7088_v0  ;;  %v7261_v61 = vld [vmem:[%s8372_s29 + $0xff8] sm:$0xf0]  ;;  %v4639_v62 = vpop.f32.mrf.mxu3  ;;  %v8260_v2 = vld [vmem:[%s8372_s29 + $0x12ec] sm:$0xf] }
 0x24f   : > { %v7389_v0 = vld [vmem:[%s8372_s29 + $0x10f8] sm:$0xf0]  ;;  %v8160_v10 = vld [vmem:[%s8372_s29 + $0xfcc] sm:$0xf]  ;;  %v7648_v13 = vor.u32 %v8260_v2, %v7645_v4 }
 0x250   : > { %4853 = vmatpush.bf16.msrb.mxu0 %v6688_v5  ;;  %v7024_v5 = vor.u32 %v8104_v50, %v7021_v58  ;;  %v8224_v16 = vld [vmem:[%s8372_s29 + $0x11cc] sm:$0xf]  ;;  %v7629_v34 = vld [vmem:[%s8372_s29 + $0x12d8] sm:$0xf0]  ;;  %v7248_v35 = vor.u32 %v8160_v10, %v7245_v11 }
 0x251   : > { %4866 = vmatpush.bf16.msrb.mxu1 %v6816_v6  ;;  %v7264_v6 = vor.u32 %v8164_v60, %v7261_v61  ;;  %v8256_v24 = vld [vmem:[%s8372_s29 + $0x12cc] sm:$0xf]  ;;  %v7504_v37 = vor.u32 %v8224_v16, %v7501_v21  ;;  %v7229_v28 = vld [vmem:[%s8372_s29 + $0xfb8] sm:$0xf0] }
 0x252   : > { %4879 = vmatpush.bf16.msrb.mxu2 %v6944_v7  ;;  %4892 = vmatpush.bf16.msrb.mxu3 %v7072_v12  ;;  %v7392_v7 = vor.u32 %v8196_v59, %v7389_v0  ;;  %v8192_v12 = vld [vmem:[%s8372_s29 + $0x10cc] sm:$0xf]  ;;  %v7357_v45 = vld [vmem:[%s8372_s29 + $0x10b8] sm:$0xf0] }
 0x253   : > { %v7376_v27 = vor.u32 %v8192_v12, %v7373_v14  ;;  %v8220_v46 = vld [vmem:[%s8372_s29 + $0x11ac] sm:$0xf]  ;;  %v7485_v23 = vld [vmem:[%s8372_s29 + $0x11b8] sm:$0xf0] }
 0x254   : > { %4854 = vmatpush.bf16.msrb.mxu0 %v6672_v40  ;;  %v8156_v40 = vld [vmem:[%s8372_s29 + $0xfac] sm:$0xf]  ;;  %v7613_v33 = vld [vmem:[%s8372_s29 + $0x12b8] sm:$0xf0]  ;;  %v7488_v43 = vor.u32 %v8220_v46, %v7485_v23 }
 0x255   : > { %4867 = vmatpush.bf16.msrb.mxu1 %v6800_v44  ;;  %v8188_v44 = vld [vmem:[%s8372_s29 + $0x10ac] sm:$0xf]  ;;  %v7213_v51 = vld [vmem:[%s8372_s29 + $0xf98] sm:$0xf0] }
 0x256   : > { %4880 = vmatpush.bf16.msrb.mxu2 %v6928_v22  ;;  %4893 = vmatpush.bf16.msrb.mxu3 %v7056_v47  ;;  %v7632_v22 = vor.u32 %v8256_v24, %v7629_v34  ;;  %v8252_v47 = vld [vmem:[%s8372_s29 + $0x12ac] sm:$0xf]  ;;  %v7360_v39 = vor.u32 %v8188_v44, %v7357_v45  ;;  %v7469_v32 = vld [vmem:[%s8372_s29 + $0x1198] sm:$0xf0] }
 0x257   : > { %v8152_v49 = vld [vmem:[%s8372_s29 + $0xf8c] sm:$0xf]  ;;  %v7197_v58 = vld [vmem:[%s8372_s29 + $0xf78] sm:$0xf0] }
 0x258   : > { %4855 = vmatpush.bf16.msrb.mxu0 %v6656_v52  ;;  %v7341_v52 = vld [vmem:[%s8372_s29 + $0x1098] sm:$0xf0]  ;;  %v8216_v53 = vld [vmem:[%s8372_s29 + $0x118c] sm:$0xf]  ;;  %v7216_v42 = vor.u32 %v8152_v49, %v7213_v51 }
 0x259   : > { %4868 = vmatpush.bf16.msrb.mxu1 %v6784_v25  ;;  %v8248_v25 = vld [vmem:[%s8372_s29 + $0x128c] sm:$0xf]  ;;  %v7472_v57 = vor.u32 %v8216_v53, %v7469_v32  ;;  %v7325_v59 = vld [vmem:[%s8372_s29 + $0x1078] sm:$0xf0] }
 0x25a   : > { %4881 = vmatpush.bf16.msrb.mxu2 %v6912_v54  ;;  %4894 = vmatpush.bf16.msrb.mxu3 %v7040_v56  ;;  %v7597_v54 = vld [vmem:[%s8372_s29 + $0x1298] sm:$0xf0]  ;;  %v8148_v50 = vld [vmem:[%s8372_s29 + $0xf6c] sm:$0xf] }
 0x25b   : > { %v8180_v15 = vld [vmem:[%s8372_s29 + $0x106c] sm:$0xf]  ;;  %v7600_v60 = vor.u32 %v8248_v25, %v7597_v54  ;;  %v7581_v0 = vld [vmem:[%s8372_s29 + $0x1278] sm:$0xf0]  ;;  %v7200_v9 = vor.u32 %v8148_v50, %v7197_v58 }
 0x25c   : > { %4856 = vmatpush.bf16.msrb.mxu0 %v6640_v63  ;;  %v8212_v62 = vld [vmem:[%s8372_s29 + $0x116c] sm:$0xf]  ;;  %v7328_v3 = vor.u32 %v8180_v15, %v7325_v59  ;;  %v7181_v2 = vld [vmem:[%s8372_s29 + $0xf58] sm:$0xf0] }
 0x25d   : > { %4869 = vmatpush.bf16.msrb.mxu1 %v6768_v1  ;;  %v4663_v31 = vpop.f32.mrf.mxu1  ;;  %v8244_v63 = vld [vmem:[%s8372_s29 + $0x126c] sm:$0xf]  ;;  %v7437_v10 = vld [vmem:[%s8372_s29 + $0x1158] sm:$0xf0] }
 0x25e   : > { %4882 = vmatpush.bf16.msrb.mxu2 %v6896_v19  ;;  %4895 = vmatpush.bf16.msrb.mxu3 %v7024_v5  ;;  %v8144_v19 = vld [vmem:[%s8372_s29 + $0xf4c] sm:$0xf]  ;;  %v7584_v5 = vor.u32 %v8244_v63, %v7581_v0  ;;  %v7565_v14 = vld [vmem:[%s8372_s29 + $0x1258] sm:$0xf0] }
 0x25f   : > { %4857 = vmatmul.bf16.vlgmr.msrb.gmra.mxu0 %v8634_v36  ;;  %v7232_v36 = vor.u32 %v8156_v40, %v7229_v28  ;;  %v8176_v4 = vld [vmem:[%s8372_s29 + $0x104c] sm:$0xf]  ;;  %v7184_v21 = vor.u32 %v8144_v19, %v7181_v2  ;;  %v7165_v40 = vld [vmem:[%s8372_s29 + $0xf38] sm:$0xf0] }
 0x260   : > { %4901 = vmatpush.bf16.msra.mxu0 %v7264_v6  ;;  %4870 = vmatmul.bf16.vlgmr.msrb.gmra.mxu1 %v8699_v18  ;;  %v7616_v18 = vor.u32 %v8252_v47, %v7613_v33  ;;  %v8172_v28 = vld [vmem:[%s8372_s29 + $0x102c] sm:$0xf]  ;;  %v7421_v46 = vld [vmem:[%s8372_s29 + $0x1138] sm:$0xf0] }
 0x261   : > { %4914 = vmatpush.bf16.msra.mxu1 %v7392_v7  ;;  %4883 = vmatmul.bf16.vlgmr.msrb.gmra.mxu2 %v8706_v29  ;;  %v8184_v29 = vld [vmem:[%s8372_s29 + $0x108c] sm:$0xf]  ;;  %v7309_v7 = vld [vmem:[%s8372_s29 + $0x1058] sm:$0xf0] }
 0x262   : > { %4927 = vmatpush.bf16.msra.mxu2 %v7520_v8  ;;  %4940 = vmatpush.bf16.msra.mxu3 %v7648_v13  ;;  %v7344_v56 = vor.u32 %v8184_v29, %v7341_v52  ;;  %v8208_v8 = vld [vmem:[%s8372_s29 + $0x114c] sm:$0xf]  ;;  %v7549_v47 = vld [vmem:[%s8372_s29 + $0x1238] sm:$0xf0] }
 0x263   : > { %4896 = vmatmul.bf16.vlgmr.msrb.gmra.mxu3 %v8704_v26  ;;  %v4650_v26 = vpop.f32.mrf.mxu0  ;;  %v8240_v13 = vld [vmem:[%s8372_s29 + $0x124c] sm:$0xf]  ;;  %v7149_v49 = vld [vmem:[%s8372_s29 + $0xf18] sm:$0xf0] }
 0x264   : > { %4902 = vmatpush.bf16.msra.mxu0 %v7248_v35  ;;  %v4651_v55 = vadd.f32 %v4650_v26, %v9677_v41  ;;  %v7453_v41 = vld [vmem:[%s8372_s29 + $0x1178] sm:$0xf0]  ;;  %v4676_v6 = vpop.f32.mrf.mxu2  ;;  %v7312_v35 = vor.u32 %v8176_v4, %v7309_v7  ;;  %v7568_v44 = vor.u32 %v8240_v13, %v7565_v14  ;;  %v8204_v45 = vld [vmem:[%s8372_s29 + $0x112c] sm:$0xf] }
 0x265   : > { %4915 = vmatpush.bf16.msra.mxu1 %v7376_v27  ;;  %v7456_v1 = vor.u32 %v8212_v62, %v7453_v41  ;;  %v4665_v24 = vpop.f32.mrf.mxu1  ;;  %v7440_v27 = vor.u32 %v8208_v8, %v7437_v10  ;;  %v8236_v23 = vld [vmem:[%s8372_s29 + $0x122c] sm:$0xf]  ;;  %v7405_v53 = vld [vmem:[%s8372_s29 + $0x1118] sm:$0xf0] }
 0x266   : > { %4928 = vmatpush.bf16.msra.mxu2 %v7504_v37  ;;  %4941 = vmatpush.bf16.msra.mxu3 %v7632_v22  ;;  %v4664_v61 = vadd.f32 %v4663_v31, %v4651_v55  ;;  %v4689_v12 = vpop.f32.mrf.mxu3  ;;  %v8140_v37 = vld [vmem:[%s8372_s29 + $0xf2c] sm:$0xf]  ;;  %v7293_v22 = vld [vmem:[%s8372_s29 + $0x1038] sm:$0xf0]  ;;  %v7552_v29 = vor.u32 %v8236_v23, %v7549_v47 }
 0x267   : > { %v7168_v33 = vor.u32 %v8140_v37, %v7165_v40  ;;  %v8168_v51 = vld [vmem:[%s8372_s29 + $0x100c] sm:$0xf]  ;;  %v7533_v25 = vld [vmem:[%s8372_s29 + $0x1218] sm:$0xf0] }
 0x268   : > { %4903 = vmatpush.bf16.msra.mxu0 %v7232_v36  ;;  %v4677_v11 = vadd.f32 %v4676_v6, %v4664_v61  ;;  %v7296_v36 = vor.u32 %v8172_v28, %v7293_v22  ;;  %v8200_v52 = vld [vmem:[%s8372_s29 + $0x110c] sm:$0xf] }
 0x269   : > { %4916 = vmatpush.bf16.msra.mxu1 %v7360_v39  ;;  %v7424_v39 = vor.u32 %v8204_v45, %v7421_v46  ;;  %v8232_v26 = vld [vmem:[%s8372_s29 + $0x120c] sm:$0xf]  ;;  %v7408_v31 = vor.u32 %v8200_v52, %v7405_v53 }
 0x26a   : > { %4929 = vmatpush.bf16.msra.mxu2 %v7488_v43  ;;  %4942 = vmatpush.bf16.msra.mxu3 %v7616_v18  ;;  %v4690_v34 = vadd.f32 %v4689_v12, %v4677_v11  ;;  %v8136_v43 = vld [vmem:[%s8372_s29 + $0xf0c] sm:$0xf]  ;;  %v7277_v18 = vld [vmem:[%s8372_s29 + $0x1018] sm:$0xf0] }
 0x26b   : > { %v4652_v16 = vpop.f32.mrf.mxu0  ;;  %v7152_v55 = vor.u32 %v8136_v43, %v7149_v49 }
 0x26c   : > { %4904 = vmatpush.bf16.msra.mxu0 %v7216_v42  ;;  %v4678_v32 = vpop.f32.mrf.mxu2  ;;  %v7280_v42 = vor.u32 %v8168_v51, %v7277_v18 }
 0x26d   : > { %4917 = vmatpush.bf16.msra.mxu1 %v7344_v56  ;;  %v7536_v56 = vor.u32 %v8232_v26, %v7533_v25 }
 0x26e   : > { %4930 = vmatpush.bf16.msra.mxu2 %v7472_v57  ;;  %4943 = vmatpush.bf16.msra.mxu3 %v7600_v60  ;;  %v4691_v54 = vpop.f32.mrf.mxu3 }
 0x270   : > { %4905 = vmatpush.bf16.msra.mxu0 %v7200_v9 }
 0x271   : > { %4918 = vmatpush.bf16.msra.mxu1 %v7328_v3 }
 0x272   : > { %4931 = vmatpush.bf16.msra.mxu2 %v7456_v1  ;;  %4944 = vmatpush.bf16.msra.mxu3 %v7584_v5 }
 0x274   : > { %4906 = vmatpush.bf16.msra.mxu0 %v7184_v21 }
 0x275   : > { %4919 = vmatpush.bf16.msra.mxu1 %v7312_v35 }
 0x276   : > { %4932 = vmatpush.bf16.msra.mxu2 %v7440_v27  ;;  %4945 = vmatpush.bf16.msra.mxu3 %v7568_v44 }
 0x278   : > { %4907 = vmatpush.bf16.msra.mxu0 %v7168_v33 }
 0x279   : > { %4920 = vmatpush.bf16.msra.mxu1 %v7296_v36 }
 0x27a   : > { %4933 = vmatpush.bf16.msra.mxu2 %v7424_v39  ;;  %4946 = vmatpush.bf16.msra.mxu3 %v7552_v29 }
 0x27c   : > { %4908 = vmatpush.bf16.msra.mxu0 %v7152_v55  ;;  %v4702_v57 = vpop.f32.mrf.mxu0  ;;  %v243_v55 = vld [vmem:[#allocation2] sm:$0xff] }
 0x27d   : > { %4921 = vmatpush.bf16.msra.mxu1 %v7280_v42  ;;  %v9768_v50 = vadd.f32 %v4702_v57, %v4690_v34  ;;  %v4715_v58 = vpop.f32.mrf.mxu1 }
 0x27e   : > { %4934 = vmatpush.bf16.msra.mxu2 %v7408_v31  ;;  %4947 = vmatpush.bf16.msra.mxu3 %v7536_v56 }
 0x27f   : > { %4909 = vmatmul.bf16.vlgmr.msra.gmra.mxu0 %v8710_v17  ;;  %v4958_v25 = vrot.slane %v9768_v50, 4 }
 0x280   : > { %4922 = vmatmul.bf16.vlgmr.msra.gmra.mxu1 %v8775_v30 }
 0x281   : > { %4935 = vmatmul.bf16.vlgmr.msra.gmra.mxu2 %v8782_v20  ;;  %4948 = vmatmul.bf16.vlgmr.msra.gmra.mxu3 %v8780_v38 }
 0x284   : > { %v4728_v15 = vpop.f32.mrf.mxu2  ;;  %v4704_v59 = vpop.f32.mrf.mxu0 }
 0x285   : > { %v4729_v61 = vadd.f32 %v4728_v15, %v4715_v58  ;;  %v4717_v41 = vpop.f32.mrf.mxu1 }
 0x286   : > { %v4741_v60 = vpop.f32.mrf.mxu3 }
 0x287   : > { %v4742_v62 = vadd.f32 %v4741_v60, %v4729_v61 }
 0x28c   : > { %v4730_v63 = vpop.f32.mrf.mxu2 }
 0x28e   : > { %v4743_v0 = vpop.f32.mrf.mxu3 }
 0x29c   : > { %v4754_v9 = vpop.f32.mrf.mxu0 }
 0x29d   : > { %v4755_v17 = vadd.f32 %v4754_v9, %v4742_v62  ;;  %v4767_v3 = vpop.f32.mrf.mxu1 }
 0x29f   : > { %v4768_v30 = vadd.f32 %v4767_v3, %v4755_v17 }
 0x2a4   : > { %v4780_v1 = vpop.f32.mrf.mxu2  ;;  %v4756_v2 = vpop.f32.mrf.mxu0 }
 0x2a5   : > { %v4781_v20 = vadd.f32 %v4780_v1, %v4768_v30  ;;  %v4769_v4 = vpop.f32.mrf.mxu1 }
 0x2a6   : > { %v4793_v19 = vpop.f32.mrf.mxu3 }
 0x2a7   : > { %v4794_v38 = vadd.f32 %v4793_v19, %v4781_v20 }
 0x2ac   : > { %v4782_v5 = vpop.f32.mrf.mxu2 }
 0x2ae   : > { %v4795_v6 = vpop.f32.mrf.mxu3 }
 0x2bc   : > { %v4806_v7 = vpop.f32.mrf.mxu0 }
 0x2bd   : > { %v4819_v8 = vpop.f32.mrf.mxu1  ;;  %v4807_v34 = vadd.f32 %v4806_v7, %v4794_v38 }
 0x2bf   : > { %v4820_v28 = vadd.f32 %v4819_v8, %v4807_v34 }
 0x2c4   : > { %v4832_v10 = vpop.f32.mrf.mxu2  ;;  %v4808_v12 = vpop.f32.mrf.mxu0 }
 0x2c5   : > { %v4821_v13 = vpop.f32.mrf.mxu1  ;;  %v4833_v44 = vadd.f32 %v4832_v10, %v4820_v28 }
 0x2c6   : > { %v4845_v11 = vpop.f32.mrf.mxu3 }
 0x2c7   : > { %v4846_v46 = vadd.f32 %v4845_v11, %v4833_v44 }
 0x2cc   : > { %v4834_v14 = vpop.f32.mrf.mxu2 }
 0x2ce   : > { %v4847_v16 = vpop.f32.mrf.mxu3 }
 0x2dc   : > { %v4858_v21 = vpop.f32.mrf.mxu0 }
 0x2dd   : > { %v4871_v24 = vpop.f32.mrf.mxu1  ;;  %v4859_v23 = vadd.f32 %v4858_v21, %v4846_v46 }
 0x2df   : > { %v4872_v47 = vadd.f32 %v4871_v24, %v4859_v23 }
 0x2e4   : > { %v4884_v35 = vpop.f32.mrf.mxu2  ;;  %v4860_v37 = vpop.f32.mrf.mxu0 }
 0x2e5   : > { %v4873_v40 = vpop.f32.mrf.mxu1  ;;  %v4885_v33 = vadd.f32 %v4884_v35, %v4872_v47 }
 0x2e6   : > { %v4897_v27 = vpop.f32.mrf.mxu3 }
 0x2e7   : > { %v4898_v36 = vadd.f32 %v4897_v27, %v4885_v33 }
 0x2ec   : > { %v4886_v22 = vpop.f32.mrf.mxu2 }
 0x2ee   : > { %v4899_v45 = vpop.f32.mrf.mxu3 }
 0x2fc   : > { %v4910_v39 = vpop.f32.mrf.mxu0 }
 0x2fd   : > { %v4923_v43 = vpop.f32.mrf.mxu1  ;;  %v4911_v49 = vadd.f32 %v4910_v39, %v4898_v36 }
 0x2ff   : > { %v4924_v51 = vadd.f32 %v4923_v43, %v4911_v49 }
 0x304   : > { %v4936_v29 = vpop.f32.mrf.mxu2  ;;  %v4949_v52 = vpop.f32.mrf.mxu3 }
 0x305   : > { %v4937_v18 = vadd.f32 %v4936_v29, %v4924_v51  ;;  %v4912_v53 = vpop.f32.mrf.mxu0  ;;  %v4925_v32 = vpop.f32.mrf.mxu1 }
 0x307   : > { %v4950_v26 = vadd.f32 %v4949_v52, %v4937_v18 }
 0x309   : > { %v4959_v54 = vrot.slane %v4950_v26, 2 }
 0x30b   : > { %v4963_v42 = vsel %vm4962_vm1, %v4958_v25, %v4959_v54  ;;  %4972 = sbr.rel (%p7649_p6) target bundleno = 955 (0x3bb), region = 48 }
 0x30c   : > { %v4965_v31 = vsel %vm4964_vm2, %v9457_v48, %v4963_v42  ;;  %v4938_v56 = vpop.f32.mrf.mxu2  ;;  %v4951_v58 = vpop.f32.mrf.mxu3 }
 0x30d   : > { %v4967_v57 = vadd.f32 %v4965_v31, %v243_v55 }
 0x30f   : > { %4968 = vst [vmem:[#allocation2] sm:$0xff] %v4967_v57 }
 0x310   : > { %v5036_v15 = vld [vmem:[%s9986_s3 + $0x178] sm:$0xff]  ;;  %v5035_v60 = vld [vmem:[%s9986_s3 + $0x170] sm:$0xff]  ;;  %v5034_v62 = vld [vmem:[%s9986_s3 + $0x168] sm:$0xff]  ;;  %vm5147_vm3 = vcmask 41984  }
 0x311   : > { %v5004_v50 = vld [vmem:[%s9986_s3 + $0x78] sm:$0xff]  ;;  %5107 = vmatpush.msra.mxu2 %v5036_v15  ;;  %v5003_v61 = vld [vmem:[%s9986_s3 + $0x70] sm:$0xff]  ;;  %v5002_v63 = vld [vmem:[%s9986_s3 + $0x68] sm:$0xff] }
 0x312   : > { %5067 = vmatpush.msra.mxu0 %v5004_v50  ;;  %v5052_v48 = vld [vmem:[%s9986_s3 + $0x1f8] sm:$0xff]  ;;  %v5051_v41 = vld [vmem:[%s9986_s3 + $0x1f0] sm:$0xff]  ;;  %v5050_v9 = vld [vmem:[%s9986_s3 + $0x1e8] sm:$0xff] }
 0x313   : > { %v5020_v59 = vld [vmem:[%s9986_s3 + $0xf8] sm:$0xff]  ;;  %5127 = vmatpush.msra.mxu3 %v5052_v48  ;;  %5108 = vmatpush.msra.mxu2 %v5035_v60  ;;  %v5019_v0 = vld [vmem:[%s9986_s3 + $0xf0] sm:$0xff]  ;;  %v5033_v17 = vld [vmem:[%s9986_s3 + $0x160] sm:$0xff] }
 0x314   : > { %5087 = vmatpush.msra.mxu1 %v5020_v59  ;;  %5068 = vmatpush.msra.mxu0 %v5003_v61  ;;  %v5001_v3 = vld [vmem:[%s9986_s3 + $0x60] sm:$0xff]  ;;  %v5018_v30 = vld [vmem:[%s9986_s3 + $0xe8] sm:$0xff]  ;;  %v5032_v19 = vld [vmem:[%s9986_s3 + $0x158] sm:$0xff] }
 0x315   : > { %5128 = vmatpush.msra.mxu3 %v5051_v41  ;;  %5109 = vmatpush.msra.mxu2 %v5034_v62  ;;  %v5049_v1 = vld [vmem:[%s9986_s3 + $0x1e0] sm:$0xff]  ;;  %v5000_v38 = vld [vmem:[%s9986_s3 + $0x58] sm:$0xff]  ;;  %v5031_v5 = vld [vmem:[%s9986_s3 + $0x150] sm:$0xff] }
 0x316   : > { %5088 = vmatpush.msra.mxu1 %v5019_v0  ;;  %5069 = vmatpush.msra.mxu0 %v5002_v63  ;;  %v5017_v20 = vld [vmem:[%s9986_s3 + $0xe0] sm:$0xff]  ;;  %v5048_v2 = vld [vmem:[%s9986_s3 + $0x1d8] sm:$0xff]  ;;  %v4999_v6 = vld [vmem:[%s9986_s3 + $0x50] sm:$0xff] }
 0x317   : > { %5129 = vmatpush.msra.mxu3 %v5050_v9  ;;  %5110 = vmatpush.msra.mxu2 %v5033_v17  ;;  %v5016_v4 = vld [vmem:[%s9986_s3 + $0xd8] sm:$0xff]  ;;  %v5047_v7 = vld [vmem:[%s9986_s3 + $0x1d0] sm:$0xff]  ;;  %v5030_v10 = vld [vmem:[%s9986_s3 + $0x148] sm:$0xff] }
 0x318   : > { %5089 = vmatpush.msra.mxu1 %v5018_v30  ;;  %5070 = vmatpush.msra.mxu0 %v5001_v3  ;;  %v5015_v8 = vld [vmem:[%s9986_s3 + $0xd0] sm:$0xff]  ;;  %v4998_v11 = vld [vmem:[%s9986_s3 + $0x48] sm:$0xff]  ;;  %v5029_v14 = vld [vmem:[%s9986_s3 + $0x140] sm:$0xff] }
 0x319   : > { %5130 = vmatpush.msra.mxu3 %v5049_v1  ;;  %5111 = vmatpush.msra.mxu2 %v5032_v19  ;;  %v5046_v12 = vld [vmem:[%s9986_s3 + $0x1c8] sm:$0xff]  ;;  %v4997_v16 = vld [vmem:[%s9986_s3 + $0x40] sm:$0xff]  ;;  %v5028_v34 = vld [vmem:[%s9986_s3 + $0x138] sm:$0xff] }
 0x31a   : > { %5090 = vmatpush.msra.mxu1 %v5017_v20  ;;  %5071 = vmatpush.msra.mxu0 %v5000_v38  ;;  %v5014_v13 = vld [vmem:[%s9986_s3 + $0xc8] sm:$0xff]  ;;  %v5045_v21 = vld [vmem:[%s9986_s3 + $0x1c0] sm:$0xff]  ;;  %v4996_v35 = vld [vmem:[%s9986_s3 + $0x38] sm:$0xff] }
 0x31b   : > { %5131 = vmatpush.msra.mxu3 %v5048_v2  ;;  %5112 = vmatpush.msra.mxu2 %v5031_v5  ;;  %v5013_v24 = vld [vmem:[%s9986_s3 + $0xc0] sm:$0xff]  ;;  %v5044_v27 = vld [vmem:[%s9986_s3 + $0x1b8] sm:$0xff]  ;;  %v5027_v40 = vld [vmem:[%s9986_s3 + $0x130] sm:$0xff] }
 0x31c   : > { %5091 = vmatpush.msra.mxu1 %v5016_v4  ;;  %5072 = vmatpush.msra.mxu0 %v4999_v6  ;;  %v5012_v37 = vld [vmem:[%s9986_s3 + $0xb8] sm:$0xff]  ;;  %v4995_v28 = vld [vmem:[%s9986_s3 + $0x30] sm:$0xff]  ;;  %v5026_v45 = vld [vmem:[%s9986_s3 + $0x128] sm:$0xff] }
 0x31d   : > { %5132 = vmatpush.msra.mxu3 %v5047_v7  ;;  %5113 = vmatpush.msra.mxu2 %v5030_v10  ;;  %v5043_v44 = vld [vmem:[%s9986_s3 + $0x1b0] sm:$0xff]  ;;  %v4994_v46 = vld [vmem:[%s9986_s3 + $0x28] sm:$0xff]  ;;  %v5025_v33 = vld [vmem:[%s9986_s3 + $0x120] sm:$0xff] }
 0x31e   : > { %5092 = vmatpush.msra.mxu1 %v5015_v8  ;;  %5073 = vmatpush.msra.mxu0 %v4998_v11  ;;  %v5011_v22 = vld [vmem:[%s9986_s3 + $0xb0] sm:$0xff]  ;;  %v5042_v23 = vld [vmem:[%s9986_s3 + $0x1a8] sm:$0xff]  ;;  %v4993_v36 = vld [vmem:[%s9986_s3 + $0x20] sm:$0xff] }
 0x31f   : > { %5133 = vmatpush.msra.mxu3 %v5046_v12  ;;  %5114 = vmatpush.msra.mxu2 %v5029_v14  ;;  %v5010_v47 = vld [vmem:[%s9986_s3 + $0xa8] sm:$0xff]  ;;  %v4974_v39 = vld [vmem:[%s9985_s2] sm:$0xf]  ;;  %v5024_v53 = vld [vmem:[%s9986_s3 + $0x118] sm:$0xff] }
 0x320   : > { %5093 = vmatpush.msra.mxu1 %v5014_v13  ;;  %5074 = vmatpush.msra.mxu0 %v4997_v16  ;;  %v5041_v43 = vld [vmem:[%s9986_s3 + $0x1a0] sm:$0xff]  ;;  %v4976_v51 = vperm.slane %v4974_v39, 0  ;;  %v4977_v29 = vperm.slane %v4974_v39, 1  ;;  %v4978_v18 = vperm.slane %v4974_v39, 2  ;;  %v4979_v52 = vperm.slane %v4974_v39, 3  ;;  %v4992_v32 = vld [vmem:[%s9986_s3 + $0x18] sm:$0xff] }
 0x321   : > { %5134 = vmatpush.msra.mxu3 %v5045_v21  ;;  %5115 = vmatpush.msra.mxu2 %v5028_v34  ;;  %v5009_v49 = vld [vmem:[%s9986_s3 + $0xa0] sm:$0xff]  ;;  %v5040_v26 = vld [vmem:[%s9986_s3 + $0x198] sm:$0xff]  ;;  %v5023_v31 = vld [vmem:[%s9986_s3 + $0x110] sm:$0xff] }
 0x322   : > { %5094 = vmatpush.msra.mxu1 %v5013_v24  ;;  %5075 = vmatpush.msra.mxu0 %v4996_v35  ;;  %v5008_v25 = vld [vmem:[%s9986_s3 + $0x98] sm:$0xff]  ;;  %v4980_v54 = vrot.slane %v4977_v29, 6  ;;  %v4981_v55 = vrot.slane %v4978_v18, 4  ;;  %v4982_v42 = vrot.slane %v4979_v52, 2  ;;  %v4991_v56 = vld [vmem:[%s9986_s3 + $0x10] sm:$0xff]  ;;  %v4973_v57 = vld [vmem:[#allocation2] sm:$0xff] }
 0x323   : > { %5135 = vmatpush.msra.mxu3 %v5044_v27  ;;  %5116 = vmatpush.msra.mxu2 %v5027_v40  ;;  %v5039_v58 = vld [vmem:[%s9986_s3 + $0x190] sm:$0xff]  ;;  %v5022_v48 = vld [vmem:[%s9986_s3 + $0x108] sm:$0xff]  ;;  %v5021_v0 = vld [vmem:[%s9986_s3 + $0x100] sm:$0xff] }
 0x324   : > { %5095 = vmatpush.msra.mxu1 %v5012_v37  ;;  %5076 = vmatpush.msra.mxu0 %v4995_v28  ;;  %v5007_v15 = vld [vmem:[%s9986_s3 + $0x90] sm:$0xff]  ;;  %v4983_v50 = vsel %vm4960_vm0, %v4976_v51, %v4980_v54  ;;  %v4984_v60 = vsel %vm4962_vm1, %v4981_v55, %v4982_v42  ;;  %v4990_v61 = vld [vmem:[%s9986_s3 + $0x8] sm:$0xff]  ;;  %v4989_v9 = vld [vmem:[%s9986_s3] sm:$0xff] }
 0x325   : > { %5136 = vmatpush.msra.mxu3 %v5043_v44  ;;  %5117 = vmatpush.msra.mxu2 %v5026_v45  ;;  %v4985_v59 = vsel %vm4964_vm2, %v4983_v50, %v4984_v60  ;;  %v5038_v62 = vld [vmem:[%s9986_s3 + $0x188] sm:$0xff]  ;;  %v5037_v3 = vld [vmem:[%s9986_s3 + $0x180] sm:$0xff] }
 0x326   : > { %5096 = vmatpush.msra.mxu1 %v5011_v22  ;;  %5077 = vmatpush.msra.mxu0 %v4994_v46  ;;  %v4987_v41 = vadd.f32 %v4985_v59, %v4973_v57  ;;  %v5006_v63 = vld [vmem:[%s9986_s3 + $0x88] sm:$0xff]  ;;  %v5005_v30 = vld [vmem:[%s9986_s3 + $0x80] sm:$0xff] }
 0x327   : > { %5137 = vmatpush.msra.mxu3 %v5042_v23  ;;  %5118 = vmatpush.msra.mxu2 %v5025_v33  ;;  %v8279_v2 = vld [vmem:[%s9987_s4] ss:$0 sm:$0xff] }
 0x328   : > { %5097 = vmatpush.msra.mxu1 %v5010_v47  ;;  %5078 = vmatpush.msra.mxu0 %v4993_v36  ;;  %v4988_v17 = vmax.f32 %v4987_v41, 0.0 }
 0x329   : > { %5138 = vmatpush.msra.mxu3 %v5041_v43  ;;  %5119 = vmatpush.msra.mxu2 %v5024_v53 }
 0x32a   : > { %5098 = vmatpush.msra.mxu1 %v5009_v49  ;;  %5079 = vmatpush.msra.mxu0 %v4992_v32  ;;  %5058 = vst [vmem:[#allocation1] ss:$4 sm:$0xff] %v4988_v17 }
 0x32b   : > { %5139 = vmatpush.msra.mxu3 %v5040_v26  ;;  %5120 = vmatpush.msra.mxu2 %v5023_v31 }
 0x32c   : > { %5099 = vmatpush.msra.mxu1 %v5008_v25  ;;  %5080 = vmatpush.msra.mxu0 %v4991_v56 }
 0x32d   : > { %5140 = vmatpush.msra.mxu3 %v5039_v58  ;;  %5121 = vmatpush.msra.mxu2 %v5022_v48 }
 0x32e   : > { %5100 = vmatpush.msra.mxu1 %v5007_v15  ;;  %5081 = vmatpush.msra.mxu0 %v4990_v61 }
 0x32f   : > { %5141 = vmatpush.msra.mxu3 %v5038_v62  ;;  %5122 = vmatpush.msra.mxu2 %v5021_v0 }
 0x330   : > { %5101 = vmatpush.msra.mxu1 %v5006_v63  ;;  %5082 = vmatpush.msra.mxu0 %v4989_v9 }
 0x331   : > { %5142 = vmatpush.msra.mxu3 %v5037_v3  ;;  %v5061_v1 = vld.sshfl [vmem:[#allocation1 + $0x10] sm:$0xff pattern:$0x73625140]  ;;  %v5059_v20 = vld.sshfl [vmem:[#allocation1] sm:$0xff pattern:$0x73625140] }
 0x332   : > { %5102 = vmatpush.msra.mxu1 %v5005_v30  ;;  %5123 = vmatmul.f32.vlgmr.msra.gmra.mxu2 %v5061_v1  ;;  %v5062_v19 = vld.sshfl [vmem:[#allocation1 + $0x18] sm:$0xff pattern:$0x73625140]  ;;  %v5060_v38 = vld.sshfl [vmem:[#allocation1 + $0x8] sm:$0xff pattern:$0x73625140] }
 0x333   : > { %5083 = vmatmul.f32.vlgmr.msra.gmra.mxu0 %v5059_v20  ;;  %5143 = vmatmul.f32.vlgmr.msra.gmra.mxu3 %v5062_v19 }
 0x334   : > { %5103 = vmatmul.f32.vlgmr.msra.gmra.mxu1 %v5060_v38 }
 0x3b0   : > { %v5084_v4 = vpop.f32.mrf.mxu0 }
 0x3b1   : > { %v5085_v5 = vadd.f32 %v8279_v2, %v5084_v4  ;;  %v5104_v6 = vpop.f32.mrf.mxu1 }
 0x3b3   : > { %v5105_v7 = vadd.f32 %v5104_v6, %v5085_v5 }
 0x3b5   : > { %v5124_v8 = vpop.f32.mrf.mxu2 }
 0x3b6   : > { %v5125_v10 = vadd.f32 %v5124_v8, %v5105_v7  ;;  %v5144_v11 = vpop.f32.mrf.mxu3 }
 0x3b8   : > { %v5145_v12 = vadd.f32 %v5144_v11, %v5125_v10 }
 0x3ba   : > { %5148 = vst.msk [vmem:[#allocation3] sm:$0x3] %vm5147_vm3, %v5145_v12 }
 0x3bb PF: > { %p8267_p7 = scmp.eq.s32.totalorder %s8358_s19, 7  ;;  %s8321_s24 = smov [#allocation3]  }
 0x3bc   : > { %s5155_s25 = sshll.u32 %s8321_s24, 4  ;;  %s5157_s28 = sshll.u32 %s9988_s5, 4  ;;  %s5156_s25 = int_to_ptr.vmem [resolvable:$true] %s5155_s25  ;;  %s5158_s28 = int_to_ptr.hbm [resolvable:$true] %s5157_s28 }
 0x3bd   : > { %8264 = dma.vmem_to_hbm [thread:$0]  (%p8267_p7), %s5156_s25, 32, %s5158_s28, [#allocation4]  }
 0x3be   : > { %8313 = dma.done.wait (%p8267_p7), [#allocation4], 32  }
 0x3bf   : > { %8315 = vsyncadd (%p8267_p7), [#allocation4], 4294967264 }
 0x3c0 PF: > { %s16_s18 = sadd.s32 1, %s8318_s18  }
 0x3c1   : > { %p13_p8 = scmp.ge.s32.totalorder %s16_s18, 10  }
 0x3c3   :  { %15 = sbr.rel (!%p13_p8) target bundleno = 1 (0x1), region = 79 }
 0x3c8   :  { %5171 = vsyncpa [#allocation4], 1 }
 0x3c9   :  { %5173 = vsyncpa [#allocation4 + $0x1], 1 }

</bundles_post_ra>
